<compile_context>
chip_gen: v7x
topology: tpu7x:2x2x1
jax: 0.10.0
libtpu: 0.0.40
codegen_flags: <defaults>
</compile_context>

<pallas_src>
import math
import numpy as np
import jax
import jax.numpy as jnp
from jax import lax
from jax.experimental import pallas as pl
from jax.experimental.pallas import tpu as pltpu

LANE = 128


def de_simple_kernel(hs_ref, ts_ref, rs_ref, rt_ref, htp_ref, ttp_ref,
                     y_ref, m_ref, d_ref, out_ref):
    # Time values, batch on lanes: [1, TB]; broadcasting along sublanes is free.
    y = y_ref[...]
    m = m_ref[...]
    d = d_ref[...]

    def time_emb(tp_ref):
        # planes: 0..2 = (y,m,d) amps, 3..5 = freqs, 6..8 = phis.
        # Leading-dim ref indexing gives zero-cost lane-dense [2T, TB] views.
        return (tp_ref[0] * jnp.sin(tp_ref[3] * y + tp_ref[6])
                + tp_ref[1] * jnp.sin(tp_ref[4] * m + tp_ref[7])
                + tp_ref[2] * jnp.sin(tp_ref[5] * d + tp_ref[8]))

    h_time = time_emb(htp_ref)                          # [2T, TB]  rows: [h1t ; h2t]
    t_time = time_emb(ttp_ref)                          # [2T, TB]  rows: [t1t ; t2t]

    prod_s = hs_ref[...] * rs_ref[...] * ts_ref[...]    # [2S, TB]  h1s*r1s*t1s ; h2s*r2s*t2s
    prod_t = h_time * rt_ref[...] * t_time              # [2T, TB]  h1t*r1t*t1t ; h2t*r2t*t2t

    # Feature-dim reduction on the MXU; result is already lane-dense [1, TB].
    ones_s = jnp.ones((1, prod_s.shape[0]), jnp.float32)
    ones_t = jnp.ones((1, prod_t.shape[0]), jnp.float32)
    score = (jnp.dot(ones_s, prod_s, preferred_element_type=jnp.float32,
                     precision=lax.Precision.HIGHEST)
             + jnp.dot(ones_t, prod_t, preferred_element_type=jnp.float32,
                       precision=lax.Precision.HIGHEST))
    out_ref[...] = 0.5 * score


def de_simple_forward(params, heads, rels, tails, years, months, days):
    """XLA gathers + feature-major packing, Pallas kernel for the scoring hot path."""
    p = params
    B = heads.shape[0]
    S = p["ent_embs_h"].shape[1]
    T = p["y_amps_h"].shape[1]

    # Batch tiling: lane-dense tiles (multiple of 128), at least 2 grid blocks so
    # pipelining / v7x megacore engage.  ~11 KB per row double-buffered at S=T=32,
    # so TB=512 stays far below the scoped-VMEM limit on v5e/v6e/v7x.
    TB = 512 if B >= 512 else LANE
    num_tiles = max(2, pl.cdiv(B, TB))
    B_pad = num_tiles * TB

    pad_i = lambda x: jnp.pad(x, (0, B_pad - B))
    pad_f = lambda x: jnp.pad(x.astype(jnp.float32), (0, B_pad - B))
    heads_p, tails_p, rels_p = pad_i(heads), pad_i(tails), pad_i(rels)
    y_p, m_p, d_p = pad_f(years), pad_f(months), pad_f(days)

    takeT = lambda tbl, idx: jnp.take(tbl, idx, axis=0).T       # [dim, B_pad]

    hs = jnp.concatenate([takeT(p["ent_embs_h"], heads_p),
                          takeT(p["ent_embs_h"], tails_p)], axis=0)        # [2S, Bp]
    ts = jnp.concatenate([takeT(p["ent_embs_t"], tails_p),
                          takeT(p["ent_embs_t"], heads_p)], axis=0)        # [2S, Bp]
    rf = jnp.take(p["rel_embs_f"], rels_p, axis=0)                         # [Bp, S+T]
    ri = jnp.take(p["rel_embs_i"], rels_p, axis=0)                         # [Bp, S+T]
    rs = jnp.concatenate([rf[:, :S].T, ri[:, :S].T], axis=0)               # [2S, Bp]
    rt = jnp.concatenate([rf[:, S:].T, ri[:, S:].T], axis=0)               # [2T, Bp]

    names9 = ["y_amps", "m_amps", "d_amps",
              "y_freq", "m_freq", "d_freq",
              "y_phi", "m_phi", "d_phi"]
    htp = jnp.stack([jnp.concatenate([takeT(p[f"{n}_h"], heads_p),
                                      takeT(p[f"{n}_h"], tails_p)], axis=0)
                     for n in names9], axis=0)                             # [9, 2T, Bp]
    ttp = jnp.stack([jnp.concatenate([takeT(p[f"{n}_t"], tails_p),
                                      takeT(p[f"{n}_t"], heads_p)], axis=0)
                     for n in names9], axis=0)                             # [9, 2T, Bp]

    yv, mv, dv = y_p[None, :], m_p[None, :], d_p[None, :]                  # [1, Bp]

    S2, T2 = 2 * S, 2 * T
    out = pl.pallas_call(
        de_simple_kernel,
        out_shape=jax.ShapeDtypeStruct((1, B_pad), jnp.float32),
        grid=(num_tiles,),
        in_specs=[
            pl.BlockSpec((S2, TB), lambda i: (0, i)),
            pl.BlockSpec((S2, TB), lambda i: (0, i)),
            pl.BlockSpec((S2, TB), lambda i: (0, i)),
            pl.BlockSpec((T2, TB), lambda i: (0, i)),
            pl.BlockSpec((9, T2, TB), lambda i: (0, 0, i)),
            pl.BlockSpec((9, T2, TB), lambda i: (0, 0, i)),
            pl.BlockSpec((1, TB), lambda i: (0, i)),
            pl.BlockSpec((1, TB), lambda i: (0, i)),
            pl.BlockSpec((1, TB), lambda i: (0, i)),
        ],
        out_specs=pl.BlockSpec((1, TB), lambda i: (0, i)),
        compiler_params=pltpu.CompilerParams(
            dimension_semantics=("parallel",)),
    )(hs, ts, rs, rt, htp, ttp, yv, mv, dv)

    return out[0, :B]                                                      # [B]


def reference_forward(params, heads, rels, tails, years, months, days):
    """Pure-JAX re-implementation of the torch forward for validation."""
    take = lambda tbl, idx: jnp.take(tbl, idx, axis=0)
    y = years[:, None]; m = months[:, None]; d = days[:, None]

    def time_emb(side, e):
        p = params
        return (take(p[f"y_amps_{side}"], e) * jnp.sin(take(p[f"y_freq_{side}"], e) * y + take(p[f"y_phi_{side}"], e))
                + take(p[f"m_amps_{side}"], e) * jnp.sin(take(p[f"m_freq_{side}"], e) * m + take(p[f"m_phi_{side}"], e))
                + take(p[f"d_amps_{side}"], e) * jnp.sin(take(p[f"d_freq_{side}"], e) * d + take(p[f"d_phi_{side}"], e)))

    h1 = jnp.concatenate([take(params["ent_embs_h"], heads), time_emb("h", heads)], axis=1)
    t1 = jnp.concatenate([take(params["ent_embs_t"], tails), time_emb("t", tails)], axis=1)
    h2 = jnp.concatenate([take(params["ent_embs_h"], tails), time_emb("h", tails)], axis=1)
    t2 = jnp.concatenate([take(params["ent_embs_t"], heads), time_emb("t", heads)], axis=1)
    r1 = jnp.take(params["rel_embs_f"], rels, axis=0)
    r2 = jnp.take(params["rel_embs_i"], rels, axis=0)
    scores = (h1 * r1 * t1 + h2 * r2 * t2) / 2.0
    return jnp.sum(scores, axis=1)


def xavier_uniform(key, shape):
    fan_out, fan_in = shape
    limit = math.sqrt(6.0 / (fan_in + fan_out))
    return jax.random.uniform(key, shape, jnp.float32, minval=-limit, maxval=limit)


if __name__ == "__main__":
    # Small, DE_SimplE-consistent shapes.
    NUM_ENT, NUM_REL = 16, 4
    S_DIM, T_DIM = 32, 32       # params.s_emb_dim, params.t_emb_dim
    B = 8                       # batch of (head, rel, tail, y, m, d) facts

    root = jax.random.PRNGKey(0)
    names = (["ent_embs_h", "ent_embs_t", "rel_embs_f", "rel_embs_i"]
             + [f"{pfx}_{s}" for pfx in ["y_freq", "m_freq", "d_freq",
                                         "y_phi", "m_phi", "d_phi",
                                         "y_amps", "m_amps", "d_amps"]
                for s in ["h", "t"]])
    keys = jax.random.split(root, len(names) + 3)

    params = {}
    for name, k in zip(names, keys[:len(names)]):
        if name.startswith("ent_embs"):
            shape = (NUM_ENT, S_DIM)
        elif name.startswith("rel_embs"):
            shape = (NUM_REL, S_DIM + T_DIM)
        else:
            shape = (NUM_ENT, T_DIM)
        params[name] = xavier_uniform(k, shape)

    k_idx, k_rel, k_time = keys[-3], keys[-2], keys[-1]
    heads, tails = jnp.split(jax.random.randint(k_idx, (2 * B,), 0, NUM_ENT, jnp.int32), 2)
    rels = jax.random.randint(k_rel, (B,), 0, NUM_REL, jnp.int32)
    yy, mm, dd = jnp.split(
        jax.random.uniform(k_time, (3 * B,), jnp.float32, minval=0.0, maxval=1.0), 3)

    scores = de_simple_forward(params, heads, rels, tails, yy, mm, dd)
    scores = jax.block_until_ready(scores)

    ref = reference_forward(params, heads, rels, tails, yy, mm, dd)
    np.testing.assert_allclose(np.asarray(scores), np.asarray(ref), rtol=1e-4, atol=1e-5)

    print("KERNEL_OK")
</pallas_src>

<mosaic_0001>
module attributes {stable_mosaic.version = 11 : i64} {
  func.func @de_simple_kernel(%arg0: i32, %arg1: memref<64x128xf32, #tpu.memory_space<vmem>>, %arg2: memref<64x128xf32, #tpu.memory_space<vmem>>, %arg3: memref<64x128xf32, #tpu.memory_space<vmem>>, %arg4: memref<64x128xf32, #tpu.memory_space<vmem>>, %arg5: memref<9x64x128xf32, #tpu.memory_space<vmem>>, %arg6: memref<9x64x128xf32, #tpu.memory_space<vmem>>, %arg7: memref<1x128xf32, #tpu.memory_space<vmem>>, %arg8: memref<1x128xf32, #tpu.memory_space<vmem>>, %arg9: memref<1x128xf32, #tpu.memory_space<vmem>>, %arg10: memref<1x128xf32, #tpu.memory_space<vmem>>) attributes {dimension_semantics = [#tpu.dimension_semantics<parallel>], iteration_bounds = array<i64: 2>, scalar_prefetch = 0 : i64, scratch_operands = 0 : i64, tpu.core_type = #tpu.core_type<tc>, window_params = [{transform_indices = @transform_0, window_bounds = array<i64: 64, 128>}, {transform_indices = @transform_1, window_bounds = array<i64: 64, 128>}, {transform_indices = @transform_2, window_bounds = array<i64: 64, 128>}, {transform_indices = @transform_3, window_bounds = array<i64: 64, 128>}, {transform_indices = @transform_4, window_bounds = array<i64: 9, 64, 128>}, {transform_indices = @transform_5, window_bounds = array<i64: 9, 64, 128>}, {transform_indices = @transform_6, window_bounds = array<i64: 1, 128>}, {transform_indices = @transform_7, window_bounds = array<i64: 1, 128>}, {transform_indices = @transform_8, window_bounds = array<i64: 1, 128>}, {transform_indices = @transform_9, window_bounds = array<i64: 1, 128>}]} {
    %c0 = arith.constant 0 : index
    %c0_0 = arith.constant 0 : index
    %0 = vector.load %arg7[%c0, %c0_0] : memref<1x128xf32, #tpu.memory_space<vmem>>, vector<1x128xf32>
    %c0_1 = arith.constant 0 : index
    %c0_2 = arith.constant 0 : index
    %1 = vector.load %arg8[%c0_1, %c0_2] : memref<1x128xf32, #tpu.memory_space<vmem>>, vector<1x128xf32>
    %c0_3 = arith.constant 0 : index
    %c0_4 = arith.constant 0 : index
    %2 = vector.load %arg9[%c0_3, %c0_4] : memref<1x128xf32, #tpu.memory_space<vmem>>, vector<1x128xf32>
    %c0_5 = arith.constant 0 : index
    %c0_6 = arith.constant 0 : index
    %c0_7 = arith.constant 0 : index
    %3 = vector.load %arg5[%c0_5, %c0_6, %c0_7] : memref<9x64x128xf32, #tpu.memory_space<vmem>>, vector<1x64x128xf32>
    %4 = vector.shape_cast %3 : vector<1x64x128xf32> to vector<64x128xf32>
    %c3 = arith.constant 3 : index
    %c0_8 = arith.constant 0 : index
    %c0_9 = arith.constant 0 : index
    %5 = vector.load %arg5[%c3, %c0_8, %c0_9] : memref<9x64x128xf32, #tpu.memory_space<vmem>>, vector<1x64x128xf32>
    %6 = vector.shape_cast %5 : vector<1x64x128xf32> to vector<64x128xf32>
    %7 = vector.broadcast %0 : vector<1x128xf32> to vector<64x128xf32>
    %8 = arith.mulf %6, %7 : vector<64x128xf32>
    %c6 = arith.constant 6 : index
    %c0_10 = arith.constant 0 : index
    %c0_11 = arith.constant 0 : index
    %9 = vector.load %arg5[%c6, %c0_10, %c0_11] : memref<9x64x128xf32, #tpu.memory_space<vmem>>, vector<1x64x128xf32>
    %10 = vector.shape_cast %9 : vector<1x64x128xf32> to vector<64x128xf32>
    %11 = arith.addf %8, %10 : vector<64x128xf32>
    %12 = math.sin %11 : vector<64x128xf32>
    %13 = arith.mulf %4, %12 : vector<64x128xf32>
    %c1 = arith.constant 1 : index
    %c0_12 = arith.constant 0 : index
    %c0_13 = arith.constant 0 : index
    %14 = vector.load %arg5[%c1, %c0_12, %c0_13] : memref<9x64x128xf32, #tpu.memory_space<vmem>>, vector<1x64x128xf32>
    %15 = vector.shape_cast %14 : vector<1x64x128xf32> to vector<64x128xf32>
    %c4 = arith.constant 4 : index
    %c0_14 = arith.constant 0 : index
    %c0_15 = arith.constant 0 : index
    %16 = vector.load %arg5[%c4, %c0_14, %c0_15] : memref<9x64x128xf32, #tpu.memory_space<vmem>>, vector<1x64x128xf32>
    %17 = vector.shape_cast %16 : vector<1x64x128xf32> to vector<64x128xf32>
    %18 = vector.broadcast %1 : vector<1x128xf32> to vector<64x128xf32>
    %19 = arith.mulf %17, %18 : vector<64x128xf32>
    %c7 = arith.constant 7 : index
    %c0_16 = arith.constant 0 : index
    %c0_17 = arith.constant 0 : index
    %20 = vector.load %arg5[%c7, %c0_16, %c0_17] : memref<9x64x128xf32, #tpu.memory_space<vmem>>, vector<1x64x128xf32>
    %21 = vector.shape_cast %20 : vector<1x64x128xf32> to vector<64x128xf32>
    %22 = arith.addf %19, %21 : vector<64x128xf32>
    %23 = math.sin %22 : vector<64x128xf32>
    %24 = arith.mulf %15, %23 : vector<64x128xf32>
    %25 = arith.addf %13, %24 : vector<64x128xf32>
    %c2 = arith.constant 2 : index
    %c0_18 = arith.constant 0 : index
    %c0_19 = arith.constant 0 : index
    %26 = vector.load %arg5[%c2, %c0_18, %c0_19] : memref<9x64x128xf32, #tpu.memory_space<vmem>>, vector<1x64x128xf32>
    %27 = vector.shape_cast %26 : vector<1x64x128xf32> to vector<64x128xf32>
    %c5 = arith.constant 5 : index
    %c0_20 = arith.constant 0 : index
    %c0_21 = arith.constant 0 : index
    %28 = vector.load %arg5[%c5, %c0_20, %c0_21] : memref<9x64x128xf32, #tpu.memory_space<vmem>>, vector<1x64x128xf32>
    %29 = vector.shape_cast %28 : vector<1x64x128xf32> to vector<64x128xf32>
    %30 = vector.broadcast %2 : vector<1x128xf32> to vector<64x128xf32>
    %31 = arith.mulf %29, %30 : vector<64x128xf32>
    %c8 = arith.constant 8 : index
    %c0_22 = arith.constant 0 : index
    %c0_23 = arith.constant 0 : index
    %32 = vector.load %arg5[%c8, %c0_22, %c0_23] : memref<9x64x128xf32, #tpu.memory_space<vmem>>, vector<1x64x128xf32>
    %33 = vector.shape_cast %32 : vector<1x64x128xf32> to vector<64x128xf32>
    %34 = arith.addf %31, %33 : vector<64x128xf32>
    %35 = math.sin %34 : vector<64x128xf32>
    %36 = arith.mulf %27, %35 : vector<64x128xf32>
    %37 = arith.addf %25, %36 : vector<64x128xf32>
    %c0_24 = arith.constant 0 : index
    %c0_25 = arith.constant 0 : index
    %c0_26 = arith.constant 0 : index
    %38 = vector.load %arg6[%c0_24, %c0_25, %c0_26] : memref<9x64x128xf32, #tpu.memory_space<vmem>>, vector<1x64x128xf32>
    %39 = vector.shape_cast %38 : vector<1x64x128xf32> to vector<64x128xf32>
    %c3_27 = arith.constant 3 : index
    %c0_28 = arith.constant 0 : index
    %c0_29 = arith.constant 0 : index
    %40 = vector.load %arg6[%c3_27, %c0_28, %c0_29] : memref<9x64x128xf32, #tpu.memory_space<vmem>>, vector<1x64x128xf32>
    %41 = vector.shape_cast %40 : vector<1x64x128xf32> to vector<64x128xf32>
    %42 = vector.broadcast %0 : vector<1x128xf32> to vector<64x128xf32>
    %43 = arith.mulf %41, %42 : vector<64x128xf32>
    %c6_30 = arith.constant 6 : index
    %c0_31 = arith.constant 0 : index
    %c0_32 = arith.constant 0 : index
    %44 = vector.load %arg6[%c6_30, %c0_31, %c0_32] : memref<9x64x128xf32, #tpu.memory_space<vmem>>, vector<1x64x128xf32>
    %45 = vector.shape_cast %44 : vector<1x64x128xf32> to vector<64x128xf32>
    %46 = arith.addf %43, %45 : vector<64x128xf32>
    %47 = math.sin %46 : vector<64x128xf32>
    %48 = arith.mulf %39, %47 : vector<64x128xf32>
    %c1_33 = arith.constant 1 : index
    %c0_34 = arith.constant 0 : index
    %c0_35 = arith.constant 0 : index
    %49 = vector.load %arg6[%c1_33, %c0_34, %c0_35] : memref<9x64x128xf32, #tpu.memory_space<vmem>>, vector<1x64x128xf32>
    %50 = vector.shape_cast %49 : vector<1x64x128xf32> to vector<64x128xf32>
    %c4_36 = arith.constant 4 : index
    %c0_37 = arith.constant 0 : index
    %c0_38 = arith.constant 0 : index
    %51 = vector.load %arg6[%c4_36, %c0_37, %c0_38] : memref<9x64x128xf32, #tpu.memory_space<vmem>>, vector<1x64x128xf32>
    %52 = vector.shape_cast %51 : vector<1x64x128xf32> to vector<64x128xf32>
    %53 = vector.broadcast %1 : vector<1x128xf32> to vector<64x128xf32>
    %54 = arith.mulf %52, %53 : vector<64x128xf32>
    %c7_39 = arith.constant 7 : index
    %c0_40 = arith.constant 0 : index
    %c0_41 = arith.constant 0 : index
    %55 = vector.load %arg6[%c7_39, %c0_40, %c0_41] : memref<9x64x128xf32, #tpu.memory_space<vmem>>, vector<1x64x128xf32>
    %56 = vector.shape_cast %55 : vector<1x64x128xf32> to vector<64x128xf32>
    %57 = arith.addf %54, %56 : vector<64x128xf32>
    %58 = math.sin %57 : vector<64x128xf32>
    %59 = arith.mulf %50, %58 : vector<64x128xf32>
    %60 = arith.addf %48, %59 : vector<64x128xf32>
    %c2_42 = arith.constant 2 : index
    %c0_43 = arith.constant 0 : index
    %c0_44 = arith.constant 0 : index
    %61 = vector.load %arg6[%c2_42, %c0_43, %c0_44] : memref<9x64x128xf32, #tpu.memory_space<vmem>>, vector<1x64x128xf32>
    %62 = vector.shape_cast %61 : vector<1x64x128xf32> to vector<64x128xf32>
    %c5_45 = arith.constant 5 : index
    %c0_46 = arith.constant 0 : index
    %c0_47 = arith.constant 0 : index
    %63 = vector.load %arg6[%c5_45, %c0_46, %c0_47] : memref<9x64x128xf32, #tpu.memory_space<vmem>>, vector<1x64x128xf32>
    %64 = vector.shape_cast %63 : vector<1x64x128xf32> to vector<64x128xf32>
    %65 = vector.broadcast %2 : vector<1x128xf32> to vector<64x128xf32>
    %66 = arith.mulf %64, %65 : vector<64x128xf32>
    %c8_48 = arith.constant 8 : index
    %c0_49 = arith.constant 0 : index
    %c0_50 = arith.constant 0 : index
    %67 = vector.load %arg6[%c8_48, %c0_49, %c0_50] : memref<9x64x128xf32, #tpu.memory_space<vmem>>, vector<1x64x128xf32>
    %68 = vector.shape_cast %67 : vector<1x64x128xf32> to vector<64x128xf32>
    %69 = arith.addf %66, %68 : vector<64x128xf32>
    %70 = math.sin %69 : vector<64x128xf32>
    %71 = arith.mulf %62, %70 : vector<64x128xf32>
    %72 = arith.addf %60, %71 : vector<64x128xf32>
    %c0_51 = arith.constant 0 : index
    %c0_52 = arith.constant 0 : index
    %73 = vector.load %arg1[%c0_51, %c0_52] : memref<64x128xf32, #tpu.memory_space<vmem>>, vector<64x128xf32>
    %c0_53 = arith.constant 0 : index
    %c0_54 = arith.constant 0 : index
    %74 = vector.load %arg3[%c0_53, %c0_54] : memref<64x128xf32, #tpu.memory_space<vmem>>, vector<64x128xf32>
    %75 = arith.mulf %73, %74 : vector<64x128xf32>
    %c0_55 = arith.constant 0 : index
    %c0_56 = arith.constant 0 : index
    %76 = vector.load %arg2[%c0_55, %c0_56] : memref<64x128xf32, #tpu.memory_space<vmem>>, vector<64x128xf32>
    %77 = arith.mulf %75, %76 : vector<64x128xf32>
    %c0_57 = arith.constant 0 : index
    %c0_58 = arith.constant 0 : index
    %78 = vector.load %arg4[%c0_57, %c0_58] : memref<64x128xf32, #tpu.memory_space<vmem>>, vector<64x128xf32>
    %79 = arith.mulf %37, %78 : vector<64x128xf32>
    %80 = arith.mulf %79, %72 : vector<64x128xf32>
    %cst = arith.constant 1.000000e+00 : f32
    %81 = vector.broadcast %cst : f32 to vector<1x64xf32>
    %cst_59 = arith.constant 1.000000e+00 : f32
    %82 = vector.broadcast %cst_59 : f32 to vector<1x64xf32>
    %cst_60 = arith.constant dense<0.000000e+00> : vector<1x128xf32>
    %83 = tpu.matmul %81, %77, %cst_60 {dimension_numbers = #tpu.dot_dimension_numbers<[1], [0], [0], [1], [0, 0, 1, 1], [], []>, precision = #tpu.contract_precision<fp32>} : vector<1x64xf32>, vector<64x128xf32>, vector<1x128xf32> -> vector<1x128xf32>
    %cst_61 = arith.constant dense<0.000000e+00> : vector<1x128xf32>
    %84 = tpu.matmul %82, %80, %cst_61 {dimension_numbers = #tpu.dot_dimension_numbers<[1], [0], [0], [1], [0, 0, 1, 1], [], []>, precision = #tpu.contract_precision<fp32>} : vector<1x64xf32>, vector<64x128xf32>, vector<1x128xf32> -> vector<1x128xf32>
    %85 = arith.addf %83, %84 : vector<1x128xf32>
    %cst_62 = arith.constant 5.000000e-01 : f32
    %86 = vector.broadcast %cst_62 : f32 to vector<1x128xf32>
    %87 = arith.mulf %86, %85 : vector<1x128xf32>
    %c0_63 = arith.constant 0 : index
    %c0_64 = arith.constant 0 : index
    %88 = vector.load %arg10[%c0_63, %c0_64] : memref<1x128xf32, #tpu.memory_space<vmem>>, vector<1x128xf32>
    tpu.vector_store %arg10[%c0_63, %c0_64], %87 {strides = array<i32>} : memref<1x128xf32, #tpu.memory_space<vmem>>, vector<1x128xf32>,
    return
  }
  func.func @transform_0(%arg0: i32) -> (i32, i32) {
    %c0_i32 = arith.constant 0 : i32
    %c0_i32_0 = arith.constant 0 : i32
    return %c0_i32, %arg0 : i32, i32
  }
  func.func @transform_1(%arg0: i32) -> (i32, i32) {
    %c0_i32 = arith.constant 0 : i32
    %c0_i32_0 = arith.constant 0 : i32
    return %c0_i32, %arg0 : i32, i32
  }
  func.func @transform_2(%arg0: i32) -> (i32, i32) {
    %c0_i32 = arith.constant 0 : i32
    %c0_i32_0 = arith.constant 0 : i32
    return %c0_i32, %arg0 : i32, i32
  }
  func.func @transform_3(%arg0: i32) -> (i32, i32) {
    %c0_i32 = arith.constant 0 : i32
    %c0_i32_0 = arith.constant 0 : i32
    return %c0_i32, %arg0 : i32, i32
  }
  func.func @transform_4(%arg0: i32) -> (i32, i32, i32) {
    %c0_i32 = arith.constant 0 : i32
    %c0_i32_0 = arith.constant 0 : i32
    %c0_i32_1 = arith.constant 0 : i32
    return %c0_i32, %c0_i32_0, %arg0 : i32, i32, i32
  }
  func.func @transform_5(%arg0: i32) -> (i32, i32, i32) {
    %c0_i32 = arith.constant 0 : i32
    %c0_i32_0 = arith.constant 0 : i32
    %c0_i32_1 = arith.constant 0 : i32
    return %c0_i32, %c0_i32_0, %arg0 : i32, i32, i32
  }
  func.func @transform_6(%arg0: i32) -> (i32, i32) {
    %c0_i32 = arith.constant 0 : i32
    %c0_i32_0 = arith.constant 0 : i32
    return %c0_i32, %arg0 : i32, i32
  }
  func.func @transform_7(%arg0: i32) -> (i32, i32) {
    %c0_i32 = arith.constant 0 : i32
    %c0_i32_0 = arith.constant 0 : i32
    return %c0_i32, %arg0 : i32, i32
  }
  func.func @transform_8(%arg0: i32) -> (i32, i32) {
    %c0_i32 = arith.constant 0 : i32
    %c0_i32_0 = arith.constant 0 : i32
    return %c0_i32, %arg0 : i32, i32
  }
  func.func @transform_9(%arg0: i32) -> (i32, i32) {
    %c0_i32 = arith.constant 0 : i32
    %c0_i32_0 = arith.constant 0 : i32
    return %c0_i32, %arg0 : i32, i32
  }
}

</mosaic_0001>

<bundles_post_ra>
// kernel: tpu_custom_call.1
= control target key start
LH: loop header
LB: loop body
LE: loop exit
PB: predicated region body
PF: predicated region fallthrough
CT: control target
= control target key end

     0   :  { %s15070_s0 = inlined_call_operand.hbm [shape: f32[64,256], index: 0, kind: input, shape index: {}]   ;;  %s15071_s1 = inlined_call_operand.hbm [shape: f32[64,256], index: 1, kind: input, shape index: {}]   ;;  %s15072_s2 = inlined_call_operand.hbm [shape: f32[64,256], index: 2, kind: input, shape index: {}]   ;;  %s15073_s3 = inlined_call_operand.hbm [shape: f32[64,256], index: 3, kind: input, shape index: {}]   ;;  %s15074_s4 = inlined_call_operand.hbm [shape: f32[9,64,256], index: 4, kind: input, shape index: {}]   ;;  %s15075_s5 = inlined_call_operand.hbm [shape: f32[9,64,256], index: 5, kind: input, shape index: {}]   ;;  %s15076_s6 = inlined_call_operand.vmem [shape: f32[1,256], index: 6, kind: input, shape index: {}]   ;;  %s15077_s7 = inlined_call_operand.vmem [shape: f32[1,256], index: 7, kind: input, shape index: {}]   ;;  %s15078_s8 = inlined_call_operand.vmem [shape: f32[1,256], index: 8, kind: input, shape index: {}]   ;;  %s15079_s9 = inlined_call_operand.hbm [shape: f32[1,256], index: 9, kind: output, shape index: {}]  }
   0x1   :  { %15177 = sst [smem:[#allocation44_spill]] %s15071_s1 }
   0x2   :  { %15178 = sst [smem:[#allocation45_spill]] %s15073_s3 }
   0x3   :  { %15179 = sst [smem:[#allocation46_spill]] %s15079_s9 }
   0x4   :  { %14 = vsyncpa [#allocation3], 0 }
   0x5   :  { %16 = vsyncpa [#allocation3 + $0x1], 0 }
   0x6   :  { %17 = vsyncpa [#allocation6], 0 }
   0x7   :  { %19 = vsyncpa [#allocation6 + $0x1], 0 }
   0x8   :  { %20 = vsyncpa [#allocation9], 0 }
   0x9   :  { %22 = vsyncpa [#allocation9 + $0x1], 0 }
   0xa   :  { %23 = vsyncpa [#allocation12], 0 }
   0xb   :  { %25 = vsyncpa [#allocation12 + $0x1], 0 }
   0xc   :  { %26 = vsyncpa [#allocation4], 0 }
   0xd   :  { %28 = vsyncpa [#allocation4 + $0x1], 0  ;;  %s8963_s30 = smov 0   ;;  %s8965_s10 = smov 0  }
   0xe   :  { %s8967_s11 = smov 0   ;;  %s8969_s12 = smov 0  }
   0xf LB: > { %15180 = sst [smem:[#allocation19_spill]] %s8878_s30  ;;  %s8984_s13 = sadd.s32 4294967295, %s8890_s12   ;;  %s8890_s12 = sphi %s8969_s12, %s15404_s12   ;;  %s8886_s11 = sphi %s8967_s11, %s15406_s11   ;;  %s8882_s10 = sphi %s8965_s10, %s15408_s10   ;;  %s8878_s30 = sphi %s8963_s30, %s15407_s30  }
  0x10   : > { %15181 = sst [smem:[#allocation20_spill]] %s8886_s11  ;;  %s7288_s14 = sadd.s32 4294967294, %s8890_s12  }
  0x11   : > { %15182 = sst [smem:[#allocation21_spill]] %s8890_s12  ;;  %s8988_s15 = sadd.s32 1, %s8890_s12  }
  0x12   : > { %15183 = sst [smem:[#allocation22_spill]] %s8988_s15  ;;  %s41_s16 = sadd.s32 1, %s8886_s11 }
  0x13   : > { %s38_s17 = ssub.s32 %s8890_s12, %s8988_s15  ;;  %p48_p0 = scmp.ne.s32.totalorder %s8886_s11, %s8882_s10 }
  0x14   : > { %p39_p1 = scmp.eq.s32.totalorder %s38_s17, 0  ;;  %p49_p2 = scmp.eq.s32.totalorder %s8890_s12, 0 }
  0x15   : > { %p54_p3 = scmp.ne.s32.totalorder %s8882_s10, %s8878_s30  ;;  %p55_p4 = scmp.eq.s32.totalorder %s8984_s13, 0 }
  0x16   : > { %s9000_s18 = scalar_select %p39_p1, %s8886_s11, %s41_s16  }
  0x17   : > { %p50_p5 = por %p49_p2, %p48_p0  ;;  %p9002_p6 = por %p55_p4, %p54_p3 }
  0x18   : > { %15184 = sst [smem:[#allocation23_spill]] %s9000_s18  ;;  %p286_p7 = scmp.eq.s32.totalorder %s8984_s13, 1 }
  0x19   : > { %s15185_s19 = scalar_select %p9002_p6, 1, 0 }
  0x1a   : > { %p292_p8 = scmp.eq.s32.totalorder %s7288_s14, 1  ;;  %p8371_p10 = scmp.lt.s32.totalorder %s8890_s12, 2 }
  0x1b   : > { %p9009_p11 = por %p286_p7, %p48_p0  ;;  %s9018_s22 = sand.u32 1, %s8886_s11  }
  0x1c   : > { %p9013_p12 = por %p292_p8, %p54_p3  ;;  %s9021_s23 = sshll.u32 %s8890_s12, 7 }
  0x1d   : > { %s15186_s20 = scalar_select %p9009_p11, 1, 0 }
  0x1e   : > { %s15188_s21 = scalar_select %p9013_p12, 1, 0 }
  0x1f   : > { %15187 = sst [smem:[#allocation24_spill]] %s15186_s20  ;;  %s9024_s24 = sshll.u32 %s9018_s22, 6 }
  0x20   : > { %15189 = sst [smem:[#allocation25_spill]] %s15188_s21  ;;  %p9026_p13 = pnand %p8371_p10, %p50_p5 }
  0x21   : > { %s15084_s26 = sand.u32 1, %s8890_s12   ;;  %s15191_s1 = sld [smem:[#allocation44_spill]] }
  0x22   : > { %s336_s14 = scalar_lea.vmem [#allocation5], %s9024_s24  ;;  %s9044_s17 = scalar_lea.sflag [#allocation6], %s15084_s26 }
  0x23   : > { %s342_s16 = sshll.u32 %s336_s14, 4  ;;  %p9050_p3 = pneg %p9026_p13  ;;  %s9039_s16 = int_to_ptr.vmem [resolvable:$true] %s342_s16 }
  0x27   : > { %s9035_s29 = scalar_lea.hbm %s15191_s1, %s9021_s23  ;;  %s8637_s11 = scalar_lea.hbm %s15191_s1, 2048 }
  0x28   : > { %s8632_s18 = scalar_lea.hbm %s9035_s29, 1024  ;;  %p8638_p7 = scmp.lt.u32.totalorder %s9035_s29, %s15191_s1 }
  0x29   : > { %p8633_p2 = scmp.ne.s32.totalorder %s9035_s29, %s8632_s18  ;;  %p8639_p8 = scmp.lt.u32.totalorder %s8637_s11, %s8632_s18 }
  0x2a   : > { %p8641_p9 = scmp.lt.u32.totalorder %s8632_s18, %s9035_s29 }
  0x2b   : > { %p8635_p4 = pnand %p9050_p3, %p8633_p2  ;;  %p8640_p10 = por %p8639_p8, %p8638_p7 }
  0x2d   : > { %p8636_p5 = pneg %p8635_p4  ;;  %p8642_p0 = por %p8641_p9, %p8640_p10 }
  0x2f   : > { %p8643_p1 = pnand %p8642_p0, %p8636_p5 }
  0x31   : > { %8646 = shalt.err (!%p8643_p1)
}
  0x32   : > { %s8647_s26 = scalar_lea.vmem %s9039_s16, 1024  ;;  %s8892_s28 = smov [#allocation5]  }
  0x33   : > { %p8648_p2 = scmp.ne.s32.totalorder %s9039_s16, %s8647_s26  ;;  %s8652_s14 = sshll.u32 %s8892_s28, 4  ;;  %s8653_s14 = int_to_ptr.vmem [resolvable:$false] %s8652_s14 }
  0x34   : > { %s8654_s15 = scalar_lea.vmem %s8653_s14, 2048  ;;  %p8655_p11 = scmp.lt.s32.totalorder %s9039_s16, %s8653_s14 }
  0x35   : > { %p8650_p4 = pnand %p8648_p2, %p9050_p3  ;;  %p8656_p6 = scmp.lt.s32.totalorder %s8654_s15, %s8647_s26 }
  0x37   : > { %p8651_p12 = pneg %p8650_p4  ;;  %p8657_p7 = por %p8656_p6, %p8655_p11 }
  0x39   : > { %p8658_p8 = pnand %p8657_p7, %p8651_p12 }
  0x3b   : > { %8661 = shalt.err (!%p8658_p8)
}
  0x3c   : > { %s15088_s11 = smov 256   ;;  %s15090_s18 = smov 128  }
  0x3d   : > { %s15092_s21 = smov 8   ;;  %p15193_p6 = scmp.lt.s32.totalorder %s8890_s12, 3 }
  0x3e   : > { %8354 = dma.hbm_to_vmem [thread:$0]  (!%p9026_p13), %s9035_s29, 1024, %s9039_s16, %s9044_s17, %s15088_s11, %s15090_s18, %s15092_s21  }
  0x3f   : > { %p15194_p9 = scmp.ge.s32.totalorder %s8890_s12, 1  ;;  %s15196_s3 = sld [smem:[#allocation45_spill]] }
  0x40   : > { %s376_s1 = scalar_lea.vmem [#allocation8], %s9024_s24  ;;  %s15197_s29 = sand.u32 1, %s8890_s12  }
  0x41   : > { %p9081_p11 = pnand %p15194_p9, %p15193_p6  ;;  %s382_s30 = sshll.u32 %s376_s1, 4  ;;  %s9092_s30 = int_to_ptr.vmem [resolvable:$true] %s382_s30 }
  0x42   : > { %s9096_s16 = scalar_lea.sflag [#allocation9], %s15197_s29 }
  0x43   : > { %s15195_s26 = scalar_select %p9081_p11, 1, 0 }
  0x45   : > { %s9089_s15 = scalar_lea.hbm %s15196_s3, %s9021_s23  ;;  %s8667_s14 = scalar_lea.hbm %s15196_s3, 2048 }
  0x46   : > { %s8662_s11 = scalar_lea.hbm %s9089_s15, 1024  ;;  %p8668_p5 = scmp.lt.u32.totalorder %s9089_s15, %s15196_s3 }
  0x47   : > { %p8663_p12 = scmp.ne.s32.totalorder %s9089_s15, %s8662_s11  ;;  %p8669_p10 = scmp.lt.u32.totalorder %s8667_s14, %s8662_s11 }
  0x48   : > { %p8671_p4 = scmp.lt.u32.totalorder %s8662_s11, %s9089_s15 }
  0x49   : > { %p8665_p0 = pnand %p8663_p12, %p9050_p3  ;;  %p8670_p2 = por %p8669_p10, %p8668_p5 }
  0x4b   : > { %p8666_p1 = pneg %p8665_p0  ;;  %p8672_p7 = por %p8671_p4, %p8670_p2 }
  0x4d   : > { %p8673_p8 = pnand %p8672_p7, %p8666_p1 }
  0x4f   : > { %8676 = shalt.err (!%p8673_p8)
}
  0x50   : > { %s8677_s1 = scalar_lea.vmem %s9092_s30, 1024  ;;  %s8896_s18 = smov [#allocation8]  }
  0x51   : > { %p8678_p6 = scmp.ne.s32.totalorder %s9092_s30, %s8677_s1  ;;  %s8682_s29 = sshll.u32 %s8896_s18, 4  ;;  %s8683_s29 = int_to_ptr.vmem [resolvable:$false] %s8682_s29 }
  0x52   : > { %s8684_s9 = scalar_lea.vmem %s8683_s29, 2048  ;;  %p8685_p0 = scmp.lt.s32.totalorder %s9092_s30, %s8683_s29 }
  0x53   : > { %p8680_p9 = pnand %p8678_p6, %p9050_p3  ;;  %p8686_p11 = scmp.lt.s32.totalorder %s8684_s9, %s8677_s1 }
  0x55   : > { %p8681_p12 = pneg %p8680_p9  ;;  %p8687_p5 = por %p8686_p11, %p8685_p0 }
  0x57   : > { %p8688_p10 = pnand %p8687_p5, %p8681_p12 }
  0x59   : > { %8691 = shalt.err (!%p8688_p10)
}
  0x5a   : > { %s15198_s11 = smov 8   ;;  %s15199_s21 = smov 128  }
  0x5b   : > { %s15200_s28 = smov 256   ;;  %s9127_s1 = scalar_lea.hbm %s15070_s0, %s9021_s23 }
  0x5c   : > { %8360 = dma.hbm_to_vmem [thread:$0]  (!%p9026_p13), %s9089_s15, 1024, %s9092_s30, %s9096_s16, %s15200_s28, %s15199_s21, %s15198_s11  }
  0x5d   : > { %s316_s29 = scalar_lea.vmem [#allocation2], %s9024_s24  ;;  %s313_s3 = scalar_lea.sflag [#allocation3], %s9018_s22 }
  0x5e   : > { %s322_s9 = sshll.u32 %s316_s29, 4  ;;  %s8692_s12 = scalar_lea.hbm %s9127_s1, 1024  ;;  %s9130_s9 = int_to_ptr.vmem [resolvable:$true] %s322_s9 }
  0x5f   : > { %p8693_p11 = scmp.ne.s32.totalorder %s9127_s1, %s8692_s12  ;;  %s8697_s14 = scalar_lea.hbm %s15070_s0, 2048 }
  0x60   : > { %p8698_p4 = scmp.lt.u32.totalorder %s9127_s1, %s15070_s0  ;;  %p8699_p7 = scmp.lt.u32.totalorder %s8697_s14, %s8692_s12 }
  0x61   : > { %p8695_p1 = pnand %p8693_p11, %p9050_p3  ;;  %p8701_p6 = scmp.lt.u32.totalorder %s8692_s12, %s9127_s1 }
  0x62   : > { %p8700_p8 = por %p8699_p7, %p8698_p4 }
  0x63   : > { %p8696_p2 = pneg %p8695_p1 }
  0x64   : > { %p8702_p9 = por %p8701_p6, %p8700_p8 }
  0x66   : > { %p8703_p12 = pnand %p8702_p9, %p8696_p2 }
  0x68   : > { %8706 = shalt.err (!%p8703_p12)
}
  0x69   : > { %s8707_s29 = scalar_lea.vmem %s9130_s9, 1024  ;;  %s8897_s30 = smov [#allocation2]  }
  0x6a   : > { %p8708_p0 = scmp.ne.s32.totalorder %s9130_s9, %s8707_s29  ;;  %s8712_s15 = sshll.u32 %s8897_s30, 4  ;;  %s8713_s15 = int_to_ptr.vmem [resolvable:$false] %s8712_s15 }
  0x6b   : > { %s8714_s20 = scalar_lea.vmem %s8713_s15, 2048  ;;  %p8715_p11 = scmp.lt.s32.totalorder %s9130_s9, %s8713_s15 }
  0x6c   : > { %p8710_p5 = pnand %p8708_p0, %p9050_p3  ;;  %p8716_p1 = scmp.lt.s32.totalorder %s8714_s20, %s8707_s29 }
  0x6e   : > { %p8711_p10 = pneg %p8710_p5  ;;  %p8717_p4 = por %p8716_p1, %p8715_p11 }
  0x70   : > { %p8718_p7 = pnand %p8717_p4, %p8711_p10 }
  0x72   : > { %8721 = shalt.err (!%p8718_p7)
}
  0x73   : > { %8351 = dma.hbm_to_vmem [thread:$0]  (!%p9026_p13), %s9127_s1, 1024, %s9130_s9, %s313_s3, %s15200_s28, %s15199_s21, %s15198_s11  }
  0x74   : > { %s9163_s18 = scalar_lea.hbm %s15072_s2, %s9021_s23  ;;  %s356_s29 = scalar_lea.vmem [#allocation7], %s9024_s24 }
  0x75   : > { %s362_s30 = sshll.u32 %s356_s29, 4  ;;  %s8139_s15 = smul.u32 576, %s9018_s22  ;;  %s9166_s30 = int_to_ptr.vmem [resolvable:$true] %s362_s30 }
  0x76   : > { %s8722_s20 = scalar_lea.hbm %s9163_s18, 1024  ;;  %s8727_s9 = scalar_lea.hbm %s15072_s2, 2048 }
  0x77   : > { %p8723_p2 = scmp.ne.s32.totalorder %s9163_s18, %s8722_s20  ;;  %p8728_p9 = scmp.lt.u32.totalorder %s9163_s18, %s15072_s2 }
  0x78   : > { %p8729_p12 = scmp.lt.u32.totalorder %s8727_s9, %s8722_s20  ;;  %p8731_p5 = scmp.lt.u32.totalorder %s8722_s20, %s9163_s18 }
  0x79   : > { %p8725_p8 = pnand %p8723_p2, %p9050_p3 }
  0x7a   : > { %p8730_p0 = por %p8729_p12, %p8728_p9 }
  0x7b   : > { %p8726_p6 = pneg %p8725_p8 }
  0x7c   : > { %p8732_p10 = por %p8731_p5, %p8730_p0 }
  0x7e   : > { %p8733_p11 = pnand %p8732_p10, %p8726_p6 }
  0x80   : > { %8736 = shalt.err (!%p8733_p11)
}
  0x81   : > { %s8737_s24 = scalar_lea.vmem %s9166_s30, 1024  ;;  %s8898_s29 = smov [#allocation7]  }
  0x82   : > { %p8738_p1 = scmp.ne.s32.totalorder %s9166_s30, %s8737_s24  ;;  %s8742_s3 = sshll.u32 %s8898_s29, 4  ;;  %s8743_s3 = int_to_ptr.vmem [resolvable:$false] %s8742_s3 }
  0x83   : > { %s8744_s1 = scalar_lea.vmem %s8743_s3, 2048  ;;  %p8745_p2 = scmp.lt.s32.totalorder %s9166_s30, %s8743_s3 }
  0x84   : > { %p8740_p4 = pnand %p8738_p1, %p9050_p3  ;;  %p8746_p8 = scmp.lt.s32.totalorder %s8744_s1, %s8737_s24 }
  0x86   : > { %p8741_p7 = pneg %p8740_p4  ;;  %p8747_p9 = por %p8746_p8, %p8745_p2 }
  0x88   : > { %p8748_p12 = pnand %p8747_p9, %p8741_p7 }
  0x8a   : > { %8751 = shalt.err (!%p8748_p12)
}
  0x8b   : > { %8357 = dma.hbm_to_vmem [thread:$0]  (!%p9026_p13), %s9163_s18, 1024, %s9166_s30, %s9044_s17, %s15200_s28, %s15199_s21, %s15198_s11  }
  0x8c   : > { %s9198_s12 = scalar_lea.hbm %s15074_s4, %s9021_s23  ;;  %s396_s14 = scalar_lea.vmem [#allocation10], %s8139_s15 }
  0x8d   : > { %s402_s24 = sshll.u32 %s396_s14, 4  ;;  %s8752_s29 = scalar_lea.hbm %s9198_s12, 9216  ;;  %s9202_s24 = int_to_ptr.vmem [resolvable:$true] %s402_s24 }
  0x8e   : > { %p8753_p6 = scmp.ne.s32.totalorder %s9198_s12, %s8752_s29  ;;  %s8757_s30 = scalar_lea.hbm %s15074_s4, 18432 }
  0x8f   : > { %p8758_p10 = scmp.lt.u32.totalorder %s9198_s12, %s15074_s4  ;;  %p8759_p11 = scmp.lt.u32.totalorder %s8757_s30, %s8752_s29 }
  0x90   : > { %p8755_p0 = pnand %p8753_p6, %p9050_p3  ;;  %p8761_p4 = scmp.lt.u32.totalorder %s8752_s29, %s9198_s12 }
  0x91   : > { %p8760_p1 = por %p8759_p11, %p8758_p10 }
  0x92   : > { %p8756_p5 = pneg %p8755_p0 }
  0x93   : > { %p8762_p7 = por %p8761_p4, %p8760_p1 }
  0x95   : > { %p8763_p2 = pnand %p8762_p7, %p8756_p5 }
  0x97   : > { %8766 = shalt.err (!%p8763_p2)
}
  0x98   : > { %s8767_s20 = scalar_lea.vmem %s9202_s24, 9216  ;;  %s8899_s9 = smov [#allocation10]  }
  0x99   : > { %p8768_p8 = scmp.ne.s32.totalorder %s9202_s24, %s8767_s20  ;;  %s8772_s14 = sshll.u32 %s8899_s9, 4  ;;  %s8773_s14 = int_to_ptr.vmem [resolvable:$false] %s8772_s14 }
  0x9a   : > { %s8774_s17 = scalar_lea.vmem %s8773_s14, 18432  ;;  %p8775_p6 = scmp.lt.s32.totalorder %s9202_s24, %s8773_s14 }
  0x9b   : > { %p8770_p9 = pnand %p8768_p8, %p9050_p3  ;;  %p8776_p0 = scmp.lt.s32.totalorder %s8774_s17, %s8767_s20 }
  0x9d   : > { %p8771_p12 = pneg %p8770_p9  ;;  %p8777_p10 = por %p8776_p0, %p8775_p6 }
  0x9f   : > { %p8778_p11 = pnand %p8777_p10, %p8771_p12 }
  0xa1   : > { %8781 = shalt.err (!%p8778_p11)
}
  0xa2   : > { %8363 = dma.hbm_to_vmem [thread:$0]  (!%p9026_p13), %s9198_s12, 9216, %s9202_s24, %s9096_s16, %s15200_s28, %s15199_s21, %s15198_s11  }
  0xa3   : > { %s9233_s30 = scalar_lea.hbm %s15075_s5, %s9021_s23  ;;  %s416_s3 = scalar_lea.vmem [#allocation11], %s8139_s15 }
  0xa4   : > { %s422_s1 = sshll.u32 %s416_s3, 4  ;;  %s413_s20 = scalar_lea.sflag [#allocation12], %s9018_s22  ;;  %s9237_s1 = int_to_ptr.vmem [resolvable:$true] %s422_s1 }
  0xa5   : > { %s8782_s9 = scalar_lea.hbm %s9233_s30, 9216  ;;  %s8787_s23 = scalar_lea.hbm %s15075_s5, 18432 }
  0xa6   : > { %p8783_p5 = scmp.ne.s32.totalorder %s9233_s30, %s8782_s9  ;;  %p8788_p7 = scmp.lt.u32.totalorder %s9233_s30, %s15075_s5 }
  0xa7   : > { %p8789_p2 = scmp.lt.u32.totalorder %s8787_s23, %s8782_s9  ;;  %p8791_p9 = scmp.lt.u32.totalorder %s8782_s9, %s9233_s30 }
  0xa8   : > { %p8785_p1 = pnand %p8783_p5, %p9050_p3 }
  0xa9   : > { %p8790_p8 = por %p8789_p2, %p8788_p7 }
  0xaa   : > { %p8786_p4 = pneg %p8785_p1 }
  0xab   : > { %p8792_p12 = por %p8791_p9, %p8790_p8 }
  0xad   : > { %p8793_p6 = pnand %p8792_p12, %p8786_p4 }
  0xaf   : > { %8796 = shalt.err (!%p8793_p6)
}
  0xb0   : > { %s8797_s15 = scalar_lea.vmem %s9237_s1, 9216  ;;  %s8900_s17 = smov [#allocation11]  }
  0xb1   : > { %p8798_p0 = scmp.ne.s32.totalorder %s9237_s1, %s8797_s15  ;;  %s8802_s29 = sshll.u32 %s8900_s17, 4  ;;  %s8803_s29 = int_to_ptr.vmem [resolvable:$false] %s8802_s29 }
  0xb2   : > { %s8804_s18 = scalar_lea.vmem %s8803_s29, 18432  ;;  %p8805_p5 = scmp.lt.s32.totalorder %s9237_s1, %s8803_s29 }
  0xb3   : > { %p8800_p10 = pnand %p8798_p0, %p9050_p3  ;;  %p8806_p1 = scmp.lt.s32.totalorder %s8804_s18, %s8797_s15 }
  0xb5   : > { %p8801_p11 = pneg %p8800_p10  ;;  %p8807_p7 = por %p8806_p1, %p8805_p5 }
  0xb7   : > { %p8808_p2 = pnand %p8807_p7, %p8801_p11 }
  0xb9   : > { %8811 = shalt.err (!%p8808_p2)
}
  0xba   : > { %8366 = dma.hbm_to_vmem [thread:$0]  (!%p9026_p13), %s9233_s30, 9216, %s9237_s1, %s413_s20, %s15200_s28, %s15199_s21, %s15198_s11  }
  0xbb   : > { %p15201_p3 = scmp.ne.s32.totalorder %s15195_s26, 0 }
  0xbd   : > { %452 = sbr.rel (%p15201_p3) target bundleno = 1810 (0x712), region = 56 }
  0xc4   : > { %s9269_s27 = sand.u32 1, %s8882_s10   ;;  %p15202_p4 = scmp.ne.s32.totalorder %s15185_s19, 0 }
  0xc5   : > { %s7302_s3 = sshll.u32 %s9269_s27, 6  ;;  %s455_s9 = scalar_lea.sflag [#allocation3], %s9269_s27 }
  0xc6   : > { %s9273_s25 = scalar_lea.vmem [#allocation2], %s7302_s3 }
  0xc7   : > { %8857 = dma.done.wait (%p15202_p4), %s455_s9, 1024  }
  0xc8   : > { %8859 = vsyncadd (%p15202_p4), %s455_s9, 4294966272  ;;  %s463_s22 = sand.u32 1, %s8984_s13   ;;  %s9280_s11 = scalar_lea.vmem [#allocation5], %s7302_s3 }
  0xc9   : > { %s464_s26 = scalar_lea.sflag [#allocation6], %s463_s22 }
  0xca   : > { %8861 = dma.done.wait (%p15202_p4), %s464_s26, 2048  }
  0xcb   : > { %8863 = vsyncadd (%p15202_p4), %s464_s26, 4294965248  ;;  %s9286_s21 = scalar_lea.vmem [#allocation7], %s7302_s3  ;;  %s482_s28 = scalar_lea.sflag [#allocation9], %s463_s22 }
  0xcc   : > { %s9288_s30 = scalar_lea.vmem [#allocation8], %s7302_s3 }
  0xcd   : > { %8865 = dma.done.wait (%p15202_p4), %s482_s28, 10240  }
  0xce   : > { %8867 = vsyncadd (%p15202_p4), %s482_s28, 4294957056  ;;  %s8141_s1 = smul.u32 576, %s9269_s27  ;;  %s500_s16 = scalar_lea.sflag [#allocation12], %s9269_s27 }
  0xd0   : > { %s9295_s20 = scalar_lea.vmem [#allocation10], %s8141_s1  ;;  %s9298_s12 = scalar_lea.vmem [#allocation11], %s8141_s1 }
  0xd1   : > { %8869 = dma.done.wait (%p15202_p4), %s500_s16, 9216  }
  0xd2   : > { %8871 = vsyncadd (%p15202_p4), %s500_s16, 4294958080  ;;  %v15113_v0 = vmov 0.0|0.0   ;;  %vm8902_vm0 = vmmov 0   ;;  %v15111_v1 = vmov 0.0   ;;  %v5929_v2 = vld [vmem:[%s9273_s25] sm:$0xff]  ;;  %v5930_v3 = vld [vmem:[%s9273_s25 + $0x8] sm:$0xff] }
  0xd3   : > { %8046 = vmatprep.subr.bf16.mxu0 %v15113_v0  ;;  %7876 = vmatprep.mubr.msk.f32.mxu0 %vm8902_vm0, %v15111_v1  ;;  %v5937_v4 = vld [vmem:[%s9286_s21] sm:$0xff]  ;;  %vm5993_vm1 = vcmask 523264   ;;  %v5938_v5 = vld [vmem:[%s9286_s21 + $0x8] sm:$0xff]  ;;  %v5931_v10 = vld [vmem:[%s9273_s25 + $0x10] sm:$0xff]  ;;  %v8904_v18 = vmov 0   ;;  %p571_p13 = scmp.lt.s32.totalorder %s8984_s13, 1 }
  0xd4   : > { %7974 = vmatprep.subr.bf16.mxu1 %v15113_v0  ;;  %7762 = vmatprep.mubr.msk.f32.mxu1 %vm8902_vm0, %v15111_v1  ;;  %v5945_v6 = vmul.f32 %v5937_v4, %v5929_v2  ;;  %v5953_v7 = vld [vmem:[%s9280_s11] sm:$0xff]  ;;  %v5954_v8 = vld [vmem:[%s9280_s11 + $0x8] sm:$0xff]  ;;  %v5946_v9 = vmul.f32 %v5938_v5, %v5930_v3  ;;  %v5932_v11 = vld [vmem:[%s9273_s25 + $0x18] sm:$0xff]  ;;  %v5995_v19 = vsel %vm5993_vm1, 1.0, %v8904_v18  ;;  %s7635_s22 = sshll.u32 %s8984_s13, 4  ;;  %s570_s26 = scalar_lea.vmem [#allocation13], %s9269_s27 }
  0xd5   : > { %v5939_v12 = vld [vmem:[%s9286_s21 + $0x10] sm:$0xff]  ;;  %v5940_v14 = vld [vmem:[%s9286_s21 + $0x18] sm:$0xff]  ;;  %v5933_v22 = vld [vmem:[%s9273_s25 + $0x20] sm:$0xff]  ;;  %v9332_v37 = vsub.f32 %v5995_v19, %v5995_v19  ;;  %s9357_s19 = scalar_select %p571_p13, %s8984_s13, 1 }
  0xd6   : > { %v5961_v13 = vmul.f32 %v5953_v7, %v5945_v6  ;;  %v5947_v15 = vmul.f32 %v5939_v12, %v5931_v10  ;;  %v5955_v16 = vld [vmem:[%s9280_s11 + $0x10] sm:$0xff]  ;;  %v5956_v17 = vld [vmem:[%s9280_s11 + $0x18] sm:$0xff]  ;;  %v5962_v20 = vmul.f32 %v5954_v8, %v5946_v9  ;;  %v5948_v21 = vmul.f32 %v5940_v14, %v5932_v11  ;;  %v5934_v23 = vld [vmem:[%s9273_s25 + $0x28] sm:$0xff]  ;;  %s7074_s16 = scalar_lea.sflag [#allocation4], %s9269_s27  ;;  %s8912_s13 = smov [#allocation13]  }
  0xd7   : > { %v5941_v24 = vld [vmem:[%s9286_s21 + $0x20] sm:$0xff]  ;;  %v5942_v27 = vld [vmem:[%s9286_s21 + $0x28] sm:$0xff]  ;;  %v5935_v34 = vld [vmem:[%s9273_s25 + $0x30] sm:$0xff]  ;;  %15203 = vst [vmem:[#allocation26_spill] sm:$0xff] %v9332_v37  ;;  %v9362_v60 = vand.u32 4294901760, %v9332_v37  ;;  %s9382_s14 = scalar_lea.vmem %s15076_s6, %s9357_s19  ;;  %s9394_s29 = scalar_lea.vmem %s15077_s7, %s9357_s19 }
  0xd8   : > { %v6535_v25 = vand.u32 4294901760, %v5961_v13  ;;  %v5963_v26 = vmul.f32 %v5955_v16, %v5947_v15  ;;  %v5949_v28 = vmul.f32 %v5941_v24, %v5933_v22  ;;  %v5957_v29 = vld [vmem:[%s9280_s11 + $0x20] sm:$0xff]  ;;  %v5958_v30 = vld [vmem:[%s9280_s11 + $0x28] sm:$0xff]  ;;  %v6538_v31 = vand.u32 4294901760, %v5962_v20  ;;  %v5936_v35 = vld [vmem:[%s9273_s25 + $0x38] sm:$0xff]  ;;  %s9740_s9 = scalar_lea.vmem %s15078_s8, %s9357_s19  ;;  %s15395_s25 = sld [smem:[#allocation24_spill]] }
  0xd9   : > { %v5964_v32 = vmul.f32 %v5956_v17, %v5948_v21  ;;  %v5950_v33 = vmul.f32 %v5942_v27, %v5934_v23  ;;  %v5943_v36 = vld [vmem:[%s9286_s21 + $0x30] sm:$0xff]  ;;  %v5944_v41 = vld [vmem:[%s9286_s21 + $0x38] sm:$0xff]  ;;  %15204 = vst [vmem:[#allocation27_spill] sm:$0xff] %v9362_v60  ;;  %v6073_v7 = vsub.f32 %v9332_v37, %v9362_v60  ;;  %v9408_v17 = vld [vmem:[%s9382_s14] ss:$0 sm:$0xff]  ;;  %s8816_s19 = sshll.u32 %s8912_s13, 4  ;;  %s8817_s19 = int_to_ptr.vmem [resolvable:$false] %s8816_s19 }
  0xda   : > { %v9334_v38 = vsub.f32 %v5961_v13, %v6535_v25  ;;  %v6541_v39 = vand.u32 4294901760, %v5963_v26  ;;  %v5965_v40 = vmul.f32 %v5957_v29, %v5949_v28  ;;  %v5951_v42 = vmul.f32 %v5943_v36, %v5935_v34  ;;  %v5959_v43 = vld [vmem:[%s9280_s11 + $0x30] sm:$0xff]  ;;  %v5960_v48 = vld [vmem:[%s9280_s11 + $0x38] sm:$0xff]  ;;  %v7306_v18 = vld [vmem:[%s9295_s20 + $0xc0] sm:$0xff]  ;;  %s7086_s11 = sshll.u32 %s570_s26, 4  ;;  %s8818_s23 = scalar_lea.vmem %s8817_s19, 32  ;;  %s15028_s11 = int_to_ptr.vmem [resolvable:$true] %s7086_s11 }
  0xdb   : > { %v9339_v44 = vpack.c.bf16 %v6538_v31, %v6535_v25  ;;  %v9341_v45 = vsub.f32 %v5962_v20, %v6538_v31  ;;  %v6544_v46 = vand.u32 4294901760, %v5964_v32  ;;  %v5966_v47 = vmul.f32 %v5958_v30, %v5950_v33  ;;  %v9413_v19 = vld [vmem:[%s9394_s29] ss:$0 sm:$0xff]  ;;  %v7307_v20 = vld [vmem:[%s9295_s20 + $0xc8] sm:$0xff]  ;;  %p8819_p0 = scmp.lt.s32.totalorder %s15028_s11, %s8817_s19 }
  0xdc   : > { %v9344_v49 = vsub.f32 %v5963_v26, %v6541_v39  ;;  %v6547_v50 = vand.u32 4294901760, %v5965_v40  ;;  %v5952_v51 = vmul.f32 %v5944_v41, %v5936_v35  ;;  %v5967_v52 = vmul.f32 %v5959_v43, %v5951_v42  ;;  %v7363_v21 = vld [vmem:[%s9295_s20 + $0x100] sm:$0xff]  ;;  %v7316_v30 = vld [vmem:[%s9295_s20 + $0x188] sm:$0xff] }
  0xdd   : > { %8048 = vmatpush3.bf16.msra.mxu0 %v9339_v44  ;;  %v9347_v53 = vpack.c.bf16 %v6544_v46, %v6541_v39  ;;  %v9349_v54 = vsub.f32 %v5964_v32, %v6544_v46  ;;  %v6550_v55 = vand.u32 4294901760, %v5966_v47  ;;  %v6620_v56 = vand.u32 4294901760, %v9334_v38  ;;  %v7315_v25 = vld [vmem:[%s9295_s20 + $0x180] sm:$0xff] }
  0xde   : > { %8049 = vmatprep.subr.bf16.mxu0 %v15113_v0  ;;  %v5968_v57 = vmul.f32 %v5960_v48, %v5952_v51  ;;  %v6627_v58 = vand.u32 4294901760, %v9341_v45  ;;  %v9359_v59 = vsub.f32 %v5965_v40, %v6547_v50  ;;  %v6634_v61 = vand.u32 4294901760, %v9344_v49  ;;  %v7372_v31 = vld [vmem:[%s9295_s20 + $0x1c0] sm:$0xff]  ;;  %p15398_p9 = scmp.ne.s32.totalorder %s15395_s25, 0 }
  0xdf   : > { %v9365_v62 = vsub.f32 %v5966_v47, %v6550_v55  ;;  %v6621_v63 = vsub.f32 %v9334_v38, %v6620_v56  ;;  %v9374_v3 = vpack.c.bf16 %v6550_v55, %v6547_v50  ;;  %v6553_v4 = vand.u32 4294901760, %v5967_v52 }
  0xe0   : > { %v6628_v2 = vsub.f32 %v9341_v45, %v6627_v58  ;;  %v6556_v5 = vand.u32 4294901760, %v5968_v57  ;;  %v6641_v6 = vand.u32 4294901760, %v9349_v54  ;;  %v6635_v8 = vsub.f32 %v9344_v49, %v6634_v61 }
  0xe1   : > { %8051 = vmatpush3.bf16.msra.mxu0 %v9347_v53  ;;  %v6648_v9 = vand.u32 4294901760, %v9359_v59  ;;  %v9396_v10 = vsub.f32 %v5967_v52, %v6553_v4  ;;  %v6622_v11 = vand.u32 4294901760, %v6621_v63  ;;  %v6655_v13 = vand.u32 4294901760, %v9365_v62 }
  0xe2   : > { %8052 = vmatprep.subr.bf16.mxu0 %v15113_v0  ;;  %v6629_v12 = vand.u32 4294901760, %v6628_v2  ;;  %v9400_v14 = vpack.c.bf16 %v6556_v5, %v6553_v4  ;;  %v9402_v15 = vsub.f32 %v5968_v57, %v6556_v5  ;;  %v6642_v16 = vsub.f32 %v9349_v54, %v6641_v6 }
  0xe3   : > { %v9417_v22 = vand.u32 4294901760, %v6073_v7  ;;  %v6636_v23 = vand.u32 4294901760, %v6635_v8  ;;  %v6649_v24 = vsub.f32 %v9359_v59, %v6648_v9  ;;  %v6656_v27 = vsub.f32 %v9365_v62, %v6655_v13 }
  0xe4   : > { %v8059_v26 = vpack.c.bf16 %v6629_v12, %v6622_v11  ;;  %v15110_v28 = vand.u32 4294901760, %v9396_v10  ;;  %v606_v29 = vmul.f32 %v9408_v17, %v7306_v18  ;;  %v6643_v32 = vand.u32 4294901760, %v6642_v16 }
  0xe5   : > { %8054 = vmatpush3.bf16.msra.mxu0 %v9374_v3  ;;  %15205 = vst [vmem:[#allocation28_spill] sm:$0xff] %v9417_v22  ;;  %v15100_v33 = vand.u32 4294901760, %v9402_v15  ;;  %v607_v34 = vmul.f32 %v9408_v17, %v7307_v20  ;;  %v1495_v35 = vmul.f32 %v9413_v19, %v7363_v21  ;;  %v6650_v39 = vand.u32 4294901760, %v6649_v24  ;;  %v7364_v24 = vld [vmem:[%s9295_s20 + $0x108] sm:$0xff] }
  0xe6   : > { %8055 = vmatprep.subr.bf16.mxu0 %v15113_v0  ;;  %v9435_v36 = vadd.f32 %v7315_v25, %v606_v29  ;;  %v6657_v42 = vand.u32 4294901760, %v6656_v27  ;;  %v6663_v43 = vsub.f32 %v9396_v10, %v15110_v28  ;;  %v8062_v48 = vpack.c.bf16 %v6643_v32, %v6636_v23 }
  0xe7   : > { %v9437_v40 = vadd.f32 %v7316_v30, %v607_v34  ;;  %v9439_v41 = vadd.f32 %v7372_v31, %v1495_v35  ;;  %v6670_v50 = vsub.f32 %v9402_v15, %v15100_v33  ;;  %v8074_v27 = vpack.c.bf16 %v9349_v54, %v9344_v49 }
  0xe8   : > { %v15099_v46 = vand.u32 2147483647, %v9435_v36  ;;  %v634_v47 = vand.u32 2139095040, %v9435_v36  ;;  %v8065_v5 = vpack.c.bf16 %v6657_v42, %v6650_v39  ;;  %v6664_v8 = vand.u32 4294901760, %v6663_v43 }
  0xe9   : > { %8057 = vmatpush3.bf16.msra.mxu0 %v9400_v14  ;;  %v15098_v51 = vand.u32 2147483647, %v9437_v40  ;;  %v738_v52 = vand.u32 2139095040, %v9437_v40  ;;  %v1523_v4 = vand.u32 2139095040, %v9439_v41  ;;  %v6671_v11 = vand.u32 4294901760, %v6670_v50 }
  0xea   : > { %8058 = vmatprep.subr.bf16.mxu0 %v15113_v0  ;;  %v635_v55 = vshrl.u32 %v634_v47, 23  ;;  %v638_v57 = vand.u32 8388607, %v15099_v46  ;;  %v8077_v29 = vpack.c.bf16 %v9365_v62, %v9359_v59  ;;  %v8080_v31 = vpack.c.bf16 %v9402_v15, %v9396_v10 }
  0xeb   : > { %v739_v63 = vshrl.u32 %v738_v52, 23  ;;  %v742_v2 = vand.u32 8388607, %v15098_v51  ;;  %v1524_v16 = vshrl.u32 %v1523_v4, 23  ;;  %v8068_v30 = vpack.c.bf16 %v6671_v11, %v6664_v8 }
  0xec   : > { %7877 = vmatmul.mubr.f32.vlgmr.msra.gmra.mrb[0].mxu0 %v9417_v22  ;;  %v7323_v7 = vadd.s32 4294967169, %v635_v55  ;;  %v639_v20 = vor.u32 8388608, %v638_v57  ;;  %v9474_v42 = vmul.f32 %v9413_v19, %v7364_v24  ;;  %v15124_v55 = vmov 683565275  }
  0xed   : > { %8060 = vmatpush3.bf16.msra.mxu0 %v8059_v26  ;;  %7895 = vmatprep.mubr.msk.f32.mxu0 %vm8902_vm0, %v15111_v1  ;;  %v7327_v12 = vadd.s32 4294967169, %v739_v63  ;;  %v743_v21 = vor.u32 8388608, %v742_v2  ;;  %v7380_v25 = vadd.s32 4294967169, %v1524_v16  ;;  %v8071_v26 = vpack.c.bf16 %v9341_v45, %v9334_v38 }
  0xee   : > { %8061 = vmatprep.subr.bf16.mxu0 %v15113_v0  ;;  %v641_v18 = vadd.s32 1, %v7323_v7  ;;  %v9476_v43 = vshll.u32 %v639_v20, 8  ;;  %v15108_v63 = vmov 2475754826   ;;  %v15106_v4 = vmov 2131351028  }
  0xef   : > { %v745_v23 = vadd.s32 1, %v7327_v12  ;;  %v9482_v50 = vadd.s32 1, %v7380_v25  ;;  %v15104_v19 = vmov 2102212464   ;;  %v15117_v8 = vmov 920167782  }
  0xf0   : > { %vm642_vm2 = vcmp.gt.s32.totalorder %v641_v18, 0  ;;  %v15126_v24 = vmov 1326507024   ;;  %v15206_v62 = vand.u32 4294901760, %v9396_v10 }
  0xf1   : > { %8063 = vmatpush3.bf16.msra.mxu0 %v8062_v48  ;;  %v643_v32 = vsel %vm642_vm2, %v641_v18, 0  ;;  %vm746_vm3 = vcmp.gt.s32.totalorder %v745_v23, 0  ;;  %v9480_v48 = vshll.u32 %v743_v21, 8  ;;  %vm1531_vm9 = vcmp.gt.s32.totalorder %v9482_v50, 0 }
  0xf2   : > { %8064 = vmatprep.subr.bf16.mxu0 %v15113_v0  ;;  %v9471_v34 = vshrl.u32 %v643_v32, 5  ;;  %v645_v35 = vand.u32 31, %v643_v32  ;;  %v747_v39 = vsel %vm746_vm3, %v745_v23, 0 }
  0xf3   : > { %v9478_v47 = vand.u32 31, %v747_v39  ;;  %v9490_v12 = vshrl.u32 %v747_v39, 5 }
  0xf4   : > { %v646_v52 = vsub.s32 32, %v645_v35  ;;  %v648_v57 = vshll.u32 %v15124_v55, %v645_v35  ;;  %v651_v2 = vshll.u32 %v15108_v63, %v645_v35  ;;  %v657_v7 = vshll.u32 %v15104_v19, %v645_v35 }
  0xf5   : > { %8066 = vmatpush3.bf16.msra.mxu0 %v8065_v5  ;;  %v654_v5 = vshll.u32 %v15106_v4, %v645_v35  ;;  %v660_v11 = vshll.u32 %v15117_v8, %v645_v35  ;;  %vm663_vm4 = vcmp.lt.s32.totalorder %v9471_v34, 1  ;;  %vm664_vm5 = vcmp.lt.s32.totalorder %v9471_v34, 2 }
  0xf6   : > { %8067 = vmatprep.subr.bf16.mxu0 %v15113_v0  ;;  %v647_v16 = vshrl.u32 %v15124_v55, %v646_v52  ;;  %v649_v18 = vshrl.u32 %v15108_v63, %v646_v52  ;;  %v652_v20 = vshrl.u32 %v15106_v4, %v646_v52  ;;  %v655_v21 = vshrl.u32 %v15104_v19, %v646_v52 }
  0xf7   : > { %v658_v23 = vshrl.u32 %v15117_v8, %v646_v52  ;;  %v661_v25 = vshrl.u32 %v15126_v24, %v646_v52  ;;  %vm666_vm6 = vcmp.lt.s32.totalorder %v9471_v34, 4  ;;  %v750_v51 = vsub.s32 32, %v9478_v47 }
  0xf8   : > { %v650_v32 = vor.u32 %v649_v18, %v648_v57  ;;  %v653_v35 = vor.u32 %v652_v20, %v651_v2  ;;  %v656_v39 = vor.u32 %v655_v21, %v654_v5  ;;  %vm665_vm7 = vcmp.lt.s32.totalorder %v9471_v34, 3 }
  0xf9   : > { %8069 = vmatpush3.bf16.msra.mxu0 %v8068_v30  ;;  %v15102_v30 = vmov 1.0   ;;  %v659_v46 = vor.u32 %v658_v23, %v657_v7  ;;  %v662_v33 = vor.u32 %v661_v25, %v660_v11  ;;  %v752_v52 = vshll.u32 %v15124_v55, %v9478_v47 }
  0xfa   : > { %8070 = vmatprep.subr.bf16.mxu0 %v15113_v0  ;;  %v667_v57 = vsel %vm663_vm4, %v647_v16, %v650_v32  ;;  %v668_v2 = vsel %vm666_vm6, %v656_v39, 2102212464  ;;  %v675_v5 = vsel %vm663_vm4, %v653_v35, %v656_v39  ;;  %vm767_vm8 = vcmp.lt.s32.totalorder %v9490_v12, 1 }
  0xfb   : > { %v669_v7 = vsel %vm665_vm7, %v653_v35, %v668_v2  ;;  %v672_v11 = vsel %vm666_vm6, %v659_v46, 920167782  ;;  %v676_v18 = vsel %vm666_vm6, %v662_v33, 1326507024  ;;  %v751_v21 = vshrl.u32 %v15124_v55, %v750_v51 }
  0xfc   : > { %7896 = vmatmul.mubr.msk.f32.vlgmr.msra.gmra.mrb[0].mxu0 %vm5993_vm1, %v15102_v30  ;;  %v673_v16 = vsel %vm665_vm7, %v656_v39, %v672_v11  ;;  %v677_v20 = vsel %vm665_vm7, %v659_v46, %v676_v18  ;;  %v753_v23 = vshrl.u32 %v15108_v63, %v750_v51  ;;  %v670_v25 = vsel %vm664_vm5, %v667_v57, %v669_v7 }
  0xfd   : > { %8072 = vmatpush3.bf16.msra.mxu0 %v8071_v26  ;;  %7914 = vmatprep.mubr.msk.f32.mxu0 %vm8902_vm0, %v15111_v1  ;;  %v671_v26 = vsel %vm663_vm4, %v650_v32, %v653_v35  ;;  %v678_v32 = vsel %vm664_vm5, %v675_v5, %v677_v20  ;;  %v755_v46 = vshll.u32 %v15108_v63, %v9478_v47  ;;  %vm768_vm10 = vcmp.lt.s32.totalorder %v9490_v12, 2 }
  0xfe   : > { %8073 = vmatprep.subr.bf16.mxu0 %v15113_v0  ;;  %v674_v33 = vsel %vm664_vm5, %v671_v26, %v673_v16  ;;  %v9539_v35 = vmul.u32.u64.low %v9476_v43, %v678_v32  ;;  %v9540_v39 = vmul.u32.u64.high %v9476_v43, %v678_v32, %v9539_v35  ;;  %v754_v57 = vor.u32 %v753_v23, %v752_v52 }
  0xff   : > { %v756_v26 = vshrl.u32 %v15106_v4, %v750_v51  ;;  %v758_v34 = vshll.u32 %v15106_v4, %v9478_v47  ;;  %v759_v5 = vshrl.u32 %v15104_v19, %v750_v51  ;;  %v761_v7 = vshll.u32 %v15104_v19, %v9478_v47 }
 0x100   : > { %v762_v11 = vshrl.u32 %v15117_v8, %v750_v51  ;;  %v764_v18 = vshll.u32 %v15117_v8, %v9478_v47  ;;  %v765_v16 = vshrl.u32 %v15126_v24, %v750_v51  ;;  %v686_v52 = vmul.u32 %v9476_v43, %v670_v25 }
 0x101   : > { %8075 = vmatpush3.bf16.msra.mxu0 %v8074_v27  ;;  %v9543_v27 = vmul.u32.u64.low %v9476_v43, %v674_v33  ;;  %v9544_v2 = vmul.u32.u64.high %v9476_v43, %v674_v33, %v9543_v27  ;;  %v757_v20 = vor.u32 %v756_v26, %v755_v46  ;;  %v760_v23 = vor.u32 %v759_v5, %v758_v34 }
 0x102   : > { %8076 = vmatprep.subr.bf16.mxu0 %v15113_v0  ;;  %v763_v47 = vor.u32 %v762_v11, %v761_v7  ;;  %vm769_vm12 = vcmp.lt.s32.totalorder %v9490_v12, 3  ;;  %v766_v51 = vor.u32 %v765_v16, %v764_v18  ;;  %vm770_vm13 = vcmp.lt.s32.totalorder %v9490_v12, 4 }
 0x103   : > { %vm688_vm11 = vc.u32 %v9540_v39, %v9543_v27  ;;  %v689_v33 = vadd.s32 1, %v9544_v2  ;;  %v775_v43 = vsel %vm767_vm8, %v754_v57, %v757_v20  ;;  %v772_v32 = vsel %vm770_vm13, %v760_v23, 2102212464 }
 0x104   : > { %v776_v46 = vsel %vm770_vm13, %v763_v47, 920167782  ;;  %v779_v35 = vsel %vm767_vm8, %v757_v20, %v760_v23  ;;  %v773_v34 = vsel %vm769_vm12, %v757_v20, %v772_v32  ;;  %v7373_v20 = vld [vmem:[%s9295_s20 + $0x1c8] sm:$0xff]  ;;  %v15101_v12 = vand.u32 2147483647, %v9439_v41 }
 0x105   : > { %8078 = vmatpush3.bf16.msra.mxu0 %v8077_v29  ;;  %v771_v29 = vsel %vm767_vm8, %v751_v21, %v754_v57  ;;  %v690_v25 = vsel %vm688_vm11, %v689_v33, %v9544_v2  ;;  %v777_v21 = vsel %vm769_vm12, %v760_v23, %v776_v46  ;;  %v780_v57 = vsel %vm770_vm13, %v766_v51, 1326507024 }
 0x106   : > { %8079 = vmatprep.subr.bf16.mxu0 %v15113_v0  ;;  %v691_v26 = vadd.s32 %v690_v25, %v686_v52  ;;  %v774_v2 = vsel %vm768_vm10, %v771_v29, %v773_v34  ;;  %v778_v5 = vsel %vm768_vm10, %v775_v43, %v777_v21  ;;  %v781_v7 = vsel %vm769_vm12, %v763_v47, %v780_v57 }
 0x107   : > { %v782_v18 = vsel %vm768_vm10, %v779_v35, %v781_v7  ;;  %v9595_v16 = vmul.u32.u64.low %v9480_v48, %v778_v5  ;;  %v9596_v52 = vmul.u32.u64.high %v9480_v48, %v778_v5, %v9595_v16  ;;  %v790_v51 = vmul.u32 %v9480_v48, %v774_v2 }
 0x108   : > { %v692_v11 = vadd.s32 536870912, %v691_v26  ;;  %v9602_v23 = vmul.u32.u64.low %v9480_v48, %v782_v18  ;;  %v9603_v33 = vmul.u32.u64.high %v9480_v48, %v782_v18, %v9602_v23  ;;  %v9614_v29 = vadd.f32 %v7373_v20, %v9474_v42 }
 0x109   : > { %8081 = vmatpush3.bf16.msra.mxu0 %v8080_v31  ;;  %v1532_v31 = vsel %vm1531_vm9, %v9482_v50, 0  ;;  %v793_v25 = vadd.s32 1, %v9596_v52  ;;  %v1527_v48 = vand.u32 8388607, %v15101_v12 }
 0x10a   : > { %8082 = vmatprep.subr.bf16.mxu0 %v15113_v0  ;;  %v9608_v50 = vshrl.u32 %v692_v11, 30  ;;  %v1534_v47 = vand.u32 31, %v1532_v31  ;;  %vm792_vm14 = vc.u32 %v9603_v33, %v9595_v16  ;;  %v9627_v34 = vshrl.u32 %v1532_v31, 5 }
 0x10b   : > { %v794_v35 = vsel %vm792_vm14, %v793_v25, %v9596_v52  ;;  %v1627_v57 = vand.u32 2139095040, %v9614_v29  ;;  %v1528_v12 = vor.u32 8388608, %v1527_v48  ;;  %v8098_v48 = vpack.c.bf16 %v6641_v6, %v6634_v61 }
 0x10c   : > { %7915 = vmatmul.mubr.f32.vlgmr.msra.gmra.mrb[0].mxu0 %v9332_v37  ;;  %v694_v43 = vshll.u32 %v9608_v50, 30  ;;  %v1535_v32 = vsub.s32 32, %v1534_v47  ;;  %v795_v42 = vadd.s32 %v794_v35, %v790_v51  ;;  %v1537_v21 = vshll.u32 %v15124_v55, %v1534_v47 }
 0x10d   : > { %8084 = vmatpush3.bf16.msra.mxu0 %v9339_v44  ;;  %7933 = vmatprep.mubr.msk.f32.mxu0 %vm8902_vm0, %v15111_v1  ;;  %v1543_v18 = vshll.u32 %v15106_v4, %v1534_v47  ;;  %v1546_v31 = vshll.u32 %v15104_v19, %v1534_v47  ;;  %v8095_v51 = vpack.c.bf16 %v6627_v58, %v6620_v56  ;;  %vm1555_vm15 = vcmp.lt.s32.totalorder %v9627_v34, 4 }
 0x10e   : > { %8085 = vmatprep.subr.bf16.mxu0 %v15113_v0  ;;  %v9621_v46 = vsub.s32 %v691_v26, %v694_v43  ;;  %v1538_v5 = vshrl.u32 %v15108_v63, %v1535_v32  ;;  %v1540_v26 = vshll.u32 %v15108_v63, %v1534_v47  ;;  %v1541_v7 = vshrl.u32 %v15106_v4, %v1535_v32 }
 0x10f   : > { %v796_v11 = vadd.s32 536870912, %v795_v42  ;;  %v1544_v52 = vshrl.u32 %v15104_v19, %v1535_v32  ;;  %v1547_v23 = vshrl.u32 %v15117_v8, %v1535_v32  ;;  %v1549_v25 = vshll.u32 %v15117_v8, %v1534_v47 }
 0x110   : > { %v697_v2 = vsub.s32 0, %v9621_v46  ;;  %v1550_v35 = vshrl.u32 %v15126_v24, %v1535_v32  ;;  %v1539_v30 = vor.u32 %v1538_v5, %v1537_v21  ;;  %v1542_v4 = vor.u32 %v1541_v7, %v1540_v26 }
 0x111   : > { %8087 = vmatpush3.bf16.msra.mxu0 %v9347_v53  ;;  %v9646_v43 = vshrl.u32 %v796_v11, 30  ;;  %v1545_v63 = vor.u32 %v1544_v52, %v1543_v18  ;;  %v1548_v28 = vor.u32 %v1547_v23, %v1546_v31  ;;  %vm1552_vm2 = vcmp.lt.s32.totalorder %v9627_v34, 1 }
 0x112   : > { %8088 = vmatprep.subr.bf16.mxu0 %v15113_v0  ;;  %v7324_v20 = vmin.u32 %v697_v2, %v9621_v46  ;;  %v1628_v2 = vshrl.u32 %v1627_v57, 23  ;;  %v1551_v45 = vor.u32 %v1550_v35, %v1549_v25  ;;  %vm1554_vm3 = vcmp.lt.s32.totalorder %v9627_v34, 3 }
 0x113   : > { %v798_v19 = vshll.u32 %v9646_v43, 30  ;;  %v1536_v58 = vshrl.u32 %v15124_v55, %v1535_v32  ;;  %v1561_v47 = vsel %vm1555_vm15, %v1548_v28, 920167782  ;;  %vm1553_vm4 = vcmp.lt.s32.totalorder %v9627_v34, 2 }
 0x114   : > { %v699_v38 = vclz %v7324_v20  ;;  %v7384_v21 = vadd.s32 4294967169, %v1628_v2  ;;  %v1557_v57 = vsel %vm1555_vm15, %v1545_v63, 2102212464  ;;  %v1562_v32 = vsel %vm1554_vm3, %v1545_v63, %v1561_v47 }
 0x115   : > { %8090 = vmatpush3.bf16.msra.mxu0 %v9374_v3  ;;  %v9656_v56 = vsub.s32 %v795_v42, %v798_v19  ;;  %v1560_v19 = vsel %vm1552_vm2, %v1539_v30, %v1542_v4  ;;  %v1564_v49 = vsel %vm1552_vm2, %v1542_v4, %v1545_v63  ;;  %v1565_v6 = vsel %vm1555_vm15, %v1551_v45, 1326507024 }
 0x116   : > { %8091 = vmatprep.subr.bf16.mxu0 %v15113_v0  ;;  %v7325_v54 = vadd.s32 4294967294, %v699_v38  ;;  %v1568_v42 = vshll.u32 %v1528_v12, 8  ;;  %v1556_v5 = vsel %vm1552_vm2, %v1536_v58, %v1539_v30  ;;  %v1566_v26 = vsel %vm1554_vm3, %v1548_v28, %v1565_v6 }
 0x117   : > { %v801_v61 = vsub.s32 0, %v9656_v56  ;;  %v1558_v63 = vsel %vm1554_vm3, %v1542_v4, %v1557_v57  ;;  %v1563_v7 = vsel %vm1553_vm4, %v1560_v19, %v1562_v32  ;;  %v1567_v11 = vsel %vm1553_vm4, %v1564_v49, %v1566_v26 }
 0x118   : > { %v1634_v18 = vadd.s32 1, %v7384_v21  ;;  %v8101_v12 = vpack.c.bf16 %v6655_v13, %v6648_v9  ;;  %vm7326_vm5 = vcmp.lt.s32.totalorder %v7325_v54, 0  ;;  %v1559_v4 = vsel %vm1553_vm4, %v1556_v5, %v1558_v63 }
 0x119   : > { %8093 = vmatpush3.bf16.msra.mxu0 %v9400_v14  ;;  %v7328_v30 = vmin.u32 %v801_v61, %v9656_v56  ;;  %v9696_v28 = vmul.u32.u64.low %v1568_v42, %v1567_v11  ;;  %v9697_v52 = vmul.u32.u64.high %v1568_v42, %v1567_v11, %v9696_v28  ;;  %v15207_v9 = vand.u32 4294901760, %v9402_v15 }
 0x11a   : > { %8094 = vmatprep.subr.bf16.mxu0 %v15113_v0  ;;  %v9702_v31 = vmul.u32.u64.low %v1568_v42, %v1563_v7  ;;  %v9703_v20 = vmul.u32.u64.high %v1568_v42, %v1563_v7, %v9702_v31  ;;  %vm1635_vm6 = vcmp.gt.s32.totalorder %v1634_v18, 0  ;;  %v1624_v23 = vand.u32 2147483647, %v9614_v29 }
 0x11b   : > { %v1636_v59 = vsel %vm1635_vm6, %v1634_v18, 0  ;;  %v8104_v13 = vpack.c.bf16 %v15207_v9, %v15206_v62  ;;  %v9711_v25 = vsel %vm7326_vm5, 0, %v7325_v54  ;;  %v803_v35 = vclz %v7328_v30 }
 0x11c   : > { %7934 = vmatmul.mubr.f32.vlgmr.msra.gmra.mrb[0].mxu0 %v9362_v60  ;;  %v1575_v34 = vmul.u32 %v1568_v42, %v1559_v4  ;;  %vm1577_vm7 = vc.u32 %v9697_v52, %v9702_v31  ;;  %v1578_v2 = vadd.s32 1, %v9703_v20  ;;  %v707_v10 = vsub.s32 4294967266, %v9711_v25 }
 0x11d   : > { %8096 = vmatpush3.bf16.msra.mxu0 %v8095_v51  ;;  %7952 = vmatprep.mubr.msk.f32.mxu0 %vm8902_vm0, %v15111_v1  ;;  %v1638_v51 = vand.u32 31, %v1636_v59  ;;  %v1631_v45 = vand.u32 8388607, %v1624_v23  ;;  %v687_v58 = vadd.s32 %v9543_v27, %v9540_v39  ;;  %v7329_v47 = vadd.s32 4294967294, %v803_v35 }
 0x11e   : > { %8097 = vmatprep.subr.bf16.mxu0 %v15113_v0  ;;  %v1579_v15 = vsel %vm1577_vm7, %v1578_v2, %v9703_v20  ;;  %v15208_v57 = vmov 2475754826   ;;  %v15209_v49 = vmov 2131351028   ;;  %v703_v61 = vsub.s32 32, %v9711_v25  ;;  %v7420_v2 = vld [vmem:[%s9295_s20 + $0x140] sm:$0xff] }
 0x11f   : > { %v1639_v38 = vsub.s32 32, %v1638_v51  ;;  %v1641_v21 = vshll.u32 %v15124_v55, %v1638_v51  ;;  %v1644_v32 = vshll.u32 %v15208_v57, %v1638_v51  ;;  %v9729_v42 = vshrl.u32 %v1636_v59, 5 }
 0x120   : > { %v15210_v5 = vmov 2102212464   ;;  %v708_v27 = vadd.s32 127, %v707_v10  ;;  %v1632_v26 = vor.u32 8388608, %v1631_v45  ;;  %v1647_v63 = vshll.u32 %v15209_v49, %v1638_v51 }
 0x121   : > { %8099 = vmatpush3.bf16.msra.mxu0 %v8098_v48  ;;  %v1580_v48 = vadd.s32 %v1579_v15, %v1575_v34  ;;  %v1642_v19 = vshrl.u32 %v15208_v57, %v1639_v38  ;;  %v1645_v54 = vshrl.u32 %v15209_v49, %v1639_v38  ;;  %v1650_v39 = vshll.u32 %v15210_v5, %v1638_v51 }
 0x122   : > { %8100 = vmatprep.subr.bf16.mxu0 %v15113_v0  ;;  %v1648_v7 = vshrl.u32 %v15210_v5, %v1639_v38  ;;  %v15211_v11 = vmov 1.0   ;;  %v704_v18 = vshll.u32 %v9621_v46, %v9711_v25  ;;  %vm7330_vm8 = vcmp.lt.s32.totalorder %v7329_v47, 0 }
 0x123   : > { %v1581_v6 = vadd.s32 536870912, %v1580_v48  ;;  %v1651_v30 = vshrl.u32 %v15117_v8, %v1639_v38  ;;  %v1643_v28 = vor.u32 %v1642_v19, %v1641_v21  ;;  %v1646_v4 = vor.u32 %v1645_v54, %v1644_v32  ;;  %v7429_v54 = vld [vmem:[%s9295_s20 + $0x200] sm:$0xff] }
 0x124   : > { %v1653_v20 = vshll.u32 %v15117_v8, %v1638_v51  ;;  %v1654_v59 = vshrl.u32 %v15126_v24, %v1639_v38  ;;  %v705_v46 = vshrl.u32 %v687_v58, %v703_v61  ;;  %vm1656_vm9 = vcmp.lt.s32.totalorder %v9729_v42, 1 }
 0x125   : > { %8102 = vmatpush3.bf16.msra.mxu0 %v8101_v12  ;;  %v9744_v12 = vshrl.u32 %v1581_v6, 30  ;;  %v1652_v9 = vor.u32 %v1651_v30, %v1650_v39  ;;  %v9759_v25 = vsel %vm7330_vm8, 0, %v7329_v47  ;;  %v1649_v35 = vor.u32 %v1648_v7, %v1647_v63 }
 0x126   : > { %8103 = vmatprep.subr.bf16.mxu0 %v15113_v0  ;;  %v1672_v34 = vshll.u32 %v1632_v26, 8  ;;  %v1640_v10 = vshrl.u32 %v15124_v55, %v1639_v38  ;;  %vm1658_vm10 = vcmp.lt.s32.totalorder %v9729_v42, 3  ;;  %vm1659_vm11 = vcmp.lt.s32.totalorder %v9729_v42, 4 }
 0x127   : > { %v1583_v62 = vshll.u32 %v9744_v12, 30  ;;  %v1655_v15 = vor.u32 %v1654_v59, %v1653_v20  ;;  %vm1657_vm12 = vcmp.lt.s32.totalorder %v9729_v42, 2  ;;  %v1661_v45 = vsel %vm1659_vm11, %v1649_v35, 2102212464 }
 0x128   : > { %v1664_v58 = vsel %vm1656_vm9, %v1643_v28, %v1646_v4  ;;  %v1665_v47 = vsel %vm1659_vm11, %v1652_v9, 920167782  ;;  %v706_v21 = vor.u32 %v705_v46, %v704_v18  ;;  %v811_v19 = vsub.s32 4294967266, %v9759_v25 }
 0x129   : > { %8105 = vmatpush3.bf16.msra.mxu0 %v8104_v13  ;;  %v9756_v13 = vld [vmem:[%s9740_s9] ss:$0 sm:$0xff]  ;;  %v9762_v51 = vsub.s32 %v1580_v48, %v1583_v62  ;;  %v1666_v32 = vsel %vm1658_vm10, %v1649_v35, %v1665_v47  ;;  %v1660_v6 = vsel %vm1656_vm9, %v1640_v10, %v1643_v28  ;;  %v1662_v39 = vsel %vm1658_vm10, %v1646_v4, %v1661_v45 }
 0x12a   : > { %8106 = vmatprep.subr.bf16.mxu0 %v15113_v0  ;;  %v2392_v48 = vmul.f32 %v9756_v13, %v7420_v2  ;;  %v1668_v26 = vsel %vm1656_vm9, %v1646_v4, %v1649_v35  ;;  %v1669_v63 = vsel %vm1659_vm11, %v1655_v15, 1326507024  ;;  %v791_v30 = vadd.s32 %v9595_v16, %v9603_v33 }
 0x12b   : > { %v1586_v38 = vsub.s32 0, %v9762_v51  ;;  %v807_v46 = vsub.s32 32, %v9759_v25  ;;  %v1670_v4 = vsel %vm1658_vm10, %v1652_v9, %v1669_v63  ;;  %v812_v62 = vadd.s32 127, %v811_v19  ;;  %v7421_v19 = vld [vmem:[%s9295_s20 + $0x148] sm:$0xff] }
 0x12c   : > { %7953 = vmatmul.mubr.msk.f32.vlgmr.msra.gmra.mrb[0].mxu0 %vm5993_vm1, %v15211_v11  ;;  %v9801_v20 = vadd.f32 %v7429_v54, %v2392_v48  ;;  %v1663_v35 = vsel %vm1657_vm12, %v1660_v6, %v1662_v39  ;;  %v1671_v2 = vsel %vm1657_vm12, %v1668_v26, %v1670_v4  ;;  %v808_v42 = vshll.u32 %v9656_v56, %v9759_v25 }
 0x12d   : > { %8108 = vmatpush3.bf16.msra.mxu0 %v9339_v44  ;;  %7971 = vmatprep.mubr.msk.f32.mxu0 %vm8902_vm0, %v15111_v1  ;;  %v709_v44 = vshll.u32 %v708_v27, 23  ;;  %v7381_v61 = vmin.u32 %v1586_v38, %v9762_v51  ;;  %v1667_v27 = vsel %vm1657_vm12, %v1664_v58, %v1666_v32  ;;  %v1679_v45 = vmul.u32 %v1672_v34, %v1663_v35 }
 0x12e   : > { %8109 = vmatprep.subr.bf16.mxu0 %v15113_v0  ;;  %v9794_v7 = vmul.u32.u64.low %v1672_v34, %v1667_v27  ;;  %v9795_v18 = vmul.u32.u64.high %v1672_v34, %v1667_v27, %v9794_v7  ;;  %v9811_v16 = vmul.u32.u64.low %v1672_v34, %v1671_v2  ;;  %v9812_v33 = vmul.u32.u64.high %v1672_v34, %v1671_v2, %v9811_v16 }
 0x12f   : > { %v1588_v28 = vclz %v7381_v61  ;;  %v2420_v9 = vand.u32 2139095040, %v9801_v20  ;;  %v809_v58 = vshrl.u32 %v791_v30, %v807_v46  ;;  %v813_v38 = vshll.u32 %v812_v62, 23 }
 0x130   : > { %v1682_v10 = vadd.s32 1, %v9795_v18  ;;  %vm1681_vm14 = vc.u32 %v9812_v33, %v9794_v7  ;;  %v717_v34 = vsub.s32 4, %v9608_v50  ;;  %vm633_vm15 = vcmp.lt.s32.totalorder %v9435_v36, 0 }
 0x131   : > { %8111 = vmatpush3.bf16.msra.mxu0 %v9347_v53  ;;  %v710_v53 = vor.u32 4788187, %v709_v44  ;;  %v7382_v44 = vadd.s32 4294967294, %v1588_v28  ;;  %v2421_v48 = vshrl.u32 %v2420_v9, 23  ;;  %v810_v32 = vor.u32 %v809_v58, %v808_v42 }
 0x132   : > { %8112 = vmatprep.subr.bf16.mxu0 %v15113_v0  ;;  %v1683_v47 = vsel %vm1681_vm14, %v1682_v10, %v9795_v18  ;;  %v814_v54 = vor.u32 4788187, %v813_v38  ;;  %v15212_v6 = vand.u32 2147483647, %v9435_v36  ;;  %v2393_v27 = vmul.f32 %v9756_v13, %v7421_v19  ;;  %v7430_v13 = vld [vmem:[%s9295_s20 + $0x208] sm:$0xff] }
 0x133   : > { %v711_v59 = vand.u32 2147483647, %v710_v53  ;;  %vm7383_vm13 = vcmp.lt.s32.totalorder %v7382_v44, 0  ;;  %v1684_v53 = vadd.s32 %v1683_v47, %v1679_v45  ;;  %v7437_v61 = vadd.s32 4294967169, %v2421_v48 }
 0x134   : > { %vm9828_vm2 = vcmp.le.f32.partialorder %v15212_v6, 0.7853982  ;;  %v9834_v18 = vsel %vm633_vm15, %v717_v34, %v9608_v50  ;;  %v1576_v30 = vadd.s32 %v9702_v31, %v9697_v52  ;;  %v2417_v46 = vand.u32 2147483647, %v9801_v20 }
 0x135   : > { %8114 = vmatpush3.bf16.msra.mxu0 %v9374_v3  ;;  %v713_v3 = vcvt.s32.f32 %v706_v21  ;;  %v1685_v25 = vadd.s32 536870912, %v1684_v53  ;;  %v2427_v26 = vadd.s32 1, %v7437_v61  ;;  %v720_v52 = vsel %vm9828_vm2, 0, %v9834_v18 }
 0x136   : > { %8115 = vmatprep.subr.bf16.mxu0 %v15113_v0  ;;  %vm737_vm4 = vcmp.lt.s32.totalorder %v9437_v40, 0  ;;  %v821_v31 = vsub.s32 4, %v9646_v43  ;;  %v2424_v38 = vand.u32 8388607, %v2417_v46  ;;  %vm1522_vm10 = vcmp.lt.s32.totalorder %v9439_v41, 0 }
 0x137   : > { %v714_v15 = vmul.f32 %v713_v3, %v711_v59  ;;  %v9838_v28 = vshrl.u32 %v1685_v25, 30  ;;  %v815_v59 = vand.u32 2147483647, %v814_v54  ;;  %v817_v3 = vcvt.s32.f32 %v810_v32 }
 0x138   : > { %vm2428_vm3 = vcmp.gt.s32.totalorder %v2427_v26, 0 }
 0x139   : > { %8117 = vmatpush3.bf16.msra.mxu0 %v9400_v14  ;;  %v1591_v14 = vsel %vm7383_vm13, 0, %v7382_v44  ;;  %v715_v21 = vxor.u32 2147483648, %v714_v15  ;;  %v1687_v44 = vshll.u32 %v9838_v28, 30  ;;  %v2429_v35 = vsel %vm2428_vm3, %v2427_v26, 0 }
 0x13a   : > { %v1596_v56 = vsub.s32 4294967266, %v1591_v14  ;;  %v1592_v4 = vsub.s32 32, %v1591_v14  ;;  %v2431_v2 = vand.u32 31, %v2429_v35  ;;  %v818_v16 = vmul.f32 %v817_v3, %v815_v59 }
 0x13b   : > { %v716_v63 = vsel %vm633_vm15, %v715_v21, %v714_v15  ;;  %v1593_v10 = vshll.u32 %v9762_v51, %v1591_v14  ;;  %v9854_v15 = vadd.f32 %v7430_v13, %v2393_v27  ;;  %v9856_v58 = vsub.s32 %v1684_v53, %v1687_v44 }
 0x13c   : > { %7972 = vmatmul.mubr.msk.f32.vlgmr.msra.gmra.mrb[0].mxu0 %vm5993_vm1, %v15211_v11  ;;  %v1597_v62 = vadd.s32 127, %v1596_v56  ;;  %v9846_v50 = vsel %vm9828_vm2, %v9435_v36, %v716_v63  ;;  %v2432_v45 = vsub.s32 32, %v2431_v2  ;;  %v1594_v9 = vshrl.u32 %v1576_v30, %v1592_v4 }
 0x13d   : > { %v2434_v47 = vshll.u32 %v15124_v55, %v2431_v2  ;;  %v2437_v21 = vshll.u32 %v15208_v57, %v2431_v2  ;;  %v9867_v51 = vsel %vm737_vm4, %v821_v31, %v9646_v43  ;;  %v2430_v14 = vshrl.u32 %v2429_v35, 5 }
 0x13e   : > { %v1598_v42 = vshll.u32 %v1597_v62, 23  ;;  %v2435_v48 = vshrl.u32 %v15208_v57, %v2432_v45  ;;  %v2438_v34 = vshrl.u32 %v15209_v49, %v2432_v45  ;;  %v2440_v53 = vshll.u32 %v15209_v49, %v2431_v2 }
 0x13f   : > { %v2441_v19 = vshrl.u32 %v15210_v5, %v2432_v45  ;;  %8419 = vcosq.f32 %v9846_v50  ;;  %v819_v32 = vxor.u32 2147483648, %v818_v16  ;;  %v2443_v54 = vshll.u32 %v15210_v5, %v2431_v2 }
 0x140   : > { %v2524_v61 = vand.u32 2139095040, %v9854_v15  ;;  %v1595_v56 = vor.u32 %v1594_v9, %v1593_v10  ;;  %v1599_v25 = vor.u32 4788187, %v1598_v42  ;;  %v1690_v6 = vsub.s32 0, %v9856_v58 }
 0x141   : > { %v2425_v27 = vor.u32 8388608, %v2424_v38  ;;  %v15215_v43 = vand.u32 2147483647, %v9437_v40  ;;  %v2436_v63 = vor.u32 %v2435_v48, %v2434_v47  ;;  %v2439_v30 = vor.u32 %v2438_v34, %v2437_v21 }
 0x142   : > { %v2444_v59 = vshrl.u32 %v15117_v8, %v2432_v45  ;;  %v2446_v3 = vshll.u32 %v15117_v8, %v2431_v2  ;;  %v2433_v4 = vshrl.u32 %v15124_v55, %v2432_v45  ;;  %v2442_v62 = vor.u32 %v2441_v19, %v2440_v53 }
 0x143   : > { %vm9877_vm5 = vcmp.le.f32.partialorder %v15215_v43, 0.7853982  ;;  %v2447_v44 = vshrl.u32 %v15126_v24, %v2432_v45  ;;  %vm2449_vm6 = vcmp.lt.s32.totalorder %v2430_v14, 1  ;;  %v820_v13 = vsel %vm737_vm4, %v819_v32, %v818_v16 }
 0x144   : > { %v2445_v35 = vor.u32 %v2444_v59, %v2443_v54  ;;  %vm2452_vm7 = vcmp.lt.s32.totalorder %v2430_v14, 4  ;;  %v2525_v31 = vshrl.u32 %v2524_v61, 23  ;;  %v7385_v10 = vmin.u32 %v1690_v6, %v9856_v58  ;;  %v7469_v54 = vld [vmem:[%s9298_s12 + $0xc0] sm:$0xff] }
 0x145   : > { %v2448_v9 = vor.u32 %v2447_v44, %v2446_v3  ;;  %vm2451_vm8 = vcmp.lt.s32.totalorder %v2430_v14, 3  ;;  %v2454_v42 = vsel %vm2452_vm7, %v2442_v62, 2102212464  ;;  %vm2450_vm9 = vcmp.lt.s32.totalorder %v2430_v14, 2 }
 0x146   : > { %v2457_v2 = vsel %vm2449_vm6, %v2436_v63, %v2439_v30  ;;  %v2458_v38 = vsel %vm2452_vm7, %v2445_v35, 920167782  ;;  %v2465_v45 = vshll.u32 %v2425_v27, 8  ;;  %v1600_v47 = vand.u32 2147483647, %v1599_v25 }
 0x147   : > { %v1602_v48 = vcvt.s32.f32 %v1595_v56  ;;  %v2453_v16 = vsel %vm2449_vm6, %v2433_v4, %v2436_v63  ;;  %v2461_v21 = vsel %vm2449_vm6, %v2439_v30, %v2442_v62  ;;  %v2455_v34 = vsel %vm2451_vm8, %v2439_v30, %v2454_v42 }
 0x148   : > { %v2459_v53 = vsel %vm2451_vm8, %v2442_v62, %v2458_v38  ;;  %v2462_v19 = vsel %vm2452_vm7, %v2448_v9, 1326507024  ;;  %v7441_v32 = vadd.s32 4294967169, %v2525_v31  ;;  %v1692_v61 = vclz %v7385_v10 }
 0x149   : > { %v2460_v6 = vsel %vm2450_vm9, %v2457_v2, %v2459_v53  ;;  %v2463_v43 = vsel %vm2451_vm8, %v2445_v35, %v2462_v19  ;;  %v15116_v25 = vand.u32 2147483647, %v9854_v15  ;;  %v9900_v56 = vpop.eup %8419  ;;  %v724_v3 = vadd.s32 3, %v720_v52 }
 0x14a   : > { %v2464_v27 = vsel %vm2450_vm9, %v2461_v21, %v2463_v43  ;;  %v9903_v63 = vmul.u32.u64.low %v2465_v45, %v2460_v6  ;;  %v9904_v59 = vmul.u32.u64.high %v2465_v45, %v2460_v6, %v9903_v63  ;;  %v2531_v30 = vadd.s32 1, %v7441_v32 }
 0x14b   : > { %v1603_v4 = vmul.f32 %v1602_v48, %v1600_v47  ;;  %v2456_v62 = vsel %vm2450_vm9, %v2453_v16, %v2455_v34  ;;  %v9913_v44 = vmul.f32 %v7469_v54, %v9408_v17  ;;  %v823_v10 = vsel %vm9877_vm5, %v9437_v40, %v820_v13 }
 0x14c   : > { %v9916_v35 = vmul.u32.u64.low %v2465_v45, %v2464_v27  ;;  %v9917_v31 = vmul.u32.u64.high %v2465_v45, %v2464_v27, %v9916_v35  ;;  %vm2532_vm11 = vcmp.gt.s32.totalorder %v2531_v30, 0  ;;  %v824_v39 = vsel %vm9877_vm5, 0, %v9867_v51 }
 0x14d   : > { %v7386_v18 = vadd.s32 4294967294, %v1692_v61  ;;  %v2533_v52 = vsel %vm2532_vm11, %v2531_v30, 0  ;;  %v2472_v14 = vmul.u32 %v2465_v45, %v2456_v62  ;;  %v2475_v17 = vadd.s32 1, %v9904_v59 }
 0x14e   : > { %v2528_v9 = vand.u32 8388607, %v15116_v25  ;;  %v2535_v42 = vand.u32 31, %v2533_v52  ;;  %8421 = vsinq.f32 %v9846_v50  ;;  %v9929_v2 = vand.u32 3, %v724_v3 }
 0x14f   : > { %v15218_v38 = vand.u32 2147483647, %v9439_v41  ;;  %v1604_v51 = vxor.u32 2147483648, %v1603_v4  ;;  %v9937_v26 = vadd.s32 3, %v824_v39  ;;  %v1606_v45 = vsub.s32 4, %v9744_v12 }
 0x150   : > { %vm2474_vm13 = vc.u32 %v9917_v31, %v9903_v63  ;;  %v2536_v47 = vsub.s32 32, %v2535_v42  ;;  %8423 = vcosq.f32 %v823_v10  ;;  %vm7387_vm14 = vcmp.lt.s32.totalorder %v7386_v18, 0 }
 0x151   : > { %vm9933_vm12 = vcmp.le.f32.partialorder %v15218_v38, 0.7853982  ;;  %v2476_v50 = vsel %vm2474_vm13, %v2475_v17, %v9904_v59  ;;  %v2538_v48 = vshll.u32 %v15124_v55, %v2535_v42  ;;  %v2529_v21 = vor.u32 8388608, %v2528_v9 }
 0x152   : > { %v2477_v16 = vadd.s32 %v2476_v50, %v2472_v14  ;;  %v2539_v34 = vshrl.u32 %v15208_v57, %v2536_v47  ;;  %v2541_v53 = vshll.u32 %v15208_v57, %v2535_v42  ;;  %v1605_v19 = vsel %vm1522_vm10, %v1604_v51, %v1603_v4 }
 0x153   : > { %v2534_v32 = vshrl.u32 %v2533_v52, 5  ;;  %v2542_v54 = vshrl.u32 %v15209_v49, %v2536_v47  ;;  %v2544_v61 = vshll.u32 %v15209_v49, %v2535_v42  ;;  %v9950_v6 = vsel %vm7387_vm14, 0, %v7386_v18 }
 0x154   : > { %v2478_v43 = vadd.s32 536870912, %v2477_v16  ;;  %v2545_v27 = vshrl.u32 %v15210_v5, %v2536_v47  ;;  %v2547_v59 = vshll.u32 %v15210_v5, %v2535_v42  ;;  %v2540_v30 = vor.u32 %v2539_v34, %v2538_v48 }
 0x155   : > { %v2543_v3 = vor.u32 %v2542_v54, %v2541_v53  ;;  %v2548_v62 = vshrl.u32 %v15117_v8, %v2536_v47  ;;  %v2550_v35 = vshll.u32 %v15117_v8, %v2535_v42  ;;  %v731_v4 = vxor.u32 2147483648, %v9900_v56 }
 0x156   : > { %8425 = vsinq.f32 %v823_v10  ;;  %v9957_v39 = vshrl.u32 %v2478_v43, 30  ;;  %v2551_v52 = vshrl.u32 %v15126_v24, %v2536_v47  ;;  %vm730_vm15 = vcmp.eq.s32.totalorder %v9929_v2, 2 }
 0x157   : > { %v1700_v18 = vsub.s32 4294967266, %v9950_v6  ;;  %v2546_v14 = vor.u32 %v2545_v27, %v2544_v61  ;;  %v2549_v17 = vor.u32 %v2548_v62, %v2547_v59  ;;  %vm2553_vm2 = vcmp.lt.s32.totalorder %v2534_v32, 1  ;;  %v7477_v59 = vld [vmem:[%s9298_s12 + $0x180] sm:$0xff] }
 0x158   : > { %v1608_v9 = vsel %vm9933_vm12, %v9439_v41, %v1605_v19  ;;  %v2480_v42 = vshll.u32 %v9957_v39, 30  ;;  %vm2554_vm3 = vcmp.lt.s32.totalorder %v2534_v32, 2  ;;  %v9966_v10 = vshll.u32 %v2529_v21, 8  ;;  %v8422_v38 = vpop.eup %8421 }
 0x159   : > { %v2552_v51 = vor.u32 %v2551_v52, %v2550_v35  ;;  %vm2555_vm4 = vcmp.lt.s32.totalorder %v2534_v32, 3  ;;  %vm2556_vm5 = vcmp.lt.s32.totalorder %v2534_v32, 4  ;;  %v2561_v50 = vsel %vm2553_vm2, %v2540_v30, %v2543_v3 }
 0x15a   : > { %v1680_v48 = vadd.s32 %v9794_v7, %v9812_v33  ;;  %v9971_v34 = vsub.s32 %v2477_v16, %v2480_v42  ;;  %v2537_v53 = vshrl.u32 %v15124_v55, %v2536_v47  ;;  %v2562_v19 = vsel %vm2556_vm5, %v2549_v17, 920167782  ;;  %v9975_v54 = vpop.eup %8423 }
 0x15b   : > { %v1696_v21 = vsub.s32 32, %v9950_v6  ;;  %v1701_v61 = vadd.s32 127, %v1700_v18  ;;  %v2558_v43 = vsel %vm2556_vm5, %v2546_v14, 2102212464  ;;  %v2563_v27 = vsel %vm2555_vm4, %v2546_v14, %v2562_v19 }
 0x15c   : > { %v728_v62 = vxor.u32 2147483648, %v8422_v38  ;;  %8427 = vcosq.f32 %v1608_v9  ;;  %v2564_v7 = vsel %vm2554_vm3, %v2561_v50, %v2563_v27  ;;  %v2565_v33 = vsel %vm2553_vm2, %v2543_v3, %v2546_v14 }
 0x15d   : > { %v2483_v47 = vsub.s32 0, %v9971_v34  ;;  %v2566_v16 = vsel %vm2556_vm5, %v2552_v51, 1326507024  ;;  %v9986_v35 = vmul.u32.u64.low %v9966_v10, %v2564_v7  ;;  %v9987_v52 = vmul.u32.u64.high %v9966_v10, %v2564_v7, %v9986_v35 }
 0x15e   : > { %v2557_v18 = vsel %vm2553_vm2, %v2537_v53, %v2540_v30  ;;  %v2559_v42 = vsel %vm2555_vm4, %v2543_v3, %v2558_v43  ;;  %v2567_v19 = vsel %vm2555_vm4, %v2549_v17, %v2566_v16  ;;  %v9994_v1 = vadd.f32 %v7477_v59, %v9913_v44 }
 0x15f   : > { %v1697_v14 = vshll.u32 %v9856_v58, %v9950_v6  ;;  %v1698_v50 = vshrl.u32 %v1680_v48, %v1696_v21  ;;  %v1702_v27 = vshll.u32 %v1701_v61, 23  ;;  %v2568_v51 = vsel %vm2554_vm3, %v2565_v33, %v2567_v19 }
 0x160   : > { %v8426_v0 = vpop.eup %8425  ;;  %vm727_vm6 = vcmp.eq.s32.totalorder %v9929_v2, 0  ;;  %v829_v7 = vand.u32 3, %v9937_v26  ;;  %8429 = vsinq.f32 %v1608_v9  ;;  %v7438_v30 = vmin.u32 %v2483_v47, %v9971_v34 }
 0x161   : > { %v2560_v3 = vsel %vm2554_vm3, %v2557_v18, %v2559_v42  ;;  %v10004_v44 = vmul.u32.u64.low %v9966_v10, %v2568_v51  ;;  %v10005_v17 = vmul.u32.u64.high %v9966_v10, %v2568_v51, %v10004_v44  ;;  %vm726_vm7 = vcmp.lt.s32.totalorder %v9929_v2, 2  ;;  %v7470_v18 = vld [vmem:[%s9298_s12 + $0xc8] sm:$0xff]  ;;  %v583_v42 = vld [vmem:[%s9295_s20] sm:$0xff] }
 0x162   : > { %v732_v58 = vsel %vm730_vm15, %v731_v4, %v8422_v38  ;;  %v1607_v26 = vsel %vm1522_vm10, %v1606_v45, %v9744_v12  ;;  %v3310_v6 = vand.u32 2139095040, %v9994_v1  ;;  %v729_v32 = vsel %vm727_vm6, %v9900_v56, %v728_v62 }
 0x163   : > { %v1699_v9 = vor.u32 %v1698_v50, %v1697_v14  ;;  %v1703_v48 = vor.u32 4788187, %v1702_v27  ;;  %v2579_v53 = vadd.s32 1, %v9987_v52  ;;  %vm723_vm8 = vweird.f32 %v9435_v36  ;;  %v8611_v36 = vld [vmem:[%s9382_s14] ss:$0 sm:$0xff] }
 0x164   : > { %vm831_vm9 = vcmp.eq.s32.totalorder %v829_v7, 0  ;;  %v2576_v21 = vmul.u32 %v9966_v10, %v2560_v3  ;;  %v3311_v4 = vshrl.u32 %v3310_v6, 23  ;;  %vm834_vm11 = vcmp.eq.s32.totalorder %v829_v7, 2 }
 0x165   : > { %v1609_v38 = vsel %vm9933_vm12, 0, %v1607_v26  ;;  %v2485_v12 = vclz %v7438_v30  ;;  %vm2578_vm10 = vc.u32 %v10005_v17, %v9986_v35  ;;  %v733_v45 = vsel %vm726_vm7, %v729_v32, %v732_v58 }
 0x166   : > { %v10024_v56 = vpop.eup %8427  ;;  %v832_v61 = vxor.u32 2147483648, %v8426_v0  ;;  %v835_v43 = vxor.u32 2147483648, %v9975_v54  ;;  %v1710_v10 = vsub.s32 4, %v9838_v28  ;;  %v1704_v59 = vand.u32 2147483647, %v1703_v48 }
 0x167   : > { %v1706_v62 = vcvt.s32.f32 %v1699_v9  ;;  %v2580_v13 = vsel %vm2578_vm10, %v2579_v53, %v9987_v52  ;;  %v7485_v33 = vadd.s32 4294967169, %v3311_v4  ;;  %v1613_v47 = vadd.s32 3, %v1609_v38 }
 0x168   : > { %vm10033_vm12 = vcmp.le.f32.partialorder %v1624_v23, 0.7853982  ;;  %vm1626_vm13 = vcmp.lt.s32.totalorder %v9614_v29, 0  ;;  %v2581_v2 = vadd.s32 %v2580_v13, %v2576_v21  ;;  %v734_v19 = vsel %vm723_vm8, nan, %v733_v45 }
 0x169   : > { %vm830_vm14 = vcmp.lt.s32.totalorder %v829_v7, 2  ;;  %v7439_v52 = vadd.s32 4294967294, %v2485_v12  ;;  %v3317_v14 = vadd.s32 1, %v7485_v33  ;;  %v833_v23 = vsel %vm831_vm9, %v9975_v54, %v832_v61 }
 0x16a   : > { %v10042_v50 = vpop.eup %8429  ;;  %v836_v27 = vsel %vm834_vm11, %v835_v43, %v8426_v0  ;;  %v10050_v51 = vsel %vm1626_vm13, %v1710_v10, %v9838_v28  ;;  %v2582_v30 = vadd.s32 536870912, %v2581_v2  ;;  %v10052_v3 = vmul.f32 %v1706_v62, %v1704_v59  ;;  %v7478_v0 = vld [vmem:[%s9298_s12 + $0x188] sm:$0xff] }
 0x16b   : > { %v3283_v44 = vmul.f32 %v8611_v36, %v7470_v18  ;;  %v15115_v58 = vand.u32 2147483647, %v9994_v1  ;;  %vm3318_vm15 = vcmp.gt.s32.totalorder %v3317_v14, 0  ;;  %v10056_v26 = vmul.f32 %v734_v19, %v583_v42 }
 0x16c   : > { %v10058_v6 = vand.u32 3, %v1613_v47  ;;  %v10060_v54 = vshrl.u32 %v2582_v30, 30  ;;  %v3319_v32 = vsel %vm3318_vm15, %v3317_v14, 0  ;;  %v10064_v9 = vsel %vm830_vm14, %v833_v23, %v836_v27 }
 0x16d   : > { %v1713_v28 = vsel %vm10033_vm12, 0, %v10050_v51  ;;  %vm7440_vm2 = vcmp.lt.s32.totalorder %v7439_v52, 0  ;;  %v3321_v48 = vand.u32 31, %v3319_v32  ;;  %v1617_v53 = vxor.u32 2147483648, %v10042_v50 }
 0x16e   : > { %v1620_v21 = vxor.u32 2147483648, %v10024_v56  ;;  %v2473_v4 = vadd.s32 %v9903_v63, %v9917_v31  ;;  %v2584_v38 = vshll.u32 %v10060_v54, 30  ;;  %v1708_v12 = vxor.u32 2147483648, %v10052_v3 }
 0x16f   : > { %v10075_v7 = vadd.f32 %v7478_v0, %v3283_v44  ;;  %v3314_v45 = vand.u32 8388607, %v15115_v58  ;;  %v3322_v61 = vsub.s32 32, %v3321_v48  ;;  %v10079_v43 = vsel %vm7440_vm2, 0, %v7439_v52 }
 0x170   : > { %v10081_v10 = vsub.s32 %v2581_v2, %v2584_v38  ;;  %v3324_v59 = vshll.u32 %v15124_v55, %v3321_v48  ;;  %v3327_v62 = vshll.u32 %v15208_v57, %v3321_v48  ;;  %vm1619_vm3 = vcmp.eq.s32.totalorder %v10058_v6, 2 }
 0x171   : > { %v3325_v63 = vshrl.u32 %v15208_v57, %v3322_v61  ;;  %v3328_v31 = vshrl.u32 %v15209_v49, %v3322_v61  ;;  %v3330_v13 = vshll.u32 %v15209_v49, %v3321_v48  ;;  %v3333_v33 = vshll.u32 %v15210_v5, %v3321_v48 }
 0x172   : > { %v2489_v47 = vsub.s32 32, %v10079_v43  ;;  %v2587_v18 = vsub.s32 0, %v10081_v10  ;;  %v3320_v2 = vshrl.u32 %v3319_v32, 5  ;;  %v3331_v42 = vshrl.u32 %v15210_v5, %v3322_v61 }
 0x173   : > { %vm1616_vm4 = vcmp.eq.s32.totalorder %v10058_v6, 0  ;;  %v2493_v19 = vsub.s32 4294967266, %v10079_v43  ;;  %v3315_v52 = vor.u32 8388608, %v3314_v45  ;;  %v3334_v14 = vshrl.u32 %v15117_v8, %v3322_v61 }
 0x174   : > { %v3336_v23 = vshll.u32 %v15117_v8, %v3321_v48  ;;  %vm827_vm5 = vweird.f32 %v9437_v40  ;;  %v2490_v27 = vshll.u32 %v9971_v34, %v10079_v43  ;;  %v7442_v30 = vmin.u32 %v2587_v18, %v10081_v10 }
 0x175   : > { %v3323_v36 = vshrl.u32 %v15124_v55, %v3322_v61  ;;  %v3326_v44 = vor.u32 %v3325_v63, %v3324_v59  ;;  %v3329_v0 = vor.u32 %v3328_v31, %v3327_v62  ;;  %v3332_v32 = vor.u32 %v3331_v42, %v3330_v13 }
 0x176   : > { %v3335_v38 = vor.u32 %v3334_v14, %v3333_v33  ;;  %v3337_v58 = vshrl.u32 %v15126_v24, %v3322_v61  ;;  %vm1615_vm6 = vcmp.lt.s32.totalorder %v10058_v6, 2  ;;  %vm2419_vm7 = vcmp.lt.s32.totalorder %v9801_v20, 0 }
 0x177   : > { %v2491_v48 = vshrl.u32 %v2473_v4, %v2489_v47  ;;  %v2589_v45 = vclz %v7442_v30  ;;  %vm3339_vm8 = vcmp.lt.s32.totalorder %v3320_v2, 1  ;;  %v3414_v25 = vand.u32 2139095040, %v10075_v7 }
 0x178   : > { %v2494_v34 = vadd.s32 127, %v2493_v19  ;;  %v3338_v43 = vor.u32 %v3337_v58, %v3336_v23  ;;  %vm3340_vm9 = vcmp.lt.s32.totalorder %v3320_v2, 2  ;;  %v3355_v18 = vshll.u32 %v3315_v52, 8 }
 0x179   : > { %v7443_v8 = vadd.s32 4294967294, %v2589_v45  ;;  %vm3341_vm11 = vcmp.lt.s32.totalorder %v3320_v2, 3  ;;  %vm3342_vm10 = vcmp.lt.s32.totalorder %v3320_v2, 4  ;;  %v3343_v59 = vsel %vm3339_vm8, %v3323_v36, %v3326_v44 }
 0x17a   : > { %vm10108_vm14 = vcmp.le.f32.partialorder %v2417_v46, 0.7853982  ;;  %v3344_v62 = vsel %vm3342_vm10, %v3332_v32, 2102212464  ;;  %v3347_v4 = vsel %vm3339_vm8, %v3326_v44, %v3329_v0  ;;  %v3348_v63 = vsel %vm3342_vm10, %v3335_v38, 920167782 }
 0x17b   : > { %v3351_v31 = vsel %vm3339_vm8, %v3329_v0, %v3332_v32  ;;  %vm1612_vm15 = vweird.f32 %v9439_v41  ;;  %v3345_v58 = vsel %vm3341_vm11, %v3329_v0, %v3344_v62  ;;  %v3349_v13 = vsel %vm3341_vm11, %v3332_v32, %v3348_v63  ;;  %v7525_v32 = vld [vmem:[%s9298_s12 + $0x100] sm:$0xff] }
 0x17c   : > { %v3352_v33 = vsel %vm3342_vm10, %v3338_v43, 1326507024  ;;  %v3415_v47 = vshrl.u32 %v3414_v25, 23  ;;  %v2495_v42 = vshll.u32 %v2494_v34, 23  ;;  %v2503_v19 = vsub.s32 4, %v9957_v39 }
 0x17d   : > { %v3350_v46 = vsel %vm3340_vm9, %v3347_v4, %v3349_v13  ;;  %v3353_v52 = vsel %vm3341_vm11, %v3335_v38, %v3352_v33  ;;  %v1621_v14 = vsel %vm1619_vm3, %v1620_v21, %v10042_v50  ;;  %vm7444_vm2 = vcmp.lt.s32.totalorder %v7443_v8, 0 }
 0x17e   : > { %v3346_v23 = vsel %vm3340_vm9, %v3343_v59, %v3345_v58  ;;  %v3354_v30 = vsel %vm3340_vm9, %v3351_v31, %v3353_v52  ;;  %v10128_v44 = vmul.u32.u64.low %v3355_v18, %v3350_v46  ;;  %v10129_v0 = vmul.u32.u64.high %v3355_v18, %v3350_v46, %v10128_v44 }
 0x17f   : > { %v10125_v25 = vmul.u32.u64.low %v3355_v18, %v3354_v30  ;;  %v10126_v36 = vmul.u32.u64.high %v3355_v18, %v3354_v30, %v10125_v25  ;;  %v1618_v21 = vsel %vm1616_vm4, %v10024_v56, %v1617_v53  ;;  %v1709_v2 = vsel %vm1626_vm13, %v1708_v12, %v10052_v3 }
 0x180   : > { %v2492_v38 = vor.u32 %v2491_v48, %v2490_v27  ;;  %v7489_v45 = vadd.s32 4294967169, %v3415_v47  ;;  %v10146_v34 = vsel %vm827_vm5, nan, %v10064_v9  ;;  %v1717_v50 = vadd.s32 3, %v1713_v28  ;;  %v10157_v48 = vld [vmem:[%s9394_s29] ss:$0 sm:$0xff] }
 0x181   : > { %v2496_v56 = vor.u32 4788187, %v2495_v42  ;;  %v2504_v53 = vsel %vm2419_vm7, %v2503_v19, %v9957_v39  ;;  %v2592_v3 = vsel %vm7444_vm2, 0, %v7443_v8  ;;  %v3362_v12 = vmul.u32 %v3355_v18, %v3346_v23  ;;  %v7533_v28 = vld [vmem:[%s9298_s12 + $0x1c0] sm:$0xff] }
 0x182   : > { %v3421_v27 = vadd.s32 1, %v7489_v45  ;;  %v4165_v40 = vmul.f32 %v10157_v48, %v7525_v32  ;;  %v1622_v9 = vsel %vm1615_vm6, %v1618_v21, %v1621_v14  ;;  %v1712_v51 = vsel %vm10033_vm12, %v9614_v29, %v1709_v2 }
 0x183   : > { %vm3364_vm13 = vc.u32 %v10126_v36, %v10128_v44  ;;  %v3365_v39 = vadd.s32 1, %v10129_v0  ;;  %v2499_v8 = vcvt.s32.f32 %v2492_v38  ;;  %v2506_v43 = vsel %vm10108_vm14, 0, %v2504_v53 }
 0x184   : > { %v3411_v18 = vand.u32 2147483647, %v10075_v7  ;;  %vm3422_vm3 = vcmp.gt.s32.totalorder %v3421_v27, 0  ;;  %v2497_v59 = vand.u32 2147483647, %v2496_v56  ;;  %v2597_v6 = vsub.s32 4294967266, %v2592_v3 }
 0x185   : > { %v3366_v62 = vsel %vm3364_vm13, %v3365_v39, %v10129_v0  ;;  %v3423_v4 = vsel %vm3422_vm3, %v3421_v27, 0  ;;  %v2577_v16 = vadd.s32 %v9986_v35, %v10005_v17  ;;  %v2593_v63 = vsub.s32 32, %v2592_v3 }
 0x186   : > { %v3367_v31 = vadd.s32 %v3366_v62, %v3362_v12  ;;  %v10175_v58 = vadd.f32 %v7533_v28, %v4165_v40  ;;  %v10179_v13 = vsel %vm1612_vm15, nan, %v1622_v9  ;;  %8431 = vcosq.f32 %v1712_v51 }
 0x187   : > { %v10181_v33 = vand.u32 3, %v1717_v50  ;;  %v3425_v47 = vand.u32 31, %v3423_v4  ;;  %8433 = vsinq.f32 %v1712_v51  ;;  %v10183_v42 = vadd.s32 3, %v2506_v43 }
 0x188   : > { %v3368_v19 = vadd.s32 536870912, %v3367_v31  ;;  %v3418_v46 = vand.u32 8388607, %v3411_v18  ;;  %v2500_v35 = vmul.f32 %v2499_v8, %v2497_v59  ;;  %v2594_v17 = vshll.u32 %v10081_v10, %v2592_v3 }
 0x189   : > { %v2598_v52 = vadd.s32 127, %v2597_v6  ;;  %v3426_v14 = vsub.s32 32, %v3425_v47  ;;  %v2595_v23 = vshrl.u32 %v2577_v16, %v2593_v63  ;;  %v3428_v30 = vshll.u32 %v15124_v55, %v3425_v47 }
 0x18a   : > { %v10188_v41 = vshrl.u32 %v3368_v19, 30  ;;  %v4193_v25 = vand.u32 2139095040, %v10175_v58  ;;  %v3431_v32 = vshll.u32 %v15208_v57, %v3425_v47  ;;  %v3437_v2 = vshll.u32 %v15210_v5, %v3425_v47 }
 0x18b   : > { %v3429_v0 = vshrl.u32 %v15208_v57, %v3426_v14  ;;  %v3432_v21 = vshrl.u32 %v15209_v49, %v3426_v14  ;;  %v3424_v10 = vshrl.u32 %v3423_v4, 5  ;;  %v3434_v45 = vshll.u32 %v15209_v49, %v3425_v47 }
 0x18c   : > { %v3370_v38 = vshll.u32 %v10188_v41, 30  ;;  %v3435_v50 = vshrl.u32 %v15210_v5, %v3426_v14  ;;  %v2599_v56 = vshll.u32 %v2598_v52, 23  ;;  %v2607_v53 = vsub.s32 4, %v10060_v54 }
 0x18d   : > { %v3419_v3 = vor.u32 8388608, %v3418_v46  ;;  %v15225_v12 = vmov 920167782   ;;  %v2501_v40 = vxor.u32 2147483648, %v2500_v35  ;;  %v10201_v9 = vor.u32 %v2595_v23, %v2594_v17 }
 0x18e   : > { %v3438_v27 = vshrl.u32 %v15225_v12, %v3426_v14  ;;  %v10203_v51 = vsub.s32 %v3367_v31, %v3370_v38  ;;  %v4194_v39 = vshrl.u32 %v4193_v25, 23  ;;  %v3430_v28 = vor.u32 %v3429_v0, %v3428_v30 }
 0x18f   : > { %v3433_v8 = vor.u32 %v3432_v21, %v3431_v32  ;;  %v3440_v59 = vshll.u32 %v15225_v12, %v3425_v47  ;;  %v3436_v62 = vor.u32 %v3435_v50, %v3434_v45  ;;  %v3441_v4 = vshrl.u32 %v15126_v24, %v3426_v14 }
 0x190   : > { %v3439_v43 = vor.u32 %v3438_v27, %v3437_v2  ;;  %v3373_v6 = vsub.s32 0, %v10203_v51  ;;  %vm3443_vm12 = vcmp.lt.s32.totalorder %v3424_v10, 1  ;;  %v8432_v16 = vpop.eup %8431  ;;  %vm2523_vm4 = vcmp.lt.s32.totalorder %v9854_v15, 0 }
 0x191   : > { %v2600_v63 = vor.u32 4788187, %v2599_v56  ;;  %v3427_v19 = vshrl.u32 %v15124_v55, %v3426_v14  ;;  %vm3446_vm5 = vcmp.lt.s32.totalorder %v3424_v10, 4  ;;  %v3459_v31 = vshll.u32 %v3419_v3, 8  ;;  %v8434_v46 = vpop.eup %8433  ;;  %v7355_v56 = vld [vmem:[%s9295_s20 + $0x40] sm:$0xff] }
 0x192   : > { %vm1723_vm6 = vcmp.eq.s32.totalorder %v10181_v33, 2  ;;  %v7486_v17 = vmin.u32 %v3373_v6, %v10203_v51  ;;  %v3442_v47 = vor.u32 %v3441_v4, %v3440_v59  ;;  %vm3445_vm8 = vcmp.lt.s32.totalorder %v3424_v10, 3 }
 0x193   : > { %v3448_v52 = vsel %vm3446_vm5, %v3436_v62, 2102212464  ;;  %vm1720_vm9 = vcmp.eq.s32.totalorder %v10181_v33, 0  ;;  %vm3444_vm11 = vcmp.lt.s32.totalorder %v3424_v10, 2  ;;  %v3451_v23 = vsel %vm3443_vm12, %v3430_v28, %v3433_v8 }
 0x194   : > { %v3452_v30 = vsel %vm3446_vm5, %v3439_v43, 920167782  ;;  %v7541_v14 = vadd.s32 4294967169, %v4194_v39  ;;  %v2502_v25 = vsel %vm2419_vm7, %v2501_v40, %v2500_v35  ;;  %v2603_v0 = vcvt.s32.f32 %v10201_v9 }
 0x195   : > { %v3375_v32 = vclz %v7486_v17  ;;  %v3455_v21 = vsel %vm3443_vm12, %v3433_v8, %v3436_v62  ;;  %v3447_v2 = vsel %vm3443_vm12, %v3427_v19, %v3430_v28  ;;  %v3449_v38 = vsel %vm3445_vm8, %v3433_v8, %v3448_v52 }
 0x196   : > { %v3453_v45 = vsel %vm3445_vm8, %v3436_v62, %v3452_v30  ;;  %v3456_v50 = vsel %vm3446_vm5, %v3442_v47, 1326507024  ;;  %v15226_v3 = vand.u32 2147483647, %v9854_v15  ;;  %v2601_v35 = vand.u32 2147483647, %v2600_v63 }
 0x197   : > { %v7487_v40 = vadd.s32 4294967294, %v3375_v32  ;;  %v3454_v9 = vsel %vm3444_vm11, %v3451_v23, %v3453_v45  ;;  %v3457_v39 = vsel %vm3445_vm8, %v3439_v43, %v3456_v50  ;;  %v4200_v6 = vadd.s32 1, %v7541_v14  ;;  %v7526_v30 = vld [vmem:[%s9298_s12 + $0x108] sm:$0xff] }
 0x198   : > { %vm10227_vm10 = vcmp.le.f32.partialorder %v15226_v3, 0.7853982  ;;  %v3458_v28 = vsel %vm3444_vm11, %v3455_v21, %v3457_v39  ;;  %v10234_v8 = vmul.u32.u64.low %v3459_v31, %v3454_v9  ;;  %v10235_v59 = vmul.u32.u64.high %v3459_v31, %v3454_v9, %v10234_v8 }
 0x199   : > { %vm7488_vm7 = vcmp.lt.s32.totalorder %v7487_v40, 0  ;;  %v3450_v62 = vsel %vm3444_vm11, %v3447_v2, %v3449_v38  ;;  %v10239_v4 = vmul.u32.u64.low %v3459_v31, %v3458_v28  ;;  %v10240_v19 = vmul.u32.u64.high %v3459_v31, %v3458_v28, %v10239_v4 }
 0x19a   : > { %v1724_v63 = vxor.u32 2147483648, %v8432_v16  ;;  %v10243_v17 = vmul.f32 %v7355_v56, %v10179_v13  ;;  %v3378_v47 = vsel %vm7488_vm7, 0, %v7487_v40  ;;  %vm4201_vm15 = vcmp.gt.s32.totalorder %v4200_v6, 0 }
 0x19b   : > { %v1721_v43 = vxor.u32 2147483648, %v8434_v46  ;;  %v10246_v52 = vand.u32 3, %v10183_v42  ;;  %v10251_v23 = vsel %vm2523_vm4, %v2607_v53, %v10060_v54  ;;  %v3383_v10 = vsub.s32 4294967266, %v3378_v47 }
 0x19c   : > { %v2505_v14 = vsel %vm10108_vm14, %v9801_v20, %v2502_v25  ;;  %v3466_v32 = vmul.u32 %v3459_v31, %v3450_v62  ;;  %v3469_v13 = vadd.s32 1, %v10235_v59  ;;  %v4202_v21 = vsel %vm4201_vm15, %v4200_v6, 0 }
 0x19d   : > { %v2604_v2 = vmul.f32 %v2603_v0, %v2601_v35  ;;  %v3363_v42 = vadd.s32 %v10128_v44, %v10126_v36  ;;  %v3379_v38 = vsub.s32 32, %v3378_v47  ;;  %v4190_v45 = vand.u32 2147483647, %v10175_v58  ;;  %v7534_v35 = vld [vmem:[%s9298_s12 + $0x1c8] sm:$0xff] }
 0x19e   : > { %v10263_v54 = vsel %vm1723_vm6, %v1724_v63, %v8434_v46  ;;  %vm3468_vm2 = vc.u32 %v10240_v19, %v10234_v8  ;;  %v4166_v61 = vmul.f32 %v10157_v48, %v7526_v30  ;;  %v4204_v53 = vand.u32 31, %v4202_v21 }
 0x19f   : > { %v10270_v31 = vsel %vm1720_vm9, %v8432_v16, %v1721_v43  ;;  %8435 = vcosq.f32 %v2505_v14  ;;  %v3384_v36 = vadd.s32 127, %v3383_v10  ;;  %v3470_v44 = vsel %vm3468_vm2, %v3469_v13, %v10235_v59 }
 0x1a0   : > { %8437 = vsinq.f32 %v2505_v14  ;;  %v2610_v46 = vsel %vm10227_vm10, 0, %v10251_v23  ;;  %v3471_v25 = vadd.s32 %v3470_v44, %v3466_v32  ;;  %v4205_v0 = vsub.s32 32, %v4204_v53 }
 0x1a1   : > { %v2605_v50 = vxor.u32 2147483648, %v2604_v2  ;;  %v3380_v56 = vshll.u32 %v10203_v51, %v3378_v47  ;;  %v3381_v48 = vshrl.u32 %v3363_v42, %v3379_v38  ;;  %v4197_v3 = vand.u32 8388607, %v4190_v45 }
 0x1a2   : > { %v3472_v16 = vadd.s32 536870912, %v3471_v25  ;;  %v4207_v40 = vshll.u32 %v15124_v55, %v4204_v53  ;;  %v4208_v9 = vshrl.u32 %v15208_v57, %v4205_v0  ;;  %v4210_v39 = vshll.u32 %v15208_v57, %v4204_v53 }
 0x1a3   : > { %v3385_v28 = vshll.u32 %v3384_v36, 23  ;;  %v4203_v59 = vshrl.u32 %v4202_v21, 5  ;;  %v4211_v6 = vshrl.u32 %v15209_v49, %v4205_v0  ;;  %v4216_v62 = vshll.u32 %v15210_v5, %v4204_v53 }
 0x1a4   : > { %v10285_v4 = vshrl.u32 %v3472_v16, 30  ;;  %v4213_v51 = vshll.u32 %v15209_v49, %v4204_v53  ;;  %v4214_v63 = vshrl.u32 %v15210_v5, %v4205_v0  ;;  %v4217_v47 = vshrl.u32 %v15225_v12, %v4205_v0 }
 0x1a5   : > { %v2606_v43 = vsel %vm2523_vm4, %v2605_v50, %v2604_v2  ;;  %v10292_v10 = vadd.f32 %v7534_v35, %v4166_v61  ;;  %v4219_v30 = vshll.u32 %v15225_v12, %v4204_v53  ;;  %v4220_v14 = vshrl.u32 %v15126_v24, %v4205_v0 }
 0x1a6   : > { %v3474_v32 = vshll.u32 %v10285_v4, 30  ;;  %v4198_v13 = vor.u32 8388608, %v4197_v3  ;;  %v4209_v21 = vor.u32 %v4208_v9, %v4207_v40  ;;  %v4212_v42 = vor.u32 %v4211_v6, %v4210_v39 }
 0x1a7   : > { %vm1719_vm14 = vcmp.lt.s32.totalorder %v10181_v33, 2  ;;  %v3382_v38 = vor.u32 %v3381_v48, %v3380_v56  ;;  %v3386_v36 = vor.u32 4788187, %v3385_v28  ;;  %v4218_v44 = vor.u32 %v4217_v47, %v4216_v62 }
 0x1a8   : > { %vm4222_vm13 = vcmp.lt.s32.totalorder %v4203_v59, 1  ;;  %vm2516_vm3 = vcmp.eq.s32.totalorder %v10246_v52, 2  ;;  %vm3309_vm12 = vcmp.lt.s32.totalorder %v9994_v1, 0  ;;  %v10300_v2 = vsub.s32 %v3471_v25, %v3474_v32 }
 0x1a9   : > { %v4206_v61 = vshrl.u32 %v15124_v55, %v4205_v0  ;;  %v4215_v53 = vor.u32 %v4214_v63, %v4213_v51  ;;  %vm4225_vm4 = vcmp.lt.s32.totalorder %v4203_v59, 4  ;;  %v8436_v50 = vpop.eup %8435  ;;  %v2609_v3 = vsel %vm10227_vm10, %v9854_v15, %v2606_v43 }
 0x1aa   : > { %v3393_v56 = vsub.s32 4, %v10188_v41  ;;  %v4221_v48 = vor.u32 %v4220_v14, %v4219_v30  ;;  %vm4224_vm5 = vcmp.lt.s32.totalorder %v4203_v59, 3  ;;  %v8438_v16 = vpop.eup %8437  ;;  %vm1716_vm6 = vweird.f32 %v9614_v29 }
 0x1ab   : > { %v3477_v35 = vsub.s32 0, %v10300_v2  ;;  %vm4223_vm8 = vcmp.lt.s32.totalorder %v4203_v59, 2  ;;  %v4227_v25 = vsel %vm4225_vm4, %v4215_v53, 2102212464  ;;  %v4230_v0 = vsel %vm4222_vm13, %v4209_v21, %v4212_v42 }
 0x1ac   : > { %v3387_v40 = vand.u32 2147483647, %v3386_v36  ;;  %v3389_v9 = vcvt.s32.f32 %v3382_v38  ;;  %v4231_v39 = vsel %vm4225_vm4, %v4218_v44, 920167782  ;;  %v4238_v28 = vshll.u32 %v4198_v13, 8 }
 0x1ad   : > { %vm2512_vm9 = vcmp.lt.s32.totalorder %v10246_v52, 2  ;;  %8439 = vcosq.f32 %v2609_v3  ;;  %v7490_v6 = vmin.u32 %v3477_v35, %v10300_v2  ;;  %v4226_v62 = vsel %vm4222_vm13, %v4206_v61, %v4209_v21 }
 0x1ae   : > { %v4232_v51 = vsel %vm4224_vm5, %v4215_v53, %v4231_v39  ;;  %v4228_v63 = vsel %vm4224_vm5, %v4212_v42, %v4227_v25  ;;  %v4234_v43 = vsel %vm4222_vm13, %v4212_v42, %v4215_v53  ;;  %v4235_v30 = vsel %vm4225_vm4, %v4221_v48, 1326507024  ;;  %v584_v48 = vld [vmem:[%s9295_s20 + $0x8] sm:$0xff] }
 0x1af   : > { %v4233_v47 = vsel %vm4223_vm8, %v4230_v0, %v4232_v51  ;;  %v2514_v14 = vxor.u32 2147483648, %v8438_v16  ;;  %v2517_v32 = vxor.u32 2147483648, %v8436_v50  ;;  %8441 = vsinq.f32 %v2609_v3 }
 0x1b0   : > { %v3479_v13 = vclz %v7490_v6  ;;  %v3390_v38 = vmul.f32 %v3389_v9, %v3387_v40  ;;  %v4236_v36 = vsel %vm4224_vm5, %v4218_v44, %v4235_v30  ;;  %v4229_v25 = vsel %vm4223_vm8, %v4226_v62, %v4228_v63  ;;  %v7356_v62 = vld [vmem:[%s9295_s20 + $0x48] sm:$0xff] }
 0x1b1   : > { %v10321_v35 = vmul.u32.u64.low %v4238_v28, %v4233_v47  ;;  %v10322_v21 = vmul.u32.u64.high %v4238_v28, %v4233_v47, %v10321_v35  ;;  %v4237_v0 = vsel %vm4223_vm8, %v4234_v43, %v4236_v36  ;;  %v4297_v42 = vand.u32 2139095040, %v10292_v10 }
 0x1b2   : > { %v7491_v61 = vadd.s32 4294967294, %v3479_v13  ;;  %vm2513_vm11 = vcmp.eq.s32.totalorder %v10246_v52, 0  ;;  %v3394_v53 = vsel %vm3309_vm12, %v3393_v56, %v10188_v41  ;;  %v1726_v40 = vsel %vm1719_vm14, %v10270_v31, %v10263_v54 }
 0x1b3   : > { %v10332_v3 = vmul.u32.u64.low %v4238_v28, %v4237_v0  ;;  %v10333_v44 = vmul.u32.u64.high %v4238_v28, %v4237_v0, %v10332_v3  ;;  %v2614_v59 = vadd.s32 3, %v2610_v46  ;;  %v15229_v9 = vand.u32 2147483647, %v9994_v1 }
 0x1b4   : > { %v4298_v41 = vshrl.u32 %v4297_v42, 23  ;;  %v2518_v56 = vsel %vm2516_vm3, %v2517_v32, %v8438_v16  ;;  %vm7492_vm15 = vcmp.lt.s32.totalorder %v7491_v61, 0  ;;  %v4245_v6 = vmul.u32 %v4238_v28, %v4229_v25 }
 0x1b5   : > { %vm10346_vm7 = vcmp.le.f32.partialorder %v15229_v9, 0.7853982  ;;  %v4248_v33 = vadd.s32 1, %v10322_v21  ;;  %v2515_v54 = vsel %vm2513_vm11, %v8436_v50, %v2514_v14  ;;  %v3391_v31 = vxor.u32 2147483648, %v3390_v38  ;;  %v7581_v14 = vld [vmem:[%s9298_s12 + $0x140] sm:$0xff] }
 0x1b6   : > { %v3396_v27 = vsel %vm10346_vm7, 0, %v3394_v53  ;;  %v7545_v23 = vadd.s32 4294967169, %v4298_v41  ;;  %v10356_v46 = vmul.f32 %v10146_v34, %v584_v48  ;;  %v1727_v51 = vsel %vm1716_vm6, nan, %v1726_v40  ;;  %v10392_v53 = vld [vmem:[%s9740_s9] ss:$0 sm:$0xff] }
 0x1b7   : > { %vm2509_vm10 = vweird.f32 %v9801_v20  ;;  %vm4247_vm2 = vc.u32 %v10333_v44, %v10321_v35  ;;  %v10364_v16 = vpop.eup %8439  ;;  %v10368_v50 = vadd.f32 %v10243_v17, %v10056_v26  ;;  %v3482_v28 = vsel %vm7492_vm15, 0, %v7491_v61  ;;  %v7589_v20 = vld [vmem:[%s9298_s12 + $0x200] sm:$0xff] }
 0x1b8   : > { %v4249_v63 = vsel %vm4247_vm2, %v4248_v33, %v10322_v21  ;;  %v4294_v34 = vand.u32 2147483647, %v10292_v10  ;;  %v2519_v29 = vsel %vm2512_vm9, %v2515_v54, %v2518_v56  ;;  %v3400_v47 = vadd.s32 3, %v3396_v27 }
 0x1b9   : > { %v4250_v43 = vadd.s32 %v4249_v63, %v4245_v6  ;;  %v4304_v30 = vadd.s32 1, %v7545_v23  ;;  %v10375_v32 = vpop.eup %8441  ;;  %v10377_v13 = vmul.f32 %v7356_v62, %v1727_v51  ;;  %v10379_v36 = vand.u32 3, %v2614_v59 }
 0x1ba   : > { %v3392_v26 = vsel %vm3309_vm12, %v3391_v31, %v3390_v38  ;;  %v3467_v17 = vadd.s32 %v10234_v8, %v10240_v19  ;;  %v3483_v52 = vsub.s32 32, %v3482_v28  ;;  %v3487_v21 = vsub.s32 4294967266, %v3482_v28 }
 0x1bb   : > { %v4251_v61 = vadd.s32 536870912, %v4250_v43  ;;  %vm4305_vm14 = vcmp.gt.s32.totalorder %v4304_v30, 0  ;;  %v10387_v25 = vsel %vm2509_vm10, nan, %v2519_v29  ;;  %v4301_v0 = vand.u32 8388607, %v4294_v34 }
 0x1bc   : > { %v4306_v42 = vsel %vm4305_vm14, %v4304_v30, 0  ;;  %v5056_v3 = vmul.f32 %v10392_v53, %v7581_v14  ;;  %v3395_v8 = vsel %vm10346_vm7, %v9994_v1, %v3392_v26  ;;  %v10398_v19 = vand.u32 3, %v3400_v47 }
 0x1bd   : > { %v10400_v38 = vshrl.u32 %v4251_v61, 30  ;;  %v4308_v48 = vand.u32 31, %v4306_v42  ;;  %v2618_v40 = vxor.u32 2147483648, %v10375_v32  ;;  %v2621_v59 = vxor.u32 2147483648, %v10364_v16 }
 0x1be   : > { %v3484_v9 = vshll.u32 %v10300_v2, %v3482_v28  ;;  %v3497_v41 = vsub.s32 4, %v10285_v4  ;;  %v3485_v56 = vshrl.u32 %v3467_v17, %v3483_v52  ;;  %v3488_v6 = vadd.s32 127, %v3487_v21 }
 0x1bf   : > { %v4253_v33 = vshll.u32 %v10400_v38, 30  ;;  %v4309_v39 = vsub.s32 32, %v4308_v48  ;;  %8443 = vcosq.f32 %v3395_v8  ;;  %v4302_v54 = vor.u32 8388608, %v4301_v0 }
 0x1c0   : > { %v4307_v31 = vshrl.u32 %v4306_v42, 5  ;;  %v10408_v27 = vadd.f32 %v7589_v20, %v5056_v3  ;;  %v4311_v62 = vshll.u32 %v15124_v55, %v4308_v48  ;;  %v4314_v2 = vshll.u32 %v15208_v57, %v4308_v48 }
 0x1c1   : > { %v10410_v23 = vsub.s32 %v4250_v43, %v4253_v33  ;;  %v4312_v51 = vshrl.u32 %v15208_v57, %v4309_v39  ;;  %v4315_v28 = vshrl.u32 %v15209_v49, %v4309_v39  ;;  %v4317_v63 = vshll.u32 %v15209_v49, %v4308_v48 }
 0x1c2   : > { %v4318_v29 = vshrl.u32 %v15210_v5, %v4309_v39  ;;  %v4320_v47 = vshll.u32 %v15210_v5, %v4308_v48  ;;  %v3486_v30 = vor.u32 %v3485_v56, %v3484_v9  ;;  %v3489_v14 = vshll.u32 %v3488_v6, 23 }
 0x1c3   : > { %v4256_v26 = vsub.s32 0, %v10410_v23  ;;  %v4321_v43 = vshrl.u32 %v15225_v12, %v4309_v39  ;;  %8445 = vsinq.f32 %v3395_v8  ;;  %v4246_v17 = vadd.s32 %v10321_v35, %v10333_v44 }
 0x1c4   : > { %v4323_v52 = vshll.u32 %v15225_v12, %v4308_v48  ;;  %v10424_v21 = vshll.u32 %v4302_v54, 8  ;;  %vm2617_vm13 = vcmp.eq.s32.totalorder %v10379_v36, 0  ;;  %vm2620_vm3 = vcmp.eq.s32.totalorder %v10379_v36, 2 }
 0x1c5   : > { %v7542_v61 = vmin.u32 %v4256_v26, %v10410_v23  ;;  %v4310_v0 = vshrl.u32 %v15124_v55, %v4309_v39  ;;  %v4313_v42 = vor.u32 %v4312_v51, %v4311_v62  ;;  %v4316_v3 = vor.u32 %v4315_v28, %v4314_v2 }
 0x1c6   : > { %v4319_v20 = vor.u32 %v4318_v29, %v4317_v63  ;;  %v4322_v9 = vor.u32 %v4321_v43, %v4320_v47  ;;  %v4324_v8 = vshrl.u32 %v15126_v24, %v4309_v39  ;;  %vm4326_vm12 = vcmp.lt.s32.totalorder %v4307_v31, 1 }
 0x1c7   : > { %vm3413_vm4 = vcmp.lt.s32.totalorder %v10075_v7, 0  ;;  %v3490_v35 = vor.u32 4788187, %v3489_v14  ;;  %v3493_v44 = vcvt.s32.f32 %v3486_v30  ;;  %v4258_v48 = vclz %v7542_v61 }
 0x1c8   : > { %v5084_v56 = vand.u32 2139095040, %v10408_v27  ;;  %v4325_v6 = vor.u32 %v4324_v8, %v4323_v52  ;;  %vm4327_vm5 = vcmp.lt.s32.totalorder %v4307_v31, 2  ;;  %vm4328_vm6 = vcmp.lt.s32.totalorder %v4307_v31, 3 }
 0x1c9   : > { %vm4329_vm8 = vcmp.lt.s32.totalorder %v4307_v31, 4  ;;  %v7543_v33 = vadd.s32 4294967294, %v4258_v48  ;;  %v4330_v54 = vsel %vm4326_vm12, %v4310_v0, %v4313_v42  ;;  %v4334_v51 = vsel %vm4326_vm12, %v4313_v42, %v4316_v3  ;;  %v10435_v2 = vpop.eup %8443  ;;  %v7582_v31 = vld [vmem:[%s9298_s12 + $0x148] sm:$0xff] }
 0x1ca   : > { %v4331_v62 = vsel %vm4329_vm8, %v4319_v20, 2102212464  ;;  %vm2616_vm9 = vcmp.lt.s32.totalorder %v10379_v36, 2  ;;  %v4335_v28 = vsel %vm4329_vm8, %v4322_v9, 920167782  ;;  %v4338_v63 = vsel %vm4326_vm12, %v4316_v3, %v4319_v20 }
 0x1cb   : > { %v4332_v39 = vsel %vm4328_vm6, %v4316_v3, %v4331_v62  ;;  %v4339_v29 = vsel %vm4329_vm8, %v4325_v6, 1326507024  ;;  %vm3406_vm11 = vcmp.eq.s32.totalorder %v10398_v19, 2  ;;  %v3491_v47 = vand.u32 2147483647, %v3490_v35 }
 0x1cc   : > { %vm7544_vm7 = vcmp.lt.s32.totalorder %v7543_v33, 0  ;;  %v4336_v30 = vsel %vm4328_vm6, %v4319_v20, %v4335_v28  ;;  %v4340_v14 = vsel %vm4328_vm6, %v4322_v9, %v4339_v29  ;;  %vm10445_vm15 = vcmp.le.f32.partialorder %v3411_v18, 0.7853982 }
 0x1cd   : > { %v4261_v43 = vsel %vm7544_vm7, 0, %v7543_v33  ;;  %v4333_v52 = vsel %vm4327_vm5, %v4330_v54, %v4332_v39  ;;  %v4337_v61 = vsel %vm4327_vm5, %v4334_v51, %v4336_v30  ;;  %v4341_v0 = vsel %vm4327_vm5, %v4338_v63, %v4340_v14  ;;  %v8446_v9 = vpop.eup %8445 }
 0x1ce   : > { %v4262_v42 = vsub.s32 32, %v4261_v43  ;;  %v4263_v3 = vshll.u32 %v10410_v23, %v4261_v43  ;;  %v4266_v20 = vsub.s32 4294967266, %v4261_v43  ;;  %v5085_v8 = vshrl.u32 %v5084_v56, 23 }
 0x1cf   : > { %v10454_v35 = vmul.u32.u64.low %v10424_v21, %v4341_v0  ;;  %v10455_v48 = vmul.u32.u64.high %v10424_v21, %v4341_v0, %v10454_v35  ;;  %v10458_v18 = vmul.u32.u64.low %v10424_v21, %v4337_v61  ;;  %v10459_v6 = vmul.u32.u64.high %v10424_v21, %v4337_v61, %v10458_v18 }
 0x1d0   : > { %v3494_v33 = vmul.f32 %v3493_v44, %v3491_v47  ;;  %v4264_v54 = vshrl.u32 %v4246_v17, %v4262_v42  ;;  %v4267_v62 = vadd.s32 127, %v4266_v20  ;;  %v7597_v51 = vadd.s32 4294967169, %v5085_v8  ;;  %v7590_v47 = vld [vmem:[%s9298_s12 + $0x208] sm:$0xff] }
 0x1d1   : > { %v2619_v23 = vsel %vm2617_vm13, %v10364_v16, %v2618_v40  ;;  %v2622_v56 = vsel %vm2620_vm3, %v2621_v59, %v10375_v32  ;;  %v10478_v17 = vsel %vm3413_vm4, %v3497_v41, %v10285_v4  ;;  %v5081_v44 = vand.u32 2147483647, %v10408_v27 }
 0x1d2   : > { %vm4192_vm10 = vcmp.lt.s32.totalorder %v10175_v58, 0  ;;  %v4265_v39 = vor.u32 %v4264_v54, %v4263_v3  ;;  %v4268_v40 = vshll.u32 %v4267_v62, 23  ;;  %v4349_v28 = vmul.u32 %v10424_v21, %v4333_v52 }
 0x1d3   : > { %v5091_v16 = vadd.s32 1, %v7597_v51  ;;  %v3407_v63 = vxor.u32 2147483648, %v10435_v2  ;;  %vm4351_vm2 = vc.u32 %v10455_v48, %v10458_v18  ;;  %v4352_v32 = vadd.s32 1, %v10459_v6 }
 0x1d4   : > { %v5057_v59 = vmul.f32 %v10392_v53, %v7582_v31  ;;  %v3495_v4 = vxor.u32 2147483648, %v3494_v33  ;;  %v4269_v41 = vor.u32 4788187, %v4268_v40  ;;  %v4272_v29 = vcvt.s32.f32 %v4265_v39 }
 0x1d5   : > { %vm5092_vm14 = vcmp.gt.s32.totalorder %v5091_v16, 0  ;;  %vm3403_vm13 = vcmp.eq.s32.totalorder %v10398_v19, 0  ;;  %v4353_v30 = vsel %vm4351_vm2, %v4352_v32, %v10459_v6  ;;  %v5088_v21 = vand.u32 8388607, %v5081_v44 }
 0x1d6   : > { %v5093_v14 = vsel %vm5092_vm14, %v5091_v16, 0  ;;  %v10495_v43 = vsel %vm2616_vm9, %v2619_v23, %v2622_v56  ;;  %v3500_v53 = vsel %vm10445_vm15, 0, %v10478_v17  ;;  %vm10502_vm3 = vcmp.le.f32.partialorder %v4190_v45, 0.7853982 }
 0x1d7   : > { %v4270_v61 = vand.u32 2147483647, %v4269_v41  ;;  %v4354_v0 = vadd.s32 %v4353_v30, %v4349_v28  ;;  %v3404_v42 = vxor.u32 2147483648, %v8446_v9  ;;  %v10508_v3 = vsel %vm3406_vm11, %v3407_v63, %v8446_v9 }
 0x1d8   : > { %v10510_v36 = vadd.f32 %v7590_v47, %v5057_v59  ;;  %v5095_v20 = vand.u32 31, %v5093_v14  ;;  %v3496_v8 = vsel %vm3413_vm4, %v3495_v4, %v3494_v33  ;;  %v4276_v6 = vsub.s32 4, %v10400_v38 }
 0x1d9   : > { %v4273_v35 = vmul.f32 %v4272_v29, %v4270_v61  ;;  %v4355_v45 = vadd.s32 536870912, %v4354_v0  ;;  %v5089_v54 = vor.u32 8388608, %v5088_v21  ;;  %v5094_v62 = vshrl.u32 %v5093_v14, 5 }
 0x1da   : > { %v5096_v31 = vsub.s32 32, %v5095_v20  ;;  %v5098_v51 = vshll.u32 %v15124_v55, %v5095_v20  ;;  %v5101_v9 = vshll.u32 %v15208_v57, %v5095_v20  ;;  %v5107_v39 = vshll.u32 %v15210_v5, %v5095_v20 }
 0x1db   : > { %v4274_v23 = vxor.u32 2147483648, %v4273_v35  ;;  %v10516_v56 = vshrl.u32 %v4355_v45, 30  ;;  %v5104_v28 = vshll.u32 %v15209_v49, %v5095_v20  ;;  %v3405_v63 = vsel %vm3403_vm13, %v10435_v2, %v3404_v42 }
 0x1dc   : > { %v5099_v40 = vshrl.u32 %v15208_v57, %v5096_v31  ;;  %v5102_v33 = vshrl.u32 %v15209_v49, %v5096_v31  ;;  %v5105_v16 = vshrl.u32 %v15210_v5, %v5096_v31  ;;  %v4277_v32 = vsel %vm4192_vm10, %v4276_v6, %v10400_v38 }
 0x1dd   : > { %v4357_v59 = vshll.u32 %v10516_v56, 30  ;;  %v5108_v4 = vshrl.u32 %v15225_v12, %v5096_v31  ;;  %v10535_v41 = vsel %vm10445_vm15, %v10075_v7, %v3496_v8  ;;  %v4275_v29 = vsel %vm4192_vm10, %v4274_v23, %v4273_v35 }
 0x1de   : > { %v5110_v47 = vshll.u32 %v15225_v12, %v5095_v20  ;;  %v5188_v2 = vand.u32 2139095040, %v10510_v36  ;;  %vm3402_vm12 = vcmp.lt.s32.totalorder %v10398_v19, 2  ;;  %v5100_v38 = vor.u32 %v5099_v40, %v5098_v51 }
 0x1df   : > { %v10542_v30 = vsub.s32 %v4354_v0, %v4357_v59  ;;  %v5103_v21 = vor.u32 %v5102_v33, %v5101_v9  ;;  %v5109_v14 = vor.u32 %v5108_v4, %v5107_v39  ;;  %vm2613_vm4 = vweird.f32 %v9854_v15  ;;  %v7412_v4 = vld [vmem:[%s9295_s20 + $0x80] sm:$0xff] }
 0x1e0   : > { %v5106_v61 = vor.u32 %v5105_v16, %v5104_v28  ;;  %v5111_v42 = vshrl.u32 %v15126_v24, %v5096_v31  ;;  %vm5113_vm5 = vcmp.lt.s32.totalorder %v5094_v62, 1  ;;  %v10546_v8 = vshll.u32 %v5089_v54, 8 }
 0x1e1   : > { %v4360_v35 = vsub.s32 0, %v10542_v30  ;;  %v5097_v20 = vshrl.u32 %v15124_v55, %v5096_v31  ;;  %vm5115_vm6 = vcmp.lt.s32.totalorder %v5094_v62, 3  ;;  %vm5116_vm8 = vcmp.lt.s32.totalorder %v5094_v62, 4 }
 0x1e2   : > { %vm3399_vm9 = vweird.f32 %v9994_v1  ;;  %v4278_v0 = vsel %vm10502_vm3, %v10175_v58, %v4275_v29  ;;  %v5112_v6 = vor.u32 %v5111_v42, %v5110_v47  ;;  %v5118_v45 = vsel %vm5116_vm8, %v5106_v61, 2102212464 }
 0x1e3   : > { %v5189_v51 = vshrl.u32 %v5188_v2, 23  ;;  %v7546_v23 = vmin.u32 %v4360_v35, %v10542_v30  ;;  %vm5114_vm11 = vcmp.lt.s32.totalorder %v5094_v62, 2  ;;  %v5121_v54 = vsel %vm5113_vm5, %v5100_v38, %v5103_v21 }
 0x1e4   : > { %v5122_v9 = vsel %vm5116_vm8, %v5109_v14, 920167782  ;;  %8447 = vcosq.f32 %v10535_v41  ;;  %v5125_v39 = vsel %vm5113_vm5, %v5103_v21, %v5106_v61  ;;  %v5126_v40 = vsel %vm5116_vm8, %v5112_v6, 1326507024 }
 0x1e5   : > { %v5123_v31 = vsel %vm5115_vm6, %v5106_v61, %v5122_v9  ;;  %v4279_v33 = vsel %vm10502_vm3, 0, %v4277_v32  ;;  %v4362_v28 = vclz %v7546_v23  ;;  %v5117_v16 = vsel %vm5113_vm5, %v5097_v20, %v5100_v38 }
 0x1e6   : > { %v5119_v59 = vsel %vm5115_vm6, %v5103_v21, %v5118_v45  ;;  %8449 = vcosq.f32 %v4278_v0  ;;  %v5124_v29 = vsel %vm5114_vm11, %v5121_v54, %v5123_v31  ;;  %v5127_v47 = vsel %vm5115_vm6, %v5109_v14, %v5126_v40  ;;  %v10617_v40 = vld [vmem:[%s9382_s14] ss:$0 sm:$0xff] }
 0x1e7   : > { %v7601_v2 = vadd.s32 4294967169, %v5189_v51  ;;  %v7547_v42 = vadd.s32 4294967294, %v4362_v28  ;;  %v5128_v35 = vsel %vm5114_vm11, %v5125_v39, %v5127_v47  ;;  %v5120_v52 = vsel %vm5114_vm11, %v5117_v16, %v5119_v59 }
 0x1e8   : > { %v10568_v61 = vmul.u32.u64.low %v10546_v8, %v5124_v29  ;;  %v10569_v6 = vmul.u32.u64.high %v10546_v8, %v5124_v29, %v10568_v61  ;;  %v10574_v32 = vmul.u32.u64.low %v10546_v8, %v5128_v35  ;;  %v10575_v38 = vmul.u32.u64.high %v10546_v8, %v5128_v35, %v10574_v32 }
 0x1e9   : > { %v5195_v21 = vadd.s32 1, %v7601_v2  ;;  %v10579_v14 = vadd.f32 %v10377_v13, %v10356_v46  ;;  %v3249_v20 = vmul.f32 %v7412_v4, %v10387_v25  ;;  %8451 = vsinq.f32 %v4278_v0  ;;  %v7413_v0 = vld [vmem:[%s9295_s20 + $0x88] sm:$0xff] }
 0x1ea   : > { %vm7548_vm7 = vcmp.lt.s32.totalorder %v7547_v42, 0  ;;  %v3409_v62 = vsel %vm3402_vm12, %v3405_v63, %v10508_v3  ;;  %v4283_v45 = vadd.s32 3, %v4279_v33  ;;  %v2624_v23 = vsel %vm2613_vm4, nan, %v10495_v43  ;;  %v7308_v43 = vld [vmem:[%s9295_s20 + $0xd0] sm:$0xff]  ;;  %v3265_v63 = vld [vmem:[%s9298_s12] sm:$0xff] }
 0x1eb   : > { %v4365_v51 = vsel %vm7548_vm7, 0, %v7547_v42  ;;  %vm5196_vm10 = vcmp.gt.s32.totalorder %v5195_v21, 0  ;;  %v3504_v46 = vadd.s32 3, %v3500_v53  ;;  %v5136_v25 = vmul.u32 %v10546_v8, %v5120_v52 }
 0x1ec   : > { %v4370_v13 = vsub.s32 4294967266, %v4365_v51  ;;  %v4350_v19 = vadd.s32 %v10458_v18, %v10455_v48  ;;  %v4366_v3 = vsub.s32 32, %v4365_v51  ;;  %vm5138_vm2 = vc.u32 %v10575_v38, %v10568_v61 }
 0x1ed   : > { %v5139_v15 = vadd.s32 1, %v10569_v6  ;;  %v3410_v26 = vsel %vm3399_vm9, nan, %v3409_v62  ;;  %8453 = vsinq.f32 %v10535_v41  ;;  %v5197_v53 = vsel %vm5196_vm10, %v5195_v21, 0 }
 0x1ee   : > { %v4371_v17 = vadd.s32 127, %v4370_v13  ;;  %v10604_v8 = vpop.eup %8447  ;;  %v10607_v48 = vadd.f32 %v3249_v20, %v10368_v50  ;;  %v10609_v18 = vand.u32 3, %v4283_v45  ;;  %v5199_v9 = vand.u32 31, %v5197_v53 }
 0x1ef   : > { %v5140_v54 = vsel %vm5138_vm2, %v5139_v15, %v10569_v6  ;;  %v10612_v31 = vmul.f32 %v7413_v0, %v2624_v23  ;;  %v10614_v39 = vand.u32 3, %v3504_v46  ;;  %v10620_v41 = vmul.f32 %v10617_v40, %v7308_v43 }
 0x1f0   : > { %v5141_v1 = vadd.s32 %v5140_v54, %v5136_v25  ;;  %v10622_v33 = vpop.eup %8449  ;;  %v10624_v28 = vmul.f32 %v3410_v26, %v3265_v63  ;;  %v4367_v50 = vshll.u32 %v10542_v30, %v4365_v51  ;;  %v4368_v16 = vshrl.u32 %v4350_v19, %v4366_v3 }
 0x1f1   : > { %v5200_v59 = vsub.s32 32, %v5199_v9  ;;  %v3511_v4 = vxor.u32 2147483648, %v10604_v8  ;;  %v4372_v29 = vshll.u32 %v4371_v17, 23  ;;  %v5185_v2 = vand.u32 2147483647, %v10510_v36 }
 0x1f2   : > { %v5142_v47 = vadd.s32 536870912, %v5141_v1  ;;  %vm4286_vm15 = vcmp.eq.s32.totalorder %v10609_v18, 0  ;;  %vm4289_vm14 = vcmp.eq.s32.totalorder %v10609_v18, 2  ;;  %v5202_v42 = vshll.u32 %v15124_v55, %v5199_v9 }
 0x1f3   : > { %v5203_v35 = vshrl.u32 %v15208_v57, %v5200_v59  ;;  %v5205_v6 = vshll.u32 %v15208_v57, %v5199_v9  ;;  %v5208_v30 = vshll.u32 %v15209_v49, %v5199_v9  ;;  %v8452_v52 = vpop.eup %8451  ;;  %v5206_v21 = vshrl.u32 %v15209_v49, %v5200_v59 }
 0x1f4   : > { %v10635_v32 = vshrl.u32 %v5142_v47, 30  ;;  %v5209_v20 = vshrl.u32 %v15210_v5, %v5200_v59  ;;  %v5211_v62 = vshll.u32 %v15210_v5, %v5199_v9  ;;  %v4369_v45 = vor.u32 %v4368_v16, %v4367_v50 }
 0x1f5   : > { %v5198_v51 = vshrl.u32 %v5197_v53, 5  ;;  %v5212_v23 = vshrl.u32 %v15225_v12, %v5200_v59  ;;  %v5214_v46 = vshll.u32 %v15225_v12, %v5199_v9  ;;  %v4290_v13 = vxor.u32 2147483648, %v10622_v33 }
 0x1f6   : > { %v4373_v25 = vor.u32 4788187, %v4372_v29  ;;  %v5144_v0 = vshll.u32 %v10635_v32, 30  ;;  %v5192_v19 = vand.u32 8388607, %v5185_v2  ;;  %vm4285_vm13 = vcmp.lt.s32.totalorder %v10609_v18, 2 }
 0x1f7   : > { %v4287_v3 = vxor.u32 2147483648, %v8452_v52  ;;  %v5201_v15 = vshrl.u32 %v15124_v55, %v5200_v59  ;;  %v5213_v43 = vor.u32 %v5212_v23, %v5211_v62  ;;  %v5215_v63 = vshrl.u32 %v15126_v24, %v5200_v59  ;;  %v10649_v26 = vpop.eup %8453 }
 0x1f8   : > { %v10651_v17 = vsub.s32 %v5141_v1, %v5144_v0  ;;  %v5204_v53 = vor.u32 %v5203_v35, %v5202_v42  ;;  %v5207_v54 = vor.u32 %v5206_v21, %v5205_v6  ;;  %v5210_v9 = vor.u32 %v5209_v20, %v5208_v30  ;;  %v7317_v0 = vld [vmem:[%s9295_s20 + $0x190] sm:$0xff] }
 0x1f9   : > { %vm4296_vm3 = vcmp.lt.s32.totalorder %v10292_v10, 0  ;;  %v4376_v50 = vcvt.s32.f32 %v4369_v45  ;;  %v5216_v16 = vor.u32 %v5215_v63, %v5214_v46  ;;  %vm5217_vm12 = vcmp.lt.s32.totalorder %v5198_v51, 1 }
 0x1fa   : > { %vm5220_vm4 = vcmp.lt.s32.totalorder %v5198_v51, 4  ;;  %vm3510_vm5 = vcmp.eq.s32.totalorder %v10614_v39, 2  ;;  %v4374_v29 = vand.u32 2147483647, %v4373_v25  ;;  %vm5083_vm6 = vcmp.lt.s32.totalorder %v10408_v27, 0 }
 0x1fb   : > { %v5147_v59 = vsub.s32 0, %v10651_v17  ;;  %vm5219_vm8 = vcmp.lt.s32.totalorder %v5198_v51, 3  ;;  %v5222_v1 = vsel %vm5220_vm4, %v5210_v9, 2102212464  ;;  %vm3507_vm9 = vcmp.eq.s32.totalorder %v10614_v39, 0 }
 0x1fc   : > { %v3508_v47 = vxor.u32 2147483648, %v10649_v26  ;;  %v4380_v42 = vsub.s32 4, %v10516_v56  ;;  %v5193_v35 = vor.u32 8388608, %v5192_v19  ;;  %v5226_v6 = vsel %vm5220_vm4, %v5213_v43, 920167782 }
 0x1fd   : > { %vm4282_vm11 = vweird.f32 %v10175_v58  ;;  %v7598_v30 = vmin.u32 %v5147_v59, %v10651_v17  ;;  %vm5218_vm7 = vcmp.lt.s32.totalorder %v5198_v51, 2  ;;  %v5221_v21 = vsel %vm5217_vm12, %v5201_v15, %v5204_v53 }
 0x1fe   : > { %v5225_v20 = vsel %vm5217_vm12, %v5204_v53, %v5207_v54  ;;  %vm10668_vm10 = vcmp.le.f32.partialorder %v4294_v34, 0.7853982  ;;  %v5223_v45 = vsel %vm5219_vm8, %v5207_v54, %v5222_v1  ;;  %v5227_v23 = vsel %vm5219_vm8, %v5210_v9, %v5226_v6 }
 0x1ff   : > { %v5229_v46 = vsel %vm5217_vm12, %v5207_v54, %v5210_v9  ;;  %v5230_v25 = vsel %vm5220_vm4, %v5216_v16, 1326507024  ;;  %v4288_v19 = vsel %vm4286_vm15, %v10622_v33, %v4287_v3  ;;  %v4291_v15 = vsel %vm4289_vm14, %v4290_v13, %v8452_v52 }
 0x200   : > { %v4377_v34 = vmul.f32 %v4376_v50, %v4374_v29  ;;  %vm10684_vm2 = vcmp.le.f32.partialorder %v5081_v44, 0.7853982  ;;  %v5149_v53 = vclz %v7598_v30  ;;  %v5167_v54 = vsub.s32 4, %v10635_v32 }
 0x201   : > { %v5228_v9 = vsel %vm5218_vm7, %v5225_v20, %v5227_v23  ;;  %v5231_v16 = vsel %vm5219_vm8, %v5213_v43, %v5230_v25  ;;  %v5233_v59 = vshll.u32 %v5193_v35, 8  ;;  %v5224_v33 = vsel %vm5218_vm7, %v5221_v21, %v5223_v45  ;;  %v7309_v25 = vld [vmem:[%s9295_s20 + $0xd8] sm:$0xff] }
 0x202   : > { %v7599_v1 = vadd.s32 4294967294, %v5149_v53  ;;  %v5232_v52 = vsel %vm5218_vm7, %v5229_v46, %v5231_v16  ;;  %v10694_v13 = vadd.f32 %v7317_v0, %v10620_v41  ;;  %vm3506_vm15 = vcmp.lt.s32.totalorder %v10614_v39, 2  ;;  %v7517_v0 = vld [vmem:[%s9298_s12 + $0x40] sm:$0xff] }
 0x203   : > { %v10697_v44 = vmul.u32.u64.low %v5233_v59, %v5232_v52  ;;  %v10698_v3 = vmul.u32.u64.high %v5233_v59, %v5232_v52, %v10697_v44  ;;  %v10700_v50 = vmul.u32.u64.low %v5233_v59, %v5228_v9  ;;  %v10701_v29 = vmul.u32.u64.high %v5233_v59, %v5228_v9, %v10700_v50 }
 0x204   : > { %v4292_v43 = vsel %vm4285_vm13, %v4288_v19, %v4291_v15  ;;  %v4381_v51 = vsel %vm4296_vm3, %v4380_v42, %v10516_v56  ;;  %v5137_v41 = vadd.s32 %v10568_v61, %v10575_v38  ;;  %vm7600_vm14 = vcmp.lt.s32.totalorder %v7599_v1, 0 }
 0x205   : > { %v4378_v35 = vxor.u32 2147483648, %v4377_v34  ;;  %v5152_v6 = vsel %vm7600_vm14, 0, %v7599_v1  ;;  %v5168_v30 = vsel %vm5083_vm6, %v5167_v54, %v10635_v32  ;;  %v842_v21 = vand.u32 2139095040, %v10694_v13 }
 0x206   : > { %v5153_v18 = vsub.s32 32, %v5152_v6  ;;  %v5154_v20 = vshll.u32 %v10651_v17, %v5152_v6  ;;  %v5157_v45 = vsub.s32 4294967266, %v5152_v6  ;;  %v5240_v23 = vmul.u32 %v5233_v59, %v5224_v33 }
 0x207   : > { %v3512_v56 = vsel %vm3510_vm5, %v3511_v4, %v10649_v26  ;;  %vm5242_vm13 = vc.u32 %v10698_v3, %v10700_v50  ;;  %v5243_v61 = vadd.s32 1, %v10701_v29  ;;  %v843_v38 = vshrl.u32 %v842_v21, 23 }
 0x208   : > { %v3509_v32 = vsel %vm3507_vm9, %v10604_v8, %v3508_v47  ;;  %v4383_v17 = vsel %vm10668_vm10, 0, %v4381_v51  ;;  %v5155_v42 = vshrl.u32 %v5137_v41, %v5153_v18  ;;  %v5158_v46 = vadd.s32 127, %v5157_v45 }
 0x209   : > { %v4293_v4 = vsel %vm4282_vm11, nan, %v4292_v43  ;;  %v5170_v26 = vsel %vm10684_vm2, 0, %v5168_v30  ;;  %v5244_v19 = vsel %vm5242_vm13, %v5243_v61, %v10701_v29  ;;  %v7331_v15 = vadd.s32 4294967169, %v843_v38  ;;  %v7318_v43 = vld [vmem:[%s9295_s20 + $0x198] sm:$0xff] }
 0x20a   : > { %v4379_v8 = vsel %vm4296_vm3, %v4378_v35, %v4377_v34  ;;  %v5156_v47 = vor.u32 %v5155_v42, %v5154_v20  ;;  %v5159_v53 = vshll.u32 %v5158_v46, 23  ;;  %v5245_v54 = vadd.s32 %v5244_v19, %v5240_v23 }
 0x20b   : > { %v4387_v9 = vadd.s32 3, %v4383_v17  ;;  %v609_v16 = vmul.f32 %v10617_v40, %v7309_v25  ;;  %v839_v59 = vand.u32 2147483647, %v10694_v13  ;;  %v849_v58 = vadd.s32 1, %v7331_v15 }
 0x20c   : > { %v5022_v1 = vmul.f32 %v7517_v0, %v4293_v4  ;;  %v5160_v33 = vor.u32 4788187, %v5159_v53  ;;  %v5163_v52 = vcvt.s32.f32 %v5156_v47  ;;  %v5246_v44 = vadd.s32 536870912, %v5245_v54 }
 0x20d   : > { %v10743_v29 = vadd.f32 %v10612_v31, %v10579_v14  ;;  %v4382_v34 = vsel %vm10668_vm10, %v10292_v10, %v4379_v8  ;;  %v5174_v51 = vadd.s32 3, %v5170_v26  ;;  %vm850_vm3 = vcmp.gt.s32.totalorder %v849_v58, 0 }
 0x20e   : > { %v10750_v40 = vsel %vm3506_vm15, %v3509_v32, %v3512_v56  ;;  %v5161_v41 = vand.u32 2147483647, %v5160_v33  ;;  %v10752_v35 = vshrl.u32 %v5246_v44, 30  ;;  %v851_v6 = vsel %vm850_vm3, %v849_v58, 0 }
 0x20f   : > { %v10754_v30 = vand.u32 3, %v4387_v9  ;;  %v10756_v21 = vadd.f32 %v7318_v43, %v609_v16  ;;  %v846_v14 = vand.u32 8388607, %v839_v59  ;;  %v853_v31 = vand.u32 31, %v851_v6 }
 0x210   : > { %8455 = vcosq.f32 %v4382_v34  ;;  %v10761_v62 = vadd.f32 %v5022_v1, %v10624_v28  ;;  %v5164_v18 = vmul.f32 %v5163_v52, %v5161_v41  ;;  %v5248_v39 = vshll.u32 %v10752_v35, 30 }
 0x211   : > { %8457 = vsinq.f32 %v4382_v34  ;;  %v10764_v20 = vand.u32 3, %v5174_v51  ;;  %v854_v45 = vsub.s32 32, %v853_v31  ;;  %v856_v23 = vshll.u32 %v15124_v55, %v853_v31 }
 0x212   : > { %v5165_v56 = vxor.u32 2147483648, %v5164_v18  ;;  %v10767_v61 = vsub.s32 %v5245_v54, %v5248_v39  ;;  %v859_v38 = vshll.u32 %v15208_v57, %v853_v31  ;;  %v862_v32 = vshll.u32 %v15209_v49, %v853_v31 }
 0x213   : > { %v847_v17 = vor.u32 8388608, %v846_v14  ;;  %v857_v28 = vshrl.u32 %v15208_v57, %v854_v45  ;;  %v860_v42 = vshrl.u32 %v15209_v49, %v854_v45  ;;  %v946_v46 = vand.u32 2139095040, %v10756_v21 }
 0x214   : > { %v5166_v25 = vsel %vm5083_vm6, %v5165_v56, %v5164_v18  ;;  %v5251_v0 = vsub.s32 0, %v10767_v61  ;;  %v852_v4 = vshrl.u32 %v851_v6, 5  ;;  %v863_v26 = vshrl.u32 %v15210_v5, %v854_v45 }
 0x215   : > { %v5169_v19 = vsel %vm10684_vm2, %v10408_v27, %v5166_v25  ;;  %v855_v15 = vshrl.u32 %v15124_v55, %v854_v45  ;;  %v858_v8 = vor.u32 %v857_v28, %v856_v23  ;;  %v865_v47 = vshll.u32 %v15210_v5, %v853_v31 }
 0x216   : > { %8459 = vcosq.f32 %v5169_v19  ;;  %v7602_v53 = vmin.u32 %v5251_v0, %v10767_v61  ;;  %v861_v54 = vor.u32 %v860_v42, %v859_v38  ;;  %v864_v9 = vor.u32 %v863_v26, %v862_v32 }
 0x217   : > { %8461 = vsinq.f32 %v5169_v19  ;;  %v866_v16 = vshrl.u32 %v15225_v12, %v854_v45  ;;  %v868_v58 = vshll.u32 %v15225_v12, %v853_v31  ;;  %v869_v1 = vshrl.u32 %v15126_v24, %v854_v45 }
 0x218   : > { %v5241_v63 = vadd.s32 %v10700_v50, %v10698_v3  ;;  %v5253_v33 = vclz %v7602_v53  ;;  %v10789_v52 = vshll.u32 %v847_v17, 8  ;;  %v947_v44 = vshrl.u32 %v946_v46, 23 }
 0x219   : > { %vm5177_vm12 = vcmp.eq.s32.totalorder %v10764_v20, 0  ;;  %v867_v43 = vor.u32 %v866_v16, %v865_v47  ;;  %v870_v34 = vor.u32 %v869_v1, %v868_v58  ;;  %vm871_vm4 = vcmp.lt.s32.totalorder %v852_v4, 1 }
 0x21a   : > { %vm872_vm5 = vcmp.lt.s32.totalorder %v852_v4, 2  ;;  %v10792_v51 = vpop.eup %8455  ;;  %vm5176_vm6 = vcmp.lt.s32.totalorder %v10764_v20, 2  ;;  %v7603_v41 = vadd.s32 4294967294, %v5253_v33  ;;  %vm873_vm8 = vcmp.lt.s32.totalorder %v852_v4, 3 }
 0x21b   : > { %vm874_vm9 = vcmp.lt.s32.totalorder %v852_v4, 4  ;;  %v875_v6 = vsel %vm871_vm4, %v855_v15, %v858_v8  ;;  %v10795_v14 = vpop.eup %8457  ;;  %vm5173_vm11 = vweird.f32 %v10408_v27  ;;  %v879_v50 = vsel %vm871_vm4, %v858_v8, %v861_v54 }
 0x21c   : > { %v876_v3 = vsel %vm874_vm9, %v864_v9, 2102212464  ;;  %v880_v31 = vsel %vm874_vm9, %v867_v43, 920167782  ;;  %v883_v18 = vsel %vm871_vm4, %v861_v54, %v864_v9  ;;  %vm7604_vm7 = vcmp.lt.s32.totalorder %v7603_v41, 0 }
 0x21d   : > { %v877_v39 = vsel %vm873_vm8, %v861_v54, %v876_v3  ;;  %v881_v45 = vsel %vm873_vm8, %v864_v9, %v880_v31  ;;  %v884_v23 = vsel %vm874_vm9, %v870_v34, 1326507024  ;;  %vm4393_vm10 = vcmp.eq.s32.totalorder %v10754_v30, 2  ;;  %v5969_v31 = vld [vmem:[%s9288_s30] sm:$0xff] }
 0x21e   : > { %v5256_v56 = vsel %vm7604_vm7, 0, %v7603_v41  ;;  %v878_v38 = vsel %vm872_vm5, %v875_v6, %v877_v39  ;;  %v882_v32 = vsel %vm872_vm5, %v879_v50, %v881_v45  ;;  %v885_v17 = vsel %vm873_vm8, %v867_v43, %v884_v23  ;;  %v7573_v6 = vld [vmem:[%s9298_s12 + $0x80] sm:$0xff] }
 0x21f   : > { %vm5187_vm2 = vcmp.lt.s32.totalorder %v10510_v36, 0  ;;  %v5257_v28 = vsub.s32 32, %v5256_v56  ;;  %v5258_v42 = vshll.u32 %v10767_v61, %v5256_v56  ;;  %v5261_v46 = vsub.s32 4294967266, %v5256_v56  ;;  %v7365_v56 = vld [vmem:[%s9295_s20 + $0x110] sm:$0xff] }
 0x220   : > { %v886_v25 = vsel %vm872_vm5, %v883_v18, %v885_v17  ;;  %v10812_v19 = vmul.u32.u64.low %v10789_v52, %v882_v32  ;;  %v10813_v15 = vmul.u32.u64.high %v10789_v52, %v882_v32, %v10812_v19  ;;  %v8460_v8 = vpop.eup %8459  ;;  %vm5180_vm15 = vcmp.eq.s32.totalorder %v10764_v20, 2 }
 0x221   : > { %v10808_v0 = vmul.u32.u64.low %v10789_v52, %v886_v25  ;;  %v10809_v26 = vmul.u32.u64.high %v10789_v52, %v886_v25, %v10808_v0  ;;  %v5259_v47 = vshrl.u32 %v5241_v63, %v5257_v28  ;;  %v5262_v53 = vadd.s32 127, %v5261_v46  ;;  %v8462_v61 = vpop.eup %8461 }
 0x222   : > { %v7335_v54 = vadd.s32 4294967169, %v947_v44  ;;  %v4394_v4 = vxor.u32 2147483648, %v10792_v51  ;;  %v5181_v9 = vxor.u32 2147483648, %v8460_v8  ;;  %vm10820_vm14 = vcmp.le.f32.partialorder %v5185_v2, 0.7853982 }
 0x223   : > { %v894_v58 = vmul.u32 %v10789_v52, %v878_v38  ;;  %v15122_v1 = vand.u32 2147483647, %v10756_v21  ;;  %v5178_v33 = vxor.u32 2147483648, %v8462_v61  ;;  %v5260_v63 = vor.u32 %v5259_v47, %v5258_v42 }
 0x224   : > { %v5263_v43 = vshll.u32 %v5262_v53, 23  ;;  %v953_v44 = vadd.s32 1, %v7335_v54  ;;  %v5182_v34 = vsel %vm5180_vm15, %v5181_v9, %v8462_v61  ;;  %v5271_v41 = vsub.s32 4, %v10752_v35 }
 0x225   : > { %vm896_vm13 = vc.u32 %v10809_v26, %v10812_v19  ;;  %v897_v2 = vadd.s32 1, %v10813_v15  ;;  %v5179_v52 = vsel %vm5177_vm12, %v8460_v8, %v5178_v33  ;;  %v5267_v50 = vcvt.s32.f32 %v5260_v63  ;;  %v10853_v8 = vld [vmem:[%s9394_s29] ss:$0 sm:$0xff] }
 0x226   : > { %v5264_v3 = vor.u32 4788187, %v5263_v43  ;;  %vm954_vm3 = vcmp.gt.s32.totalorder %v953_v44, 0  ;;  %v4391_v18 = vxor.u32 2147483648, %v10795_v14  ;;  %v5183_v39 = vsel %vm5176_vm6, %v5179_v52, %v5182_v34 }
 0x227   : > { %v898_v45 = vsel %vm896_vm13, %v897_v2, %v10813_v15  ;;  %v955_v23 = vsel %vm954_vm3, %v953_v44, 0  ;;  %vm4389_vm4 = vcmp.lt.s32.totalorder %v10754_v30, 2  ;;  %vm4390_vm5 = vcmp.eq.s32.totalorder %v10754_v30, 0  ;;  %v3266_v30 = vld [vmem:[%s9298_s12 + $0x8] sm:$0xff] }
 0x228   : > { %v5184_v38 = vsel %vm5173_vm11, nan, %v5183_v39  ;;  %v5265_v32 = vand.u32 2147483647, %v5264_v3  ;;  %v899_v17 = vadd.s32 %v898_v45, %v894_v58  ;;  %v5272_v28 = vsel %vm5187_vm2, %v5271_v41, %v10752_v35 }
 0x229   : > { %v5913_v20 = vmul.f32 %v7573_v6, %v5184_v38  ;;  %v5977_v42 = vmul.f32 %v5969_v31, %v10607_v48  ;;  %v957_v46 = vand.u32 31, %v955_v23  ;;  %v4395_v25 = vsel %vm4393_vm10, %v4394_v4, %v10795_v14 }
 0x22a   : > { %v5268_v0 = vmul.f32 %v5267_v50, %v5265_v32  ;;  %v900_v15 = vadd.s32 536870912, %v899_v17  ;;  %v1497_v27 = vmul.f32 %v10853_v8, %v7365_v56  ;;  %vm3503_vm12 = vweird.f32 %v10075_v7 }
 0x22b   : > { %v4392_v47 = vsel %vm4390_vm5, %v10792_v51, %v4391_v18  ;;  %v5921_v35 = vadd.f32 %v5913_v20, %v10761_v62  ;;  %v950_v48 = vand.u32 8388607, %v15122_v1  ;;  %v958_v53 = vsub.s32 32, %v957_v46 }
 0x22c   : > { %v5269_v54 = vxor.u32 2147483648, %v5268_v0  ;;  %v5274_v14 = vsel %vm10820_vm14, 0, %v5272_v28  ;;  %v10863_v61 = vshrl.u32 %v900_v15, 30  ;;  %v960_v4 = vshll.u32 %v15124_v55, %v957_v46  ;;  %v7374_v28 = vld [vmem:[%s9295_s20 + $0x1d0] sm:$0xff] }
 0x22d   : > { %vm4386_vm6 = vweird.f32 %v10292_v10  ;;  %v10867_v9 = vmul.f32 %v5977_v42, %v5921_v35  ;;  %v961_v51 = vshrl.u32 %v15208_v57, %v958_v53  ;;  %v963_v62 = vshll.u32 %v15208_v57, %v957_v46 }
 0x22e   : > { %v964_v58 = vshrl.u32 %v15209_v49, %v958_v53  ;;  %v5270_v33 = vsel %vm5187_vm2, %v5269_v54, %v5268_v0  ;;  %v956_v63 = vshrl.u32 %v955_v23, 5  ;;  %v966_v43 = vshll.u32 %v15209_v49, %v957_v46 }
 0x22f   : > { %v967_v44 = vshrl.u32 %v15210_v5, %v958_v53  ;;  %v5273_v34 = vsel %vm10820_vm14, %v10510_v36, %v5270_v33  ;;  %v5278_v41 = vadd.s32 3, %v5274_v14  ;;  %v5998_v2 = vand.u32 4294901760, %v10867_v9 }
 0x230   : > { %v969_v6 = vshll.u32 %v15210_v5, %v957_v46  ;;  %8463 = vcosq.f32 %v5273_v34  ;;  %v902_v52 = vshll.u32 %v10863_v61, 30  ;;  %v951_v3 = vor.u32 8388608, %v950_v48 }
 0x231   : > { %v962_v50 = vor.u32 %v961_v51, %v960_v4  ;;  %8465 = vsinq.f32 %v5273_v34  ;;  %v10885_v31 = vsub.f32 %v10867_v9, %v5998_v2  ;;  %v965_v18 = vor.u32 %v964_v58, %v963_v62  ;;  %v7518_v51 = vld [vmem:[%s9298_s12 + $0x48] sm:$0xff] }
 0x232   : > { %v970_v16 = vshrl.u32 %v15225_v12, %v958_v53  ;;  %v968_v39 = vor.u32 %v967_v44, %v966_v43  ;;  %v972_v45 = vshll.u32 %v15225_v12, %v957_v46  ;;  %v973_v23 = vshrl.u32 %v15126_v24, %v958_v53 }
 0x233   : > { %vm975_vm8 = vcmp.lt.s32.totalorder %v956_v63, 1  ;;  %v4396_v56 = vsel %vm4389_vm4, %v4392_v47, %v4395_v25  ;;  %v959_v38 = vshrl.u32 %v15124_v55, %v958_v53  ;;  %vm978_vm9 = vcmp.lt.s32.totalorder %v956_v63, 4 }
 0x234   : > { %v971_v32 = vor.u32 %v970_v16, %v969_v6  ;;  %v10894_v20 = vsub.s32 %v899_v17, %v902_v52  ;;  %v974_v42 = vor.u32 %v973_v23, %v972_v45  ;;  %vm977_vm11 = vcmp.lt.s32.totalorder %v956_v63, 3 }
 0x235   : > { %v980_v0 = vsel %vm978_vm9, %v968_v39, 2102212464  ;;  %vm976_vm7 = vcmp.lt.s32.totalorder %v956_v63, 2  ;;  %v983_v46 = vsel %vm975_vm8, %v962_v50, %v965_v18  ;;  %v991_v35 = vshll.u32 %v951_v3, 8 }
 0x236   : > { %v984_v15 = vsel %vm978_vm9, %v971_v32, 920167782  ;;  %v3514_v25 = vsel %vm3503_vm12, nan, %v10750_v40  ;;  %v5279_v47 = vand.u32 3, %v5278_v41  ;;  %v987_v17 = vsel %vm975_vm8, %v965_v18, %v968_v39 }
 0x237   : > { %v10904_v48 = vadd.f32 %v7374_v28, %v1497_v27  ;;  %v979_v53 = vsel %vm975_vm8, %v959_v38, %v962_v50  ;;  %v981_v54 = vsel %vm977_vm11, %v965_v18, %v980_v0  ;;  %v985_v14 = vsel %vm977_vm11, %v968_v39, %v984_v15  ;;  %v7574_v38 = vld [vmem:[%s9298_s12 + $0x88] sm:$0xff] }
 0x238   : > { %v988_v4 = vsel %vm978_vm9, %v974_v42, 1326507024  ;;  %v4397_v62 = vsel %vm4386_vm6, nan, %v4396_v56  ;;  %v905_v7 = vsub.s32 0, %v10894_v20  ;;  %v986_v40 = vsel %vm976_vm7, %v983_v46, %v985_v14  ;;  %v5970_v28 = vld [vmem:[%s9288_s30 + $0x8] sm:$0xff] }
 0x239   : > { %v989_v58 = vsel %vm977_vm11, %v971_v32, %v988_v4  ;;  %v4140_v27 = vmul.f32 %v3514_v25, %v3266_v30  ;;  %v10917_v43 = vmul.u32.u64.low %v991_v35, %v986_v40  ;;  %v10918_v44 = vmul.u32.u64.high %v991_v35, %v986_v40, %v10917_v43 }
 0x23a   : > { %v990_v33 = vsel %vm976_vm7, %v987_v17, %v989_v58  ;;  %v8464_v34 = vpop.eup %8463  ;;  %vm5284_vm10 = vcmp.eq.s32.totalorder %v5279_v47, 2  ;;  %v982_v41 = vsel %vm976_vm7, %v979_v53, %v981_v54  ;;  %v5023_v3 = vmul.f32 %v7518_v51, %v4397_v62  ;;  %v7366_v62 = vld [vmem:[%s9295_s20 + $0x118] sm:$0xff] }
 0x23b   : > { %v10922_v10 = vmul.u32.u64.low %v991_v35, %v990_v33  ;;  %v10923_v6 = vmul.u32.u64.high %v991_v35, %v990_v33, %v10922_v10  ;;  %v8466_v52 = vpop.eup %8465  ;;  %vm5281_vm2 = vcmp.eq.s32.totalorder %v5279_v47, 0  ;;  %v5285_v50 = vxor.u32 2147483648, %v8464_v34 }
 0x23c   : > { %v1731_v18 = vand.u32 2139095040, %v10904_v48  ;;  %vm5277_vm15 = vweird.f32 %v10510_v36  ;;  %vm5280_vm14 = vcmp.lt.s32.totalorder %v5279_v47, 2  ;;  %v5282_v16 = vxor.u32 2147483648, %v8466_v52 }
 0x23d   : > { %v7332_v39 = vmin.u32 %v905_v7, %v10894_v20  ;;  %v5286_v45 = vsel %vm5284_vm10, %v5285_v50, %v8466_v52  ;;  %v998_v63 = vmul.u32 %v991_v35, %v982_v41  ;;  %v1001_v23 = vadd.s32 1, %v10918_v44 }
 0x23e   : > { %v1732_v56 = vshrl.u32 %v1731_v18, 23  ;;  %v5283_v32 = vsel %vm5281_vm2, %v8464_v34, %v5282_v16  ;;  %v5031_v42 = vadd.f32 %v5023_v3, %v4140_v27  ;;  %vm1000_vm13 = vc.u32 %v10923_v6, %v10917_v43  ;;  %v7375_v34 = vld [vmem:[%s9295_s20 + $0x1d8] sm:$0xff] }
 0x23f   : > { %v5287_v0 = vsel %vm5280_vm14, %v5283_v32, %v5286_v45  ;;  %v907_v30 = vclz %v7332_v39  ;;  %v1002_v25 = vsel %vm1000_vm13, %v1001_v23, %v10918_v44  ;;  %v5978_v47 = vmul.f32 %v5970_v28, %v10743_v29 }
 0x240   : > { %v7388_v46 = vadd.s32 4294967169, %v1732_v56  ;;  %v5288_v15 = vsel %vm5277_vm15, nan, %v5287_v0  ;;  %v1003_v17 = vadd.s32 %v1002_v25, %v998_v63  ;;  %v15121_v14 = vand.u32 2147483647, %v10904_v48 }
 0x241   : > { %v5914_v35 = vmul.f32 %v7574_v38, %v5288_v15  ;;  %v7333_v4 = vadd.s32 4294967294, %v907_v30  ;;  %v1498_v27 = vmul.f32 %v10853_v8, %v7366_v62  ;;  %vm841_vm13 = vcmp.lt.s32.totalorder %v10694_v13, 0 }
 0x242   : > { %v1738_v53 = vadd.s32 1, %v7388_v46  ;;  %v1004_v51 = vadd.s32 536870912, %v1003_v17  ;;  %v1735_v33 = vand.u32 8388607, %v15121_v14 }
 0x243   : > { %v5922_v54 = vadd.f32 %v5914_v35, %v5031_v42  ;;  %vm7334_vm4 = vcmp.lt.s32.totalorder %v7333_v4, 0  ;;  %v10956_v16 = vadd.f32 %v7375_v34, %v1498_v27 }
 0x244   : > { %vm1739_vm3 = vcmp.gt.s32.totalorder %v1738_v53, 0  ;;  %v10942_v44 = vshrl.u32 %v1004_v51, 30  ;;  %v910_v18 = vsel %vm7334_vm4, 0, %v7333_v4  ;;  %v1736_v39 = vor.u32 8388608, %v1735_v33 }
 0x245   : > { %v1740_v7 = vsel %vm1739_vm3, %v1738_v53, 0  ;;  %v5986_v40 = vmul.f32 %v5978_v47, %v5922_v54  ;;  %v915_v30 = vsub.s32 4294967266, %v910_v18  ;;  %v1835_v35 = vand.u32 2139095040, %v10956_v16 }
 0x246   : > { %v1742_v36 = vand.u32 31, %v1740_v7  ;;  %v1006_v45 = vshll.u32 %v10942_v44, 30  ;;  %v1741_v63 = vshrl.u32 %v1740_v7, 5  ;;  %v1776_v25 = vshll.u32 %v1736_v39, 8 }
 0x247   : > { %v6001_v58 = vand.u32 4294901760, %v5986_v40  ;;  %vm11041_vm3 = vcmp.le.f32.partialorder %v839_v59, 0.7853982  ;;  %v999_v59 = vadd.s32 %v10917_v43, %v10923_v6 }
 0x248   : > { %v1743_v29 = vsub.s32 32, %v1742_v36  ;;  %v1745_v52 = vshll.u32 %v15124_v55, %v1742_v36  ;;  %v1748_v3 = vshll.u32 %v15208_v57, %v1742_v36  ;;  %v1751_v50 = vshll.u32 %v15209_v49, %v1742_v36 }
 0x249   : > { %v10947_v41 = vpack.c.bf16 %v6001_v58, %v5998_v2  ;;  %v10949_v10 = vsub.f32 %v5986_v40, %v6001_v58  ;;  %v15243_v2 = vmov 0.0|0.0   ;;  %v1754_v56 = vshll.u32 %v15210_v5, %v1742_v36 }
 0x24a   : > { %v1746_v8 = vshrl.u32 %v15208_v57, %v1743_v29  ;;  %v1749_v9 = vshrl.u32 %v15209_v49, %v1743_v29  ;;  %v1752_v23 = vshrl.u32 %v15210_v5, %v1743_v29  ;;  %v1744_v38 = vshrl.u32 %v15124_v55, %v1743_v29 }
 0x24b   : > { %15242 = vst [vmem:[#allocation29_spill] sm:$0xff] %v10947_v41  ;;  %7976 = vmatpush3.bf16.msra.mxu1 %v10947_v41  ;;  %v1755_v0 = vshrl.u32 %v15225_v12, %v1743_v29  ;;  %v1757_v46 = vshll.u32 %v15225_v12, %v1742_v36  ;;  %v1758_v15 = vshrl.u32 %v15126_v24, %v1743_v29  ;;  %vm1760_vm5 = vcmp.lt.s32.totalorder %v1741_v63, 1 }
 0x24c   : > { %7977 = vmatprep.subr.bf16.mxu1 %v15243_v2  ;;  %v1747_v32 = vor.u32 %v1746_v8, %v1745_v52  ;;  %v1750_v28 = vor.u32 %v1749_v9, %v1748_v3  ;;  %v1753_v42 = vor.u32 %v1752_v23, %v1751_v50  ;;  %v10968_v47 = vsub.s32 %v1003_v17, %v1006_v45 }
 0x24d   : > { %v1756_v53 = vor.u32 %v1755_v0, %v1754_v56  ;;  %v1759_v54 = vor.u32 %v1758_v15, %v1757_v46  ;;  %vm1761_vm12 = vcmp.lt.s32.totalorder %v1741_v63, 2  ;;  %vm1762_vm6 = vcmp.lt.s32.totalorder %v1741_v63, 3 }
 0x24e   : > { %vm1763_vm8 = vcmp.lt.s32.totalorder %v1741_v63, 4  ;;  %v1764_v4 = vsel %vm1760_vm5, %v1744_v38, %v1747_v32  ;;  %v1768_v62 = vsel %vm1760_vm5, %v1747_v32, %v1750_v28  ;;  %v1772_v40 = vsel %vm1760_vm5, %v1750_v28, %v1753_v42 }
 0x24f   : > { %v1765_v51 = vsel %vm1763_vm8, %v1753_v42, 2102212464  ;;  %v1769_v7 = vsel %vm1763_vm8, %v1756_v53, 920167782  ;;  %v895_v36 = vadd.s32 %v10812_v19, %v10809_v26  ;;  %v1773_v33 = vsel %vm1763_vm8, %v1759_v54, 1326507024 }
 0x250   : > { %v1766_v58 = vsel %vm1762_vm6, %v1750_v28, %v1765_v51  ;;  %v1770_v27 = vsel %vm1762_vm6, %v1753_v42, %v1769_v7  ;;  %v911_v29 = vsub.s32 32, %v910_v18  ;;  %v1774_v34 = vsel %vm1762_vm6, %v1756_v53, %v1773_v33 }
 0x251   : > { %v1771_v17 = vsel %vm1761_vm12, %v1768_v62, %v1770_v27  ;;  %v1836_v52 = vshrl.u32 %v1835_v35, 23  ;;  %v916_v3 = vadd.s32 127, %v915_v30  ;;  %v1009_v8 = vsub.s32 0, %v10968_v47  ;;  %v7422_v30 = vld [vmem:[%s9295_s20 + $0x150] sm:$0xff]  ;;  %v10994_v62 = vld [vmem:[%s9740_s9] ss:$0 sm:$0xff] }
 0x252   : > { %v1767_v50 = vsel %vm1761_vm12, %v1764_v4, %v1766_v58  ;;  %v1775_v39 = vsel %vm1761_vm12, %v1772_v40, %v1774_v34  ;;  %v10979_v26 = vmul.u32.u64.low %v1776_v25, %v1771_v17  ;;  %v10980_v19 = vmul.u32.u64.high %v1776_v25, %v1771_v17, %v10979_v26  ;;  %v7431_v40 = vld [vmem:[%s9295_s20 + $0x210] sm:$0xff] }
 0x253   : > { %v10976_v9 = vmul.u32.u64.low %v1776_v25, %v1775_v39  ;;  %v10977_v45 = vmul.u32.u64.high %v1776_v25, %v1775_v39, %v10976_v9  ;;  %v7392_v23 = vadd.s32 4294967169, %v1836_v52  ;;  %v912_v56 = vshll.u32 %v10894_v20, %v910_v18 }
 0x254   : > { %v913_v38 = vshrl.u32 %v895_v36, %v911_v29  ;;  %v917_v32 = vshll.u32 %v916_v3, 23  ;;  %v1783_v28 = vmul.u32 %v1776_v25, %v1767_v50  ;;  %v7336_v42 = vmin.u32 %v1009_v8, %v10968_v47 }
 0x255   : > { %vm1785_vm9 = vc.u32 %v10977_v45, %v10979_v26  ;;  %v1786_v63 = vadd.s32 1, %v10980_v19  ;;  %v15120_v0 = vand.u32 2147483647, %v10956_v16  ;;  %v1842_v46 = vadd.s32 1, %v7392_v23 }
 0x256   : > { %v914_v35 = vor.u32 %v913_v38, %v912_v56  ;;  %v918_v20 = vor.u32 4788187, %v917_v32  ;;  %v1011_v25 = vclz %v7336_v42  ;;  %v2394_v7 = vmul.f32 %v10994_v62, %v7422_v30 }
 0x257   : > { %v1787_v15 = vsel %vm1785_vm9, %v1786_v63, %v10980_v19  ;;  %vm1843_vm11 = vcmp.gt.s32.totalorder %v1842_v46, 0  ;;  %v1839_v53 = vand.u32 8388607, %v15120_v0  ;;  %v925_v32 = vsub.s32 4, %v10863_v61 }
 0x258   : > { %v1788_v18 = vadd.s32 %v1787_v15, %v1783_v28  ;;  %v1844_v54 = vsel %vm1843_vm11, %v1842_v46, 0  ;;  %v919_v36 = vand.u32 2147483647, %v918_v20  ;;  %v921_v58 = vcvt.s32.f32 %v914_v35 }
 0x259   : > { %v1846_v51 = vand.u32 31, %v1844_v54  ;;  %v7337_v29 = vadd.s32 4294967294, %v1011_v25  ;;  %v1840_v17 = vor.u32 8388608, %v1839_v53  ;;  %v1845_v8 = vshrl.u32 %v1844_v54, 5 }
 0x25a   : > { %v1789_v4 = vadd.s32 536870912, %v1788_v18  ;;  %v11004_v39 = vadd.f32 %v7431_v40, %v2394_v7  ;;  %v922_v38 = vmul.f32 %v921_v58, %v919_v36 }
 0x25b   : > { %v1847_v33 = vsub.s32 32, %v1846_v51  ;;  %v1849_v34 = vshll.u32 %v15124_v55, %v1846_v51  ;;  %v1852_v52 = vshll.u32 %v15208_v57, %v1846_v51  ;;  %v1858_v50 = vshll.u32 %v15210_v5, %v1846_v51 }
 0x25c   : > { %v10998_v27 = vshrl.u32 %v1789_v4, 30  ;;  %v1855_v23 = vshll.u32 %v15209_v49, %v1846_v51  ;;  %vm7338_vm7 = vcmp.lt.s32.totalorder %v7337_v29, 0  ;;  %v1861_v15 = vshll.u32 %v15225_v12, %v1846_v51 }
 0x25d   : > { %v1850_v9 = vshrl.u32 %v15208_v57, %v1847_v33  ;;  %v1853_v19 = vshrl.u32 %v15209_v49, %v1847_v33  ;;  %v1856_v56 = vshrl.u32 %v15210_v5, %v1847_v33  ;;  %v1859_v42 = vshrl.u32 %v15225_v12, %v1847_v33 }
 0x25e   : > { %v1791_v3 = vshll.u32 %v10998_v27, 30  ;;  %v1848_v35 = vshrl.u32 %v15124_v55, %v1847_v33  ;;  %v2628_v25 = vand.u32 2139095040, %v11004_v39  ;;  %v1862_v54 = vshrl.u32 %v15126_v24, %v1847_v33 }
 0x25f   : > { %v1851_v63 = vor.u32 %v1850_v9, %v1849_v34  ;;  %v1854_v46 = vor.u32 %v1853_v19, %v1852_v52  ;;  %v1860_v20 = vor.u32 %v1859_v42, %v1858_v50  ;;  %v1857_v53 = vor.u32 %v1856_v56, %v1855_v23 }
 0x260   : > { %v11011_v28 = vsub.s32 %v1788_v18, %v1791_v3  ;;  %vm1864_vm10 = vcmp.lt.s32.totalorder %v1845_v8, 1  ;;  %v1880_v18 = vshll.u32 %v1840_v17, 8  ;;  %vm1865_vm2 = vcmp.lt.s32.totalorder %v1845_v8, 2 }
 0x261   : > { %vm1866_vm15 = vcmp.lt.s32.totalorder %v1845_v8, 3  ;;  %vm1867_vm14 = vcmp.lt.s32.totalorder %v1845_v8, 4  ;;  %v1863_v7 = vor.u32 %v1862_v54, %v1861_v15  ;;  %v1872_v51 = vsel %vm1864_vm10, %v1851_v63, %v1854_v46 }
 0x262   : > { %v1794_v30 = vsub.s32 0, %v11011_v28  ;;  %v1869_v40 = vsel %vm1867_vm14, %v1857_v53, 2102212464  ;;  %v1873_v36 = vsel %vm1867_vm14, %v1860_v20, 920167782  ;;  %v923_v58 = vxor.u32 2147483648, %v922_v38 }
 0x263   : > { %v1868_v52 = vsel %vm1864_vm10, %v1848_v35, %v1851_v63  ;;  %v2629_v3 = vshrl.u32 %v2628_v25, 23  ;;  %v1870_v50 = vsel %vm1866_vm15, %v1854_v46, %v1869_v40  ;;  %v1874_v33 = vsel %vm1866_vm15, %v1857_v53, %v1873_v36 }
 0x264   : > { %v7389_v4 = vmin.u32 %v1794_v30, %v11011_v28  ;;  %v1876_v17 = vsel %vm1864_vm10, %v1854_v46, %v1857_v53  ;;  %v1877_v9 = vsel %vm1867_vm14, %v1863_v7, 1326507024  ;;  %v1014_v19 = vsel %vm7338_vm7, 0, %v7337_v29  ;;  %v7432_v29 = vld [vmem:[%s9295_s20 + $0x218] sm:$0xff] }
 0x265   : > { %v1875_v23 = vsel %vm1865_vm2, %v1872_v51, %v1874_v33  ;;  %v1878_v56 = vsel %vm1866_vm15, %v1860_v20, %v1877_v9  ;;  %v926_v42 = vsel %vm841_vm13, %v925_v32, %v10863_v61  ;;  %v1871_v35 = vsel %vm1865_vm2, %v1868_v52, %v1870_v50 }
 0x266   : > { %v1796_v34 = vclz %v7389_v4  ;;  %v1879_v63 = vsel %vm1865_vm2, %v1876_v17, %v1878_v56  ;;  %v11031_v15 = vmul.u32.u64.low %v1880_v18, %v1875_v23  ;;  %v11032_v30 = vmul.u32.u64.high %v1880_v18, %v1875_v23, %v11031_v15 }
 0x267   : > { %v11036_v46 = vmul.u32.u64.low %v1880_v18, %v1879_v63  ;;  %v11037_v25 = vmul.u32.u64.high %v1880_v18, %v1879_v63, %v11036_v46  ;;  %v7445_v53 = vadd.s32 4294967169, %v2629_v3  ;;  %v924_v20 = vsel %vm841_vm13, %v923_v58, %v922_v38  ;;  %v7423_v58 = vld [vmem:[%s9295_s20 + $0x158] sm:$0xff] }
 0x268   : > { %v1019_v61 = vsub.s32 4294967266, %v1014_v19  ;;  %v7390_v32 = vadd.s32 4294967294, %v1796_v34  ;;  %v928_v54 = vsel %vm11041_vm3, 0, %v926_v42  ;;  %v1887_v4 = vmul.u32 %v1880_v18, %v1871_v35 }
 0x269   : > { %v1890_v8 = vadd.s32 1, %v11032_v30  ;;  %v2635_v7 = vadd.s32 1, %v7445_v53  ;;  %v927_v40 = vsel %vm11041_vm3, %v10694_v13, %v924_v20  ;;  %v1015_v51 = vsub.s32 32, %v1014_v19 }
 0x26a   : > { %v1020_v36 = vadd.s32 127, %v1019_v61  ;;  %vm7391_vm4 = vcmp.lt.s32.totalorder %v7390_v32, 0  ;;  %vm1889_vm5 = vc.u32 %v11037_v25, %v11031_v15  ;;  %v11055_v38 = vadd.s32 3, %v928_v54 }
 0x26b   : > { %vm2636_vm12 = vcmp.gt.s32.totalorder %v2635_v7, 0  ;;  %v1891_v18 = vsel %vm1889_vm5, %v1890_v8, %v11032_v30  ;;  %v15119_v34 = vand.u32 2147483647, %v11004_v39  ;;  %8467 = vcosq.f32 %v927_v40 }
 0x26c   : > { %v1029_v52 = vsub.s32 4, %v10942_v44  ;;  %v1892_v3 = vadd.s32 %v1891_v18, %v1887_v4  ;;  %v2637_v43 = vsel %vm2636_vm12, %v2635_v7, 0  ;;  %8469 = vsinq.f32 %v927_v40 }
 0x26d   : > { %v1016_v6 = vshll.u32 %v10968_v47, %v1014_v19  ;;  %v1799_v50 = vsel %vm7391_vm4, 0, %v7390_v32  ;;  %v2639_v33 = vand.u32 31, %v2637_v43  ;;  %v1017_v17 = vshrl.u32 %v999_v59, %v1015_v51 }
 0x26e   : > { %v1021_v9 = vshll.u32 %v1020_v36, 23  ;;  %v1893_v23 = vadd.s32 536870912, %v1892_v3  ;;  %v2395_v56 = vmul.f32 %v10994_v62, %v7423_v58  ;;  %v1784_v42 = vadd.s32 %v10979_v26, %v10977_v45 }
 0x26f   : > { %v1800_v63 = vsub.s32 32, %v1799_v50  ;;  %v2632_v30 = vand.u32 8388607, %v15119_v34  ;;  %v2640_v35 = vsub.s32 32, %v2639_v33  ;;  %v1804_v46 = vsub.s32 4294967266, %v1799_v50 }
 0x270   : > { %v11067_v53 = vshrl.u32 %v1893_v23, 30  ;;  %v2638_v47 = vshrl.u32 %v2637_v43, 5  ;;  %v2642_v19 = vshll.u32 %v15124_v55, %v2639_v33  ;;  %v2645_v61 = vshll.u32 %v15208_v57, %v2639_v33 }
 0x271   : > { %v2643_v20 = vshrl.u32 %v15208_v57, %v2640_v35  ;;  %v2646_v62 = vshrl.u32 %v15209_v49, %v2640_v35  ;;  %v2651_v45 = vshll.u32 %v15210_v5, %v2639_v33  ;;  %v2648_v32 = vshll.u32 %v15209_v49, %v2639_v33 }
 0x272   : > { %v1895_v26 = vshll.u32 %v11067_v53, 30  ;;  %v2649_v54 = vshrl.u32 %v15210_v5, %v2640_v35  ;;  %v2652_v4 = vshrl.u32 %v15225_v12, %v2640_v35  ;;  %v1018_v8 = vor.u32 %v1017_v17, %v1016_v6 }
 0x273   : > { %v11079_v7 = vadd.f32 %v7432_v29, %v2395_v56  ;;  %v2654_v40 = vshll.u32 %v15225_v12, %v2639_v33  ;;  %v2655_v59 = vshrl.u32 %v15126_v24, %v2640_v35  ;;  %v1022_v51 = vor.u32 4788187, %v1021_v9 }
 0x274   : > { %v1805_v36 = vadd.s32 127, %v1804_v46  ;;  %v11083_v18 = vsub.s32 %v1892_v3, %v1895_v26  ;;  %v2633_v58 = vor.u32 8388608, %v2632_v30  ;;  %v1801_v43 = vshll.u32 %v11011_v28, %v1799_v50 }
 0x275   : > { %v2644_v23 = vor.u32 %v2643_v20, %v2642_v19  ;;  %v2647_v34 = vor.u32 %v2646_v62, %v2645_v61  ;;  %v2653_v0 = vor.u32 %v2652_v4, %v2651_v45  ;;  %v11086_v14 = vpop.eup %8467  ;;  %v1802_v1 = vshrl.u32 %v1784_v42, %v1800_v63 }
 0x276   : > { %v2641_v6 = vshrl.u32 %v15124_v55, %v2640_v35  ;;  %v2650_v17 = vor.u32 %v2649_v54, %v2648_v32  ;;  %vm2657_vm6 = vcmp.lt.s32.totalorder %v2638_v47, 1  ;;  %v11089_v33 = vpop.eup %8469  ;;  %v1025_v56 = vcvt.s32.f32 %v1018_v8 }
 0x277   : > { %v2656_v9 = vor.u32 %v2655_v59, %v2654_v40  ;;  %vm2660_vm8 = vcmp.lt.s32.totalorder %v2638_v47, 4  ;;  %v2732_v3 = vand.u32 2139095040, %v11079_v7  ;;  %v1806_v30 = vshll.u32 %v1805_v36, 23 }
 0x278   : > { %v1898_v28 = vsub.s32 0, %v11083_v18  ;;  %vm2659_vm9 = vcmp.lt.s32.totalorder %v2638_v47, 3  ;;  %v2662_v50 = vsel %vm2660_vm8, %v2650_v17, 2102212464  ;;  %vm2658_vm11 = vcmp.lt.s32.totalorder %v2638_v47, 2 }
 0x279   : > { %v2665_v42 = vsel %vm2657_vm6, %v2644_v23, %v2647_v34  ;;  %v2666_v63 = vsel %vm2660_vm8, %v2653_v0, 920167782  ;;  %v2673_v35 = vshll.u32 %v2633_v58, 8  ;;  %v1023_v46 = vand.u32 2147483647, %v1022_v51 }
 0x27a   : > { %v1803_v29 = vor.u32 %v1802_v1, %v1801_v43  ;;  %v2661_v19 = vsel %vm2657_vm6, %v2641_v6, %v2644_v23  ;;  %v2669_v20 = vsel %vm2657_vm6, %v2647_v34, %v2650_v17  ;;  %v2663_v61 = vsel %vm2659_vm9, %v2647_v34, %v2662_v50 }
 0x27b   : > { %v2667_v62 = vsel %vm2659_vm9, %v2650_v17, %v2666_v63  ;;  %v2670_v45 = vsel %vm2660_vm8, %v2656_v9, 1326507024  ;;  %v2733_v26 = vshrl.u32 %v2732_v3, 23  ;;  %v1807_v32 = vor.u32 4788187, %v1806_v30 }
 0x27c   : > { %v7393_v54 = vmin.u32 %v1898_v28, %v11083_v18  ;;  %v2668_v4 = vsel %vm2658_vm11, %v2665_v42, %v2667_v62  ;;  %v2671_v8 = vsel %vm2659_vm9, %v2653_v0, %v2670_v45  ;;  %v2664_v34 = vsel %vm2658_vm11, %v2661_v19, %v2663_v61 }
 0x27d   : > { %v2672_v1 = vsel %vm2658_vm11, %v2669_v20, %v2671_v8  ;;  %v11105_v40 = vmul.u32.u64.low %v2673_v35, %v2668_v4  ;;  %v11106_v59 = vmul.u32.u64.high %v2673_v35, %v2668_v4, %v11105_v40  ;;  %v7449_v51 = vadd.s32 4294967169, %v2733_v26 }
 0x27e   : > { %v11110_v36 = vmul.u32.u64.low %v2673_v35, %v2672_v1  ;;  %v11111_v58 = vmul.u32.u64.high %v2673_v35, %v2672_v1, %v11110_v36  ;;  %v11114_v43 = vand.u32 3, %v11055_v38  ;;  %vm945_vm7 = vcmp.lt.s32.totalorder %v10756_v21, 0 }
 0x27f   : > { %v2739_v23 = vadd.s32 1, %v7449_v51  ;;  %v1026_v6 = vmul.f32 %v1025_v56, %v1023_v46  ;;  %v1030_v0 = vsel %vm945_vm7, %v1029_v52, %v10942_v44  ;;  %v1808_v17 = vand.u32 2147483647, %v1807_v32 }
 0x280   : > { %v1810_v9 = vcvt.s32.f32 %v1803_v29  ;;  %v1900_v47 = vclz %v7393_v54  ;;  %v2680_v3 = vmul.u32 %v2673_v35, %v2664_v34  ;;  %v2683_v30 = vadd.s32 1, %v11106_v59 }
 0x281   : > { %vm2740_vm10 = vcmp.gt.s32.totalorder %v2739_v23, 0  ;;  %v15246_v38 = vand.u32 2147483647, %v10756_v21  ;;  %vm938_vm15 = vcmp.eq.s32.totalorder %v11114_v43, 2  ;;  %vm2682_vm14 = vc.u32 %v11111_v58, %v11105_v40 }
 0x282   : > { %v2741_v44 = vsel %vm2740_vm10, %v2739_v23, 0  ;;  %v939_v52 = vxor.u32 2147483648, %v11086_v14  ;;  %v1027_v50 = vxor.u32 2147483648, %v1026_v6  ;;  %v2684_v42 = vsel %vm2682_vm14, %v2683_v30, %v11106_v59  ;;  %v7471_v30 = vld [vmem:[%s9298_s12 + $0xd0] sm:$0xff] }
 0x283   : > { %vm11125_vm2 = vcmp.le.f32.partialorder %v15246_v38, 0.7853982  ;;  %v15123_v63 = vand.u32 2147483647, %v11079_v7  ;;  %v1811_v35 = vmul.f32 %v1810_v9, %v1808_v17  ;;  %v7394_v46 = vadd.s32 4294967294, %v1900_v47 }
 0x284   : > { %v1032_v56 = vsel %vm11125_vm2, 0, %v1030_v0  ;;  %v2685_v29 = vadd.s32 %v2684_v42, %v2680_v3  ;;  %v2743_v19 = vand.u32 31, %v2741_v44  ;;  %vm1730_vm13 = vcmp.lt.s32.totalorder %v10904_v48, 0 }
 0x285   : > { %v11139_v61 = vadd.s32 3, %v1032_v56  ;;  %v11144_v26 = vsel %vm938_vm15, %v939_v52, %v11089_v33  ;;  %v11148_v32 = vsel %vm945_vm7, %v1027_v50, %v1026_v6  ;;  %v15249_v54 = vand.u32 2147483647, %v10904_v48 }
 0x286   : > { %v2686_v62 = vadd.s32 536870912, %v2685_v29  ;;  %v2744_v45 = vsub.s32 32, %v2743_v19  ;;  %v1814_v8 = vsub.s32 4, %v10998_v27  ;;  %v2736_v1 = vand.u32 8388607, %v15123_v63 }
 0x287   : > { %vm11152_vm3 = vcmp.le.f32.partialorder %v15249_v54, 0.7853982  ;;  %v1812_v59 = vxor.u32 2147483648, %v1811_v35  ;;  %vm7395_vm4 = vcmp.lt.s32.totalorder %v7394_v46, 0  ;;  %v2746_v34 = vshll.u32 %v15124_v55, %v2743_v19 }
 0x288   : > { %v11159_v51 = vshrl.u32 %v2686_v62, 30  ;;  %v2747_v36 = vshrl.u32 %v15208_v57, %v2744_v45  ;;  %v2749_v23 = vshll.u32 %v15208_v57, %v2743_v19  ;;  %v2750_v6 = vshrl.u32 %v15209_v49, %v2744_v45 }
 0x289   : > { %v2755_v0 = vshll.u32 %v15210_v5, %v2743_v19  ;;  %v2742_v9 = vshrl.u32 %v2741_v44, 5  ;;  %v2752_v47 = vshll.u32 %v15209_v49, %v2743_v19  ;;  %v2753_v3 = vshrl.u32 %v15210_v5, %v2744_v45 }
 0x28a   : > { %v2688_v17 = vshll.u32 %v11159_v51, 30  ;;  %vm935_vm5 = vcmp.eq.s32.totalorder %v11114_v43, 0  ;;  %v11174_v38 = vsel %vm1730_vm13, %v1814_v8, %v10998_v27  ;;  %v1888_v56 = vadd.s32 %v11031_v15, %v11037_v25  ;;  %v11187_v8 = vld [vmem:[%s9382_s14] ss:$0 sm:$0xff] }
 0x28b   : > { %v2756_v52 = vshrl.u32 %v15225_v12, %v2744_v45  ;;  %v2758_v44 = vshll.u32 %v15225_v12, %v2743_v19  ;;  %v11181_v50 = vsel %vm7395_vm4, 0, %v7394_v46  ;;  %v2737_v62 = vor.u32 8388608, %v2736_v1  ;;  %v7479_v46 = vld [vmem:[%s9298_s12 + $0x190] sm:$0xff] }
 0x28c   : > { %v11183_v42 = vsub.s32 %v2685_v29, %v2688_v17  ;;  %v2759_v54 = vshrl.u32 %v15126_v24, %v2744_v45  ;;  %v2748_v63 = vor.u32 %v2747_v36, %v2746_v34  ;;  %v2751_v20 = vor.u32 %v2750_v6, %v2749_v23 }
 0x28d   : > { %v2757_v27 = vor.u32 %v2756_v52, %v2755_v0  ;;  %v3284_v15 = vmul.f32 %v11187_v8, %v7471_v30  ;;  %v1813_v25 = vsel %vm1730_vm13, %v1812_v59, %v1811_v35  ;;  %v2754_v55 = vor.u32 %v2753_v3, %v2752_v47 }
 0x28e   : > { %v2691_v19 = vsub.s32 0, %v11183_v42  ;;  %vm2761_vm12 = vcmp.lt.s32.totalorder %v2742_v9, 1  ;;  %vm934_vm6 = vcmp.lt.s32.totalorder %v11114_v43, 2  ;;  %v1908_v29 = vsub.s32 4294967266, %v11181_v50 }
 0x28f   : > { %v15252_v1 = vmov 683565275   ;;  %v2760_v36 = vor.u32 %v2759_v54, %v2758_v44  ;;  %vm2764_vm8 = vcmp.lt.s32.totalorder %v2742_v9, 4  ;;  %vm2763_vm9 = vcmp.lt.s32.totalorder %v2742_v9, 3 }
 0x290   : > { %v2745_v34 = vshrl.u32 %v15252_v1, %v2744_v45  ;;  %v7446_v23 = vmin.u32 %v2691_v19, %v11183_v42  ;;  %v2766_v6 = vsel %vm2764_vm8, %v2754_v55, 2102212464  ;;  %v2777_v0 = vshll.u32 %v2737_v62, 8 }
 0x291   : > { %vm2762_vm11 = vcmp.lt.s32.totalorder %v2742_v9, 2  ;;  %v2769_v35 = vsel %vm2761_vm12, %v2748_v63, %v2751_v20  ;;  %v2770_v59 = vsel %vm2764_vm8, %v2757_v27, 920167782  ;;  %v11201_v17 = vadd.f32 %v7479_v46, %v3284_v15 }
 0x292   : > { %v1816_v47 = vsel %vm11152_vm3, %v10904_v48, %v1813_v25  ;;  %v1904_v45 = vsub.s32 32, %v11181_v50  ;;  %v2693_v3 = vclz %v7446_v23  ;;  %v2773_v30 = vsel %vm2761_vm12, %v2751_v20, %v2754_v55 }
 0x293   : > { %vm931_vm7 = vweird.f32 %v10694_v13  ;;  %vm1834_vm10 = vcmp.lt.s32.totalorder %v10956_v16, 0  ;;  %v2765_v52 = vsel %vm2761_vm12, %v2745_v34, %v2748_v63  ;;  %v2767_v44 = vsel %vm2763_vm9, %v2751_v20, %v2766_v6 }
 0x294   : > { %v2771_v62 = vsel %vm2763_vm9, %v2754_v55, %v2770_v59  ;;  %v2774_v54 = vsel %vm2764_vm8, %v2760_v36, 1326507024  ;;  %v1909_v15 = vadd.s32 127, %v1908_v29  ;;  %v7447_v19 = vadd.s32 4294967294, %v2693_v3 }
 0x295   : > { %v2772_v25 = vsel %vm2762_vm11, %v2769_v35, %v2771_v62  ;;  %v2775_v46 = vsel %vm2763_vm9, %v2757_v27, %v2774_v54  ;;  %v3518_v63 = vand.u32 2139095040, %v11201_v17  ;;  %v15253_v20 = vxor.u32 2147483648, %v11089_v33  ;;  %v7480_v54 = vld [vmem:[%s9298_s12 + $0x198] sm:$0xff] }
 0x296   : > { %v2776_v23 = vsel %vm2762_vm11, %v2773_v30, %v2775_v46  ;;  %v11217_v24 = vmul.u32.u64.low %v2777_v0, %v2772_v25  ;;  %v11218_v60 = vmul.u32.u64.high %v2777_v0, %v2772_v25, %v11217_v24  ;;  %v2768_v29 = vsel %vm2762_vm11, %v2765_v52, %v2767_v44  ;;  %v7472_v52 = vld [vmem:[%s9298_s12 + $0xd8] sm:$0xff] }
 0x297   : > { %v937_v55 = vsel %vm935_vm5, %v11086_v14, %v15253_v20  ;;  %v11228_v34 = vmul.u32.u64.low %v2777_v0, %v2776_v23  ;;  %v11229_v36 = vmul.u32.u64.high %v2777_v0, %v2776_v23, %v11228_v34  ;;  %v1031_v27 = vsel %vm11125_vm2, %v10756_v21, %v11148_v32 }
 0x298   : > { %v1817_v6 = vsel %vm11152_vm3, 0, %v11174_v38  ;;  %v1918_v33 = vsub.s32 4, %v11067_v53  ;;  %v3519_v35 = vshrl.u32 %v3518_v63, 23  ;;  %8471 = vcosq.f32 %v1816_v47 }
 0x299   : > { %v1905_v14 = vshll.u32 %v11083_v18, %v11181_v50  ;;  %v1906_v9 = vshrl.u32 %v1888_v56, %v1904_v45  ;;  %vm7448_vm15 = vcmp.lt.s32.totalorder %v7447_v19, 0  ;;  %v1910_v59 = vshll.u32 %v1909_v15, 23 }
 0x29a   : > { %v2784_v3 = vmul.u32 %v2777_v0, %v2768_v29  ;;  %v2787_v30 = vadd.s32 1, %v11218_v60  ;;  %v7493_v28 = vadd.s32 4294967169, %v3519_v35  ;;  %v941_v32 = vsel %vm934_vm6, %v937_v55, %v11144_v26 }
 0x29b   : > { %8473 = vcosq.f32 %v1031_v27  ;;  %v11247_v4 = vand.u32 3, %v11139_v61  ;;  %v15254_v38 = vand.u32 2147483647, %v10956_v16  ;;  %v1821_v56 = vadd.s32 3, %v1817_v6 }
 0x29c   : > { %v11255_v50 = vsel %vm7448_vm15, 0, %v7447_v19  ;;  %vm2786_vm14 = vc.u32 %v11229_v36, %v11217_v24  ;;  %v3525_v0 = vadd.s32 1, %v7493_v28  ;;  %v1907_v45 = vor.u32 %v1906_v9, %v1905_v14 }
 0x29d   : > { %vm11251_vm2 = vcmp.le.f32.partialorder %v15254_v38, 0.7853982  ;;  %v11262_v43 = vsel %vm1834_vm10, %v1918_v33, %v11067_v53  ;;  %v2788_v61 = vsel %vm2786_vm14, %v2787_v30, %v11218_v60  ;;  %v3285_v26 = vmul.f32 %v11187_v8, %v7472_v52 }
 0x29e   : > { %v1911_v44 = vor.u32 4788187, %v1910_v59  ;;  %v2789_v62 = vadd.s32 %v2788_v61, %v2784_v3  ;;  %v15129_v15 = vand.u32 2147483647, %v11201_v17  ;;  %vm3526_vm13 = vcmp.gt.s32.totalorder %v3525_v0, 0 }
 0x29f   : > { %v11270_v19 = vsel %vm931_vm7, nan, %v941_v32  ;;  %8475 = vsinq.f32 %v1031_v27  ;;  %v2701_v25 = vsub.s32 4294967266, %v11255_v50  ;;  %v3527_v46 = vsel %vm3526_vm13, %v3525_v0, 0 }
 0x2a0   : > { %v11273_v53 = vand.u32 3, %v1821_v56  ;;  %v2790_v8 = vadd.s32 536870912, %v2789_v62  ;;  %v3529_v23 = vand.u32 31, %v3527_v46  ;;  %8477 = vsinq.f32 %v1816_v47 }
 0x2a1   : > { %v1914_v63 = vcvt.s32.f32 %v1907_v45  ;;  %v2681_v20 = vadd.s32 %v11105_v40, %v11111_v58  ;;  %v11280_v13 = vadd.f32 %v7480_v54, %v3285_v26  ;;  %v1912_v55 = vand.u32 2147483647, %v1911_v44 }
 0x2a2   : > { %v11282_v29 = vshrl.u32 %v2790_v8, 30  ;;  %v3522_v34 = vand.u32 8388607, %v15129_v15  ;;  %v3530_v27 = vsub.s32 32, %v3529_v23  ;;  %v11286_v6 = vpop.eup %8471  ;;  %v2697_v33 = vsub.s32 32, %v11255_v50 }
 0x2a3   : > { %v2702_v35 = vadd.s32 127, %v2701_v25  ;;  %v11289_v14 = vshrl.u32 %v3527_v46, 5  ;;  %v3532_v47 = vshll.u32 %v15252_v1, %v3529_v23  ;;  %v3535_v9 = vshll.u32 %v15208_v57, %v3529_v23 }
 0x2a4   : > { %v2792_v40 = vshll.u32 %v11282_v29, 30  ;;  %v3533_v58 = vshrl.u32 %v15208_v57, %v3530_v27  ;;  %v3538_v59 = vshll.u32 %v15209_v49, %v3529_v23  ;;  %v3536_v30 = vshrl.u32 %v15209_v49, %v3530_v27 }
 0x2a5   : > { %v11296_v3 = vpop.eup %8473  ;;  %v3539_v52 = vshrl.u32 %v15210_v5, %v3530_v27  ;;  %v3541_v28 = vshll.u32 %v15210_v5, %v3529_v23  ;;  %v3542_v32 = vshrl.u32 %v15225_v12, %v3530_v27  ;;  %v1915_v38 = vmul.f32 %v1914_v63, %v1912_v55 }
 0x2a6   : > { %v11302_v56 = vsub.s32 %v2789_v62, %v2792_v40  ;;  %v3523_v0 = vor.u32 8388608, %v3522_v34  ;;  %v3622_v45 = vand.u32 2139095040, %v11280_v13  ;;  %v1828_v61 = vxor.u32 2147483648, %v11286_v6 }
 0x2a7   : > { %v2698_v26 = vshll.u32 %v11183_v42, %v11255_v50  ;;  %v2699_v44 = vshrl.u32 %v2681_v20, %v2697_v33  ;;  %v3544_v54 = vshll.u32 %v15225_v12, %v3529_v23  ;;  %v2703_v25 = vshll.u32 %v2702_v35, 23 }
 0x2a8   : > { %v2795_v46 = vsub.s32 0, %v11302_v56  ;;  %v3534_v8 = vor.u32 %v3533_v58, %v3532_v47  ;;  %v3537_v15 = vor.u32 %v3536_v30, %v3535_v9  ;;  %vm1824_vm3 = vcmp.eq.s32.totalorder %v11273_v53, 0 }
 0x2a9   : > { %v11310_v60 = vpop.eup %8475  ;;  %vm1827_vm4 = vcmp.eq.s32.totalorder %v11273_v53, 2  ;;  %v3540_v62 = vor.u32 %v3539_v52, %v3538_v59  ;;  %v3543_v63 = vor.u32 %v3542_v32, %v3541_v28  ;;  %v15257_v55 = vmov 1326507024  }
 0x2aa   : > { %v3545_v34 = vshrl.u32 %v15257_v55, %v3530_v27  ;;  %vm3547_vm5 = vcmp.lt.s32.totalorder %v11289_v14, 1  ;;  %v1916_v42 = vxor.u32 2147483648, %v1915_v38  ;;  %v3531_v50 = vshrl.u32 %v15252_v1, %v3530_v27  ;;  %v8478_v33 = vpop.eup %8477 }
 0x2ab   : > { %v3563_v23 = vshll.u32 %v3523_v0, 8  ;;  %v3623_v20 = vshrl.u32 %v3622_v45, 23  ;;  %v7450_v35 = vmin.u32 %v2795_v46, %v11302_v56  ;;  %vm3549_vm12 = vcmp.lt.s32.totalorder %v11289_v14, 3 }
 0x2ac   : > { %v3546_v47 = vor.u32 %v3545_v34, %v3544_v54  ;;  %vm3550_vm6 = vcmp.lt.s32.totalorder %v11289_v14, 4  ;;  %vm1042_vm8 = vcmp.eq.s32.totalorder %v11247_v4, 2  ;;  %v2700_v40 = vor.u32 %v2699_v44, %v2698_v26 }
 0x2ad   : > { %v2704_v58 = vor.u32 4788187, %v2703_v25  ;;  %vm3548_vm9 = vcmp.lt.s32.totalorder %v11289_v14, 2  ;;  %v3555_v9 = vsel %vm3547_vm5, %v3534_v8, %v3537_v15  ;;  %vm1039_vm11 = vcmp.eq.s32.totalorder %v11247_v4, 0 }
 0x2ae   : > { %vm2627_vm7 = vcmp.lt.s32.totalorder %v11004_v39, 0  ;;  %v3552_v27 = vsel %vm3550_vm6, %v3540_v62, 2102212464  ;;  %v3556_v59 = vsel %vm3550_vm6, %v3543_v63, 920167782  ;;  %v3559_v30 = vsel %vm3547_vm5, %v3537_v15, %v3540_v62 }
 0x2af   : > { %v3560_v52 = vsel %vm3550_vm6, %v3546_v47, 1326507024  ;;  %v3551_v28 = vsel %vm3547_vm5, %v3531_v50, %v3534_v8  ;;  %v3553_v32 = vsel %vm3549_vm12, %v3537_v15, %v3552_v27  ;;  %v3557_v0 = vsel %vm3549_vm12, %v3540_v62, %v3556_v59 }
 0x2b0   : > { %v3561_v45 = vsel %vm3549_vm12, %v3543_v63, %v3560_v52  ;;  %v2797_v26 = vclz %v7450_v35  ;;  %v3558_v44 = vsel %vm3548_vm9, %v3555_v9, %v3557_v0  ;;  %v7497_v25 = vadd.s32 4294967169, %v3623_v20 }
 0x2b1   : > { %v3562_v54 = vsel %vm3548_vm9, %v3559_v30, %v3561_v45  ;;  %v1825_v46 = vxor.u32 2147483648, %v8478_v33  ;;  %v2707_v34 = vcvt.s32.f32 %v2700_v40  ;;  %v2705_v15 = vand.u32 2147483647, %v2704_v58 }
 0x2b2   : > { %v11340_v8 = vmul.u32.u64.low %v3563_v23, %v3562_v54  ;;  %v11341_v50 = vmul.u32.u64.high %v3563_v23, %v3562_v54, %v11340_v8  ;;  %v3554_v62 = vsel %vm3548_vm9, %v3551_v28, %v3553_v32  ;;  %vm1823_vm15 = vcmp.lt.s32.totalorder %v11273_v53, 2 }
 0x2b3   : > { %v11345_v47 = vmul.u32.u64.low %v3563_v23, %v3558_v44  ;;  %v11346_v27 = vmul.u32.u64.high %v3563_v23, %v3558_v44, %v11345_v47  ;;  %v15258_v63 = vand.u32 2147483647, %v11004_v39  ;;  %v2711_v20 = vsub.s32 4, %v11159_v51 }
 0x2b4   : > { %v3629_v40 = vadd.s32 1, %v7497_v25  ;;  %v1040_v58 = vxor.u32 2147483648, %v11310_v60  ;;  %v1043_v14 = vxor.u32 2147483648, %v11296_v3  ;;  %v1917_v9 = vsel %vm1834_vm10, %v1916_v42, %v1915_v38 }
 0x2b5   : > { %vm11352_vm14 = vcmp.le.f32.partialorder %v15258_v63, 0.7853982  ;;  %v7451_v59 = vadd.s32 4294967294, %v2797_v26  ;;  %v1826_v30 = vsel %vm1824_vm3, %v11286_v6, %v1825_v46  ;;  %v1829_v52 = vsel %vm1827_vm4, %v1828_v61, %v8478_v33 }
 0x2b6   : > { %v15261_v28 = vsel %vm11251_vm2, 0, %v11262_v43  ;;  %v3570_v0 = vmul.u32 %v3563_v23, %v3554_v62  ;;  %v2708_v45 = vmul.f32 %v2707_v34, %v2705_v15  ;;  %vm3572_vm13 = vc.u32 %v11341_v50, %v11345_v47 }
 0x2b7   : > { %v1925_v32 = vadd.s32 3, %v15261_v28  ;;  %v3573_v38 = vadd.s32 1, %v11346_v27  ;;  %vm3630_vm10 = vcmp.gt.s32.totalorder %v3629_v40, 0  ;;  %v1920_v6 = vsel %vm11251_vm2, %v10956_v16, %v1917_v9 }
 0x2b8   : > { %v11379_v61 = vsel %vm2627_vm7, %v2711_v20, %v11159_v51  ;;  %v15130_v43 = vand.u32 2147483647, %v11280_v13  ;;  %v3631_v42 = vsel %vm3630_vm10, %v3629_v40, 0  ;;  %v11385_v23 = vsel %vm1042_vm8, %v1043_v14, %v11310_v60 }
 0x2b9   : > { %vm7452_vm3 = vcmp.lt.s32.totalorder %v7451_v59, 0  ;;  %v3574_v33 = vsel %vm3572_vm13, %v3573_v38, %v11346_v27  ;;  %v3633_v26 = vand.u32 31, %v3631_v42  ;;  %v11391_v18 = vsel %vm1039_vm11, %v11296_v3, %v1040_v58 }
 0x2ba   : > { %v11395_v51 = vsel %vm1823_vm15, %v1826_v30, %v1829_v52  ;;  %v11397_v44 = vand.u32 3, %v1925_v32  ;;  %v3575_v54 = vadd.s32 %v3574_v33, %v3570_v0  ;;  %8479 = vcosq.f32 %v1920_v6 }
 0x2bb   : > { %v2709_v25 = vxor.u32 2147483648, %v2708_v45  ;;  %v2714_v60 = vsel %vm11352_vm14, 0, %v11379_v61  ;;  %v3634_v46 = vsub.s32 32, %v3633_v26  ;;  %v11402_v34 = vsel %vm7452_vm3, 0, %v7451_v59 }
 0x2bc   : > { %v3576_v8 = vadd.s32 536870912, %v3575_v54  ;;  %v3626_v3 = vand.u32 8388607, %v15130_v43  ;;  %v11406_v15 = vshrl.u32 %v3631_v42, 5  ;;  %v3636_v53 = vshll.u32 %v15252_v1, %v3633_v26 }
 0x2bd   : > { %v3637_v62 = vshrl.u32 %v15208_v57, %v3634_v46  ;;  %v3639_v27 = vshll.u32 %v15208_v57, %v3633_v26  ;;  %v3640_v63 = vshrl.u32 %v15209_v49, %v3634_v46  ;;  %v3642_v40 = vshll.u32 %v15209_v49, %v3633_v26 }
 0x2be   : > { %v11412_v20 = vshrl.u32 %v3576_v8, 30  ;;  %v3643_v58 = vshrl.u32 %v15210_v5, %v3634_v46  ;;  %v3645_v14 = vshll.u32 %v15210_v5, %v3633_v26  ;;  %8481 = vsinq.f32 %v1920_v6 }
 0x2bf   : > { %v2710_v9 = vsel %vm2627_vm7, %v2709_v25, %v2708_v45  ;;  %v2785_v59 = vadd.s32 %v11217_v24, %v11229_v36  ;;  %v3646_v30 = vshrl.u32 %v15225_v12, %v3634_v46  ;;  %v2805_v52 = vsub.s32 4294967266, %v11402_v34 }
 0x2c0   : > { %v3578_v28 = vshll.u32 %v11412_v20, 30  ;;  %v3627_v32 = vor.u32 8388608, %v3626_v3  ;;  %v3648_v0 = vshll.u32 %v15225_v12, %v3633_v26  ;;  %v3638_v38 = vor.u32 %v3637_v62, %v3636_v53 }
 0x2c1   : > { %v3641_v42 = vor.u32 %v3640_v63, %v3639_v27  ;;  %v3647_v33 = vor.u32 %v3646_v30, %v3645_v14  ;;  %v3649_v6 = vshrl.u32 %v15257_v55, %v3634_v46  ;;  %v3635_v45 = vshrl.u32 %v15252_v1, %v3634_v46  ;;  %v8618_v30 = vld [vmem:[%s9394_s29] ss:$0 sm:$0xff] }
 0x2c2   : > { %v11426_v8 = vsub.s32 %v3575_v54, %v3578_v28  ;;  %v3644_v24 = vor.u32 %v3643_v58, %v3642_v40  ;;  %vm3651_vm2 = vcmp.lt.s32.totalorder %v11406_v15, 1  ;;  %vm1038_vm4 = vcmp.lt.s32.totalorder %v11247_v4, 2  ;;  %v7527_v54 = vld [vmem:[%s9298_s12 + $0x110] sm:$0xff] }
 0x2c3   : > { %vm1820_vm5 = vweird.f32 %v10904_v48  ;;  %v2713_v36 = vsel %vm11352_vm14, %v11004_v39, %v2710_v9  ;;  %v3650_v26 = vor.u32 %v3649_v6, %v3648_v0  ;;  %vm3653_vm12 = vcmp.lt.s32.totalorder %v11406_v15, 3  ;;  %v7535_v6 = vld [vmem:[%s9298_s12 + $0x1d0] sm:$0xff] }
 0x2c4   : > { %vm3654_vm6 = vcmp.lt.s32.totalorder %v11406_v15, 4  ;;  %v2801_v25 = vsub.s32 32, %v11402_v34  ;;  %v3581_v46 = vsub.s32 0, %v11426_v8  ;;  %vm3652_vm8 = vcmp.lt.s32.totalorder %v11406_v15, 2  ;;  %v8480_v53 = vpop.eup %8479 }
 0x2c5   : > { %v11441_v3 = vshll.u32 %v3627_v32, 8  ;;  %vm1928_vm9 = vcmp.eq.s32.totalorder %v11397_v44, 0  ;;  %vm1931_vm11 = vcmp.eq.s32.totalorder %v11397_v44, 2  ;;  %v2806_v62 = vadd.s32 127, %v2805_v52 }
 0x2c6   : > { %v3656_v27 = vsel %vm3654_vm6, %v3644_v24, 2102212464  ;;  %v3659_v63 = vsel %vm3651_vm2, %v3638_v38, %v3641_v42  ;;  %v3660_v40 = vsel %vm3654_vm6, %v3647_v33, 920167782  ;;  %v7494_v58 = vmin.u32 %v3581_v46, %v11426_v8 }
 0x2c7   : > { %v3655_v14 = vsel %vm3651_vm2, %v3635_v45, %v3638_v38  ;;  %v3661_v9 = vsel %vm3653_vm12, %v3644_v24, %v3660_v40  ;;  %v4167_v28 = vmul.f32 %v8618_v30, %v7527_v54  ;;  %vm1035_vm7 = vweird.f32 %v10756_v21 }
 0x2c8   : > { %v3657_v52 = vsel %vm3653_vm12, %v3641_v42, %v3656_v27  ;;  %v3662_v32 = vsel %vm3652_vm8, %v3659_v63, %v3661_v9  ;;  %v3663_v0 = vsel %vm3651_vm2, %v3641_v42, %v3644_v24  ;;  %v3664_v38 = vsel %vm3654_vm6, %v3650_v26, 1326507024  ;;  %v8482_v40 = vpop.eup %8481 }
 0x2c9   : > { %8483 = vcosq.f32 %v2713_v36  ;;  %v2802_v45 = vshll.u32 %v11302_v56, %v11402_v34  ;;  %v2803_v54 = vshrl.u32 %v2785_v59, %v2801_v25  ;;  %v3583_v46 = vclz %v7494_v58  ;;  %v585_v34 = vld [vmem:[%s9295_s20 + $0x10] sm:$0xff] }
 0x2ca   : > { %v2807_v43 = vshll.u32 %v2806_v62, 23  ;;  %v3665_v27 = vsel %vm3653_vm12, %v3647_v33, %v3664_v38  ;;  %v11472_v63 = vmul.u32.u64.low %v11441_v3, %v3662_v32  ;;  %v11473_v9 = vmul.u32.u64.high %v11441_v3, %v3662_v32, %v11472_v63 }
 0x2cb   : > { %v7495_v42 = vadd.s32 4294967294, %v3583_v46  ;;  %v3658_v24 = vsel %vm3652_vm8, %v3655_v14, %v3657_v52  ;;  %v3666_v26 = vsel %vm3652_vm8, %v3663_v0, %v3665_v27  ;;  %v11480_v56 = vadd.f32 %v7535_v6, %v4167_v28  ;;  %v7357_v0 = vld [vmem:[%s9295_s20 + $0x50] sm:$0xff] }
 0x2cc   : > { %8485 = vsinq.f32 %v2713_v36  ;;  %v2718_v59 = vadd.s32 3, %v2714_v60  ;;  %v11488_v33 = vmul.u32.u64.low %v11441_v3, %v3666_v26  ;;  %v11489_v25 = vmul.u32.u64.high %v11441_v3, %v3666_v26, %v11488_v33 }
 0x2cd   : > { %v1929_v62 = vxor.u32 2147483648, %v8482_v40  ;;  %v1932_v58 = vxor.u32 2147483648, %v8480_v53  ;;  %vm7496_vm15 = vcmp.lt.s32.totalorder %v7495_v42, 0  ;;  %v4401_v15 = vand.u32 2139095040, %v11480_v56 }
 0x2ce   : > { %vm1924_vm13 = vweird.f32 %v10956_v16  ;;  %v2804_v14 = vor.u32 %v2803_v54, %v2802_v45  ;;  %v2808_v28 = vor.u32 4788187, %v2807_v43  ;;  %v3674_v35 = vmul.u32 %v11441_v3, %v3658_v24 }
 0x2cf   : > { %v3677_v61 = vadd.s32 1, %v11473_v9  ;;  %v1045_v60 = vsel %vm1038_vm4, %v11391_v18, %v11385_v23  ;;  %v11500_v36 = vmul.f32 %v11270_v19, %v585_v34  ;;  %v1831_v52 = vsel %vm1820_vm5, nan, %v11395_v51  ;;  %v7528_v18 = vld [vmem:[%s9298_s12 + $0x118] sm:$0xff] }
 0x2d0   : > { %vm1927_vm14 = vcmp.lt.s32.totalorder %v11397_v44, 2  ;;  %v11506_v43 = vand.u32 3, %v2718_v59  ;;  %v11508_v32 = vsel %vm7496_vm15, 0, %v7495_v42  ;;  %vm3676_vm10 = vc.u32 %v11489_v25, %v11472_v63  ;;  %v7536_v59 = vld [vmem:[%s9298_s12 + $0x1d8] sm:$0xff] }
 0x2d1   : > { %v4402_v3 = vshrl.u32 %v4401_v15, 23  ;;  %v1930_v4 = vsel %vm1928_vm9, %v8480_v53, %v1929_v62  ;;  %v1933_v19 = vsel %vm1931_vm11, %v1932_v58, %v8482_v40  ;;  %v2815_v48 = vsub.s32 4, %v11282_v29 }
 0x2d2   : > { %v3678_v23 = vsel %vm3676_vm10, %v3677_v61, %v11473_v9  ;;  %v2809_v51 = vand.u32 2147483647, %v2808_v28  ;;  %v2811_v38 = vcvt.s32.f32 %v2804_v14  ;;  %v11522_v46 = vsel %vm1035_vm7, nan, %v1045_v60 }
 0x2d3   : > { %v3679_v6 = vadd.s32 %v3678_v23, %v3674_v35  ;;  %v7549_v45 = vadd.s32 4294967169, %v4402_v3  ;;  %v8484_v54 = vpop.eup %8483  ;;  %v15262_v53 = vand.u32 2147483647, %v11079_v7  ;;  %vm2731_vm2 = vcmp.lt.s32.totalorder %v11079_v7, 0 }
 0x2d4   : > { %v3591_v40 = vsub.s32 4294967266, %v11508_v32  ;;  %v11532_v9 = vmul.f32 %v7357_v0, %v1831_v52  ;;  %v4168_v24 = vmul.f32 %v8618_v30, %v7528_v18  ;;  %v1934_v21 = vsel %vm1927_vm14, %v1930_v4, %v1933_v19 }
 0x2d5   : > { %vm11526_vm3 = vcmp.le.f32.partialorder %v15262_v53, 0.7853982  ;;  %v3680_v42 = vadd.s32 536870912, %v3679_v6  ;;  %v4408_v26 = vadd.s32 1, %v7549_v45  ;;  %vm2721_vm4 = vcmp.eq.s32.totalorder %v11506_v43, 0 }
 0x2d6   : > { %vm2724_vm5 = vcmp.eq.s32.totalorder %v11506_v43, 2  ;;  %v11541_v34 = vsel %vm2731_vm2, %v2815_v48, %v11282_v29  ;;  %v8486_v33 = vpop.eup %8485  ;;  %v2725_v62 = vxor.u32 2147483648, %v8484_v54  ;;  %v2812_v58 = vmul.f32 %v2811_v38, %v2809_v51 }
 0x2d7   : > { %v11544_v15 = vshrl.u32 %v3680_v42, 30  ;;  %vm4409_vm12 = vcmp.gt.s32.totalorder %v4408_v26, 0  ;;  %v3571_v44 = vadd.s32 %v11345_v47, %v11341_v50  ;;  %v3587_v30 = vsub.s32 32, %v11508_v32 }
 0x2d8   : > { %v3592_v14 = vadd.s32 127, %v3591_v40  ;;  %v4410_v28 = vsel %vm4409_vm12, %v4408_v26, 0  ;;  %vm3517_vm6 = vcmp.lt.s32.totalorder %v11201_v17, 0  ;;  %v11551_v29 = vadd.f32 %v7536_v59, %v4168_v24 }
 0x2d9   : > { %v3682_v35 = vshll.u32 %v11544_v15, 30  ;;  %v4398_v61 = vand.u32 2147483647, %v11480_v56  ;;  %v11556_v60 = vsel %vm1924_vm13, nan, %v1934_v21  ;;  %v2722_v52 = vxor.u32 2147483648, %v8486_v33 }
 0x2da   : > { %v2818_v50 = vsel %vm11526_vm3, 0, %v11541_v34  ;;  %v4412_v47 = vand.u32 31, %v4410_v28  ;;  %v2726_v3 = vsel %vm2724_vm5, %v2725_v62, %v8486_v33  ;;  %v2813_v0 = vxor.u32 2147483648, %v2812_v58 }
 0x2db   : > { %v3601_v4 = vsub.s32 4, %v11412_v20  ;;  %v11564_v19 = vsub.s32 %v3679_v6, %v3682_v35  ;;  %v3588_v48 = vshll.u32 %v11426_v8, %v11508_v32  ;;  %v3589_v16 = vshrl.u32 %v3571_v44, %v3587_v30 }
 0x2dc   : > { %v3593_v23 = vshll.u32 %v3592_v14, 23  ;;  %v4413_v18 = vsub.s32 32, %v4412_v47  ;;  %v4405_v51 = vand.u32 8388607, %v4398_v61  ;;  %v4415_v38 = vshll.u32 %v15252_v1, %v4412_v47 }
 0x2dd   : > { %v4418_v45 = vshll.u32 %v15208_v57, %v4412_v47  ;;  %v4505_v53 = vand.u32 2139095040, %v11551_v29  ;;  %vm2720_vm8 = vcmp.lt.s32.totalorder %v11506_v43, 2  ;;  %v2723_v6 = vsel %vm2721_vm4, %v8484_v54, %v2722_v52 }
 0x2de   : > { %v4411_v40 = vshrl.u32 %v4410_v28, 5  ;;  %v4416_v8 = vshrl.u32 %v15208_v57, %v4413_v18  ;;  %v4419_v32 = vshrl.u32 %v15209_v49, %v4413_v18  ;;  %v2814_v42 = vsel %vm2731_vm2, %v2813_v0, %v2812_v58 }
 0x2df   : > { %v3685_v24 = vsub.s32 0, %v11564_v19  ;;  %v4421_v26 = vshll.u32 %v15209_v49, %v4412_v47  ;;  %v4422_v21 = vshrl.u32 %v15210_v5, %v4413_v18  ;;  %v3590_v59 = vor.u32 %v3589_v16, %v3588_v48 }
 0x2e0   : > { %v3594_v33 = vor.u32 4788187, %v3593_v23  ;;  %v3602_v54 = vsel %vm3517_vm6, %v3601_v4, %v11412_v20  ;;  %v4424_v62 = vshll.u32 %v15210_v5, %v4412_v47  ;;  %v4406_v44 = vor.u32 8388608, %v4405_v51 }
 0x2e1   : > { %v4417_v30 = vor.u32 %v4416_v8, %v4415_v38  ;;  %v4420_v14 = vor.u32 %v4419_v32, %v4418_v45  ;;  %v4506_v28 = vshrl.u32 %v4505_v53, 23  ;;  %vm2717_vm9 = vweird.f32 %v11004_v39 }
 0x2e2   : > { %v15265_v58 = vand.u32 2147483647, %v11201_v17  ;;  %v4414_v52 = vshrl.u32 %v15252_v1, %v4413_v18  ;;  %v4425_v0 = vshrl.u32 %v15225_v12, %v4413_v18  ;;  %v4427_v20 = vshll.u32 %v15225_v12, %v4412_v47 }
 0x2e3   : > { %vm4430_vm7 = vcmp.lt.s32.totalorder %v4411_v40, 1  ;;  %v7498_v4 = vmin.u32 %v3685_v24, %v11564_v19  ;;  %v4423_v48 = vor.u32 %v4422_v21, %v4421_v26  ;;  %v4428_v16 = vshrl.u32 %v15257_v55, %v4413_v18 }
 0x2e4   : > { %vm11590_vm11 = vcmp.le.f32.partialorder %v15265_v58, 0.7853982  ;;  %vm4433_vm15 = vcmp.lt.s32.totalorder %v4411_v40, 4  ;;  %v3595_v23 = vand.u32 2147483647, %v3594_v33  ;;  %v3597_v51 = vcvt.s32.f32 %v3590_v59 }
 0x2e5   : > { %v4426_v38 = vor.u32 %v4425_v0, %v4424_v62  ;;  %vm4432_vm13 = vcmp.lt.s32.totalorder %v4411_v40, 3  ;;  %v4429_v45 = vor.u32 %v4428_v16, %v4427_v20  ;;  %vm4431_vm14 = vcmp.lt.s32.totalorder %v4411_v40, 2 }
 0x2e6   : > { %v4435_v53 = vsel %vm4433_vm15, %v4423_v48, 2102212464  ;;  %v4438_v8 = vsel %vm4430_vm7, %v4417_v30, %v4420_v14  ;;  %v4446_v47 = vshll.u32 %v4406_v44, 8  ;;  %v15132_v58 = vand.u32 2147483647, %v11551_v29 }
 0x2e7   : > { %v4439_v32 = vsel %vm4433_vm15, %v4426_v38, 920167782  ;;  %v7553_v24 = vadd.s32 4294967169, %v4506_v28  ;;  %v3687_v26 = vclz %v7498_v4  ;;  %v4434_v18 = vsel %vm4430_vm7, %v4414_v52, %v4417_v30 }
 0x2e8   : > { %v4440_v21 = vsel %vm4432_vm13, %v4423_v48, %v4439_v32  ;;  %v4442_v59 = vsel %vm4430_vm7, %v4420_v14, %v4423_v48  ;;  %v4436_v33 = vsel %vm4432_vm13, %v4420_v14, %v4435_v53  ;;  %v4443_v0 = vsel %vm4433_vm15, %v4429_v45, 1326507024 }
 0x2e9   : > { %v4441_v62 = vsel %vm4431_vm14, %v4438_v8, %v4440_v21  ;;  %v4512_v20 = vadd.s32 1, %v7553_v24  ;;  %v2727_v44 = vsel %vm2720_vm8, %v2723_v6, %v2726_v3  ;;  %v2822_v30 = vadd.s32 3, %v2818_v50 }
 0x2ea   : > { %v3598_v28 = vmul.f32 %v3597_v51, %v3595_v23  ;;  %v4444_v52 = vsel %vm4432_vm13, %v4426_v38, %v4443_v0  ;;  %v11617_v14 = vmul.u32.u64.low %v4446_v47, %v4441_v62  ;;  %v11618_v48 = vmul.u32.u64.high %v4446_v47, %v4441_v62, %v11617_v14  ;;  %v7583_v38 = vld [vmem:[%s9298_s12 + $0x150] sm:$0xff] }
 0x2eb   : > { %v4445_v4 = vsel %vm4431_vm14, %v4442_v59, %v4444_v52  ;;  %vm4513_vm10 = vcmp.gt.s32.totalorder %v4512_v20, 0  ;;  %v2817_v43 = vsel %vm11526_vm3, %v11079_v7, %v2814_v42  ;;  %v3604_v3 = vsel %vm11590_vm11, 0, %v3602_v54 }
 0x2ec   : > { %v4437_v34 = vsel %vm4431_vm14, %v4434_v18, %v4436_v33  ;;  %v4514_v50 = vsel %vm4513_vm10, %v4512_v20, 0  ;;  %v7499_v6 = vadd.s32 4294967294, %v3687_v26  ;;  %v4509_v51 = vand.u32 8388607, %v15132_v58  ;;  %v11647_v26 = vld [vmem:[%s9740_s9] ss:$0 sm:$0xff] }
 0x2ed   : > { %v11627_v16 = vmul.u32.u64.low %v4446_v47, %v4445_v4  ;;  %v11628_v23 = vmul.u32.u64.high %v4446_v47, %v4445_v4, %v11627_v16  ;;  %v11635_v45 = vsel %vm2717_vm9, nan, %v2727_v44  ;;  %v11637_v27 = vand.u32 3, %v2822_v30 }
 0x2ee   : > { %v3599_v42 = vxor.u32 2147483648, %v3598_v28  ;;  %v4516_v54 = vand.u32 31, %v4514_v50  ;;  %8487 = vcosq.f32 %v2817_v43  ;;  %v11639_v40 = vadd.s32 3, %v3604_v3 }
 0x2ef   : > { %v4453_v53 = vmul.u32 %v4446_v47, %v4437_v34  ;;  %v4456_v8 = vadd.s32 1, %v11618_v48  ;;  %8489 = vsinq.f32 %v2817_v43  ;;  %v11644_v32 = vadd.s32 %v11472_v63, %v11489_v25 }
 0x2f0   : > { %v4517_v24 = vsub.s32 32, %v4516_v54  ;;  %v11650_v39 = vmul.f32 %v11647_v26, %v7583_v38  ;;  %vm7500_vm3 = vcmp.lt.s32.totalorder %v7499_v6, 0  ;;  %vm4455_vm2 = vc.u32 %v11628_v23, %v11617_v14 }
 0x2f1   : > { %v4510_v18 = vor.u32 8388608, %v4509_v51  ;;  %v4519_v47 = vshll.u32 %v15252_v1, %v4516_v54  ;;  %v3600_v21 = vsel %vm3517_vm6, %v3599_v42, %v3598_v28  ;;  %v4457_v59 = vsel %vm4455_vm2, %v4456_v8, %v11618_v48 }
 0x2f2   : > { %v4515_v63 = vshrl.u32 %v4514_v50, 5  ;;  %v4522_v25 = vshll.u32 %v15208_v57, %v4516_v54  ;;  %v4458_v33 = vadd.s32 %v4457_v59, %v4453_v53  ;;  %v4520_v62 = vshrl.u32 %v15208_v57, %v4517_v24 }
 0x2f3   : > { %v4523_v0 = vshrl.u32 %v15209_v49, %v4517_v24  ;;  %v4525_v20 = vshll.u32 %v15209_v49, %v4516_v54  ;;  %v11662_v44 = vsel %vm7500_vm3, 0, %v7499_v6  ;;  %v4526_v30 = vshrl.u32 %v15210_v5, %v4517_v24 }
 0x2f4   : > { %v4528_v52 = vshll.u32 %v15210_v5, %v4516_v54  ;;  %v4529_v28 = vshrl.u32 %v15225_v12, %v4517_v24  ;;  %v4459_v4 = vadd.s32 536870912, %v4458_v33  ;;  %v4518_v48 = vshrl.u32 %v15252_v1, %v4517_v24 }
 0x2f5   : > { %v4521_v43 = vor.u32 %v4520_v62, %v4519_v47  ;;  %v4531_v3 = vshll.u32 %v15225_v12, %v4516_v54  ;;  %v4524_v34 = vor.u32 %v4523_v0, %v4522_v25  ;;  %v4527_v50 = vor.u32 %v4526_v30, %v4525_v20 }
 0x2f6   : > { %v4530_v16 = vor.u32 %v4529_v28, %v4528_v52  ;;  %v4532_v51 = vshrl.u32 %v15257_v55, %v4517_v24  ;;  %v3603_v6 = vsel %vm11590_vm11, %v11201_v17, %v3600_v21  ;;  %v11673_v38 = vshrl.u32 %v4459_v4, 30 }
 0x2f7   : > { %vm4534_vm4 = vcmp.lt.s32.totalorder %v4515_v63, 1  ;;  %vm4537_vm5 = vcmp.lt.s32.totalorder %v4515_v63, 4  ;;  %v3695_v42 = vsub.s32 4294967266, %v11662_v44  ;;  %vm4536_vm12 = vcmp.lt.s32.totalorder %v4515_v63, 3 }
 0x2f8   : > { %v4533_v53 = vor.u32 %v4532_v51, %v4531_v3  ;;  %v4539_v8 = vsel %vm4537_vm5, %v4527_v50, 2102212464  ;;  %v11677_v54 = vpop.eup %8487  ;;  %v4461_v47 = vshll.u32 %v11673_v38, 30  ;;  %vm4535_vm6 = vcmp.lt.s32.totalorder %v4515_v63, 2  ;;  %v7414_v3 = vld [vmem:[%s9295_s20 + $0x90] sm:$0xff] }
 0x2f9   : > { %v4538_v24 = vsel %vm4534_vm4, %v4518_v48, %v4521_v43  ;;  %v4550_v35 = vshll.u32 %v4510_v18, 8  ;;  %v11680_v21 = vpop.eup %8489  ;;  %v4540_v59 = vsel %vm4536_vm12, %v4524_v34, %v4539_v8  ;;  %v4542_v25 = vsel %vm4534_vm4, %v4521_v43, %v4524_v34  ;;  %v7591_v43 = vld [vmem:[%s9298_s12 + $0x210] sm:$0xff]  ;;  %v586_v8 = vld [vmem:[%s9295_s20 + $0x18] sm:$0xff] }
 0x2fa   : > { %v4543_v62 = vsel %vm4537_vm5, %v4530_v16, 920167782  ;;  %v4546_v0 = vsel %vm4534_vm4, %v4524_v34, %v4527_v50  ;;  %v3691_v20 = vsub.s32 32, %v11662_v44  ;;  %v11685_v30 = vsub.s32 %v4458_v33, %v4461_v47 }
 0x2fb   : > { %v4544_v52 = vsel %vm4536_vm12, %v4527_v50, %v4543_v62  ;;  %v4547_v28 = vsel %vm4537_vm5, %v4533_v53, 1326507024  ;;  %8491 = vcosq.f32 %v3603_v6  ;;  %v3696_v18 = vadd.s32 127, %v3695_v42 }
 0x2fc   : > { %v4545_v4 = vsel %vm4535_vm6, %v4542_v25, %v4544_v52  ;;  %v4548_v48 = vsel %vm4536_vm12, %v4530_v16, %v4547_v28  ;;  %8493 = vsinq.f32 %v3603_v6  ;;  %v4464_v34 = vsub.s32 0, %v11685_v30  ;;  %v7358_v25 = vld [vmem:[%s9295_s20 + $0x58] sm:$0xff] }
 0x2fd   : > { %v4541_v51 = vsel %vm4535_vm6, %v4538_v24, %v4540_v59  ;;  %v4549_v33 = vsel %vm4535_vm6, %v4546_v0, %v4548_v48  ;;  %v11700_v53 = vmul.u32.u64.low %v4550_v35, %v4545_v4  ;;  %v11701_v42 = vmul.u32.u64.high %v4550_v35, %v4545_v4, %v11700_v53 }
 0x2fe   : > { %v11697_v50 = vmul.u32.u64.low %v4550_v35, %v4549_v33  ;;  %v11698_v47 = vmul.u32.u64.high %v4550_v35, %v4549_v33, %v11697_v50  ;;  %v3692_v16 = vshll.u32 %v11564_v19, %v11662_v44  ;;  %v3693_v6 = vshrl.u32 %v11644_v32, %v3691_v20  ;;  %v7584_v44 = vld [vmem:[%s9298_s12 + $0x158] sm:$0xff] }
 0x2ff   : > { %v7550_v62 = vmin.u32 %v4464_v34, %v11685_v30  ;;  %v11710_v63 = vadd.f32 %v7591_v43, %v11650_v39  ;;  %v2362_v24 = vadd.f32 %v11532_v9, %v11500_v36  ;;  %v3251_v59 = vmul.f32 %v7414_v3, %v11635_v45  ;;  %v7592_v33 = vld [vmem:[%s9298_s12 + $0x218] sm:$0xff] }
 0x300   : > { %v3697_v0 = vshll.u32 %v3696_v18, 23  ;;  %v11716_v52 = vmul.f32 %v11522_v46, %v586_v8  ;;  %vm3621_vm8 = vcmp.lt.s32.totalorder %v11280_v13, 0  ;;  %v4557_v19 = vmul.u32 %v4550_v35, %v4541_v51 }
 0x301   : > { %v4466_v28 = vclz %v7550_v62  ;;  %v11721_v32 = vmul.f32 %v7358_v25, %v11556_v60  ;;  %v11724_v39 = vand.u32 3, %v11639_v40  ;;  %vm4559_vm9 = vc.u32 %v11698_v47, %v11700_v53 }
 0x302   : > { %v4560_v36 = vadd.s32 1, %v11701_v42  ;;  %vm2825_vm11 = vcmp.eq.s32.totalorder %v11637_v27, 0  ;;  %vm2828_vm7 = vcmp.eq.s32.totalorder %v11637_v27, 2  ;;  %v3694_v46 = vor.u32 %v3693_v6, %v3692_v16 }
 0x303   : > { %v7551_v9 = vadd.s32 4294967294, %v4466_v28  ;;  %v5292_v45 = vand.u32 2139095040, %v11710_v63  ;;  %v11732_v35 = vadd.f32 %v3251_v59, %v2362_v24  ;;  %v3698_v60 = vor.u32 4788187, %v3697_v0 }
 0x304   : > { %v4561_v40 = vsel %vm4559_vm9, %v4560_v36, %v11701_v42  ;;  %v5059_v20 = vmul.f32 %v11647_v26, %v7584_v44  ;;  %v4454_v18 = vadd.s32 %v11617_v14, %v11628_v23  ;;  %vm3611_vm13 = vcmp.eq.s32.totalorder %v11724_v39, 0 }
 0x305   : > { %vm7552_vm15 = vcmp.lt.s32.totalorder %v7551_v9, 0  ;;  %v4562_v4 = vadd.s32 %v4561_v40, %v4557_v19  ;;  %v5293_v48 = vshrl.u32 %v5292_v45, 23  ;;  %v8492_v43 = vpop.eup %8491  ;;  %vm3614_vm14 = vcmp.eq.s32.totalorder %v11724_v39, 2 }
 0x306   : > { %v15268_v3 = vand.u32 2147483647, %v11280_v13  ;;  %v3705_v51 = vsub.s32 4, %v11544_v15  ;;  %v4469_v26 = vsel %vm7552_vm15, 0, %v7551_v9  ;;  %v8494_v8 = vpop.eup %8493  ;;  %v3701_v14 = vcvt.s32.f32 %v3694_v46 }
 0x307   : > { %v4470_v23 = vsub.s32 32, %v4469_v26  ;;  %v4471_v50 = vshll.u32 %v11685_v30, %v4469_v26  ;;  %v4474_v42 = vsub.s32 4294967266, %v4469_v26  ;;  %v3699_v25 = vand.u32 2147483647, %v3698_v60 }
 0x308   : > { %vm11742_vm10 = vcmp.le.f32.partialorder %v15268_v3, 0.7853982  ;;  %v4563_v16 = vadd.s32 536870912, %v4562_v4  ;;  %v15131_v6 = vand.u32 2147483647, %v11710_v63  ;;  %v7605_v62 = vadd.s32 4294967169, %v5293_v48 }
 0x309   : > { %v2829_v24 = vxor.u32 2147483648, %v11677_v54  ;;  %v4472_v59 = vshrl.u32 %v4454_v18, %v4470_v23  ;;  %v4475_v0 = vadd.s32 127, %v4474_v42  ;;  %v11751_v28 = vadd.f32 %v7592_v33, %v5059_v20 }
 0x30a   : > { %v2826_v19 = vxor.u32 2147483648, %v11680_v21  ;;  %v11757_v44 = vsel %vm3621_vm8, %v3705_v51, %v11544_v15  ;;  %v11759_v30 = vshrl.u32 %v4563_v16, 30  ;;  %v5299_v36 = vadd.s32 1, %v7605_v62 }
 0x30b   : > { %v3612_v46 = vxor.u32 2147483648, %v8494_v8  ;;  %v3615_v9 = vxor.u32 2147483648, %v8492_v43  ;;  %v4473_v45 = vor.u32 %v4472_v59, %v4471_v50  ;;  %v4476_v60 = vshll.u32 %v4475_v0, 23 }
 0x30c   : > { %v3702_v40 = vmul.f32 %v3701_v14, %v3699_v25  ;;  %vm4400_vm3 = vcmp.lt.s32.totalorder %v11480_v56, 0  ;;  %v4565_v20 = vshll.u32 %v11759_v30, 30  ;;  %v5296_v18 = vand.u32 8388607, %v15131_v6 }
 0x30d   : > { %vm5300_vm2 = vcmp.gt.s32.totalorder %v5299_v36, 0  ;;  %v4477_v48 = vor.u32 4788187, %v4476_v60  ;;  %v4480_v3 = vcvt.s32.f32 %v4473_v45  ;;  %v5396_v51 = vand.u32 2139095040, %v11751_v28 }
 0x30e   : > { %v5301_v15 = vsel %vm5300_vm2, %v5299_v36, 0  ;;  %v11769_v26 = vsel %vm2825_vm11, %v11677_v54, %v2826_v19  ;;  %v11774_v33 = vsel %vm2828_vm7, %v2829_v24, %v11680_v21  ;;  %v11776_v14 = vsub.s32 %v4562_v4, %v4565_v20 }
 0x30f   : > { %v5303_v23 = vand.u32 31, %v5301_v15  ;;  %v11780_v50 = vsel %vm3611_vm13, %v8492_v43, %v3612_v46  ;;  %v11784_v42 = vsel %vm3614_vm14, %v3615_v9, %v8494_v8  ;;  %v4478_v25 = vand.u32 2147483647, %v4477_v48 }
 0x310   : > { %v3703_v16 = vxor.u32 2147483648, %v3702_v40  ;;  %v4484_v21 = vsub.s32 4, %v11673_v38  ;;  %v4568_v4 = vsub.s32 0, %v11776_v14  ;;  %v5297_v59 = vor.u32 8388608, %v5296_v18 }
 0x311   : > { %v5304_v62 = vsub.s32 32, %v5303_v23  ;;  %v4481_v24 = vmul.f32 %v4480_v3, %v4478_v25  ;;  %v5306_v43 = vshll.u32 %v15252_v1, %v5303_v23  ;;  %v5397_v0 = vshrl.u32 %v5396_v51, 23 }
 0x312   : > { %v7554_v19 = vmin.u32 %v4568_v4, %v11776_v14  ;;  %v5309_v36 = vshll.u32 %v15208_v57, %v5303_v23  ;;  %v5312_v46 = vshll.u32 %v15209_v49, %v5303_v23  ;;  %v5315_v60 = vshll.u32 %v15210_v5, %v5303_v23 }
 0x313   : > { %v5307_v8 = vshrl.u32 %v15208_v57, %v5304_v62  ;;  %v5310_v9 = vshrl.u32 %v15209_v49, %v5304_v62  ;;  %v5313_v45 = vshrl.u32 %v15210_v5, %v5304_v62  ;;  %v5316_v20 = vshrl.u32 %v15225_v12, %v5304_v62 }
 0x314   : > { %v3704_v18 = vsel %vm3621_vm8, %v3703_v16, %v3702_v40  ;;  %v4482_v48 = vxor.u32 2147483648, %v4481_v24  ;;  %v4570_v3 = vclz %v7554_v19  ;;  %v5302_v51 = vshrl.u32 %v5301_v15, 5 }
 0x315   : > { %vm2824_vm4 = vcmp.lt.s32.totalorder %v11637_v27, 2  ;;  %vm11805_vm5 = vcmp.le.f32.partialorder %v4398_v61, 0.7853982  ;;  %v4485_v4 = vsel %vm4400_vm3, %v4484_v21, %v11673_v38  ;;  %v4558_v6 = vadd.s32 %v11700_v53, %v11698_v47 }
 0x316   : > { %v11814_v58 = vshll.u32 %v5297_v59, 8  ;;  %v7609_v40 = vadd.s32 4294967169, %v5397_v0  ;;  %vm3610_vm12 = vcmp.lt.s32.totalorder %v11724_v39, 2  ;;  %v7555_v15 = vadd.s32 4294967294, %v4570_v3 }
 0x317   : > { %v5305_v16 = vshrl.u32 %v15252_v1, %v5304_v62  ;;  %v5308_v19 = vor.u32 %v5307_v8, %v5306_v43  ;;  %v5318_v61 = vshll.u32 %v15225_v12, %v5303_v23  ;;  %v5311_v54 = vor.u32 %v5310_v9, %v5309_v36 }
 0x318   : > { %v5314_v41 = vor.u32 %v5313_v45, %v5312_v46  ;;  %v5317_v37 = vor.u32 %v5316_v20, %v5315_v60  ;;  %v5319_v11 = vshrl.u32 %v15257_v55, %v5304_v62  ;;  %v4483_v38 = vsel %vm4400_vm3, %v4482_v48, %v4481_v24 }
 0x319   : > { %vm7556_vm6 = vcmp.lt.s32.totalorder %v7555_v15, 0  ;;  %vm5321_vm8 = vcmp.lt.s32.totalorder %v5302_v51, 1  ;;  %vm5324_vm9 = vcmp.lt.s32.totalorder %v5302_v51, 4  ;;  %vm3607_vm11 = vweird.f32 %v11201_v17 }
 0x31a   : > { %v4573_v47 = vsel %vm7556_vm6, 0, %v7555_v15  ;;  %v5320_v53 = vor.u32 %v5319_v11, %v5318_v61  ;;  %vm5323_vm7 = vcmp.lt.s32.totalorder %v5302_v51, 3  ;;  %v5326_v21 = vsel %vm5324_vm9, %v5314_v41, 2102212464 }
 0x31b   : > { %v4574_v59 = vsub.s32 32, %v4573_v47  ;;  %v4578_v23 = vsub.s32 4294967266, %v4573_v47  ;;  %vm5322_vm15 = vcmp.lt.s32.totalorder %v5302_v51, 2  ;;  %v5325_v43 = vsel %vm5321_vm8, %v5305_v16, %v5308_v19 }
 0x31c   : > { %v5327_v0 = vsel %vm5323_vm7, %v5311_v54, %v5326_v21  ;;  %v5329_v62 = vsel %vm5321_vm8, %v5308_v19, %v5311_v54  ;;  %v5330_v8 = vsel %vm5324_vm9, %v5317_v37, 920167782  ;;  %v5333_v24 = vsel %vm5321_vm8, %v5311_v54, %v5314_v41 }
 0x31d   : > { %v4575_v36 = vshll.u32 %v11776_v14, %v4573_v47  ;;  %v4579_v46 = vadd.s32 127, %v4578_v23  ;;  %v5331_v9 = vsel %vm5323_vm7, %v5314_v41, %v5330_v8  ;;  %v5334_v11 = vsel %vm5324_vm9, %v5320_v53, 1326507024 }
 0x31e   : > { %v4576_v45 = vshrl.u32 %v4558_v6, %v4574_v59  ;;  %v5332_v60 = vsel %vm5322_vm15, %v5329_v62, %v5331_v9  ;;  %v5335_v20 = vsel %vm5323_vm7, %v5317_v37, %v5334_v11  ;;  %v5403_v48 = vadd.s32 1, %v7609_v40  ;;  %v3267_v59 = vld [vmem:[%s9298_s12 + $0x10] sm:$0xff]  ;;  %v7310_v62 = vld [vmem:[%s9295_s20 + $0xe0] sm:$0xff] }
 0x31f   : > { %v4487_v3 = vsel %vm11805_vm5, 0, %v4485_v4  ;;  %v4580_v15 = vshll.u32 %v4579_v46, 23  ;;  %v5328_v16 = vsel %vm5322_vm15, %v5325_v43, %v5327_v0  ;;  %v5336_v54 = vsel %vm5322_vm15, %v5333_v24, %v5335_v20 }
 0x320   : > { %v11836_v14 = vmul.u32.u64.low %v11814_v58, %v5336_v54  ;;  %v11837_v19 = vmul.u32.u64.high %v11814_v58, %v5336_v54, %v11836_v14  ;;  %v11840_v41 = vmul.u32.u64.low %v11814_v58, %v5332_v60  ;;  %v11841_v6 = vmul.u32.u64.high %v11814_v58, %v5332_v60, %v11840_v41 }
 0x321   : > { %v11848_v37 = vsel %vm2824_vm4, %v11769_v26, %v11774_v33  ;;  %v15273_v51 = vsel %vm11742_vm10, 0, %v11757_v44  ;;  %v4486_v40 = vsel %vm11805_vm5, %v11480_v56, %v4483_v38  ;;  %vm5404_vm13 = vcmp.gt.s32.totalorder %v5403_v48, 0 }
 0x322   : > { %v3712_v4 = vadd.s32 3, %v15273_v51  ;;  %v3617_v61 = vsel %vm3610_vm12, %v11780_v50, %v11784_v42  ;;  %v4577_v47 = vor.u32 %v4576_v45, %v4575_v36  ;;  %v4581_v53 = vor.u32 4788187, %v4580_v15 }
 0x323   : > { %v5405_v27 = vsel %vm5404_vm13, %v5403_v48, 0  ;;  %v3707_v26 = vsel %vm11742_vm10, %v11280_v13, %v3704_v18  ;;  %v4491_v44 = vadd.s32 3, %v4487_v3  ;;  %v5344_v33 = vmul.u32 %v11814_v58, %v5328_v16  ;;  %v8620_v16 = vld [vmem:[%s9382_s14] ss:$0 sm:$0xff] }
 0x324   : > { %v5407_v21 = vand.u32 31, %v5405_v27  ;;  %8495 = vcosq.f32 %v4486_v40  ;;  %vm5346_vm14 = vc.u32 %v11837_v19, %v11840_v41  ;;  %v5347_v25 = vadd.s32 1, %v11841_v6 }
 0x325   : > { %v5393_v39 = vand.u32 2147483647, %v11751_v28  ;;  %v3618_v50 = vsel %vm3607_vm11, nan, %v3617_v61  ;;  %v11871_v42 = vand.u32 3, %v3712_v4  ;;  %8497 = vsinq.f32 %v4486_v40 }
 0x326   : > { %v5408_v34 = vsub.s32 32, %v5407_v21  ;;  %8499 = vcosq.f32 %v3707_v26  ;;  %v4582_v18 = vand.u32 2147483647, %v4581_v53  ;;  %v4584_v58 = vcvt.s32.f32 %v4577_v47 }
 0x327   : > { %v5348_v38 = vsel %vm5346_vm14, %v5347_v25, %v11841_v6  ;;  %v11875_v23 = vand.u32 3, %v4491_v44  ;;  %vm4504_vm10 = vcmp.lt.s32.totalorder %v11551_v29, 0  ;;  %v5410_v0 = vshll.u32 %v15252_v1, %v5407_v21  ;;  %v7319_v44 = vld [vmem:[%s9295_s20 + $0x1a0] sm:$0xff] }
 0x328   : > { %v5349_v43 = vadd.s32 %v5348_v38, %v5344_v33  ;;  %v5413_v17 = vshll.u32 %v15208_v57, %v5407_v21  ;;  %v5400_v8 = vand.u32 8388607, %v5393_v39  ;;  %v11883_v24 = vshrl.u32 %v5405_v27, 5 }
 0x329   : > { %v5411_v36 = vshrl.u32 %v15208_v57, %v5408_v34  ;;  %v5414_v46 = vshrl.u32 %v15209_v49, %v5408_v34  ;;  %v5416_v11 = vshll.u32 %v15209_v49, %v5407_v21  ;;  %v5417_v45 = vshrl.u32 %v15210_v5, %v5408_v34 }
 0x32a   : > { %v5350_v9 = vadd.s32 536870912, %v5349_v43  ;;  %v5419_v60 = vshll.u32 %v15210_v5, %v5407_v21  ;;  %8501 = vsinq.f32 %v3707_v26  ;;  %v11890_v20 = vmul.f32 %v3618_v50, %v3267_v59 }
 0x32b   : > { %v15274_v48 = vand.u32 2147483647, %v11551_v29  ;;  %v4585_v15 = vmul.f32 %v4584_v58, %v4582_v18  ;;  %v610_v54 = vmul.f32 %v8620_v16, %v7310_v62  ;;  %v5412_v6 = vor.u32 %v5411_v36, %v5410_v0 }
 0x32c   : > { %v11899_v14 = vshrl.u32 %v5350_v9, 30  ;;  %v5415_v51 = vor.u32 %v5414_v46, %v5413_v17  ;;  %v5420_v4 = vshrl.u32 %v15225_v12, %v5408_v34  ;;  %vm4494_vm2 = vcmp.eq.s32.totalorder %v11875_v23, 0 }
 0x32d   : > { %vm11894_vm3 = vcmp.le.f32.partialorder %v15274_v48, 0.7853982  ;;  %v5401_v40 = vor.u32 8388608, %v5400_v8  ;;  %v5422_v61 = vshll.u32 %v15225_v12, %v5407_v21  ;;  %v5423_v47 = vshrl.u32 %v15257_v55, %v5408_v34  ;;  %v7311_v48 = vld [vmem:[%s9295_s20 + $0xe8] sm:$0xff] }
 0x32e   : > { %vm5425_vm4 = vcmp.lt.s32.totalorder %v11883_v24, 1  ;;  %vm4497_vm5 = vcmp.eq.s32.totalorder %v11875_v23, 2  ;;  %v5352_v53 = vshll.u32 %v11899_v14, 30  ;;  %v5418_v27 = vor.u32 %v5417_v45, %v5416_v11  ;;  %v8496_v33 = vpop.eup %8495 }
 0x32f   : > { %v5421_v26 = vor.u32 %v5420_v4, %v5419_v60  ;;  %v4586_v25 = vxor.u32 2147483648, %v4585_v15  ;;  %v5424_v50 = vor.u32 %v5423_v47, %v5422_v61  ;;  %vm5427_vm12 = vcmp.lt.s32.totalorder %v11883_v24, 3  ;;  %v8498_v18 = vpop.eup %8497 }
 0x330   : > { %vm5428_vm6 = vcmp.lt.s32.totalorder %v11883_v24, 4  ;;  %v11911_v21 = vsub.s32 %v5349_v43, %v5352_v53  ;;  %v5409_v58 = vshrl.u32 %v15252_v1, %v5408_v34  ;;  %vm5426_vm8 = vcmp.lt.s32.totalorder %v11883_v24, 2  ;;  %v11917_v59 = vpop.eup %8499 }
 0x331   : > { %v5433_v38 = vsel %vm5425_vm4, %v5412_v6, %v5415_v51  ;;  %v5430_v0 = vsel %vm5428_vm6, %v5418_v27, 2102212464  ;;  %v5434_v17 = vsel %vm5428_vm6, %v5421_v26, 920167782  ;;  %v5441_v62 = vshll.u32 %v5401_v40, 8 }
 0x332   : > { %v11923_v8 = vadd.f32 %v7319_v44, %v610_v54  ;;  %v4498_v43 = vxor.u32 2147483648, %v8496_v33  ;;  %v5355_v34 = vsub.s32 0, %v11911_v21  ;;  %v5435_v36 = vsel %vm5427_vm12, %v5418_v27, %v5434_v17 }
 0x333   : > { %v5437_v46 = vsel %vm5425_vm4, %v5415_v51, %v5418_v27  ;;  %vm4490_vm9 = vweird.f32 %v11480_v56  ;;  %v4495_v9 = vxor.u32 2147483648, %v8498_v18  ;;  %v4587_v11 = vsel %vm4504_vm10, %v4586_v25, %v4585_v15 }
 0x334   : > { %v5436_v45 = vsel %vm5426_vm8, %v5433_v38, %v5435_v36  ;;  %v5438_v60 = vsel %vm5428_vm6, %v5424_v50, 1326507024  ;;  %vm3715_vm11 = vcmp.eq.s32.totalorder %v11871_v42, 0  ;;  %vm3718_vm7 = vcmp.eq.s32.totalorder %v11871_v42, 2  ;;  %v8502_v61 = vpop.eup %8501 }
 0x335   : > { %v7606_v54 = vmin.u32 %v5355_v34, %v11911_v21  ;;  %v5429_v4 = vsel %vm5425_vm4, %v5409_v58, %v5412_v6  ;;  %v5431_v40 = vsel %vm5427_vm12, %v5415_v51, %v5430_v0  ;;  %v5439_v15 = vsel %vm5427_vm12, %v5421_v26, %v5438_v60 }
 0x336   : > { %v4588_v47 = vsub.s32 4, %v11759_v30  ;;  %v5440_v53 = vsel %vm5426_vm8, %v5437_v46, %v5439_v15  ;;  %v11950_v27 = vmul.u32.u64.low %v5441_v62, %v5436_v45  ;;  %v11951_v44 = vmul.u32.u64.high %v5441_v62, %v5436_v45, %v11950_v27 }
 0x337   : > { %vm4493_vm15 = vcmp.lt.s32.totalorder %v11875_v23, 2  ;;  %v11958_v6 = vsel %vm11894_vm3, %v11551_v29, %v4587_v11  ;;  %v5357_v51 = vclz %v7606_v54  ;;  %v611_v25 = vmul.f32 %v8620_v16, %v7311_v48  ;;  %v7519_v54 = vld [vmem:[%s9298_s12 + $0x50] sm:$0xff] }
 0x338   : > { %v5432_v26 = vsel %vm5426_vm8, %v5429_v4, %v5431_v40  ;;  %v11962_v50 = vmul.u32.u64.low %v5441_v62, %v5440_v53  ;;  %v11963_v58 = vmul.u32.u64.high %v5441_v62, %v5440_v53, %v11962_v50  ;;  %v1050_v38 = vand.u32 2139095040, %v11923_v8 }
 0x339   : > { %vm2821_vm13 = vweird.f32 %v11079_v7  ;;  %v3719_v0 = vxor.u32 2147483648, %v11917_v59  ;;  %v4496_v17 = vsel %vm4494_vm2, %v8496_v33, %v4495_v9  ;;  %v4499_v34 = vsel %vm4497_vm5, %v4498_v43, %v8498_v18 }
 0x33a   : > { %v7607_v36 = vadd.s32 4294967294, %v5357_v51  ;;  %vm3714_vm14 = vcmp.lt.s32.totalorder %v11871_v42, 2  ;;  %v4589_v24 = vsel %vm4504_vm10, %v4588_v47, %v11759_v30  ;;  %v5375_v16 = vsub.s32 4, %v11899_v14 }
 0x33b   : > { %v5451_v46 = vadd.s32 1, %v11951_v44  ;;  %v1051_v11 = vshrl.u32 %v1050_v38, 23  ;;  %8503 = vcosq.f32 %v11958_v6  ;;  %v5345_v33 = vadd.s32 %v11840_v41, %v11837_v19 }
 0x33c   : > { %vm7608_vm2 = vcmp.lt.s32.totalorder %v7607_v36, 0  ;;  %v5448_v18 = vmul.u32 %v5441_v62, %v5432_v26  ;;  %v3716_v43 = vxor.u32 2147483648, %v8502_v61  ;;  %v4500_v9 = vsel %vm4493_vm15, %v4496_v17, %v4499_v34 }
 0x33d   : > { %v5360_v45 = vsel %vm7608_vm2, 0, %v7607_v36  ;;  %vm5450_vm10 = vc.u32 %v11963_v58, %v11950_v27  ;;  %vm5291_vm4 = vcmp.lt.s32.totalorder %v11710_v63, 0  ;;  %v4591_v19 = vsel %vm11894_vm3, 0, %v4589_v24 }
 0x33e   : > { %v5361_v30 = vsub.s32 32, %v5360_v45  ;;  %v5362_v60 = vshll.u32 %v11911_v21, %v5360_v45  ;;  %v5365_v48 = vsub.s32 4294967266, %v5360_v45  ;;  %v5376_v41 = vsel %vm5291_vm4, %v5375_v16, %v11899_v14  ;;  %v7320_v21 = vld [vmem:[%s9295_s20 + $0x1a8] sm:$0xff] }
 0x33f   : > { %v5452_v23 = vsel %vm5450_vm10, %v5451_v46, %v11951_v44  ;;  %v7339_v62 = vadd.s32 4294967169, %v1051_v11  ;;  %v4501_v4 = vsel %vm4490_vm9, nan, %v4500_v9  ;;  %v3717_v3 = vsel %vm3715_vm11, %v11917_v59, %v3716_v43  ;;  %v5971_v59 = vld [vmem:[%s9288_s30 + $0x10] sm:$0xff]  ;;  %v7367_v46 = vld [vmem:[%s9295_s20 + $0x120] sm:$0xff] }
 0x340   : > { %v5363_v40 = vshrl.u32 %v5345_v33, %v5361_v30  ;;  %v5366_v15 = vadd.s32 127, %v5365_v48  ;;  %v5453_v47 = vadd.s32 %v5452_v23, %v5448_v18  ;;  %v3720_v53 = vsel %vm3718_vm7, %v3719_v0, %v8502_v61 }
 0x341   : > { %v15277_v14 = vand.u32 2147483647, %v11710_v63  ;;  %v1057_v56 = vadd.s32 1, %v7339_v62  ;;  %v4595_v17 = vadd.s32 3, %v4591_v19  ;;  %v5024_v34 = vmul.f32 %v7519_v54, %v4501_v4  ;;  %v12040_v19 = vld [vmem:[%s9394_s29] ss:$0 sm:$0xff] }
 0x342   : > { %v5364_v51 = vor.u32 %v5363_v40, %v5362_v60  ;;  %v5367_v26 = vshll.u32 %v5366_v15, 23  ;;  %v5454_v38 = vadd.s32 536870912, %v5453_v47  ;;  %v12011_v36 = vadd.f32 %v7320_v21, %v611_v25 }
 0x343   : > { %vm12004_vm3 = vcmp.le.f32.partialorder %v15277_v14, 0.7853982  ;;  %vm1058_vm5 = vcmp.gt.s32.totalorder %v1057_v56, 0  ;;  %v12019_v11 = vsel %vm2821_vm13, nan, %v11848_v37  ;;  %v1047_v18 = vand.u32 2147483647, %v11923_v8 }
 0x344   : > { %v5378_v50 = vsel %vm12004_vm3, 0, %v5376_v41  ;;  %v5368_v61 = vor.u32 4788187, %v5367_v26  ;;  %v5371_v0 = vcvt.s32.f32 %v5364_v51  ;;  %v12013_v24 = vshrl.u32 %v5454_v38, 30 }
 0x345   : > { %v1059_v16 = vsel %vm1058_vm5, %v1057_v56, 0  ;;  %v5382_v33 = vadd.s32 3, %v5378_v50  ;;  %v12022_v9 = vpop.eup %8503  ;;  %v12026_v25 = vsel %vm3714_vm14, %v3717_v3, %v3720_v53  ;;  %v12030_v60 = vmul.f32 %v5971_v59, %v11732_v35 }
 0x346   : > { %v1061_v43 = vand.u32 31, %v1059_v16  ;;  %v5369_v45 = vand.u32 2147483647, %v5368_v61  ;;  %v5456_v30 = vshll.u32 %v12013_v24, 30  ;;  %v12032_v48 = vand.u32 3, %v4595_v17 }
 0x347   : > { %v12035_v7 = vadd.f32 %v5024_v34, %v11890_v20  ;;  %v12043_v41 = vmul.f32 %v12040_v19, %v7367_v46  ;;  %8505 = vsinq.f32 %v11958_v6  ;;  %v1154_v35 = vand.u32 2139095040, %v12011_v36 }
 0x348   : > { %v12037_v37 = vsub.s32 32, %v1061_v43  ;;  %v5372_v42 = vmul.f32 %v5371_v0, %v5369_v45  ;;  %v12046_v23 = vsub.s32 %v5453_v47, %v5456_v30  ;;  %v4602_v62 = vxor.u32 2147483648, %v12022_v9 }
 0x349   : > { %v12050_v54 = vand.u32 3, %v5382_v33  ;;  %v1054_v20 = vand.u32 8388607, %v1047_v18  ;;  %v1067_v4 = vshll.u32 %v15208_v57, %v1061_v43  ;;  %v1070_v21 = vshll.u32 %v15209_v49, %v1061_v43 }
 0x34a   : > { %v5373_v40 = vxor.u32 2147483648, %v5372_v42  ;;  %v5459_v15 = vsub.s32 0, %v12046_v23  ;;  %v1073_v6 = vshll.u32 %v15210_v5, %v1061_v43  ;;  %v1068_v47 = vshrl.u32 %v15209_v49, %v12037_v37 }
 0x34b   : > { %v1071_v3 = vshrl.u32 %v15210_v5, %v12037_v37  ;;  %v1074_v53 = vshrl.u32 %v15225_v12, %v12037_v37  ;;  %v1076_v14 = vshll.u32 %v15225_v12, %v1061_v43  ;;  %vm4601_vm12 = vcmp.eq.s32.totalorder %v12032_v48, 2 }
 0x34c   : > { %v5374_v56 = vsel %vm5291_vm4, %v5373_v40, %v5372_v42  ;;  %v7610_v51 = vmin.u32 %v5459_v15, %v12046_v23  ;;  %v12069_v26 = vshrl.u32 %v1059_v16, 5  ;;  %v1155_v50 = vshrl.u32 %v1154_v35, 23 }
 0x34d   : > { %v5377_v38 = vsel %vm12004_vm3, %v11710_v63, %v5374_v56  ;;  %v1064_v17 = vshll.u32 %v15252_v1, %v1061_v43  ;;  %v1065_v34 = vshrl.u32 %v15208_v57, %v12037_v37  ;;  %v1077_v59 = vshrl.u32 %v15257_v55, %v12037_v37 }
 0x34e   : > { %8507 = vcosq.f32 %v5377_v38  ;;  %vm5395_vm6 = vcmp.lt.s32.totalorder %v11751_v28, 0  ;;  %v5461_v61 = vclz %v7610_v51  ;;  %v1075_v0 = vor.u32 %v1074_v53, %v1073_v6 }
 0x34f   : > { %v15140_v16 = vand.u32 2147483647, %v12011_v36  ;;  %8509 = vsinq.f32 %v5377_v38  ;;  %v12081_v46 = vor.u32 %v1068_v47, %v1067_v4  ;;  %v1072_v44 = vor.u32 %v1071_v3, %v1070_v21 }
 0x350   : > { %v1078_v33 = vor.u32 %v1077_v59, %v1076_v14  ;;  %v7611_v45 = vadd.s32 4294967294, %v5461_v61  ;;  %vm1079_vm8 = vcmp.lt.s32.totalorder %v12069_v26, 1  ;;  %vm1081_vm9 = vcmp.lt.s32.totalorder %v12069_v26, 3 }
 0x351   : > { %vm1082_vm11 = vcmp.lt.s32.totalorder %v12069_v26, 4  ;;  %vm4598_vm7 = vcmp.eq.s32.totalorder %v12032_v48, 0  ;;  %v5449_v43 = vadd.s32 %v11950_v27, %v11963_v58  ;;  %v1055_v30 = vor.u32 8388608, %v1054_v20  ;;  %v8506_v40 = vpop.eup %8505 }
 0x352   : > { %v1066_v42 = vor.u32 %v1065_v34, %v1064_v17  ;;  %v7343_v35 = vadd.s32 4294967169, %v1155_v50  ;;  %vm5384_vm15 = vcmp.lt.s32.totalorder %v12050_v54, 2  ;;  %vm7612_vm13 = vcmp.lt.s32.totalorder %v7611_v45, 0 }
 0x353   : > { %v5479_v4 = vsub.s32 4, %v12013_v24  ;;  %v1088_v15 = vsel %vm1082_vm11, %v1075_v0, 920167782  ;;  %v1092_v21 = vsel %vm1082_vm11, %v1078_v33, 1326507024  ;;  %vm5381_vm14 = vweird.f32 %v11710_v63 }
 0x354   : > { %v5464_v6 = vsel %vm7612_vm13, 0, %v7611_v45  ;;  %vm1080_vm2 = vcmp.lt.s32.totalorder %v12069_v26, 2  ;;  %v1091_v27 = vsel %vm1079_vm8, %v12081_v46, %v1072_v44  ;;  %v1093_v58 = vsel %vm1081_vm9, %v1075_v0, %v1092_v21 }
 0x355   : > { %vm5385_vm10 = vcmp.eq.s32.totalorder %v12050_v54, 0  ;;  %v5465_v20 = vsub.s32 32, %v5464_v6  ;;  %v5466_v47 = vshll.u32 %v12046_v23, %v5464_v6  ;;  %v5469_v3 = vsub.s32 4294967266, %v5464_v6 }
 0x356   : > { %vm5388_vm4 = vcmp.eq.s32.totalorder %v12050_v54, 2  ;;  %vm12107_vm3 = vcmp.le.f32.partialorder %v5393_v39, 0.7853982  ;;  %v1087_v14 = vsel %vm1079_vm8, %v1066_v42, %v12081_v46  ;;  %v1089_v56 = vsel %vm1081_vm9, %v1072_v44, %v1088_v15 }
 0x357   : > { %v12116_v51 = vshll.u32 %v1055_v30, 8  ;;  %v5467_v50 = vshrl.u32 %v5449_v43, %v5465_v20  ;;  %v5470_v23 = vadd.s32 127, %v5469_v3  ;;  %v1094_v38 = vsel %vm1080_vm2, %v1091_v27, %v1093_v58  ;;  %v7376_v27 = vld [vmem:[%s9295_s20 + $0x1e0] sm:$0xff] }
 0x358   : > { %v1161_v17 = vadd.s32 1, %v7343_v35  ;;  %v4599_v34 = vxor.u32 2147483648, %v8506_v40  ;;  %v12124_v39 = vsel %vm4601_vm12, %v4602_v62, %v8506_v40  ;;  %v12129_v59 = vsel %vm5395_vm6, %v5479_v4, %v12013_v24  ;;  %v8508_v0 = vpop.eup %8507 }
 0x359   : > { %v12133_v61 = vand.u32 8388607, %v15140_v16  ;;  %v5468_v33 = vor.u32 %v5467_v50, %v5466_v47  ;;  %v5471_v45 = vshll.u32 %v5470_v23, 23  ;;  %v1090_v43 = vsel %vm1080_vm2, %v1087_v14, %v1089_v56  ;;  %v8510_v62 = vpop.eup %8509  ;;  %v7575_v14 = vld [vmem:[%s9298_s12 + $0x90] sm:$0xff] }
 0x35a   : > { %vm1162_vm5 = vcmp.gt.s32.totalorder %v1161_v17, 0  ;;  %v5389_v30 = vxor.u32 2147483648, %v8508_v0  ;;  %v1063_v35 = vshrl.u32 %v15252_v1, %v12037_v37  ;;  %v5386_v4 = vxor.u32 2147483648, %v8510_v62 }
 0x35b   : > { %v12140_v24 = vmul.u32.u64.low %v12116_v51, %v1094_v38  ;;  %v12141_v40 = vmul.u32.u64.high %v12116_v51, %v1094_v38, %v12140_v24  ;;  %v5472_v15 = vor.u32 4788187, %v5471_v45  ;;  %v5475_v21 = vcvt.s32.f32 %v5468_v33 }
 0x35c   : > { %v1163_v6 = vsel %vm1162_vm5, %v1161_v17, 0  ;;  %v5390_v58 = vsel %vm5388_vm4, %v5389_v30, %v8510_v62  ;;  %v12147_v20 = vmul.u32.u64.low %v12116_v51, %v1090_v43  ;;  %v12148_v47 = vmul.u32.u64.high %v12116_v51, %v1090_v43, %v12147_v20 }
 0x35d   : > { %v1165_v3 = vand.u32 31, %v1163_v6  ;;  %v4600_v37 = vsel %vm4598_vm7, %v12022_v9, %v4599_v34  ;;  %v5387_v56 = vsel %vm5385_vm10, %v8508_v0, %v5386_v4  ;;  %v5473_v50 = vand.u32 2147483647, %v5472_v15 }
 0x35e   : > { %v1084_v23 = vsel %vm1082_vm11, %v1072_v44, 2102212464  ;;  %vm4597_vm12 = vcmp.lt.s32.totalorder %v12032_v48, 2  ;;  %v5391_v38 = vsel %vm5384_vm15, %v5387_v56, %v5390_v58  ;;  %v1159_v17 = vor.u32 8388608, %v12133_v61 }
 0x35f   : > { %v12163_v33 = vsub.s32 32, %v1165_v3  ;;  %v12166_v45 = vadd.f32 %v7376_v27, %v12043_v41  ;;  %v5392_v9 = vsel %vm5381_vm14, nan, %v5391_v38  ;;  %v5476_v34 = vmul.f32 %v5475_v21, %v5473_v50 }
 0x360   : > { %v5482_v44 = vsel %vm12107_vm3, 0, %v12129_v59  ;;  %v1083_v0 = vsel %vm1079_vm8, %v1063_v35, %v1066_v42  ;;  %v5915_v54 = vmul.f32 %v7575_v14, %v5392_v9  ;;  %v1085_v61 = vsel %vm1081_vm9, %v12081_v46, %v1084_v23 }
 0x361   : > { %v1168_v43 = vshll.u32 %v15252_v1, %v1165_v3  ;;  %v1171_v41 = vshll.u32 %v15208_v57, %v1165_v3  ;;  %vm3711_vm11 = vweird.f32 %v11280_v13  ;;  %v5477_v63 = vxor.u32 2147483648, %v5476_v34 }
 0x362   : > { %v1169_v62 = vshrl.u32 %v15208_v57, %v12163_v33  ;;  %v1172_v59 = vshrl.u32 %v15209_v49, %v12163_v33  ;;  %v1174_v42 = vshll.u32 %v15209_v49, %v1165_v3  ;;  %vm4594_vm8 = vweird.f32 %v11551_v29 }
 0x363   : > { %v5923_v30 = vadd.f32 %v5915_v54, %v12035_v7  ;;  %v1175_v46 = vshrl.u32 %v15210_v5, %v12163_v33  ;;  %v1177_v35 = vshll.u32 %v15210_v5, %v1165_v3  ;;  %v1178_v24 = vshrl.u32 %v15225_v12, %v12163_v33 }
 0x364   : > { %v5478_v4 = vsel %vm5395_vm6, %v5477_v63, %v5476_v34  ;;  %v1086_v15 = vsel %vm1080_vm2, %v1083_v0, %v1085_v61  ;;  %vm1104_vm9 = vc.u32 %v12141_v40, %v12147_v20  ;;  %v12199_v21 = vshrl.u32 %v1163_v6, 5  ;;  %v7415_v34 = vld [vmem:[%s9295_s20 + $0x98] sm:$0xff] }
 0x365   : > { %v5481_v7 = vsel %vm12107_vm3, %v11751_v28, %v5478_v4  ;;  %v12205_v27 = vmul.f32 %v12030_v60, %v5923_v30  ;;  %v1105_v58 = vadd.s32 1, %v12148_v47  ;;  %v1180_v14 = vshll.u32 %v15225_v12, %v1165_v3  ;;  %v3268_v63 = vld [vmem:[%s9298_s12 + $0x18] sm:$0xff] }
 0x366   : > { %8511 = vcosq.f32 %v5481_v7  ;;  %v1170_v26 = vor.u32 %v1169_v62, %v1168_v43  ;;  %v1173_v56 = vor.u32 %v1172_v59, %v1171_v41  ;;  %v1181_v50 = vshrl.u32 %v15257_v55, %v12163_v33 }
 0x367   : > { %8513 = vsinq.f32 %v5481_v7  ;;  %v6004_v6 = vand.u32 4294901760, %v12205_v27  ;;  %v1176_v23 = vor.u32 %v1175_v46, %v1174_v42  ;;  %v1179_v53 = vor.u32 %v1178_v24, %v1177_v35  ;;  %v7520_v46 = vld [vmem:[%s9298_s12 + $0x58] sm:$0xff] }
 0x368   : > { %v5486_v38 = vadd.s32 3, %v5482_v44  ;;  %v1102_v9 = vmul.u32 %v12116_v51, %v1086_v15  ;;  %v1182_v60 = vor.u32 %v1181_v50, %v1180_v14  ;;  %vm1183_vm6 = vcmp.lt.s32.totalorder %v12199_v21, 1 }
 0x369   : > { %v12218_v3 = vsub.f32 %v12205_v27, %v6004_v6  ;;  %v1106_v0 = vsel %vm1104_vm9, %v1105_v58, %v12148_v47  ;;  %vm1186_vm7 = vcmp.lt.s32.totalorder %v12199_v21, 4  ;;  %v1939_v44 = vand.u32 2139095040, %v12166_v45 }
 0x36a   : > { %v4604_v51 = vsel %vm4597_vm12, %v4600_v37, %v12124_v39  ;;  %vm1184_vm15 = vcmp.lt.s32.totalorder %v12199_v21, 2  ;;  %vm1185_vm13 = vcmp.lt.s32.totalorder %v12199_v21, 3  ;;  %v12231_v54 = vshll.u32 %v1159_v17, 8 }
 0x36b   : > { %15282 = vst [vmem:[#allocation30_spill] sm:$0xff] %v12218_v3  ;;  %v1191_v61 = vsel %vm1183_vm6, %v1170_v26, %v1173_v56  ;;  %v1192_v47 = vsel %vm1186_vm7, %v1179_v53, 920167782  ;;  %v1195_v43 = vsel %vm1183_vm6, %v1173_v56, %v1176_v23  ;;  %v1196_v48 = vsel %vm1186_vm7, %v1182_v60, 1326507024 }
 0x36c   : > { %v2363_v39 = vadd.f32 %v11721_v32, %v11716_v52  ;;  %v3252_v37 = vmul.f32 %v7415_v34, %v12019_v11  ;;  %v5487_v41 = vand.u32 3, %v5486_v38  ;;  %v1107_v17 = vadd.s32 %v1106_v0, %v1102_v9 }
 0x36d   : > { %v3722_v62 = vsel %vm3711_vm11, nan, %v12026_v25  ;;  %v1193_v59 = vsel %vm1185_vm13, %v1176_v23, %v1192_v47  ;;  %v1197_v42 = vsel %vm1185_vm13, %v1179_v53, %v1196_v48  ;;  %v1940_v30 = vshrl.u32 %v1939_v44, 23  ;;  %v7368_v53 = vld [vmem:[%s9295_s20 + $0x128] sm:$0xff]  ;;  %v7576_v44 = vld [vmem:[%s9298_s12 + $0x98] sm:$0xff] }
 0x36e   : > { %v4605_v52 = vsel %vm4594_vm8, nan, %v4604_v51  ;;  %v1167_v32 = vshrl.u32 %v15252_v1, %v12163_v33  ;;  %v1194_v11 = vsel %vm1184_vm15, %v1191_v61, %v1193_v59  ;;  %v1198_v13 = vsel %vm1184_vm15, %v1195_v43, %v1197_v42  ;;  %v5972_v61 = vld [vmem:[%s9288_s30 + $0x18] sm:$0xff] }
 0x36f   : > { %v12262_v25 = vmul.u32.u64.low %v12231_v54, %v1198_v13  ;;  %v12263_v35 = vmul.u32.u64.high %v12231_v54, %v1198_v13, %v12262_v25  ;;  %v12266_v24 = vmul.u32.u64.low %v12231_v54, %v1194_v11  ;;  %v12267_v4 = vmul.u32.u64.high %v12231_v54, %v1194_v11, %v12266_v24 }
 0x370   : > { %v8512_v29 = vpop.eup %8511  ;;  %v4142_v15 = vmul.f32 %v3722_v62, %v3268_v63  ;;  %vm5492_vm14 = vcmp.eq.s32.totalorder %v5487_v41, 2  ;;  %v1108_v33 = vadd.s32 536870912, %v1107_v17  ;;  %v1188_v7 = vsel %vm1186_vm7, %v1176_v23, 2102212464 }
 0x371   : > { %v8514_v58 = vpop.eup %8513  ;;  %v5025_v14 = vmul.f32 %v7520_v46, %v4605_v52  ;;  %vm5489_vm2 = vcmp.eq.s32.totalorder %v5487_v41, 0  ;;  %v5493_v50 = vxor.u32 2147483648, %v8512_v29  ;;  %v7396_v38 = vadd.s32 4294967169, %v1940_v30 }
 0x372   : > { %v3260_v9 = vadd.f32 %v3252_v37, %v2363_v39  ;;  %vm5488_vm10 = vcmp.lt.s32.totalorder %v5487_v41, 2  ;;  %v5490_v60 = vxor.u32 2147483648, %v8514_v58  ;;  %vm5485_vm4 = vweird.f32 %v11751_v28  ;;  %v7377_v37 = vld [vmem:[%s9295_s20 + $0x1e8] sm:$0xff] }
 0x373   : > { %v5494_v34 = vsel %vm5492_vm14, %v5493_v50, %v8514_v58  ;;  %v1187_v0 = vsel %vm1183_vm6, %v1167_v32, %v1170_v26  ;;  %v1189_v23 = vsel %vm1185_vm13, %v1173_v56, %v1188_v7  ;;  %v12280_v47 = vshrl.u32 %v1108_v33, 30 }
 0x374   : > { %v5491_v51 = vsel %vm5489_vm2, %v8512_v29, %v5490_v60  ;;  %v1500_v43 = vmul.f32 %v12040_v19, %v7368_v53  ;;  %v5033_v48 = vadd.f32 %v5025_v14, %v4142_v15  ;;  %v1946_v41 = vadd.s32 1, %v7396_v38 }
 0x375   : > { %v5495_v39 = vsel %vm5488_vm10, %v5491_v51, %v5494_v34  ;;  %v1190_v28 = vsel %vm1184_vm15, %v1187_v0, %v1189_v23  ;;  %v1209_v26 = vadd.s32 1, %v12267_v4  ;;  %v5980_v59 = vmul.f32 %v5972_v61, %v3260_v9 }
 0x376   : > { %v5496_v63 = vsel %vm5485_vm4, nan, %v5495_v39  ;;  %vm1208_vm3 = vc.u32 %v12263_v35, %v12266_v24  ;;  %vm1947_vm5 = vcmp.gt.s32.totalorder %v1946_v41, 0  ;;  %v1110_v56 = vshll.u32 %v12280_v47, 30 }
 0x377   : > { %v5916_v62 = vmul.f32 %v7576_v44, %v5496_v63  ;;  %v12290_v42 = vadd.f32 %v7377_v37, %v1500_v43  ;;  %v1948_v19 = vsel %vm1947_vm5, %v1946_v41, 0  ;;  %v1206_v46 = vmul.u32 %v12231_v54, %v1190_v28 }
 0x378   : > { %v15139_v52 = vand.u32 2147483647, %v12166_v45  ;;  %v1950_v21 = vand.u32 31, %v1948_v19  ;;  %v1210_v32 = vsel %vm1208_vm3, %v1209_v26, %v12267_v4  ;;  %v12295_v25 = vsub.s32 %v1107_v17, %v1110_v56 }
 0x379   : > { %v5924_v30 = vadd.f32 %v5916_v62, %v5033_v48  ;;  %v2043_v29 = vand.u32 2139095040, %v12290_v42  ;;  %v1211_v33 = vadd.s32 %v1210_v32, %v1206_v46  ;;  %v1949_v58 = vshrl.u32 %v1948_v19, 5 }
 0x37a   : > { %v1951_v13 = vsub.s32 32, %v1950_v21  ;;  %v1943_v7 = vand.u32 8388607, %v15139_v52  ;;  %v1953_v14 = vshll.u32 %v15252_v1, %v1950_v21  ;;  %v1956_v50 = vshll.u32 %v15208_v57, %v1950_v21 }
 0x37b   : > { %v5988_v11 = vmul.f32 %v5980_v59, %v5924_v30  ;;  %v1959_v38 = vshll.u32 %v15209_v49, %v1950_v21  ;;  %v1113_v60 = vsub.s32 0, %v12295_v25  ;;  %v2044_v34 = vshrl.u32 %v2043_v29, 23 }
 0x37c   : > { %v1954_v54 = vshrl.u32 %v15208_v57, %v1951_v13  ;;  %v1957_v4 = vshrl.u32 %v15209_v49, %v1951_v13  ;;  %v1960_v9 = vshrl.u32 %v15210_v5, %v1951_v13  ;;  %v1944_v0 = vor.u32 8388608, %v1943_v7 }
 0x37d   : > { %v6007_v15 = vand.u32 4294901760, %v5988_v11  ;;  %v1962_v23 = vshll.u32 %v15210_v5, %v1950_v21  ;;  %v1963_v44 = vshrl.u32 %v15225_v12, %v1951_v13  ;;  %v1212_v27 = vadd.s32 536870912, %v1211_v33 }
 0x37e   : > { %v1958_v51 = vor.u32 %v1957_v4, %v1956_v50  ;;  %v1965_v61 = vshll.u32 %v15225_v12, %v1950_v21  ;;  %v1961_v43 = vor.u32 %v1960_v9, %v1959_v38  ;;  %v1966_v39 = vshrl.u32 %v15257_v55, %v1951_v13 }
 0x37f   : > { %v12306_v17 = vpack.c.bf16 %v6007_v15, %v6004_v6  ;;  %v12308_v53 = vsub.f32 %v5988_v11, %v6007_v15  ;;  %v1955_v6 = vor.u32 %v1954_v54, %v1953_v14  ;;  %v1964_v48 = vor.u32 %v1963_v44, %v1962_v23 }
 0x380   : > { %vm1968_vm12 = vcmp.lt.s32.totalorder %v1949_v58, 1  ;;  %v7340_v37 = vmin.u32 %v1113_v60, %v12295_v25  ;;  %v7400_v41 = vadd.s32 4294967169, %v2044_v34  ;;  %v1967_v63 = vor.u32 %v1966_v39, %v1965_v61 }
 0x381   : > { %15283 = vst [vmem:[#allocation31_spill] sm:$0xff] %v12306_v17  ;;  %15284 = vst [vmem:[#allocation32_spill] sm:$0xff] %v12308_v53  ;;  %7979 = vmatpush3.bf16.msra.mxu1 %v12306_v17  ;;  %vm1970_vm11 = vcmp.lt.s32.totalorder %v1949_v58, 3  ;;  %vm1971_vm8 = vcmp.lt.s32.totalorder %v1949_v58, 4  ;;  %v1984_v28 = vshll.u32 %v1944_v0, 8  ;;  %v12320_v26 = vshrl.u32 %v1212_v27, 30 }
 0x382   : > { %7980 = vmatprep.subr.bf16.mxu1 %v15243_v2  ;;  %v1952_v62 = vshrl.u32 %v15252_v1, %v1951_v13  ;;  %vm1969_vm9 = vcmp.lt.s32.totalorder %v1949_v58, 2  ;;  %v1976_v59 = vsel %vm1968_vm12, %v1955_v6, %v1958_v51  ;;  %v1973_v56 = vsel %vm1971_vm8, %v1961_v43, 2102212464 }
 0x383   : > { %v1977_v19 = vsel %vm1971_vm8, %v1964_v48, 920167782  ;;  %v1980_v30 = vsel %vm1968_vm12, %v1958_v51, %v1961_v43  ;;  %v1981_v46 = vsel %vm1971_vm8, %v1967_v63, 1326507024  ;;  %v1115_v21 = vclz %v7340_v37 }
 0x384   : > { %v1978_v32 = vsel %vm1970_vm11, %v1961_v43, %v1977_v19  ;;  %v1982_v11 = vsel %vm1970_vm11, %v1964_v48, %v1981_v46  ;;  %v2050_v29 = vadd.s32 1, %v7400_v41  ;;  %v1214_v13 = vshll.u32 %v12320_v26, 30 }
 0x385   : > { %v1979_v15 = vsel %vm1969_vm9, %v1976_v59, %v1978_v32  ;;  %v1983_v7 = vsel %vm1969_vm9, %v1980_v30, %v1982_v11  ;;  %v1972_v14 = vsel %vm1968_vm12, %v1952_v62, %v1955_v6  ;;  %v1974_v54 = vsel %vm1970_vm11, %v1958_v51, %v1973_v56 }
 0x386   : > { %v12332_v50 = vmul.u32.u64.low %v1984_v28, %v1983_v7  ;;  %v12333_v4 = vmul.u32.u64.high %v1984_v28, %v1983_v7, %v12332_v50  ;;  %v12335_v38 = vmul.u32.u64.low %v1984_v28, %v1979_v15  ;;  %v12336_v9 = vmul.u32.u64.high %v1984_v28, %v1979_v15, %v12335_v38 }
 0x387   : > { %v7341_v60 = vadd.s32 4294967294, %v1115_v21  ;;  %vm2051_vm6 = vcmp.gt.s32.totalorder %v2050_v29, 0  ;;  %v1975_v34 = vsel %vm1969_vm9, %v1972_v14, %v1974_v54  ;;  %v15138_v23 = vand.u32 2147483647, %v12290_v42  ;;  %v7424_v14 = vld [vmem:[%s9295_s20 + $0x160] sm:$0xff] }
 0x388   : > { %v2052_v0 = vsel %vm2051_vm6, %v2050_v29, 0  ;;  %v12341_v44 = vsub.s32 %v1211_v33, %v1214_v13  ;;  %vm1993_vm7 = vc.u32 %v12333_v4, %v12335_v38  ;;  %v1994_v27 = vadd.s32 1, %v12336_v9 }
 0x389   : > { %vm7342_vm15 = vcmp.lt.s32.totalorder %v7341_v60, 0  ;;  %v1991_v6 = vmul.u32 %v1984_v28, %v1975_v34  ;;  %v2054_v51 = vand.u32 31, %v2052_v0  ;;  %v2047_v43 = vand.u32 8388607, %v15138_v23 }
 0x38a   : > { %v1995_v61 = vsel %vm1993_vm7, %v1994_v27, %v12336_v9  ;;  %v12349_v48 = vsel %vm7342_vm15, 0, %v7341_v60  ;;  %v1217_v39 = vsub.s32 0, %v12341_v44  ;;  %v2053_v63 = vshrl.u32 %v2052_v0, 5 }
 0x38b   : > { %v2055_v58 = vsub.s32 32, %v2054_v51  ;;  %v2057_v33 = vshll.u32 %v15252_v1, %v2054_v51  ;;  %v2060_v37 = vshll.u32 %v15208_v57, %v2054_v51  ;;  %v12354_v41 = vadd.s32 %v1995_v61, %v1991_v6 }
 0x38c   : > { %v2063_v62 = vshll.u32 %v15209_v49, %v2054_v51  ;;  %v2066_v19 = vshll.u32 %v15210_v5, %v2054_v51  ;;  %v2048_v46 = vor.u32 8388608, %v2047_v43  ;;  %v2069_v21 = vshll.u32 %v15225_v12, %v2054_v51  ;;  %v8622_v51 = vld [vmem:[%s9740_s9] ss:$0 sm:$0xff] }
 0x38d   : > { %v2058_v28 = vshrl.u32 %v15208_v57, %v2055_v58  ;;  %v2061_v59 = vshrl.u32 %v15209_v49, %v2055_v58  ;;  %v2064_v56 = vshrl.u32 %v15210_v5, %v2055_v58  ;;  %v2067_v30 = vshrl.u32 %v15225_v12, %v2055_v58 }
 0x38e   : > { %v2070_v29 = vshrl.u32 %v15257_v55, %v2055_v58  ;;  %v1123_v15 = vsub.s32 4294967266, %v12349_v48  ;;  %v7344_v7 = vmin.u32 %v1217_v39, %v12341_v44  ;;  %vm2072_vm13 = vcmp.lt.s32.totalorder %v2053_v63, 1 }
 0x38f   : > { %v2059_v32 = vor.u32 %v2058_v28, %v2057_v33  ;;  %v2062_v11 = vor.u32 %v2061_v59, %v2060_v37  ;;  %v2068_v13 = vor.u32 %v2067_v30, %v2066_v19  ;;  %v1997_v54 = vadd.s32 536870912, %v12354_v41  ;;  %v7433_v28 = vld [vmem:[%s9295_s20 + $0x220] sm:$0xff] }
 0x390   : > { %v2065_v50 = vor.u32 %v2064_v56, %v2063_v62  ;;  %v2071_v9 = vor.u32 %v2070_v29, %v2069_v21  ;;  %vm2075_vm14 = vcmp.lt.s32.totalorder %v2053_v63, 4  ;;  %v1103_v60 = vadd.s32 %v12147_v20, %v12141_v40 }
 0x391   : > { %v2056_v34 = vshrl.u32 %v15252_v1, %v2055_v58  ;;  %vm2074_vm2 = vcmp.lt.s32.totalorder %v2053_v63, 3  ;;  %v2088_v0 = vshll.u32 %v2048_v46, 8  ;;  %vm2073_vm10 = vcmp.lt.s32.totalorder %v2053_v63, 2 }
 0x392   : > { %v2077_v27 = vsel %vm2075_vm14, %v2065_v50, 2102212464  ;;  %v2080_v6 = vsel %vm2072_vm13, %v2059_v32, %v2062_v11  ;;  %v2396_v61 = vmul.f32 %v8622_v51, %v7424_v14  ;;  %v1119_v43 = vsub.s32 32, %v12349_v48 }
 0x393   : > { %v1124_v39 = vadd.s32 127, %v1123_v15  ;;  %v1219_v33 = vclz %v7344_v7  ;;  %v2081_v37 = vsel %vm2075_vm14, %v2068_v13, 920167782  ;;  %v12377_v62 = vshrl.u32 %v1997_v54, 30 }
 0x394   : > { %v2082_v40 = vsel %vm2074_vm2, %v2065_v50, %v2081_v37  ;;  %v2084_v20 = vsel %vm2072_vm13, %v2062_v11, %v2065_v50  ;;  %v2085_v58 = vsel %vm2075_vm14, %v2071_v9, 1326507024  ;;  %v2076_v59 = vsel %vm2072_vm13, %v2056_v34, %v2059_v32 }
 0x395   : > { %v2078_v56 = vsel %vm2074_vm2, %v2062_v11, %v2077_v27  ;;  %v2083_v19 = vsel %vm2073_vm10, %v2080_v6, %v2082_v40  ;;  %v2086_v30 = vsel %vm2074_vm2, %v2068_v13, %v2085_v58  ;;  %v12391_v15 = vadd.f32 %v7433_v28, %v2396_v61  ;;  %v7425_v61 = vld [vmem:[%s9295_s20 + $0x168] sm:$0xff] }
 0x396   : > { %v2087_v46 = vsel %vm2073_vm10, %v2084_v20, %v2086_v30  ;;  %v12387_v21 = vmul.u32.u64.low %v2088_v0, %v2083_v19  ;;  %v12388_v29 = vmul.u32.u64.high %v2088_v0, %v2083_v19, %v12387_v21  ;;  %v1120_v7 = vshll.u32 %v12295_v25, %v12349_v48 }
 0x397   : > { %v2079_v32 = vsel %vm2073_vm10, %v2076_v59, %v2078_v56  ;;  %v12396_v14 = vmul.u32.u64.low %v2088_v0, %v2087_v46  ;;  %v12397_v11 = vmul.u32.u64.high %v2088_v0, %v2087_v46, %v12396_v14  ;;  %v1121_v54 = vshrl.u32 %v1103_v60, %v1119_v43 }
 0x398   : > { %v7345_v50 = vadd.s32 4294967294, %v1219_v33  ;;  %v1999_v13 = vshll.u32 %v12377_v62, 30  ;;  %v2836_v9 = vand.u32 2139095040, %v12391_v15  ;;  %v1125_v34 = vshll.u32 %v1124_v39, 23  ;;  %v7434_v39 = vld [vmem:[%s9295_s20 + $0x228] sm:$0xff] }
 0x399   : > { %v2098_v27 = vadd.s32 1, %v12388_v29  ;;  %v2095_v6 = vmul.u32 %v2088_v0, %v2079_v32  ;;  %vm2097_vm4 = vc.u32 %v12397_v11, %v12387_v21  ;;  %v1122_v25 = vor.u32 %v1121_v54, %v1120_v7 }
 0x39a   : > { %v2837_v37 = vshrl.u32 %v2836_v9, 23  ;;  %vm7346_vm3 = vcmp.lt.s32.totalorder %v7345_v50, 0  ;;  %v12406_v48 = vsub.s32 %v12354_v41, %v1999_v13  ;;  %v1126_v63 = vor.u32 4788187, %v1125_v34 }
 0x39b   : > { %v2099_v60 = vsel %vm2097_vm4, %v2098_v27, %v12388_v29  ;;  %v2397_v43 = vmul.f32 %v8622_v51, %v7425_v61  ;;  %v12410_v40 = vsel %vm7346_vm3, 0, %v7345_v50  ;;  %v1129_v20 = vcvt.s32.f32 %v1122_v25 }
 0x39c   : > { %v7453_v33 = vadd.s32 4294967169, %v2837_v37  ;;  %v2100_v28 = vadd.s32 %v2099_v60, %v2095_v6  ;;  %v2002_v58 = vsub.s32 0, %v12406_v48  ;;  %v1127_v56 = vand.u32 2147483647, %v1126_v63 }
 0x39d   : > { %v12413_v19 = vadd.f32 %v7434_v39, %v2397_v43  ;;  %v15137_v41 = vand.u32 2147483647, %v12391_v15  ;;  %v1227_v30 = vsub.s32 4294967266, %v12410_v40  ;;  %v1133_v29 = vsub.s32 4, %v12280_v47 }
 0x39e   : > { %v2843_v0 = vadd.s32 1, %v7453_v33  ;;  %v2101_v59 = vadd.s32 536870912, %v2100_v28  ;;  %v1207_v7 = vadd.s32 %v12266_v24, %v12263_v35  ;;  %v7397_v32 = vmin.u32 %v2002_v58, %v12406_v48 }
 0x39f   : > { %v1130_v54 = vmul.f32 %v1129_v20, %v1127_v56  ;;  %v2840_v50 = vand.u32 8388607, %v15137_v41  ;;  %v2940_v9 = vand.u32 2139095040, %v12413_v19  ;;  %v1223_v34 = vsub.s32 32, %v12410_v40 }
 0x3a0   : > { %vm2844_vm5 = vcmp.gt.s32.totalorder %v2843_v0, 0  ;;  %v12421_v14 = vshrl.u32 %v2101_v59, 30  ;;  %v1228_v27 = vadd.s32 127, %v1227_v30  ;;  %vm1049_vm12 = vcmp.lt.s32.totalorder %v11923_v8, 0 }
 0x3a1   : > { %v2845_v46 = vsel %vm2844_vm5, %v2843_v0, 0  ;;  %v2004_v63 = vclz %v7397_v32  ;;  %v2841_v39 = vor.u32 8388608, %v2840_v50  ;;  %v2941_v58 = vshrl.u32 %v2940_v9, 23 }
 0x3a2   : > { %v2847_v51 = vand.u32 31, %v2845_v46  ;;  %v2103_v60 = vshll.u32 %v12421_v14, 30  ;;  %v2846_v43 = vshrl.u32 %v2845_v46, 5  ;;  %v1131_v59 = vxor.u32 2147483648, %v1130_v54 }
 0x3a3   : > { %v1224_v56 = vshll.u32 %v12341_v44, %v12410_v40  ;;  %vm12443_vm11 = vcmp.le.f32.partialorder %v1047_v18, 0.7853982  ;;  %v1229_v9 = vshll.u32 %v1228_v27, 23  ;;  %v7398_v44 = vadd.s32 4294967294, %v2004_v63 }
 0x3a4   : > { %v2848_v13 = vsub.s32 32, %v2847_v51  ;;  %v2850_v6 = vshll.u32 %v15252_v1, %v2847_v51  ;;  %v2853_v61 = vshll.u32 %v15208_v57, %v2847_v51  ;;  %v2856_v37 = vshll.u32 %v15209_v49, %v2847_v51 }
 0x3a5   : > { %v2859_v25 = vshll.u32 %v15210_v5, %v2847_v51  ;;  %v2862_v20 = vshll.u32 %v15225_v12, %v2847_v51  ;;  %v1225_v51 = vshrl.u32 %v1207_v7, %v1223_v34  ;;  %v12448_v16 = vsub.s32 %v2100_v28, %v2103_v60 }
 0x3a6   : > { %v2851_v35 = vshrl.u32 %v15208_v57, %v2848_v13  ;;  %v2854_v24 = vshrl.u32 %v15209_v49, %v2848_v13  ;;  %v2857_v33 = vshrl.u32 %v15210_v5, %v2848_v13  ;;  %v2860_v0 = vshrl.u32 %v15225_v12, %v2848_v13 }
 0x3a7   : > { %v2849_v30 = vshrl.u32 %v15252_v1, %v2848_v13  ;;  %v2863_v52 = vshrl.u32 %v15257_v55, %v2848_v13  ;;  %vm2865_vm8 = vcmp.lt.s32.totalorder %v2846_v43, 1  ;;  %v2881_v17 = vshll.u32 %v2841_v39, 8 }
 0x3a8   : > { %v2852_v41 = vor.u32 %v2851_v35, %v2850_v6  ;;  %v2855_v46 = vor.u32 %v2854_v24, %v2853_v61  ;;  %v2858_v50 = vor.u32 %v2857_v33, %v2856_v37  ;;  %v2861_v23 = vor.u32 %v2860_v0, %v2859_v25 }
 0x3a9   : > { %v2864_v40 = vor.u32 %v2863_v52, %v2862_v20  ;;  %v7457_v6 = vadd.s32 4294967169, %v2941_v58  ;;  %vm2866_vm9 = vcmp.lt.s32.totalorder %v2846_v43, 2  ;;  %vm2867_vm6 = vcmp.lt.s32.totalorder %v2846_v43, 3 }
 0x3aa   : > { %vm2868_vm7 = vcmp.lt.s32.totalorder %v2846_v43, 4  ;;  %v2869_v18 = vsel %vm2865_vm8, %v2849_v30, %v2852_v41  ;;  %v2873_v22 = vsel %vm2865_vm8, %v2852_v41, %v2855_v46  ;;  %v2877_v24 = vsel %vm2865_vm8, %v2855_v46, %v2858_v50 }
 0x3ab   : > { %v2870_v35 = vsel %vm2868_vm7, %v2858_v50, 2102212464  ;;  %v2874_v61 = vsel %vm2868_vm7, %v2861_v23, 920167782  ;;  %v2106_v37 = vsub.s32 0, %v12448_v16  ;;  %v1134_v28 = vsel %vm1049_vm12, %v1133_v29, %v12280_v47 }
 0x3ac   : > { %v2871_v13 = vsel %vm2867_vm6, %v2855_v46, %v2870_v35  ;;  %v2875_v7 = vsel %vm2867_vm6, %v2858_v50, %v2874_v61  ;;  %v2878_v34 = vsel %vm2868_vm7, %v2864_v40, 1326507024  ;;  %vm7399_vm15 = vcmp.lt.s32.totalorder %v7398_v44, 0 }
 0x3ad   : > { %v2876_v52 = vsel %vm2866_vm9, %v2873_v22, %v2875_v7  ;;  %v2879_v27 = vsel %vm2867_vm6, %v2861_v23, %v2878_v34  ;;  %v1132_v25 = vsel %vm1049_vm12, %v1131_v59, %v1130_v54  ;;  %v1226_v63 = vor.u32 %v1225_v51, %v1224_v56 }
 0x3ae   : > { %v2872_v41 = vsel %vm2866_vm9, %v2869_v18, %v2871_v13  ;;  %v2880_v60 = vsel %vm2866_vm9, %v2877_v24, %v2879_v27  ;;  %v12462_v0 = vmul.u32.u64.low %v2881_v17, %v2876_v52  ;;  %v12463_v20 = vmul.u32.u64.high %v2881_v17, %v2876_v52, %v12462_v0 }
 0x3af   : > { %v12459_v33 = vmul.u32.u64.low %v2881_v17, %v2880_v60  ;;  %v12460_v39 = vmul.u32.u64.high %v2881_v17, %v2880_v60, %v12459_v33  ;;  %v1230_v47 = vor.u32 4788187, %v1229_v9  ;;  %v2007_v29 = vsel %vm7399_vm15, 0, %v7398_v44 }
 0x3b0   : > { %v7401_v22 = vmin.u32 %v2106_v37, %v12448_v16  ;;  %v2947_v23 = vadd.s32 1, %v7457_v6  ;;  %v1135_v54 = vsel %vm12443_vm11, %v11923_v8, %v1132_v25  ;;  %v1136_v43 = vsel %vm12443_vm11, 0, %v1134_v28 }
 0x3b1   : > { %v2888_v58 = vmul.u32 %v2881_v17, %v2872_v41  ;;  %v1233_v59 = vcvt.s32.f32 %v1226_v63  ;;  %v2012_v56 = vsub.s32 4294967266, %v2007_v29  ;;  %vm2890_vm14 = vc.u32 %v12460_v39, %v12462_v0 }
 0x3b2   : > { %vm2948_vm13 = vcmp.gt.s32.totalorder %v2947_v23, 0  ;;  %v2891_v30 = vadd.s32 1, %v12463_v20  ;;  %v1231_v46 = vand.u32 2147483647, %v1230_v47  ;;  %v2108_v50 = vclz %v7401_v22 }
 0x3b3   : > { %v15145_v51 = vand.u32 2147483647, %v12413_v19  ;;  %v2949_v9 = vsel %vm2948_vm13, %v2947_v23, 0  ;;  %8515 = vcosq.f32 %v1135_v54  ;;  %v1140_v32 = vadd.s32 3, %v1136_v43  ;;  %v12497_v43 = vld [vmem:[%s9382_s14] ss:$0 sm:$0xff] }
 0x3b4   : > { %v2892_v44 = vsel %vm2890_vm14, %v2891_v30, %v12463_v20  ;;  %v2951_v40 = vand.u32 31, %v2949_v9  ;;  %8517 = vsinq.f32 %v1135_v54  ;;  %v1237_v17 = vsub.s32 4, %v12320_v26 }
 0x3b5   : > { %v12478_v6 = vadd.s32 %v2892_v44, %v2888_v58  ;;  %v1992_v18 = vadd.s32 %v12335_v38, %v12333_v4  ;;  %v2008_v35 = vsub.s32 32, %v2007_v29  ;;  %v2013_v61 = vadd.s32 127, %v2012_v56  ;;  %v7473_v38 = vld [vmem:[%s9298_s12 + $0xe0] sm:$0xff] }
 0x3b6   : > { %v2952_v24 = vsub.s32 32, %v2951_v40  ;;  %v1234_v37 = vmul.f32 %v1233_v59, %v1231_v46  ;;  %v7402_v13 = vadd.s32 4294967294, %v2108_v50  ;;  %v2944_v7 = vand.u32 8388607, %v15145_v51 }
 0x3b7   : > { %v2954_v34 = vshll.u32 %v15252_v1, %v2951_v40  ;;  %vm1153_vm2 = vcmp.lt.s32.totalorder %v12011_v36, 0  ;;  %v2950_v28 = vshrl.u32 %v2949_v9, 5  ;;  %v2957_v27 = vshll.u32 %v15208_v57, %v2951_v40 }
 0x3b8   : > { %v2955_v52 = vshrl.u32 %v15208_v57, %v2952_v24  ;;  %v2958_v4 = vshrl.u32 %v15209_v49, %v2952_v24  ;;  %v2894_v25 = vadd.s32 536870912, %v12478_v6  ;;  %v2960_v63 = vshll.u32 %v15209_v49, %v2951_v40 }
 0x3b9   : > { %v2961_v41 = vshrl.u32 %v15210_v5, %v2952_v24  ;;  %v2963_v60 = vshll.u32 %v15210_v5, %v2951_v40  ;;  %v2009_v33 = vshll.u32 %v12406_v48, %v2007_v29  ;;  %v2010_v20 = vshrl.u32 %v1992_v18, %v2008_v35 }
 0x3ba   : > { %v2014_v47 = vshll.u32 %v2013_v61, 23  ;;  %v2964_v22 = vshrl.u32 %v15225_v12, %v2952_v24  ;;  %vm7403_vm10 = vcmp.lt.s32.totalorder %v7402_v13, 0  ;;  %v2945_v23 = vor.u32 8388608, %v2944_v7  ;;  %v7481_v7 = vld [vmem:[%s9298_s12 + $0x1a0] sm:$0xff] }
 0x3bb   : > { %v2956_v54 = vor.u32 %v2955_v52, %v2954_v34  ;;  %v3286_v58 = vmul.f32 %v12497_v43, %v7473_v38  ;;  %v2959_v59 = vor.u32 %v2958_v4, %v2957_v27  ;;  %v2966_v30 = vshll.u32 %v15225_v12, %v2951_v40 }
 0x3bc   : > { %v2965_v56 = vor.u32 %v2964_v22, %v2963_v60  ;;  %v2967_v46 = vshrl.u32 %v15257_v55, %v2952_v24  ;;  %v12502_v50 = vshrl.u32 %v2894_v25, 30  ;;  %v2953_v48 = vshrl.u32 %v15252_v1, %v2952_v24 }
 0x3bd   : > { %v2962_v29 = vor.u32 %v2961_v41, %v2960_v63  ;;  %vm2969_vm4 = vcmp.lt.s32.totalorder %v2950_v28, 1  ;;  %v12505_v9 = vpop.eup %8515  ;;  %v1235_v44 = vxor.u32 2147483648, %v1234_v37  ;;  %v2011_v18 = vor.u32 %v2010_v20, %v2009_v33 }
 0x3be   : > { %v2015_v35 = vor.u32 4788187, %v2014_v47  ;;  %v2968_v61 = vor.u32 %v2967_v46, %v2966_v30  ;;  %v12508_v34 = vpop.eup %8517  ;;  %v12511_v52 = vsel %vm7403_vm10, 0, %v7402_v13  ;;  %vm2970_vm3 = vcmp.lt.s32.totalorder %v2950_v28, 2 }
 0x3bf   : > { %vm2971_vm5 = vcmp.lt.s32.totalorder %v2950_v28, 3  ;;  %vm2972_vm12 = vcmp.lt.s32.totalorder %v2950_v28, 4  ;;  %v2977_v24 = vsel %vm2969_vm4, %v2956_v54, %v2959_v59  ;;  %v2985_v4 = vshll.u32 %v2945_v23, 8 }
 0x3c0   : > { %v2974_v40 = vsel %vm2972_vm12, %v2962_v29, 2102212464  ;;  %v2978_v27 = vsel %vm2972_vm12, %v2965_v56, 920167782  ;;  %v2896_v38 = vshll.u32 %v12502_v50, 30  ;;  %v2973_v25 = vsel %vm2969_vm4, %v2953_v48, %v2956_v54 }
 0x3c1   : > { %v2979_v63 = vsel %vm2971_vm5, %v2962_v29, %v2978_v27  ;;  %v12517_v41 = vadd.f32 %v7481_v7, %v3286_v58  ;;  %v2975_v60 = vsel %vm2971_vm5, %v2959_v59, %v2974_v40  ;;  %v2981_v33 = vsel %vm2969_vm4, %v2959_v59, %v2962_v29 }
 0x3c2   : > { %v2980_v13 = vsel %vm2970_vm3, %v2977_v24, %v2979_v63  ;;  %v2982_v20 = vsel %vm2972_vm12, %v2968_v61, 1326507024  ;;  %v12522_v47 = vand.u32 3, %v1140_v32  ;;  %v15287_v22 = vand.u32 2147483647, %v12011_v36 }
 0x3c3   : > { %v1236_v54 = vsel %vm1153_vm2, %v1235_v44, %v1234_v37  ;;  %v2018_v58 = vcvt.s32.f32 %v2011_v18  ;;  %v2016_v30 = vand.u32 2147483647, %v2015_v35  ;;  %v2983_v46 = vsel %vm2971_vm5, %v2965_v56, %v2982_v20 }
 0x3c4   : > { %vm12526_vm11 = vcmp.le.f32.partialorder %v15287_v22, 0.7853982  ;;  %v12533_v48 = vmul.u32.u64.low %v2985_v4, %v2980_v13  ;;  %v12534_v7 = vmul.u32.u64.high %v2985_v4, %v2980_v13, %v12533_v48  ;;  %v1238_v32 = vsel %vm1153_vm2, %v1237_v17, %v12320_v26 }
 0x3c5   : > { %v2116_v59 = vsub.s32 4294967266, %v12511_v52  ;;  %v2976_v29 = vsel %vm2970_vm3, %v2973_v25, %v2975_v60  ;;  %v2984_v37 = vsel %vm2970_vm3, %v2981_v33, %v2983_v46  ;;  %v12546_v44 = vsub.s32 %v12478_v6, %v2896_v38 }
 0x3c6   : > { %v12548_v56 = vmul.u32.u64.low %v2985_v4, %v2984_v37  ;;  %v12549_v18 = vmul.u32.u64.high %v2985_v4, %v2984_v37, %v12548_v56  ;;  %v3726_v35 = vand.u32 2139095040, %v12517_v41  ;;  %v1239_v61 = vsel %vm12526_vm11, %v12011_v36, %v1236_v54 }
 0x3c7   : > { %vm1938_vm8 = vcmp.lt.s32.totalorder %v12166_v45, 0  ;;  %v2096_v26 = vadd.s32 %v12387_v21, %v12397_v11  ;;  %v2112_v17 = vsub.s32 32, %v12511_v52  ;;  %v2019_v28 = vmul.f32 %v2018_v58, %v2016_v30 }
 0x3c8   : > { %v2992_v40 = vmul.u32 %v2985_v4, %v2976_v29  ;;  %v2995_v6 = vadd.s32 1, %v12534_v7  ;;  %v3727_v24 = vshrl.u32 %v3726_v35, 23  ;;  %vm1143_vm9 = vcmp.eq.s32.totalorder %v12522_v47, 0  ;;  %v7474_v35 = vld [vmem:[%s9298_s12 + $0xe8] sm:$0xff] }
 0x3c9   : > { %v1240_v27 = vsel %vm12526_vm11, 0, %v1238_v32  ;;  %v2022_v38 = vsub.s32 4, %v12377_v62  ;;  %v2117_v25 = vadd.s32 127, %v2116_v59  ;;  %8519 = vcosq.f32 %v1239_v61 }
 0x3ca   : > { %v2899_v63 = vsub.s32 0, %v12546_v44  ;;  %vm2994_vm6 = vc.u32 %v12549_v18, %v12533_v48  ;;  %v7501_v21 = vadd.s32 4294967169, %v3727_v24  ;;  %vm1146_vm7 = vcmp.eq.s32.totalorder %v12522_v47, 2 }
 0x3cb   : > { %v2113_v11 = vshll.u32 %v12448_v16, %v12511_v52  ;;  %v2114_v4 = vshrl.u32 %v2096_v26, %v2112_v17  ;;  %v2996_v60 = vsel %vm2994_vm6, %v2995_v6, %v12534_v7  ;;  %v1244_v13 = vadd.s32 3, %v1240_v27 }
 0x3cc   : > { %v2020_v33 = vxor.u32 2147483648, %v2019_v28  ;;  %v2997_v20 = vadd.s32 %v2996_v60, %v2992_v40  ;;  %v3733_v22 = vadd.s32 1, %v7501_v21  ;;  %v1144_v23 = vxor.u32 2147483648, %v12508_v34 }
 0x3cd   : > { %v1147_v54 = vxor.u32 2147483648, %v12505_v9  ;;  %v12576_v58 = vsel %vm1938_vm8, %v2022_v38, %v12377_v62  ;;  %v2118_v30 = vshll.u32 %v2117_v25, 23  ;;  %v7454_v16 = vmin.u32 %v2899_v63, %v12546_v44 }
 0x3ce   : > { %v2998_v52 = vadd.s32 536870912, %v2997_v20  ;;  %v15144_v46 = vand.u32 2147483647, %v12517_v41  ;;  %vm3734_vm15 = vcmp.gt.s32.totalorder %v3733_v22, 0  ;;  %v15290_v7 = vand.u32 2147483647, %v12166_v45 }
 0x3cf   : > { %v2115_v59 = vor.u32 %v2114_v4, %v2113_v11  ;;  %v3735_v29 = vsel %vm3734_vm15, %v3733_v22, 0  ;;  %v12586_v37 = vand.u32 3, %v1244_v13  ;;  %v2021_v62 = vsel %vm1938_vm8, %v2020_v33, %v2019_v28  ;;  %v7482_v13 = vld [vmem:[%s9298_s12 + $0x1a8] sm:$0xff] }
 0x3d0   : > { %vm12582_vm13 = vcmp.le.f32.partialorder %v15290_v7, 0.7853982  ;;  %v12590_v56 = vshrl.u32 %v2998_v52, 30  ;;  %v3737_v26 = vand.u32 31, %v3735_v29  ;;  %v12596_v17 = vsel %vm1143_vm9, %v12505_v9, %v1144_v23 }
 0x3d1   : > { %v12601_v40 = vsel %vm1146_vm7, %v1147_v54, %v12508_v34  ;;  %8521 = vsinq.f32 %v1239_v61  ;;  %v2025_v28 = vsel %vm12582_vm13, 0, %v12576_v58  ;;  %v2119_v6 = vor.u32 4788187, %v2118_v30 }
 0x3d2   : > { %v2901_v24 = vclz %v7454_v16  ;;  %v3730_v27 = vand.u32 8388607, %v15144_v46  ;;  %v3738_v38 = vsub.s32 32, %v3737_v26  ;;  %v2024_v9 = vsel %vm12582_vm13, %v12166_v45, %v2021_v62 }
 0x3d3   : > { %v2122_v25 = vcvt.s32.f32 %v2115_v59  ;;  %v3000_v34 = vshll.u32 %v12590_v56, 30  ;;  %v3287_v61 = vmul.f32 %v12497_v43, %v7474_v35  ;;  %v12613_v63 = vpop.eup %8519  ;;  %v12615_v21 = vshrl.u32 %v3735_v29, 5 }
 0x3d4   : > { %v3740_v11 = vshll.u32 %v15252_v1, %v3737_v26  ;;  %v3741_v4 = vshrl.u32 %v15208_v57, %v3738_v38  ;;  %v3743_v60 = vshll.u32 %v15208_v57, %v3737_v26  ;;  %vm2042_vm14 = vcmp.lt.s32.totalorder %v12290_v42, 0 }
 0x3d5   : > { %v3744_v33 = vshrl.u32 %v15209_v49, %v3738_v38  ;;  %v3746_v22 = vshll.u32 %v15209_v49, %v3737_v26  ;;  %v3747_v23 = vshrl.u32 %v15210_v5, %v3738_v38  ;;  %v3749_v43 = vshll.u32 %v15210_v5, %v3737_v26 }
 0x3d6   : > { %v2120_v54 = vand.u32 2147483647, %v2119_v6  ;;  %v7455_v30 = vadd.s32 4294967294, %v2901_v24  ;;  %v3731_v16 = vor.u32 8388608, %v3730_v27  ;;  %v3750_v52 = vshrl.u32 %v15225_v12, %v3738_v38 }
 0x3d7   : > { %v2126_v59 = vsub.s32 4, %v12421_v14  ;;  %v12629_v29 = vsub.s32 %v2997_v20, %v3000_v34  ;;  %v3752_v62 = vshll.u32 %v15225_v12, %v3737_v26  ;;  %vm1142_vm2 = vcmp.lt.s32.totalorder %v12522_v47, 2 }
 0x3d8   : > { %8523 = vcosq.f32 %v2024_v9  ;;  %v12633_v35 = vadd.f32 %v7482_v13, %v3287_v61  ;;  %v3742_v46 = vor.u32 %v3741_v4, %v3740_v11  ;;  %v3745_v51 = vor.u32 %v3744_v33, %v3743_v60 }
 0x3d9   : > { %vm1247_vm10 = vcmp.eq.s32.totalorder %v12586_v37, 0  ;;  %vm1250_vm4 = vcmp.eq.s32.totalorder %v12586_v37, 2  ;;  %v3748_v6 = vor.u32 %v3747_v23, %v3746_v22  ;;  %v3751_v24 = vor.u32 %v3750_v52, %v3749_v43 }
 0x3da   : > { %v3753_v27 = vshrl.u32 %v15257_v55, %v3738_v38  ;;  %vm3755_vm3 = vcmp.lt.s32.totalorder %v12615_v21, 1  ;;  %8525 = vsinq.f32 %v2024_v9  ;;  %v2123_v20 = vmul.f32 %v2122_v25, %v2120_v54 }
 0x3db   : > { %vm7456_vm5 = vcmp.lt.s32.totalorder %v7455_v30, 0  ;;  %v12639_v26 = vshll.u32 %v3731_v16, 8  ;;  %v8522_v34 = vpop.eup %8521  ;;  %v15293_v61 = vand.u32 2147483647, %v12290_v42  ;;  %v3003_v4 = vsub.s32 0, %v12629_v29 }
 0x3dc   : > { %v3754_v60 = vor.u32 %v3753_v27, %v3752_v62  ;;  %vm3757_vm11 = vcmp.lt.s32.totalorder %v12615_v21, 3  ;;  %vm3758_vm8 = vcmp.lt.s32.totalorder %v12615_v21, 4  ;;  %v3739_v9 = vshrl.u32 %v15252_v1, %v3738_v38 }
 0x3dd   : > { %vm12643_vm12 = vcmp.le.f32.partialorder %v15293_v61, 0.7853982  ;;  %vm3756_vm9 = vcmp.lt.s32.totalorder %v12615_v21, 2  ;;  %v3763_v25 = vsel %vm3755_vm3, %v3742_v46, %v3745_v51  ;;  %v3830_v13 = vand.u32 2139095040, %v12633_v35 }
 0x3de   : > { %vm1139_vm6 = vweird.f32 %v11923_v8  ;;  %vm1246_vm7 = vcmp.lt.s32.totalorder %v12586_v37, 2  ;;  %v3760_v33 = vsel %vm3758_vm8, %v3748_v6, 2102212464  ;;  %v3764_v22 = vsel %vm3758_vm8, %v3751_v24, 920167782 }
 0x3df   : > { %v3767_v23 = vsel %vm3755_vm3, %v3745_v51, %v3748_v6  ;;  %v3768_v43 = vsel %vm3758_vm8, %v3754_v60, 1326507024  ;;  %v1248_v54 = vxor.u32 2147483648, %v8522_v34  ;;  %v2127_v38 = vsel %vm2042_vm14, %v2126_v59, %v12421_v14 }
 0x3e0   : > { %v3765_v16 = vsel %vm3757_vm11, %v3748_v6, %v3764_v22  ;;  %v3769_v52 = vsel %vm3757_vm11, %v3751_v24, %v3768_v43  ;;  %v2904_v62 = vsel %vm7456_vm5, 0, %v7455_v30  ;;  %v7458_v27 = vmin.u32 %v3003_v4, %v12629_v29 }
 0x3e1   : > { %v3766_v61 = vsel %vm3756_vm9, %v3763_v25, %v3765_v16  ;;  %v3770_v60 = vsel %vm3756_vm9, %v3767_v23, %v3769_v52  ;;  %v2124_v7 = vxor.u32 2147483648, %v2123_v20  ;;  %v3759_v14 = vsel %vm3755_vm3, %v3739_v9, %v3742_v46 }
 0x3e2   : > { %v3761_v59 = vsel %vm3757_vm11, %v3745_v51, %v3760_v33  ;;  %v3831_v6 = vshrl.u32 %v3830_v13, 23  ;;  %v12677_v24 = vmul.u32.u64.low %v12639_v26, %v3770_v60  ;;  %v12678_v22 = vmul.u32.u64.high %v12639_v26, %v3770_v60, %v12677_v24  ;;  %v12685_v25 = vpop.eup %8523 }
 0x3e3   : > { %v12681_v30 = vmul.u32.u64.low %v12639_v26, %v3766_v61  ;;  %v12682_v4 = vmul.u32.u64.high %v12639_v26, %v3766_v61, %v12681_v30  ;;  %v2889_v23 = vadd.s32 %v12462_v0, %v12460_v39  ;;  %v2905_v43 = vsub.s32 32, %v2904_v62 }
 0x3e4   : > { %v2909_v46 = vsub.s32 4294967266, %v2904_v62  ;;  %v7505_v9 = vadd.s32 4294967169, %v3831_v6  ;;  %v1149_v51 = vsel %vm1142_vm2, %v12596_v17, %v12601_v40  ;;  %v2029_v13 = vadd.s32 3, %v2025_v28  ;;  %v12699_v52 = vpop.eup %8525 }
 0x3e5   : > { %v3005_v33 = vclz %v7458_v27  ;;  %v3762_v16 = vsel %vm3756_vm9, %v3759_v14, %v3761_v59  ;;  %v1249_v39 = vsel %vm1247_vm10, %v12613_v63, %v1248_v54  ;;  %v15296_v0 = vxor.u32 2147483648, %v12613_v63  ;;  %v12734_v59 = vld [vmem:[%s9394_s29] ss:$0 sm:$0xff] }
 0x3e6   : > { %v2129_v58 = vsel %vm12643_vm12, 0, %v2127_v38  ;;  %v3837_v32 = vadd.s32 1, %v7505_v9  ;;  %v2125_v17 = vsel %vm2042_vm14, %v2124_v7, %v2123_v20  ;;  %v2906_v40 = vshll.u32 %v12546_v44, %v2904_v62 }
 0x3e7   : > { %v1252_v47 = vsel %vm1250_vm4, %v15296_v0, %v8522_v34  ;;  %vm3780_vm15 = vc.u32 %v12678_v22, %v12681_v30  ;;  %v3781_v28 = vadd.s32 1, %v12682_v4  ;;  %v2907_v21 = vshrl.u32 %v2889_v23, %v2905_v43  ;;  %v7529_v34 = vld [vmem:[%s9298_s12 + $0x120] sm:$0xff] }
 0x3e8   : > { %v2910_v63 = vadd.s32 127, %v2909_v46  ;;  %v3778_v54 = vmul.u32 %v12639_v26, %v3762_v16  ;;  %vm3838_vm13 = vcmp.gt.s32.totalorder %v3837_v32, 0  ;;  %v7459_v27 = vadd.s32 4294967294, %v3005_v33 }
 0x3e9   : > { %v3782_v38 = vsel %vm3780_vm15, %v3781_v28, %v12682_v4  ;;  %v15146_v61 = vand.u32 2147483647, %v12633_v35  ;;  %v3839_v7 = vsel %vm3838_vm13, %v3837_v32, 0  ;;  %v12722_v44 = vsel %vm1139_vm6, nan, %v1149_v51 }
 0x3ea   : > { %v12726_v20 = vsel %vm1246_vm7, %v1249_v39, %v1252_v47  ;;  %v12728_v62 = vand.u32 3, %v2029_v13  ;;  %v2036_v26 = vxor.u32 2147483648, %v12685_v25  ;;  %v12731_v60 = vadd.s32 3, %v2129_v58 }
 0x3eb   : > { %v3841_v14 = vand.u32 31, %v3839_v7  ;;  %v4169_v6 = vmul.f32 %v12734_v59, %v7529_v34  ;;  %v2033_v24 = vxor.u32 2147483648, %v12699_v52  ;;  %v2128_v8 = vsel %vm12643_vm12, %v12290_v42, %v2125_v17 }
 0x3ec   : > { %v2911_v37 = vshll.u32 %v2910_v63, 23  ;;  %v12741_v4 = vadd.s32 %v3782_v38, %v3778_v54  ;;  %v2908_v23 = vor.u32 %v2907_v21, %v2906_v40  ;;  %vm7460_vm14 = vcmp.lt.s32.totalorder %v7459_v27, 0 }
 0x3ed   : > { %v3834_v43 = vand.u32 8388607, %v15146_v61  ;;  %v3842_v46 = vsub.s32 32, %v3841_v14  ;;  %v3840_v9 = vshrl.u32 %v3839_v7, 5  ;;  %v3844_v51 = vshll.u32 %v15252_v1, %v3841_v14 }
 0x3ee   : > { %v3847_v13 = vshll.u32 %v15208_v57, %v3841_v14  ;;  %v3853_v33 = vshll.u32 %v15210_v5, %v3841_v14  ;;  %v3850_v39 = vshll.u32 %v15209_v49, %v3841_v14  ;;  %8527 = vcosq.f32 %v2128_v8 }
 0x3ef   : > { %v3845_v16 = vshrl.u32 %v15208_v57, %v3842_v46  ;;  %v3848_v11 = vshrl.u32 %v15209_v49, %v3842_v46  ;;  %v3851_v0 = vshrl.u32 %v15210_v5, %v3842_v46  ;;  %v2912_v47 = vor.u32 4788187, %v2911_v37 }
 0x3f0   : > { %v3784_v58 = vadd.s32 536870912, %v12741_v4  ;;  %v3854_v32 = vshrl.u32 %v15225_v12, %v3842_v46  ;;  %vm1243_vm2 = vweird.f32 %v12011_v36  ;;  %vm2032_vm10 = vcmp.eq.s32.totalorder %v12728_v62, 0 }
 0x3f1   : > { %vm2035_vm4 = vcmp.eq.s32.totalorder %v12728_v62, 2  ;;  %8529 = vsinq.f32 %v2128_v8  ;;  %v2915_v17 = vcvt.s32.f32 %v2908_v23  ;;  %v2919_v40 = vsub.s32 4, %v12502_v50 }
 0x3f2   : > { %v3835_v28 = vor.u32 8388608, %v3834_v43  ;;  %v12759_v21 = vsel %vm7460_vm14, 0, %v7459_v27  ;;  %v3846_v63 = vor.u32 %v3845_v16, %v3844_v51  ;;  %v3849_v54 = vor.u32 %v3848_v11, %v3847_v13  ;;  %v7537_v27 = vld [vmem:[%s9298_s12 + $0x1e0] sm:$0xff] }
 0x3f3   : > { %v3855_v34 = vor.u32 %v3854_v32, %v3853_v33  ;;  %v3852_v38 = vor.u32 %v3851_v0, %v3850_v39  ;;  %v3856_v7 = vshll.u32 %v15225_v12, %v3841_v14  ;;  %v3857_v37 = vshrl.u32 %v15257_v55, %v3842_v46 }
 0x3f4   : > { %vm3859_vm3 = vcmp.lt.s32.totalorder %v3840_v9, 1  ;;  %vm2031_vm5 = vcmp.lt.s32.totalorder %v12728_v62, 2  ;;  %vm2835_vm12 = vcmp.lt.s32.totalorder %v12391_v15, 0  ;;  %v2913_v8 = vand.u32 2147483647, %v2912_v47 }
 0x3f5   : > { %v12765_v23 = vshrl.u32 %v3784_v58, 30  ;;  %v3843_v43 = vshrl.u32 %v15252_v1, %v3842_v46  ;;  %vm3861_vm11 = vcmp.lt.s32.totalorder %v3840_v9, 3  ;;  %v3013_v51 = vsub.s32 4294967266, %v12759_v21 }
 0x3f6   : > { %v3858_v13 = vor.u32 %v3857_v37, %v3856_v7  ;;  %vm3862_vm8 = vcmp.lt.s32.totalorder %v3840_v9, 4  ;;  %v3875_v33 = vshll.u32 %v3835_v28, 8  ;;  %vm3860_vm9 = vcmp.lt.s32.totalorder %v3840_v9, 2 }
 0x3f7   : > { %v3864_v14 = vsel %vm3862_vm8, %v3852_v38, 2102212464  ;;  %v3867_v16 = vsel %vm3859_vm3, %v3846_v63, %v3849_v54  ;;  %v3868_v11 = vsel %vm3862_vm8, %v3855_v34, 920167782  ;;  %vm2028_vm6 = vweird.f32 %v12166_v45 }
 0x3f8   : > { %v3869_v39 = vsel %vm3861_vm11, %v3852_v38, %v3868_v11  ;;  %v3871_v0 = vsel %vm3859_vm3, %v3849_v54, %v3852_v38  ;;  %v3872_v47 = vsel %vm3862_vm8, %v3858_v13, 1326507024  ;;  %v12774_v46 = vadd.f32 %v7537_v27, %v4169_v6  ;;  %v12784_v13 = vpop.eup %8527 }
 0x3f9   : > { %v2993_v58 = vadd.s32 %v12533_v48, %v12549_v18  ;;  %v3786_v32 = vshll.u32 %v12765_v23, 30  ;;  %v3863_v28 = vsel %vm3859_vm3, %v3843_v43, %v3846_v63  ;;  %v3865_v7 = vsel %vm3861_vm11, %v3849_v54, %v3864_v14 }
 0x3fa   : > { %v2916_v37 = vmul.f32 %v2915_v17, %v2913_v8  ;;  %v3009_v61 = vsub.s32 32, %v12759_v21  ;;  %v3870_v11 = vsel %vm3860_vm9, %v3867_v16, %v3869_v39  ;;  %v3873_v38 = vsel %vm3861_vm11, %v3855_v34, %v3872_v47  ;;  %v587_v16 = vld [vmem:[%s9295_s20 + $0x20] sm:$0xff] }
 0x3fb   : > { %v3014_v6 = vadd.s32 127, %v3013_v51  ;;  %v3874_v48 = vsel %vm3860_vm9, %v3871_v0, %v3873_v38  ;;  %v12787_v18 = vmul.u32.u64.low %v3875_v33, %v3870_v11  ;;  %v12788_v27 = vmul.u32.u64.high %v3875_v33, %v3870_v11, %v12787_v18  ;;  %v12791_v63 = vpop.eup %8529  ;;  %v588_v0 = vld [vmem:[%s9295_s20 + $0x28] sm:$0xff] }
 0x3fc   : > { %v3866_v17 = vsel %vm3860_vm9, %v3863_v28, %v3865_v7  ;;  %v12794_v54 = vmul.u32.u64.low %v3875_v33, %v3874_v48  ;;  %v12795_v8 = vmul.u32.u64.high %v3875_v33, %v3874_v48, %v12794_v54  ;;  %v4609_v43 = vand.u32 2139095040, %v12774_v46  ;;  %v7359_v7 = vld [vmem:[%s9295_s20 + $0x60] sm:$0xff] }
 0x3fd   : > { %v1254_v34 = vsel %vm1243_vm2, nan, %v12726_v20  ;;  %v2034_v51 = vsel %vm2032_vm10, %v12685_v25, %v2033_v24  ;;  %v2037_v9 = vsel %vm2035_vm4, %v2036_v26, %v12699_v52  ;;  %v12812_v14 = vsub.s32 %v12741_v4, %v3786_v32 }
 0x3fe   : > { %v12816_v39 = vand.u32 3, %v12731_v60  ;;  %v2917_v36 = vxor.u32 2147483648, %v2916_v37  ;;  %v2920_v20 = vsel %vm2835_vm12, %v2919_v40, %v12502_v50  ;;  %v4610_v24 = vshrl.u32 %v4609_v43, 23  ;;  %v7530_v40 = vld [vmem:[%s9298_s12 + $0x128] sm:$0xff] }
 0x3ff   : > { %v3010_v25 = vshll.u32 %v12629_v29, %v12759_v21  ;;  %v3011_v47 = vshrl.u32 %v2993_v58, %v3009_v61  ;;  %v3015_v52 = vshll.u32 %v3014_v6, 23  ;;  %v3882_v26 = vmul.u32 %v3875_v33, %v3866_v17 }
 0x400   : > { %v2038_v4 = vsel %vm2031_vm5, %v2034_v51, %v2037_v9  ;;  %v15297_v60 = vand.u32 2147483647, %v12391_v15  ;;  %vm3884_vm15 = vc.u32 %v12795_v8, %v12787_v18  ;;  %v3885_v50 = vadd.s32 1, %v12788_v27 }
 0x401   : > { %v12836_v29 = vmul.f32 %v12722_v44, %v587_v16  ;;  %v3789_v62 = vsub.s32 0, %v12812_v14  ;;  %v7557_v21 = vadd.s32 4294967169, %v4610_v24  ;;  %v12842_v33 = vmul.f32 %v1254_v34, %v588_v0  ;;  %v7538_v16 = vld [vmem:[%s9298_s12 + $0x1e8] sm:$0xff] }
 0x402   : > { %vm12828_vm7 = vcmp.le.f32.partialorder %v15297_v60, 0.7853982  ;;  %vm2139_vm13 = vcmp.eq.s32.totalorder %v12816_v39, 2  ;;  %v2918_v58 = vsel %vm2835_vm12, %v2917_v36, %v2916_v37  ;;  %v3886_v28 = vsel %vm3884_vm15, %v3885_v50, %v12788_v27 }
 0x403   : > { %v2922_v61 = vsel %vm12828_vm7, 0, %v2920_v20  ;;  %v2039_v44 = vsel %vm2028_vm6, nan, %v2038_v4  ;;  %vm2135_vm14 = vcmp.lt.s32.totalorder %v12816_v39, 2  ;;  %v3012_v11 = vor.u32 %v3011_v47, %v3010_v25 }
 0x404   : > { %v3016_v38 = vor.u32 4788187, %v3015_v52  ;;  %v3887_v6 = vadd.s32 %v3886_v28, %v3882_v26  ;;  %v2140_v48 = vxor.u32 2147483648, %v12784_v13  ;;  %v2926_v17 = vadd.s32 3, %v2922_v61 }
 0x405   : > { %v4170_v54 = vmul.f32 %v12734_v59, %v7530_v40  ;;  %v4616_v43 = vadd.s32 1, %v7557_v21  ;;  %v2921_v37 = vsel %vm12828_vm7, %v12391_v15, %v2918_v58  ;;  %v7502_v27 = vmin.u32 %v3789_v62, %v12812_v14 }
 0x406   : > { %v3888_v45 = vadd.s32 536870912, %v3887_v6  ;;  %v15147_v34 = vand.u32 2147483647, %v12774_v46  ;;  %vm2136_vm2 = vcmp.eq.s32.totalorder %v12816_v39, 0  ;;  %v2137_v51 = vxor.u32 2147483648, %v12791_v63 }
 0x407   : > { %v12861_v9 = vmul.f32 %v7359_v7, %v2039_v44  ;;  %vm2939_vm10 = vcmp.lt.s32.totalorder %v12413_v19, 0  ;;  %vm4617_vm4 = vcmp.gt.s32.totalorder %v4616_v43, 0  ;;  %v3017_v59 = vand.u32 2147483647, %v3016_v38 }
 0x408   : > { %v3019_v36 = vcvt.s32.f32 %v3012_v11  ;;  %v12865_v20 = vshrl.u32 %v3888_v45, 30  ;;  %v4618_v24 = vsel %vm4617_vm4, %v4616_v43, 0  ;;  %v2141_v0 = vsel %vm2139_vm13, %v2140_v48, %v12791_v63 }
 0x409   : > { %8531 = vcosq.f32 %v2921_v37  ;;  %v12870_v25 = vand.u32 3, %v2926_v17  ;;  %v4620_v47 = vand.u32 31, %v4618_v24  ;;  %v3791_v52 = vclz %v7502_v27 }
 0x40a   : > { %v3890_v26 = vshll.u32 %v12865_v20, 30  ;;  %v12873_v4 = vadd.f32 %v7538_v16, %v4170_v54  ;;  %v4613_v60 = vand.u32 8388607, %v15147_v34  ;;  %v2138_v32 = vsel %vm2136_vm2, %v12784_v13, %v2137_v51 }
 0x40b   : > { %8533 = vsinq.f32 %v2921_v37  ;;  %v3023_v50 = vsub.s32 4, %v12590_v56  ;;  %v4621_v63 = vsub.s32 32, %v4620_v47  ;;  %v3020_v61 = vmul.f32 %v3019_v36, %v3017_v59 }
 0x40c   : > { %v12881_v62 = vsub.s32 %v3887_v6, %v3890_v26  ;;  %v4623_v40 = vshll.u32 %v15252_v1, %v4620_v47  ;;  %v4626_v21 = vshll.u32 %v15208_v57, %v4620_v47  ;;  %v4629_v7 = vshll.u32 %v15209_v49, %v4620_v47 }
 0x40d   : > { %v4624_v58 = vshrl.u32 %v15208_v57, %v4621_v63  ;;  %v4627_v28 = vshrl.u32 %v15209_v49, %v4621_v63  ;;  %v4632_v44 = vshll.u32 %v15210_v5, %v4620_v47  ;;  %v15300_v13 = vand.u32 2147483647, %v12413_v19 }
 0x40e   : > { %v7503_v38 = vadd.s32 4294967294, %v3791_v52  ;;  %v4614_v6 = vor.u32 8388608, %v4613_v60  ;;  %v4630_v48 = vshrl.u32 %v15210_v5, %v4621_v63  ;;  %v4713_v17 = vand.u32 2139095040, %v12873_v4 }
 0x40f   : > { %vm12891_vm3 = vcmp.le.f32.partialorder %v15300_v13, 0.7853982  ;;  %v2142_v54 = vsel %vm2135_vm14, %v2138_v32, %v2141_v0  ;;  %v3893_v43 = vsub.s32 0, %v12881_v62  ;;  %v4619_v37 = vshrl.u32 %v4618_v24, 5 }
 0x410   : > { %v4633_v27 = vshrl.u32 %v15225_v12, %v4621_v63  ;;  %vm2132_vm5 = vweird.f32 %v12290_v42  ;;  %v3024_v45 = vsel %vm2939_vm10, %v3023_v50, %v12590_v56  ;;  %v4622_v51 = vshrl.u32 %v15252_v1, %v4621_v63 }
 0x411   : > { %v4625_v16 = vor.u32 %v4624_v58, %v4623_v40  ;;  %v4628_v59 = vor.u32 %v4627_v28, %v4626_v21  ;;  %v4631_v36 = vor.u32 %v4630_v48, %v4629_v7  ;;  %v4635_v39 = vshll.u32 %v15225_v12, %v4620_v47 }
 0x412   : > { %v4634_v52 = vor.u32 %v4633_v27, %v4632_v44  ;;  %v4636_v0 = vshrl.u32 %v15257_v55, %v4621_v63  ;;  %v3021_v26 = vxor.u32 2147483648, %v3020_v61  ;;  %vm7504_vm12 = vcmp.lt.s32.totalorder %v7503_v38, 0 }
 0x413   : > { %v12908_v24 = vshll.u32 %v4614_v6, 8  ;;  %v4714_v60 = vshrl.u32 %v4713_v17, 23  ;;  %v8532_v32 = vpop.eup %8531  ;;  %v7506_v13 = vmin.u32 %v3893_v43, %v12881_v62  ;;  %vm4638_vm11 = vcmp.lt.s32.totalorder %v4619_v37, 1 }
 0x414   : > { %v4637_v34 = vor.u32 %v4636_v0, %v4635_v39  ;;  %vm4640_vm8 = vcmp.lt.s32.totalorder %v4619_v37, 3  ;;  %vm2929_vm9 = vcmp.eq.s32.totalorder %v12870_v25, 0  ;;  %vm4639_vm6 = vcmp.lt.s32.totalorder %v4619_v37, 2 }
 0x415   : > { %vm4641_vm7 = vcmp.lt.s32.totalorder %v4619_v37, 4  ;;  %v4642_v56 = vsel %vm4638_vm11, %v4622_v51, %v4625_v16  ;;  %v4646_v50 = vsel %vm4638_vm11, %v4625_v16, %v4628_v59  ;;  %v8534_v47 = vpop.eup %8533  ;;  %v4650_v21 = vsel %vm4638_vm11, %v4628_v59, %v4631_v36 }
 0x416   : > { %v4643_v40 = vsel %vm4641_vm7, %v4631_v36, 2102212464  ;;  %v4647_v63 = vsel %vm4641_vm7, %v4634_v52, 920167782  ;;  %v4651_v58 = vsel %vm4641_vm7, %v4637_v34, 1326507024  ;;  %v3022_v48 = vsel %vm2939_vm10, %v3021_v26, %v3020_v61 }
 0x417   : > { %v4644_v28 = vsel %vm4640_vm8, %v4628_v59, %v4643_v40  ;;  %v4648_v7 = vsel %vm4640_vm8, %v4631_v36, %v4647_v63  ;;  %v4652_v44 = vsel %vm4640_vm8, %v4634_v52, %v4651_v58  ;;  %v7561_v6 = vadd.s32 4294967169, %v4714_v60 }
 0x418   : > { %v3026_v17 = vsel %vm12891_vm3, 0, %v3024_v45  ;;  %v4649_v43 = vsel %vm4639_vm6, %v4646_v50, %v4648_v7  ;;  %v4653_v27 = vsel %vm4639_vm6, %v4650_v21, %v4652_v44  ;;  %v12919_v51 = vsel %vm7504_vm12, 0, %v7503_v38 }
 0x419   : > { %v3895_v16 = vclz %v7506_v13  ;;  %v4645_v34 = vsel %vm4639_vm6, %v4642_v56, %v4644_v28  ;;  %v15148_v59 = vand.u32 2147483647, %v12873_v4  ;;  %vm2932_vm15 = vcmp.eq.s32.totalorder %v12870_v25, 2  ;;  %v7585_v13 = vld [vmem:[%s9298_s12 + $0x160] sm:$0xff] }
 0x41a   : > { %v12924_v36 = vmul.u32.u64.low %v12908_v24, %v4653_v27  ;;  %v12925_v52 = vmul.u32.u64.high %v12908_v24, %v4653_v27, %v12924_v36  ;;  %v12928_v61 = vmul.u32.u64.low %v12908_v24, %v4649_v43  ;;  %v12929_v45 = vmul.u32.u64.high %v12908_v24, %v4649_v43, %v12928_v61  ;;  %v12959_v28 = vld [vmem:[%s9740_s9] ss:$0 sm:$0xff] }
 0x41b   : > { %v2933_v39 = vxor.u32 2147483648, %v8532_v32  ;;  %vm3725_vm13 = vcmp.lt.s32.totalorder %v12517_v41, 0  ;;  %v4720_v38 = vadd.s32 1, %v7561_v6  ;;  %v12936_v37 = vsel %vm2132_vm5, nan, %v2142_v54 }
 0x41c   : > { %v2930_v0 = vxor.u32 2147483648, %v8534_v47  ;;  %v12938_v26 = vadd.s32 3, %v3026_v17  ;;  %v3809_v60 = vsub.s32 4, %v12765_v23  ;;  %v3025_v56 = vsel %vm12891_vm3, %v12413_v19, %v3022_v48 }
 0x41d   : > { %v3799_v50 = vsub.s32 4294967266, %v12919_v51  ;;  %v4661_v40 = vmul.u32 %v12908_v24, %v4645_v34  ;;  %vm4721_vm14 = vcmp.gt.s32.totalorder %v4720_v38, 0  ;;  %v7507_v63 = vadd.s32 4294967294, %v3895_v16 }
 0x41e   : > { %vm4663_vm2 = vc.u32 %v12925_v52, %v12928_v61  ;;  %v4664_v42 = vadd.s32 1, %v12929_v45  ;;  %v4717_v54 = vand.u32 8388607, %v15148_v59  ;;  %v12954_v21 = vsel %vm2932_vm15, %v2933_v39, %v8534_v47 }
 0x41f   : > { %v3779_v11 = vadd.s32 %v12681_v30, %v12678_v22  ;;  %v4722_v58 = vsel %vm4721_vm14, %v4720_v38, 0  ;;  %v5060_v24 = vmul.f32 %v12959_v28, %v7585_v13  ;;  %v12964_v7 = vsel %vm2929_vm9, %v8532_v32, %v2930_v0 }
 0x420   : > { %8535 = vcosq.f32 %v3025_v56  ;;  %v4665_v44 = vsel %vm4663_vm2, %v4664_v42, %v12929_v45  ;;  %v4724_v6 = vand.u32 31, %v4722_v58  ;;  %v3795_v47 = vsub.s32 32, %v12919_v51 }
 0x421   : > { %8537 = vsinq.f32 %v3025_v56  ;;  %v12971_v22 = vsel %vm3725_vm13, %v3809_v60, %v12765_v23  ;;  %v4666_v30 = vadd.s32 %v4665_v44, %v4661_v40  ;;  %v3800_v48 = vadd.s32 127, %v3799_v50 }
 0x422   : > { %vm7508_vm10 = vcmp.lt.s32.totalorder %v7507_v63, 0  ;;  %v4718_v17 = vor.u32 8388608, %v4717_v54  ;;  %v4725_v43 = vsub.s32 32, %v4724_v6  ;;  %v4723_v32 = vshrl.u32 %v4722_v58, 5 }
 0x423   : > { %v4667_v27 = vadd.s32 536870912, %v4666_v30  ;;  %v4727_v16 = vshll.u32 %v15252_v1, %v4724_v6  ;;  %v4730_v34 = vshll.u32 %v15208_v57, %v4724_v6  ;;  %v4733_v39 = vshll.u32 %v15209_v49, %v4724_v6 }
 0x424   : > { %v4728_v36 = vshrl.u32 %v15208_v57, %v4725_v43  ;;  %v4731_v45 = vshrl.u32 %v15209_v49, %v4725_v43  ;;  %v4736_v23 = vshll.u32 %v15210_v5, %v4724_v6  ;;  %v4734_v0 = vshrl.u32 %v15210_v5, %v4725_v43 }
 0x425   : > { %v12979_v38 = vshrl.u32 %v4667_v27, 30  ;;  %v4737_v60 = vshrl.u32 %v15225_v12, %v4725_v43  ;;  %v4739_v13 = vshll.u32 %v15225_v12, %v4724_v6  ;;  %v3796_v56 = vshll.u32 %v12812_v14, %v12919_v51 }
 0x426   : > { %v3797_v50 = vshrl.u32 %v3779_v11, %v3795_v47  ;;  %v3883_v40 = vadd.s32 %v12787_v18, %v12795_v8  ;;  %v4740_v42 = vshrl.u32 %v15257_v55, %v4725_v43  ;;  %v12990_v54 = vsel %vm7508_vm10, 0, %v7507_v63  ;;  %v7593_v47 = vld [vmem:[%s9298_s12 + $0x220] sm:$0xff] }
 0x427   : > { %v4669_v58 = vshll.u32 %v12979_v38, 30  ;;  %v4729_v44 = vor.u32 %v4728_v36, %v4727_v16  ;;  %v4732_v27 = vor.u32 %v4731_v45, %v4730_v34  ;;  %vm2928_vm4 = vcmp.lt.s32.totalorder %v12870_v25, 2 }
 0x428   : > { %v4726_v6 = vshrl.u32 %v15252_v1, %v4725_v43  ;;  %v4738_v59 = vor.u32 %v4737_v60, %v4736_v23  ;;  %v4741_v14 = vor.u32 %v4740_v42, %v4739_v13  ;;  %vm4742_vm3 = vcmp.lt.s32.totalorder %v4723_v32, 1 }
 0x429   : > { %v3801_v51 = vshll.u32 %v3800_v48, 23  ;;  %v12995_v11 = vsub.s32 %v4666_v30, %v4669_v58  ;;  %v4735_v18 = vor.u32 %v4734_v0, %v4733_v39  ;;  %v12997_v8 = vshll.u32 %v4718_v17, 8 }
 0x42a   : > { %v13000_v63 = vpop.eup %8535  ;;  %v3899_v53 = vsub.s32 32, %v12990_v54  ;;  %v3903_v16 = vsub.s32 4294967266, %v12990_v54  ;;  %vm4744_vm5 = vcmp.lt.s32.totalorder %v4723_v32, 3  ;;  %vm4745_vm12 = vcmp.lt.s32.totalorder %v4723_v32, 4 }
 0x42b   : > { %v13004_v34 = vpop.eup %8537  ;;  %v4672_v43 = vsub.s32 0, %v12995_v11  ;;  %vm4743_vm11 = vcmp.lt.s32.totalorder %v4723_v32, 2  ;;  %v4747_v30 = vsel %vm4745_vm12, %v4735_v18, 2102212464  ;;  %v4750_v48 = vsel %vm4742_vm3, %v4729_v44, %v4732_v27 }
 0x42c   : > { %v4746_v17 = vsel %vm4742_vm3, %v4726_v6, %v4729_v44  ;;  %v4751_v36 = vsel %vm4745_vm12, %v4738_v59, 920167782  ;;  %v4755_v45 = vsel %vm4745_vm12, %v4741_v14, 1326507024  ;;  %v13009_v39 = vadd.f32 %v7593_v47, %v5060_v24  ;;  %v7360_v6 = vld [vmem:[%s9295_s20 + $0x68] sm:$0xff] }
 0x42d   : > { %vm2925_vm8 = vweird.f32 %v12391_v15  ;;  %v7558_v23 = vmin.u32 %v4672_v43, %v12995_v11  ;;  %v4748_v0 = vsel %vm4744_vm5, %v4732_v27, %v4747_v30  ;;  %v4752_v60 = vsel %vm4744_vm5, %v4735_v18, %v4751_v36 }
 0x42e   : > { %v4754_v13 = vsel %vm4742_vm3, %v4732_v27, %v4735_v18  ;;  %v3798_v42 = vor.u32 %v3797_v50, %v3796_v56  ;;  %v3904_v58 = vadd.s32 127, %v3903_v16  ;;  %v4753_v3 = vsel %vm4743_vm11, %v4750_v48, %v4752_v60  ;;  %v7594_v60 = vld [vmem:[%s9298_s12 + $0x228] sm:$0xff] }
 0x42f   : > { %v4756_v44 = vsel %vm4744_vm5, %v4738_v59, %v4755_v45  ;;  %v3802_v24 = vor.u32 4788187, %v3801_v51  ;;  %v3900_v14 = vshll.u32 %v12881_v62, %v12990_v54  ;;  %v3901_v47 = vshrl.u32 %v3883_v40, %v3899_v53  ;;  %v7586_v54 = vld [vmem:[%s9298_s12 + $0x168] sm:$0xff] }
 0x430   : > { %v4674_v43 = vclz %v7558_v23  ;;  %v4749_v30 = vsel %vm4743_vm11, %v4746_v17, %v4748_v0  ;;  %v4757_v36 = vsel %vm4743_vm11, %v4754_v13, %v4756_v44  ;;  %v5500_v51 = vand.u32 2139095040, %v13009_v39 }
 0x431   : > { %v13024_v27 = vmul.u32.u64.low %v12997_v8, %v4753_v3  ;;  %v13025_v56 = vmul.u32.u64.high %v12997_v8, %v4753_v3, %v13024_v27  ;;  %v13029_v59 = vmul.u32.u64.low %v12997_v8, %v4757_v36  ;;  %v13030_v18 = vmul.u32.u64.high %v12997_v8, %v4757_v36, %v13029_v59 }
 0x432   : > { %v7559_v50 = vadd.s32 4294967294, %v4674_v43  ;;  %v13034_v62 = vmul.f32 %v7360_v6, %v12936_v37  ;;  %v13038_v53 = vadd.f32 %v12861_v9, %v12836_v29  ;;  %v15303_v32 = vand.u32 2147483647, %v12517_v41 }
 0x433   : > { %v3905_v40 = vshll.u32 %v3904_v58, 23  ;;  %v2935_v16 = vsel %vm2928_vm4, %v12964_v7, %v12954_v21  ;;  %v13052_v37 = vand.u32 3, %v12938_v26  ;;  %v5501_v29 = vshrl.u32 %v5500_v51, 23 }
 0x434   : > { %vm13042_vm9 = vcmp.le.f32.partialorder %v15303_v32, 0.7853982  ;;  %vm7560_vm6 = vcmp.lt.s32.totalorder %v7559_v50, 0  ;;  %vm3829_vm7 = vcmp.lt.s32.totalorder %v12633_v35, 0  ;;  %v4765_v17 = vmul.u32 %v12997_v8, %v4749_v30 }
 0x435   : > { %v3812_v9 = vsel %vm13042_vm9, 0, %v12971_v22  ;;  %v4677_v48 = vsel %vm7560_vm6, 0, %v7559_v50  ;;  %v4768_v45 = vadd.s32 1, %v13025_v56  ;;  %v3803_v23 = vand.u32 2147483647, %v3802_v24 }
 0x436   : > { %v3805_v25 = vcvt.s32.f32 %v3798_v42  ;;  %v3902_v21 = vor.u32 %v3901_v47, %v3900_v14  ;;  %v5061_v26 = vmul.f32 %v12959_v28, %v7586_v54  ;;  %v3906_v7 = vor.u32 4788187, %v3905_v40  ;;  %v7416_v14 = vld [vmem:[%s9295_s20 + $0xa0] sm:$0xff] }
 0x437   : > { %v4682_v0 = vsub.s32 4294967266, %v4677_v48  ;;  %vm4767_vm15 = vc.u32 %v13030_v18, %v13024_v27  ;;  %v7613_v22 = vadd.s32 4294967169, %v5501_v29  ;;  %v4662_v13 = vadd.s32 %v12928_v61, %v12925_v52 }
 0x438   : > { %v4678_v58 = vsub.s32 32, %v4677_v48  ;;  %v4769_v8 = vsel %vm4767_vm15, %v4768_v45, %v13025_v56  ;;  %v15151_v44 = vand.u32 2147483647, %v13009_v39  ;;  %v2936_v42 = vsel %vm2925_vm8, nan, %v2935_v16 }
 0x439   : > { %v3816_v6 = vadd.s32 3, %v3812_v9  ;;  %v4770_v28 = vadd.s32 %v4769_v8, %v4765_v17  ;;  %v5507_v24 = vadd.s32 1, %v7613_v22  ;;  %v3806_v47 = vmul.f32 %v3805_v25, %v3803_v23 }
 0x43a   : > { %v3909_v43 = vcvt.s32.f32 %v3902_v21  ;;  %v3913_v30 = vsub.s32 4, %v12865_v20  ;;  %v13072_v36 = vadd.f32 %v7594_v60, %v5061_v26  ;;  %v3907_v50 = vand.u32 2147483647, %v3906_v7 }
 0x43b   : > { %v4683_v52 = vadd.s32 127, %v4682_v0  ;;  %v4771_v61 = vadd.s32 536870912, %v4770_v28  ;;  %vm5508_vm14 = vcmp.gt.s32.totalorder %v5507_v24, 0  ;;  %v4679_v56 = vshll.u32 %v12995_v11, %v4677_v48 }
 0x43c   : > { %v4680_v59 = vshrl.u32 %v4662_v13, %v4678_v58  ;;  %v5504_v15 = vand.u32 8388607, %v15151_v44  ;;  %v5509_v51 = vsel %vm5508_vm14, %v5507_v24, 0  ;;  %v13077_v32 = vmul.f32 %v7416_v14, %v2936_v42 }
 0x43d   : > { %v13079_v40 = vand.u32 3, %v3816_v6  ;;  %v13081_v54 = vshrl.u32 %v4771_v61, 30  ;;  %v5511_v16 = vand.u32 31, %v5509_v51  ;;  %v3037_v9 = vxor.u32 2147483648, %v13000_v63 }
 0x43e   : > { %v3807_v17 = vxor.u32 2147483648, %v3806_v47  ;;  %v13088_v11 = vsel %vm3829_vm7, %v3913_v30, %v12865_v20  ;;  %v4684_v48 = vshll.u32 %v4683_v52, 23  ;;  %v5604_v25 = vand.u32 2139095040, %v13072_v36 }
 0x43f   : > { %v4773_v45 = vshll.u32 %v13081_v54, 30  ;;  %v5512_v23 = vsub.s32 32, %v5511_v16  ;;  %v13092_v21 = vmul.f32 %v3909_v43, %v3907_v50  ;;  %v4681_v26 = vor.u32 %v4680_v59, %v4679_v56 }
 0x440   : > { %v5505_v7 = vor.u32 8388608, %v5504_v15  ;;  %v5510_v0 = vshrl.u32 %v5509_v51, 5  ;;  %v5514_v22 = vshll.u32 %v15252_v1, %v5511_v16  ;;  %v5517_v20 = vshll.u32 %v15208_v57, %v5511_v16 }
 0x441   : > { %v13094_v60 = vsub.s32 %v4770_v28, %v4773_v45  ;;  %v5515_v13 = vshrl.u32 %v15208_v57, %v5512_v23  ;;  %v5518_v58 = vshrl.u32 %v15209_v49, %v5512_v23  ;;  %v5520_v8 = vshll.u32 %v15209_v49, %v5511_v16 }
 0x442   : > { %v5521_v42 = vshrl.u32 %v15210_v5, %v5512_v23  ;;  %v5523_v6 = vshll.u32 %v15210_v5, %v5511_v16  ;;  %v4685_v24 = vor.u32 4788187, %v4684_v48  ;;  %v5524_v28 = vshrl.u32 %v15225_v12, %v5512_v23 }
 0x443   : > { %v4776_v14 = vsub.s32 0, %v13094_v60  ;;  %v5605_v43 = vshrl.u32 %v5604_v25, 23  ;;  %vm3036_vm2 = vcmp.eq.s32.totalorder %v13052_v37, 2  ;;  %v3808_v30 = vsel %vm3725_vm13, %v3807_v17, %v3806_v47 }
 0x444   : > { %v3911_v50 = vxor.u32 2147483648, %v13092_v21  ;;  %v5526_v52 = vshll.u32 %v15225_v12, %v5511_v16  ;;  %v13110_v61 = vshll.u32 %v5505_v7, 8  ;;  %vm3033_vm10 = vcmp.eq.s32.totalorder %v13052_v37, 0 }
 0x445   : > { %v7562_v56 = vmin.u32 %v4776_v14, %v13094_v60  ;;  %v5513_v59 = vshrl.u32 %v15252_v1, %v5512_v23  ;;  %v5516_v15 = vor.u32 %v5515_v13, %v5514_v22  ;;  %v5519_v51 = vor.u32 %v5518_v58, %v5517_v20 }
 0x446   : > { %v5522_v48 = vor.u32 %v5521_v42, %v5520_v8  ;;  %v5525_v45 = vor.u32 %v5524_v28, %v5523_v6  ;;  %v5527_v25 = vshrl.u32 %v15257_v55, %v5512_v23  ;;  %vm5529_vm4 = vcmp.lt.s32.totalorder %v5510_v0, 1 }
 0x447   : > { %v15306_v47 = vand.u32 2147483647, %v12633_v35  ;;  %v4686_v16 = vand.u32 2147483647, %v4685_v24  ;;  %v4688_v7 = vcvt.s32.f32 %v4681_v26  ;;  %v4778_v44 = vclz %v7562_v56 }
 0x448   : > { %v7617_v29 = vadd.s32 4294967169, %v5605_v43  ;;  %vm4608_vm3 = vcmp.lt.s32.totalorder %v12774_v46, 0  ;;  %v5528_v14 = vor.u32 %v5527_v25, %v5526_v52  ;;  %vm5530_vm5 = vcmp.lt.s32.totalorder %v5510_v0, 2 }
 0x449   : > { %vm13118_vm13 = vcmp.le.f32.partialorder %v15306_v47, 0.7853982  ;;  %vm5531_vm12 = vcmp.lt.s32.totalorder %v5510_v0, 3  ;;  %vm5532_vm11 = vcmp.lt.s32.totalorder %v5510_v0, 4  ;;  %v7563_v22 = vadd.s32 4294967294, %v4778_v44 }
 0x44a   : > { %v5533_v23 = vsel %vm5529_vm4, %v5513_v59, %v5516_v15  ;;  %v5534_v13 = vsel %vm5532_vm11, %v5522_v48, 2102212464  ;;  %v5537_v20 = vsel %vm5529_vm4, %v5516_v15, %v5519_v51  ;;  %v5538_v8 = vsel %vm5532_vm11, %v5525_v45, 920167782 }
 0x44b   : > { %v5535_v58 = vsel %vm5531_vm12, %v5519_v51, %v5534_v13  ;;  %v5541_v42 = vsel %vm5529_vm4, %v5519_v51, %v5522_v48  ;;  %v5542_v6 = vsel %vm5532_vm11, %v5528_v14, 1326507024  ;;  %v15309_v26 = vand.u32 2147483647, %v12774_v46 }
 0x44c   : > { %v4689_v28 = vmul.f32 %v4688_v7, %v4686_v16  ;;  %vm7564_vm6 = vcmp.lt.s32.totalorder %v7563_v22, 0  ;;  %v5539_v43 = vsel %vm5531_vm12, %v5522_v48, %v5538_v8  ;;  %v5543_v44 = vsel %vm5531_vm12, %v5525_v45, %v5542_v6  ;;  %v7312_v8 = vld [vmem:[%s9295_s20 + $0xf0] sm:$0xff]  ;;  %v13183_v6 = vld [vmem:[%s9382_s14] ss:$0 sm:$0xff] }
 0x44d   : > { %vm13128_vm8 = vcmp.le.f32.partialorder %v15309_v26, 0.7853982  ;;  %v4766_v52 = vadd.s32 %v13024_v27, %v13030_v18  ;;  %v4781_v56 = vsel %vm7564_vm6, 0, %v7563_v22  ;;  %v5540_v59 = vsel %vm5530_vm5, %v5537_v20, %v5539_v43 }
 0x44e   : > { %v5544_v15 = vsel %vm5530_vm5, %v5541_v42, %v5543_v44  ;;  %v4782_v51 = vsub.s32 32, %v4781_v56  ;;  %v4786_v25 = vsub.s32 4294967266, %v4781_v56  ;;  %v5536_v47 = vsel %vm5530_vm5, %v5533_v23, %v5535_v58 }
 0x44f   : > { %v5611_v14 = vadd.s32 1, %v7617_v29  ;;  %v13138_v13 = vmul.u32.u64.low %v13110_v61, %v5544_v15  ;;  %v13139_v16 = vmul.u32.u64.high %v13110_v61, %v5544_v15, %v13138_v13  ;;  %v13151_v27 = vsel %vm3036_vm2, %v3037_v9, %v13004_v34 }
 0x450   : > { %v13142_v48 = vmul.u32.u64.low %v13110_v61, %v5540_v59  ;;  %v13143_v45 = vmul.u32.u64.high %v13110_v61, %v5540_v59, %v13142_v48  ;;  %v4690_v18 = vxor.u32 2147483648, %v4689_v28  ;;  %v4787_v0 = vadd.s32 127, %v4786_v25 }
 0x451   : > { %vm5612_vm15 = vcmp.gt.s32.totalorder %v5611_v14, 0  ;;  %v15312_v29 = vxor.u32 2147483648, %v13004_v34  ;;  %v3811_v22 = vsel %vm13042_vm9, %v12517_v41, %v3808_v30  ;;  %v3916_v23 = vsel %vm13118_vm13, 0, %v13088_v11 }
 0x452   : > { %v5613_v9 = vsel %vm5612_vm15, %v5611_v14, 0  ;;  %v3912_v20 = vsel %vm3829_vm7, %v3911_v50, %v13092_v21  ;;  %v4783_v34 = vshll.u32 %v13094_v60, %v4781_v56  ;;  %v5552_v58 = vmul.u32 %v13110_v61, %v5536_v47 }
 0x453   : > { %v13158_v7 = vsel %vm3033_vm10, %v13000_v63, %v15312_v29  ;;  %v5601_v63 = vand.u32 2147483647, %v13072_v36  ;;  %v4784_v42 = vshrl.u32 %v4766_v52, %v4782_v51  ;;  %v4788_v3 = vshll.u32 %v4787_v0, 23 }
 0x454   : > { %vm5554_vm9 = vc.u32 %v13139_v16, %v13142_v48  ;;  %v5555_v11 = vadd.s32 1, %v13143_v45  ;;  %8539 = vcosq.f32 %v3811_v22  ;;  %v13176_v30 = vadd.s32 3, %v3916_v23 }
 0x455   : > { %v4691_v21 = vsel %vm4608_vm3, %v4690_v18, %v4689_v28  ;;  %v5615_v50 = vand.u32 31, %v5613_v9  ;;  %8541 = vsinq.f32 %v3811_v22  ;;  %v4692_v60 = vsub.s32 4, %v12979_v38 }
 0x456   : > { %v5556_v61 = vsel %vm5554_vm9, %v5555_v11, %v13143_v45  ;;  %v13186_v26 = vmul.f32 %v13183_v6, %v7312_v8  ;;  %v13191_v43 = vsel %vm13118_vm13, %v12633_v35, %v3912_v20  ;;  %v5608_v28 = vand.u32 8388607, %v5601_v63 }
 0x457   : > { %v5557_v44 = vadd.s32 %v5556_v61, %v5552_v58  ;;  %v5616_v52 = vsub.s32 32, %v5615_v50  ;;  %v4694_v56 = vsel %vm13128_vm8, %v12774_v46, %v4691_v21  ;;  %v4785_v59 = vor.u32 %v4784_v42, %v4783_v34 }
 0x458   : > { %v4789_v15 = vor.u32 4788187, %v4788_v3  ;;  %v13198_v51 = vshrl.u32 %v5613_v9, 5  ;;  %v5618_v47 = vshll.u32 %v15252_v1, %v5615_v50  ;;  %v5621_v17 = vshll.u32 %v15208_v57, %v5615_v50 }
 0x459   : > { %v5558_v25 = vadd.s32 536870912, %v5557_v44  ;;  %v5624_v14 = vshll.u32 %v15209_v49, %v5615_v50  ;;  %v5619_v13 = vshrl.u32 %v15208_v57, %v5616_v52  ;;  %v5622_v45 = vshrl.u32 %v15209_v49, %v5616_v52 }
 0x45a   : > { %v5625_v18 = vshrl.u32 %v15210_v5, %v5616_v52  ;;  %v5627_v0 = vshll.u32 %v15210_v5, %v5615_v50  ;;  %8543 = vcosq.f32 %v13191_v43  ;;  %v4693_v29 = vsel %vm4608_vm3, %v4692_v60, %v12979_v38 }
 0x45b   : > { %v13211_v22 = vshrl.u32 %v5558_v25, 30  ;;  %v5628_v23 = vshrl.u32 %v15225_v12, %v5616_v52  ;;  %vm3032_vm7 = vcmp.lt.s32.totalorder %v13052_v37, 2  ;;  %8545 = vcosq.f32 %v4694_v56 }
 0x45c   : > { %v4792_v9 = vcvt.s32.f32 %v4785_v59  ;;  %v5609_v20 = vor.u32 8388608, %v5608_v28  ;;  %v5630_v34 = vshll.u32 %v15225_v12, %v5615_v50  ;;  %v4790_v58 = vand.u32 2147483647, %v4789_v15 }
 0x45d   : > { %v5560_v8 = vshll.u32 %v13211_v22, 30  ;;  %v5620_v42 = vor.u32 %v5619_v13, %v5618_v47  ;;  %v5623_v3 = vor.u32 %v5622_v45, %v5621_v17  ;;  %v5626_v11 = vor.u32 %v5625_v18, %v5624_v14  ;;  %v7321_v13 = vld [vmem:[%s9295_s20 + $0x1b0] sm:$0xff] }
 0x45e   : > { %v5629_v21 = vor.u32 %v5628_v23, %v5627_v0  ;;  %v5631_v38 = vshrl.u32 %v15257_v55, %v5616_v52  ;;  %vm5633_vm14 = vcmp.lt.s32.totalorder %v13198_v51, 1  ;;  %v13219_v60 = vpop.eup %8539  ;;  %v4695_v61 = vsel %vm13128_vm8, 0, %v4693_v29 }
 0x45f   : > { %8547 = vsinq.f32 %v4694_v56  ;;  %vm4712_vm2 = vcmp.lt.s32.totalorder %v12873_v4, 0  ;;  %v13224_v50 = vsub.s32 %v5557_v44, %v5560_v8  ;;  %vm5636_vm10 = vcmp.lt.s32.totalorder %v13198_v51, 4  ;;  %v8542_v28 = vpop.eup %8541 }
 0x460   : > { %v5617_v59 = vshrl.u32 %v15252_v1, %v5616_v52  ;;  %v5632_v15 = vor.u32 %v5631_v38, %v5630_v34  ;;  %vm5634_vm4 = vcmp.lt.s32.totalorder %v13198_v51, 2  ;;  %vm5635_vm13 = vcmp.lt.s32.totalorder %v13198_v51, 3 }
 0x461   : > { %vm3819_vm3 = vcmp.eq.s32.totalorder %v13079_v40, 0  ;;  %vm3822_vm5 = vcmp.eq.s32.totalorder %v13079_v40, 2  ;;  %v4793_v24 = vmul.f32 %v4792_v9, %v4790_v58  ;;  %v5563_v56 = vsub.s32 0, %v13224_v50 }
 0x462   : > { %v5638_v44 = vsel %vm5636_vm10, %v5626_v11, 2102212464  ;;  %v5641_v25 = vsel %vm5633_vm14, %v5620_v42, %v5623_v3  ;;  %v5642_v47 = vsel %vm5636_vm10, %v5629_v21, 920167782  ;;  %v5645_v52 = vsel %vm5633_vm14, %v5623_v3, %v5626_v11 }
 0x463   : > { %v5646_v17 = vsel %vm5636_vm10, %v5632_v15, 1326507024  ;;  %v13237_v14 = vshll.u32 %v5609_v20, 8  ;;  %v4699_v45 = vadd.s32 3, %v4695_v61  ;;  %v7614_v18 = vmin.u32 %v5563_v56, %v13224_v50  ;;  %v7313_v15 = vld [vmem:[%s9295_s20 + $0xf8] sm:$0xff] }
 0x464   : > { %v5643_v0 = vsel %vm5635_vm13, %v5626_v11, %v5642_v47  ;;  %v5647_v29 = vsel %vm5635_vm13, %v5629_v21, %v5646_v17  ;;  %v5637_v23 = vsel %vm5633_vm14, %v5617_v59, %v5620_v42  ;;  %v5639_v9 = vsel %vm5635_vm13, %v5623_v3, %v5638_v44  ;;  %v13253_v58 = vpop.eup %8543 }
 0x465   : > { %v5644_v20 = vsel %vm5634_vm4, %v5641_v25, %v5643_v0  ;;  %v5648_v34 = vsel %vm5634_vm4, %v5645_v52, %v5647_v29  ;;  %8549 = vsinq.f32 %v13191_v43  ;;  %v4794_v8 = vxor.u32 2147483648, %v4793_v24  ;;  %v13259_v38 = vpop.eup %8545 }
 0x466   : > { %v5565_v11 = vclz %v7614_v18  ;;  %v13257_v21 = vadd.f32 %v7321_v13, %v13186_v26  ;;  %v13262_v42 = vmul.u32.u64.low %v13237_v14, %v5648_v34  ;;  %v13263_v3 = vmul.u32.u64.high %v13237_v14, %v5648_v34, %v13262_v42 }
 0x467   : > { %v13266_v61 = vmul.u32.u64.low %v13237_v14, %v5644_v20  ;;  %v13267_v59 = vmul.u32.u64.high %v13237_v14, %v5644_v20, %v13266_v61  ;;  %v13275_v43 = vsel %vm3032_vm7, %v13158_v7, %v13151_v27  ;;  %v13278_v26 = vand.u32 3, %v13176_v30 }
 0x468   : > { %v7615_v56 = vadd.s32 4294967294, %v5565_v11  ;;  %v5640_v44 = vsel %vm5634_vm4, %v5637_v23, %v5639_v9  ;;  %v3820_v25 = vxor.u32 2147483648, %v8542_v28  ;;  %v3823_v47 = vxor.u32 2147483648, %v13219_v60 }
 0x469   : > { %v13283_v52 = vand.u32 3, %v4699_v45  ;;  %v15313_v17 = vand.u32 2147483647, %v12873_v4  ;;  %v8548_v37 = vpop.eup %8547  ;;  %vm3029_vm11 = vweird.f32 %v12413_v19  ;;  %v4796_v27 = vsub.s32 4, %v13081_v54 }
 0x46a   : > { %v5553_v7 = vadd.s32 %v13142_v48, %v13139_v16  ;;  %vm7616_vm8 = vcmp.lt.s32.totalorder %v7615_v56, 0  ;;  %v613_v30 = vmul.f32 %v13183_v6, %v7313_v15  ;;  %vm3818_vm6 = vcmp.lt.s32.totalorder %v13079_v40, 2 }
 0x46b   : > { %vm13287_vm12 = vcmp.le.f32.partialorder %v15313_v17, 0.7853982  ;;  %v4795_v51 = vsel %vm4712_vm2, %v4794_v8, %v4793_v24  ;;  %v5568_v45 = vsel %vm7616_vm8, 0, %v7615_v56  ;;  %v5656_v18 = vmul.u32 %v13237_v14, %v5640_v44 }
 0x46c   : > { %v1258_v0 = vand.u32 2139095040, %v13257_v21  ;;  %vm3923_vm15 = vcmp.eq.s32.totalorder %v13278_v26, 0  ;;  %vm3926_vm9 = vcmp.eq.s32.totalorder %v13278_v26, 2  ;;  %v5569_v29 = vsub.s32 32, %v5568_v45 }
 0x46d   : > { %v5570_v16 = vshll.u32 %v13224_v50, %v5568_v45  ;;  %v5573_v48 = vsub.s32 4294967266, %v5568_v45  ;;  %vm5658_vm7 = vc.u32 %v13263_v3, %v13266_v61  ;;  %v3821_v6 = vsel %vm3819_vm3, %v13219_v60, %v3820_v25 }
 0x46e   : > { %v3824_v24 = vsel %vm3822_vm5, %v3823_v47, %v8542_v28  ;;  %vm4701_vm14 = vcmp.lt.s32.totalorder %v13283_v52, 2  ;;  %v5659_v14 = vadd.s32 1, %v13267_v59  ;;  %vm4705_vm10 = vcmp.eq.s32.totalorder %v13283_v52, 2 }
 0x46f   : > { %v4797_v50 = vsel %vm4712_vm2, %v4796_v27, %v13081_v54  ;;  %v5571_v23 = vshrl.u32 %v5553_v7, %v5569_v29  ;;  %v5574_v9 = vadd.s32 127, %v5573_v48  ;;  %vm3815_vm4 = vweird.f32 %v12517_v41  ;;  %v8550_v8 = vpop.eup %8549 }
 0x470   : > { %v4703_v20 = vxor.u32 2147483648, %v8548_v37  ;;  %v4706_v60 = vxor.u32 2147483648, %v13259_v38  ;;  %v4798_v28 = vsel %vm13287_vm12, %v12873_v4, %v4795_v51  ;;  %v5660_v34 = vsel %vm5658_vm7, %v5659_v14, %v13267_v59  ;;  %v7322_v59 = vld [vmem:[%s9295_s20 + $0x1b8] sm:$0xff] }
 0x471   : > { %vm4698_vm13 = vweird.f32 %v12774_v46  ;;  %v5572_v11 = vor.u32 %v5571_v23, %v5570_v16  ;;  %v5575_v42 = vshll.u32 %v5574_v9, 23  ;;  %v5661_v54 = vadd.s32 %v5660_v34, %v5656_v18 }
 0x472   : > { %v1259_v15 = vshrl.u32 %v1258_v0, 23  ;;  %v3927_v56 = vxor.u32 2147483648, %v13253_v58  ;;  %vm4702_vm2 = vcmp.eq.s32.totalorder %v13283_v52, 0  ;;  %vm5499_vm3 = vcmp.lt.s32.totalorder %v13009_v39, 0 }
 0x473   : > { %v5583_v44 = vsub.s32 4, %v13211_v22  ;;  %8551 = vcosq.f32 %v4798_v28  ;;  %v5576_v25 = vor.u32 4788187, %v5575_v42  ;;  %v5579_v47 = vcvt.s32.f32 %v5572_v11  ;;  %v3269_v42 = vld [vmem:[%s9298_s12 + $0x20] sm:$0xff] }
 0x474   : > { %v5662_v17 = vadd.s32 536870912, %v5661_v54  ;;  %v3924_v27 = vxor.u32 2147483648, %v8550_v8  ;;  %v4707_v7 = vsel %vm4705_vm10, %v4706_v60, %v8548_v37  ;;  %v4799_v51 = vsel %vm13287_vm12, 0, %v4797_v50 }
 0x475   : > { %8553 = vsinq.f32 %v4798_v28  ;;  %v4704_v45 = vsel %vm4702_vm2, %v13259_v38, %v4703_v20  ;;  %v5577_v18 = vand.u32 2147483647, %v5576_v25  ;;  %v7347_v29 = vadd.s32 4294967169, %v1259_v15  ;;  %v5973_v25 = vld [vmem:[%s9288_s30 + $0x20] sm:$0xff] }
 0x476   : > { %v13334_v0 = vshrl.u32 %v5662_v17, 30  ;;  %v3040_v16 = vsel %vm3029_vm11, nan, %v13275_v43  ;;  %vm3922_vm5 = vcmp.lt.s32.totalorder %v13278_v26, 2  ;;  %v5584_v37 = vsel %vm5499_vm3, %v5583_v44, %v13211_v22  ;;  %v7417_v43 = vld [vmem:[%s9295_s20 + $0xa8] sm:$0xff] }
 0x477   : > { %v13343_v48 = vadd.f32 %v7322_v59, %v613_v30  ;;  %v3825_v13 = vsel %vm3818_vm6, %v3821_v6, %v3824_v24  ;;  %v15316_v38 = vand.u32 2147483647, %v13009_v39  ;;  %v5580_v50 = vmul.f32 %v5579_v47, %v5577_v18 }
 0x478   : > { %v5664_v19 = vshll.u32 %v13334_v0, 30  ;;  %v3925_v23 = vsel %vm3923_vm15, %v13253_v58, %v3924_v27  ;;  %v3928_v22 = vsel %vm3926_vm9, %v3927_v56, %v8550_v8  ;;  %v4708_v40 = vsel %vm4701_vm14, %v4704_v45, %v4707_v7 }
 0x479   : > { %vm13349_vm12 = vcmp.le.f32.partialorder %v15316_v38, 0.7853982  ;;  %v4803_v30 = vadd.s32 3, %v4799_v51  ;;  %v5581_v6 = vxor.u32 2147483648, %v5580_v50  ;;  %v1265_v20 = vadd.s32 1, %v7347_v29 }
 0x47a   : > { %v5586_v24 = vsel %vm13349_vm12, 0, %v5584_v37  ;;  %v13364_v9 = vsub.s32 %v5661_v54, %v5664_v19  ;;  %v2365_v60 = vadd.f32 %v13034_v62, %v12842_v33  ;;  %v3261_v58 = vadd.f32 %v13077_v32, %v13038_v53  ;;  %v7521_v62 = vld [vmem:[%s9298_s12 + $0x60] sm:$0xff] }
 0x47b   : > { %vm3919_vm11 = vweird.f32 %v12633_v35  ;;  %v1362_v52 = vand.u32 2139095040, %v13343_v48  ;;  %v3254_v28 = vmul.f32 %v7417_v43, %v3040_v16  ;;  %v3826_v34 = vsel %vm3815_vm4, nan, %v3825_v13 }
 0x47c   : > { %v5582_v8 = vsel %vm5499_vm3, %v5581_v6, %v5580_v50  ;;  %v5667_v11 = vsub.s32 0, %v13364_v9  ;;  %v3929_v33 = vsel %vm3922_vm5, %v3925_v23, %v3928_v22  ;;  %v4709_v53 = vsel %vm4698_vm13, nan, %v4708_v40 }
 0x47d   : > { %v5585_v32 = vsel %vm13349_vm12, %v13009_v39, %v5582_v8  ;;  %v5590_v41 = vadd.s32 3, %v5586_v24  ;;  %v8552_v54 = vpop.eup %8551  ;;  %v4804_v15 = vand.u32 3, %v4803_v30  ;;  %vm1266_vm8 = vcmp.gt.s32.totalorder %v1265_v20, 0 }
 0x47e   : > { %8555 = vcosq.f32 %v5585_v32  ;;  %v7618_v56 = vmin.u32 %v5667_v11, %v13364_v9  ;;  %v1363_v26 = vshrl.u32 %v1362_v52, 23  ;;  %v13388_v47 = vadd.f32 %v3254_v28, %v2365_v60 }
 0x47f   : > { %v8554_v44 = vpop.eup %8553  ;;  %8557 = vsinq.f32 %v5585_v32  ;;  %v4143_v17 = vmul.f32 %v3826_v34, %v3269_v42  ;;  %v5026_v46 = vmul.f32 %v7521_v62, %v4709_v53  ;;  %v13392_v27 = vsel %vm3919_vm11, nan, %v3929_v33 }
 0x480   : > { %v5669_v59 = vclz %v7618_v56  ;;  %v4810_v7 = vxor.u32 2147483648, %v8552_v54  ;;  %v5591_v51 = vand.u32 3, %v5590_v41  ;;  %v1267_v45 = vsel %vm1266_vm8, %v1265_v20, 0 }
 0x481   : > { %v4807_v18 = vxor.u32 2147483648, %v8554_v44  ;;  %vm4809_vm6 = vcmp.eq.s32.totalorder %v4804_v15, 2  ;;  %vm5603_vm15 = vcmp.lt.s32.totalorder %v13072_v36, 0  ;;  %v13395_v16 = vmul.f32 %v5973_v25, %v3261_v58 }
 0x482   : > { %v7619_v29 = vadd.s32 4294967294, %v5669_v59  ;;  %vm4805_vm9 = vcmp.lt.s32.totalorder %v4804_v15, 2  ;;  %vm4806_vm7 = vcmp.eq.s32.totalorder %v4804_v15, 0  ;;  %vm5589_vm14 = vweird.f32 %v13009_v39 }
 0x483   : > { %v1255_v37 = vand.u32 2147483647, %v13257_v21  ;;  %v7351_v13 = vadd.s32 4294967169, %v1363_v26  ;;  %v5034_v35 = vadd.f32 %v5026_v46, %v4143_v17  ;;  %v5657_v38 = vadd.s32 %v13266_v61, %v13263_v3  ;;  %v3270_v26 = vld [vmem:[%s9298_s12 + $0x28] sm:$0xff] }
 0x484   : > { %vm7620_vm10 = vcmp.lt.s32.totalorder %v7619_v29, 0  ;;  %v1269_v14 = vand.u32 31, %v1267_v45  ;;  %v4811_v50 = vsel %vm4809_vm6, %v4810_v7, %v8554_v44  ;;  %vm5592_vm4 = vcmp.lt.s32.totalorder %v5591_v51, 2 }
 0x485   : > { %vm5593_vm13 = vcmp.eq.s32.totalorder %v5591_v51, 0  ;;  %v5672_v19 = vsel %vm7620_vm10, 0, %v7619_v29  ;;  %v4808_v43 = vsel %vm4806_vm7, %v8552_v54, %v4807_v18  ;;  %vm13403_vm2 = vcmp.le.f32.partialorder %v5601_v63, 0.7853982  ;;  %v7577_v54 = vld [vmem:[%s9298_s12 + $0xa0] sm:$0xff] }
 0x486   : > { %v5673_v22 = vsub.s32 32, %v5672_v19  ;;  %v5674_v40 = vshll.u32 %v13364_v9, %v5672_v19  ;;  %v5677_v30 = vsub.s32 4294967266, %v5672_v19  ;;  %vm4802_vm3 = vweird.f32 %v12873_v4 }
 0x487   : > { %vm5596_vm5 = vcmp.eq.s32.totalorder %v5591_v51, 2  ;;  %v5687_v3 = vsub.s32 4, %v13334_v0  ;;  %v13412_v61 = vand.u32 8388607, %v1255_v37  ;;  %v1369_v6 = vadd.s32 1, %v7351_v13 }
 0x488   : > { %v8556_v24 = vpop.eup %8555  ;;  %v5675_v20 = vshrl.u32 %v5657_v38, %v5673_v22  ;;  %v5678_v63 = vadd.s32 127, %v5677_v30  ;;  %v13414_v60 = vsub.s32 32, %v1269_v14  ;;  %v1359_v58 = vand.u32 2147483647, %v13343_v48 }
 0x489   : > { %v8558_v9 = vpop.eup %8557  ;;  %v4812_v52 = vsel %vm4805_vm9, %v4808_v43, %v4811_v50  ;;  %v5597_v28 = vxor.u32 2147483648, %v8556_v24  ;;  %v13418_v34 = vshrl.u32 %v1267_v45, 5  ;;  %v1272_v8 = vshll.u32 %v15252_v1, %v1269_v14 }
 0x48a   : > { %v5594_v11 = vxor.u32 2147483648, %v8558_v9  ;;  %v5676_v42 = vor.u32 %v5675_v20, %v5674_v40  ;;  %v5679_v33 = vshll.u32 %v5678_v63, 23  ;;  %v1275_v62 = vshll.u32 %v15208_v57, %v1269_v14 }
 0x48b   : > { %v5598_v53 = vsel %vm5596_vm5, %v5597_v28, %v8558_v9  ;;  %v5688_v32 = vsel %vm5603_vm15, %v5687_v3, %v13334_v0  ;;  %v1281_v41 = vshll.u32 %v15210_v5, %v1269_v14  ;;  %vm1370_vm12 = vcmp.gt.s32.totalorder %v1369_v6, 0  ;;  %v7369_v9 = vld [vmem:[%s9295_s20 + $0x130] sm:$0xff] }
 0x48c   : > { %v5595_v15 = vsel %vm5593_vm13, %v8556_v24, %v5594_v11  ;;  %v5680_v56 = vor.u32 4788187, %v5679_v33  ;;  %v5683_v44 = vcvt.s32.f32 %v5676_v42  ;;  %v1282_v25 = vshrl.u32 %v15225_v12, %v13414_v60 }
 0x48d   : > { %v5599_v17 = vsel %vm5592_vm4, %v5595_v15, %v5598_v53  ;;  %v1278_v46 = vshll.u32 %v15209_v49, %v1269_v14  ;;  %v1284_v59 = vshll.u32 %v15225_v12, %v1269_v14  ;;  %v1285_v0 = vshrl.u32 %v15257_v55, %v13414_v60 }
 0x48e   : > { %v5600_v7 = vsel %vm5589_vm14, nan, %v5599_v17  ;;  %v5681_v45 = vand.u32 2147483647, %v5680_v56  ;;  %v1273_v18 = vshrl.u32 %v15208_v57, %v13414_v60  ;;  %v1371_v29 = vsel %vm1370_vm12, %v1369_v6, 0 }
 0x48f   : > { %v5690_v13 = vsel %vm13403_vm2, 0, %v5688_v32  ;;  %v5917_v51 = vmul.f32 %v7577_v54, %v5600_v7  ;;  %v1276_v38 = vshrl.u32 %v15209_v49, %v13414_v60  ;;  %v1279_v14 = vshrl.u32 %v15210_v5, %v13414_v60 }
 0x490   : > { %v13448_v50 = vmul.f32 %v13392_v27, %v3270_v26  ;;  %v5684_v39 = vmul.f32 %v5683_v44, %v5681_v45  ;;  %v1263_v19 = vor.u32 8388608, %v13412_v61  ;;  %v1283_v43 = vor.u32 %v1282_v25, %v1281_v41 }
 0x491   : > { %v5925_v22 = vadd.f32 %v5917_v51, %v5034_v35  ;;  %v1286_v40 = vor.u32 %v1285_v0, %v1284_v59  ;;  %vm1290_vm11 = vcmp.lt.s32.totalorder %v13418_v34, 4  ;;  %v1373_v30 = vand.u32 31, %v1371_v29  ;;  %v7378_v59 = vld [vmem:[%s9295_s20 + $0x1f0] sm:$0xff] }
 0x492   : > { %v4813_v3 = vsel %vm4802_vm3, nan, %v4812_v52  ;;  %v5685_v6 = vxor.u32 2147483648, %v5684_v39  ;;  %v5694_v24 = vadd.s32 3, %v5690_v13  ;;  %v13456_v27 = vand.u32 8388607, %v1359_v58  ;;  %v7522_v52 = vld [vmem:[%s9298_s12 + $0x68] sm:$0xff] }
 0x493   : > { %v13459_v20 = vmul.f32 %v13395_v16, %v5925_v22  ;;  %v1274_v61 = vor.u32 %v1273_v18, %v1272_v8  ;;  %v13461_v35 = vor.u32 %v1276_v38, %v1275_v62  ;;  %v1280_v63 = vor.u32 %v1279_v14, %v1278_v46  ;;  %v13483_v62 = vld [vmem:[%s9394_s29] ss:$0 sm:$0xff] }
 0x494   : > { %v5686_v28 = vsel %vm5603_vm15, %v5685_v6, %v5684_v39  ;;  %vm1287_vm8 = vcmp.lt.s32.totalorder %v13418_v34, 1  ;;  %vm1289_vm6 = vcmp.lt.s32.totalorder %v13418_v34, 3  ;;  %v1296_v4 = vsel %vm1290_vm11, %v1283_v43, 920167782 }
 0x495   : > { %v5689_v16 = vsel %vm13403_vm2, %v13072_v36, %v5686_v28  ;;  %v6010_v8 = vand.u32 4294901760, %v13459_v20  ;;  %v1300_v11 = vsel %vm1290_vm11, %v1286_v40, 1326507024  ;;  %v13477_v42 = vsub.s32 32, %v1373_v30 }
 0x496   : > { %8559 = vcosq.f32 %v5689_v16  ;;  %v13479_v33 = vand.u32 3, %v5694_v24  ;;  %vm1288_vm15 = vcmp.lt.s32.totalorder %v13418_v34, 2  ;;  %v1501_v53 = vmul.f32 %v13483_v62, %v7369_v9 }
 0x497   : > { %8561 = vsinq.f32 %v5689_v16  ;;  %v13489_v23 = vsub.f32 %v13459_v20, %v6010_v8  ;;  %v1295_v32 = vsel %vm1287_vm8, %v1274_v61, %v13461_v35  ;;  %v1297_v41 = vsel %vm1289_vm6, %v1280_v63, %v1296_v4  ;;  %v5974_v4 = vld [vmem:[%s9288_s30 + $0x28] sm:$0xff] }
 0x498   : > { %v5027_v54 = vmul.f32 %v7522_v52, %v4813_v3  ;;  %v1299_v15 = vsel %vm1287_vm8, %v13461_v35, %v1280_v63  ;;  %v1301_v56 = vsel %vm1289_vm6, %v1283_v43, %v1300_v11  ;;  %v13501_v44 = vshll.u32 %v1263_v19, 8 }
 0x499   : > { %15321 = vst [vmem:[#allocation33_spill] sm:$0xff] %v13489_v23  ;;  %v1271_v25 = vshrl.u32 %v15252_v1, %v13414_v60  ;;  %v1367_v26 = vor.u32 8388608, %v13456_v27  ;;  %v1385_v17 = vshll.u32 %v15210_v5, %v1373_v30  ;;  %v1386_v46 = vshrl.u32 %v15225_v12, %v13477_v42 }
 0x49a   : > { %vm5696_vm9 = vcmp.lt.s32.totalorder %v13479_v33, 2  ;;  %v1298_v0 = vsel %vm1288_vm15, %v1295_v32, %v1297_v41  ;;  %v13513_v7 = vshrl.u32 %v1371_v29, 5  ;;  %v1388_v45 = vshll.u32 %v15225_v12, %v1373_v30 }
 0x49b   : > { %v1389_v60 = vshrl.u32 %v15257_v55, %v13477_v42  ;;  %vm5693_vm7 = vweird.f32 %v13072_v36  ;;  %v1302_v18 = vsel %vm1288_vm15, %v1299_v15, %v1301_v56  ;;  %v1376_v13 = vshll.u32 %v15252_v1, %v1373_v30 }
 0x49c   : > { %v1379_v51 = vshll.u32 %v15208_v57, %v1373_v30  ;;  %v1382_v38 = vshll.u32 %v15209_v49, %v1373_v30  ;;  %v1377_v29 = vshrl.u32 %v15208_v57, %v13477_v42  ;;  %v1380_v14 = vshrl.u32 %v15209_v49, %v13477_v42 }
 0x49d   : > { %v1383_v39 = vshrl.u32 %v15210_v5, %v13477_v42  ;;  %v13530_v19 = vadd.f32 %v7378_v59, %v1501_v53  ;;  %vm5697_vm14 = vcmp.eq.s32.totalorder %v13479_v33, 0  ;;  %v1387_v40 = vor.u32 %v1386_v46, %v1385_v17 }
 0x49e   : > { %v13534_v43 = vmul.u32.u64.low %v13501_v44, %v1298_v0  ;;  %v13535_v22 = vmul.u32.u64.high %v13501_v44, %v1298_v0, %v13534_v43  ;;  %vm5700_vm10 = vcmp.eq.s32.totalorder %v13479_v33, 2  ;;  %v1390_v30 = vor.u32 %v1389_v60, %v1388_v45  ;;  %v7578_v0 = vld [vmem:[%s9298_s12 + $0xa8] sm:$0xff] }
 0x49f   : > { %vm1394_vm4 = vcmp.lt.s32.totalorder %v13513_v7, 4  ;;  %v2147_v3 = vand.u32 2139095040, %v13530_v19  ;;  %v1291_v6 = vsel %vm1287_vm8, %v1271_v25, %v1274_v61  ;;  %v1292_v24 = vsel %vm1290_vm11, %v1280_v63, 2102212464 }
 0x4a0   : > { %v13546_v27 = vmul.u32.u64.low %v13501_v44, %v1302_v18  ;;  %v13547_v9 = vmul.u32.u64.high %v13501_v44, %v1302_v18, %v13546_v27  ;;  %v8560_v28 = vpop.eup %8559  ;;  %v1378_v52 = vor.u32 %v1377_v29, %v1376_v13  ;;  %v1381_v16 = vor.u32 %v1380_v14, %v1379_v51 }
 0x4a1   : > { %v1384_v11 = vor.u32 %v1383_v39, %v1382_v38  ;;  %v2148_v53 = vshrl.u32 %v2147_v3, 23  ;;  %v8562_v32 = vpop.eup %8561  ;;  %v5701_v41 = vxor.u32 2147483648, %v8560_v28  ;;  %vm1391_vm13 = vcmp.lt.s32.totalorder %v13513_v7, 1  ;;  %v7370_v27 = vld [vmem:[%s9295_s20 + $0x138] sm:$0xff] }
 0x4a2   : > { %vm1393_vm2 = vcmp.lt.s32.totalorder %v13513_v7, 3  ;;  %v1400_v61 = vsel %vm1394_vm4, %v1387_v40, 920167782  ;;  %v5698_v63 = vxor.u32 2147483648, %v8562_v32  ;;  %v1293_v15 = vsel %vm1289_vm6, %v13461_v35, %v1292_v24 }
 0x4a3   : > { %v1404_v56 = vsel %vm1394_vm4, %v1390_v30, 1326507024  ;;  %v7404_v25 = vadd.s32 4294967169, %v2148_v53  ;;  %v5035_v17 = vadd.f32 %v5027_v54, %v13448_v50  ;;  %v5702_v46 = vsel %vm5700_vm10, %v5701_v41, %v8562_v32 }
 0x4a4   : > { %v5982_v59 = vmul.f32 %v5974_v4, %v13388_v47  ;;  %vm1392_vm3 = vcmp.lt.s32.totalorder %v13513_v7, 2  ;;  %v5699_v45 = vsel %vm5697_vm14, %v8560_v28, %v5698_v63  ;;  %v1399_v35 = vsel %vm1391_vm13, %v1378_v52, %v1381_v16 }
 0x4a5   : > { %v1401_v60 = vsel %vm1393_vm2, %v1384_v11, %v1400_v61  ;;  %v2154_v18 = vadd.s32 1, %v7404_v25  ;;  %v5703_v50 = vsel %vm5696_vm9, %v5699_v45, %v5702_v46  ;;  %v1294_v54 = vsel %vm1288_vm15, %v1291_v6, %v1293_v15 }
 0x4a6   : > { %v1403_v47 = vsel %vm1391_vm13, %v1381_v16, %v1384_v11  ;;  %v1405_v13 = vsel %vm1393_vm2, %v1387_v40, %v1404_v56  ;;  %v5704_v51 = vsel %vm5693_vm7, nan, %v5703_v50  ;;  %v1313_v38 = vadd.s32 1, %v13535_v22 }
 0x4a7   : > { %v13582_v29 = vshll.u32 %v1367_v26, 8  ;;  %vm2155_vm5 = vcmp.gt.s32.totalorder %v2154_v18, 0  ;;  %v5918_v33 = vmul.f32 %v7578_v0, %v5704_v51  ;;  %vm1312_vm12 = vc.u32 %v13547_v9, %v13534_v43 }
 0x4a8   : > { %v1402_v34 = vsel %vm1392_vm3, %v1399_v35, %v1401_v60  ;;  %v2156_v14 = vsel %vm2155_vm5, %v2154_v18, 0  ;;  %v1406_v39 = vsel %vm1392_vm3, %v1403_v47, %v1405_v13  ;;  %v1310_v30 = vmul.u32 %v13501_v44, %v1294_v54 }
 0x4a9   : > { %v2158_v40 = vand.u32 31, %v2156_v14  ;;  %v5926_v36 = vadd.f32 %v5918_v33, %v5035_v17  ;;  %v1314_v3 = vsel %vm1312_vm12, %v1313_v38, %v13535_v22  ;;  %v1375_v26 = vshrl.u32 %v15252_v1, %v13477_v42  ;;  %v7379_v17 = vld [vmem:[%s9295_s20 + $0x1f8] sm:$0xff] }
 0x4aa   : > { %v13595_v6 = vmul.u32.u64.low %v13582_v29, %v1402_v34  ;;  %v13596_v24 = vmul.u32.u64.high %v13582_v29, %v1402_v34, %v13595_v6  ;;  %v1396_v4 = vsel %vm1394_vm4, %v1384_v11, 2102212464  ;;  %v1315_v41 = vadd.s32 %v1314_v3, %v1310_v30 }
 0x4ab   : > { %v5990_v28 = vmul.f32 %v5982_v59, %v5926_v36  ;;  %v13603_v53 = vmul.u32.u64.low %v13582_v29, %v1406_v39  ;;  %v13604_v32 = vmul.u32.u64.high %v13582_v29, %v1406_v39, %v13603_v53  ;;  %v2159_v44 = vsub.s32 32, %v2158_v40 }
 0x4ac   : > { %v1502_v42 = vmul.f32 %v13483_v62, %v7370_v27  ;;  %v1395_v61 = vsel %vm1391_vm13, %v1375_v26, %v1378_v52  ;;  %v1397_v63 = vsel %vm1393_vm2, %v1381_v16, %v1396_v4  ;;  %v15156_v15 = vand.u32 2147483647, %v13530_v19 }
 0x4ad   : > { %v6013_v22 = vand.u32 4294901760, %v5990_v28  ;;  %v13612_v56 = vshrl.u32 %v2156_v14, 5  ;;  %v2161_v46 = vshll.u32 %v15252_v1, %v2158_v40  ;;  %v2164_v62 = vshll.u32 %v15208_v57, %v2158_v40 }
 0x4ae   : > { %v2162_v52 = vshrl.u32 %v15208_v57, %v2159_v44  ;;  %v2165_v59 = vshrl.u32 %v15209_v49, %v2159_v44  ;;  %v2167_v16 = vshll.u32 %v15209_v49, %v2158_v40  ;;  %v2168_v0 = vshrl.u32 %v15210_v5, %v2159_v44 }
 0x4af   : > { %v13616_v11 = vpack.c.bf16 %v6013_v22, %v6010_v8  ;;  %v13618_v25 = vsub.f32 %v5990_v28, %v6013_v22  ;;  %v2170_v20 = vshll.u32 %v15210_v5, %v2158_v40  ;;  %v2171_v8 = vshrl.u32 %v15225_v12, %v2159_v44 }
 0x4b0   : > { %v2173_v45 = vshll.u32 %v15225_v12, %v2158_v40  ;;  %v1398_v35 = vsel %vm1392_vm3, %v1395_v61, %v1397_v63  ;;  %v1417_v60 = vadd.s32 1, %v13596_v24  ;;  %v13635_v18 = vadd.f32 %v7379_v17, %v1502_v42 }
 0x4b1   : > { %15322 = vst [vmem:[#allocation34_spill] sm:$0xff] %v13616_v11  ;;  %15323 = vst [vmem:[#allocation35_spill] sm:$0xff] %v13618_v25  ;;  %7982 = vmatpush3.bf16.msra.mxu1 %v13616_v11  ;;  %v2151_v50 = vand.u32 8388607, %v15156_v15  ;;  %v1316_v54 = vadd.s32 536870912, %v1315_v41  ;;  %vm1416_vm11 = vc.u32 %v13604_v32, %v13595_v6  ;;  %v2172_v47 = vor.u32 %v2171_v8, %v2170_v20 }
 0x4b2   : > { %7983 = vmatprep.subr.bf16.mxu1 %v15243_v2  ;;  %15324 = vst [vmem:[#allocation36_spill] sm:$0xff] %v13635_v18  ;;  %v2174_v13 = vshrl.u32 %v15257_v55, %v2159_v44  ;;  %v2163_v51 = vor.u32 %v2162_v52, %v2161_v46  ;;  %v2166_v38 = vor.u32 %v2165_v59, %v2164_v62  ;;  %vm2179_vm8 = vcmp.lt.s32.totalorder %v13612_v56, 4 }
 0x4b3   : > { %v2169_v33 = vor.u32 %v2168_v0, %v2167_v16  ;;  %v1414_v7 = vmul.u32 %v13582_v29, %v1398_v35  ;;  %vm2176_vm6 = vcmp.lt.s32.totalorder %v13612_v56, 1  ;;  %vm2178_vm15 = vcmp.lt.s32.totalorder %v13612_v56, 3 }
 0x4b4   : > { %v2175_v34 = vor.u32 %v2174_v13, %v2173_v45  ;;  %v1418_v14 = vsel %vm1416_vm11, %v1417_v60, %v13596_v24  ;;  %v2152_v39 = vor.u32 8388608, %v2151_v50  ;;  %v2185_v40 = vsel %vm2179_vm8, %v2172_v47, 920167782 }
 0x4b5   : > { %v2251_v36 = vand.u32 2139095040, %v13635_v18  ;;  %v13650_v30 = vshrl.u32 %v1316_v54, 30  ;;  %vm2177_vm9 = vcmp.lt.s32.totalorder %v13612_v56, 2  ;;  %v2184_v29 = vsel %vm2176_vm6, %v2163_v51, %v2166_v38  ;;  %v7426_v54 = vld [vmem:[%s9295_s20 + $0x170] sm:$0xff] }
 0x4b6   : > { %v2189_v3 = vsel %vm2179_vm8, %v2175_v34, 1326507024  ;;  %v2186_v26 = vsel %vm2178_vm15, %v2169_v33, %v2185_v40  ;;  %v1419_v24 = vadd.s32 %v1418_v14, %v1414_v7  ;;  %v2188_v27 = vsel %vm2176_vm6, %v2166_v38, %v2169_v33  ;;  %v8628_v14 = vld [vmem:[%s9740_s9] ss:$0 sm:$0xff] }
 0x4b7   : > { %v2190_v28 = vsel %vm2178_vm15, %v2172_v47, %v2189_v3  ;;  %v2192_v4 = vshll.u32 %v2152_v39, 8  ;;  %v2252_v53 = vshrl.u32 %v2251_v36, 23  ;;  %v1318_v22 = vshll.u32 %v13650_v30, 30  ;;  %v7435_v39 = vld [vmem:[%s9295_s20 + $0x230] sm:$0xff] }
 0x4b8   : > { %v2187_v42 = vsel %vm2177_vm9, %v2184_v29, %v2186_v26  ;;  %v2191_v61 = vsel %vm2177_vm9, %v2188_v27, %v2190_v28  ;;  %v1420_v17 = vadd.s32 536870912, %v1419_v24  ;;  %v2160_v16 = vshrl.u32 %v15252_v1, %v2159_v44 }
 0x4b9   : > { %v7408_v63 = vadd.s32 4294967169, %v2252_v53  ;;  %v13668_v46 = vmul.u32.u64.low %v2192_v4, %v2187_v42  ;;  %v13669_v62 = vmul.u32.u64.high %v2192_v4, %v2187_v42, %v13668_v46  ;;  %v13672_v59 = vsub.s32 %v1315_v41, %v1318_v22 }
 0x4ba   : > { %v13675_v0 = vmul.u32.u64.low %v2192_v4, %v2191_v61  ;;  %v13676_v20 = vmul.u32.u64.high %v2192_v4, %v2191_v61, %v13675_v0  ;;  %v2181_v8 = vsel %vm2179_vm8, %v2169_v33, 2102212464  ;;  %v13680_v45 = vshrl.u32 %v1420_v17, 30 }
 0x4bb   : > { %v2258_v52 = vadd.s32 1, %v7408_v63  ;;  %v1321_v60 = vsub.s32 0, %v13672_v59  ;;  %v2180_v41 = vsel %vm2176_vm6, %v2160_v16, %v2163_v51  ;;  %v2182_v44 = vsel %vm2178_vm15, %v2166_v38, %v2181_v8 }
 0x4bc   : > { %v1422_v47 = vshll.u32 %v13680_v45, 30  ;;  %v2183_v13 = vsel %vm2177_vm9, %v2180_v41, %v2182_v44  ;;  %v2202_v33 = vadd.s32 1, %v13669_v62  ;;  %vm2201_vm14 = vc.u32 %v13676_v20, %v13668_v46 }
 0x4bd   : > { %vm2259_vm7 = vcmp.gt.s32.totalorder %v2258_v52, 0  ;;  %v7348_v7 = vmin.u32 %v1321_v60, %v13672_v59  ;;  %v2398_v51 = vmul.f32 %v8628_v14, %v7426_v54  ;;  %v2199_v38 = vmul.u32 %v2192_v4, %v2183_v13 }
 0x4be   : > { %v2260_v35 = vsel %vm2259_vm7, %v2258_v52, 0  ;;  %v13697_v40 = vsub.s32 %v1419_v24, %v1422_v47  ;;  %v2203_v36 = vsel %vm2201_vm14, %v2202_v33, %v13669_v62  ;;  %v15154_v27 = vand.u32 2147483647, %v13635_v18 }
 0x4bf   : > { %v2262_v50 = vand.u32 31, %v2260_v35  ;;  %v1323_v3 = vclz %v7348_v7  ;;  %v13702_v26 = vadd.f32 %v7435_v39, %v2398_v51  ;;  %v13705_v28 = vshrl.u32 %v2260_v35, 5 }
 0x4c0   : > { %v1425_v24 = vsub.s32 0, %v13697_v40  ;;  %v2204_v4 = vadd.s32 %v2203_v36, %v2199_v38  ;;  %v2255_v8 = vand.u32 8388607, %v15154_v27  ;;  %vm1257_vm8 = vcmp.lt.s32.totalorder %v13257_v21, 0  ;;  %v7476_v27 = vld [vmem:[%s9298_s12 + $0xf8] sm:$0xff] }
 0x4c1   : > { %v2263_v34 = vsub.s32 32, %v2262_v50  ;;  %v2274_v56 = vshll.u32 %v15210_v5, %v2262_v50  ;;  %v2277_v53 = vshll.u32 %v15225_v12, %v2262_v50  ;;  %v2265_v42 = vshll.u32 %v15252_v1, %v2262_v50 }
 0x4c2   : > { %v2268_v61 = vshll.u32 %v15208_v57, %v2262_v50  ;;  %v2271_v62 = vshll.u32 %v15209_v49, %v2262_v50  ;;  %v3044_v0 = vand.u32 2139095040, %v13702_v26  ;;  %vm2283_vm10 = vcmp.lt.s32.totalorder %v13705_v28, 4 }
 0x4c3   : > { %v2275_v29 = vshrl.u32 %v15225_v12, %v2263_v34  ;;  %v2278_v22 = vshrl.u32 %v15257_v55, %v2263_v34  ;;  %v2266_v63 = vshrl.u32 %v15208_v57, %v2263_v34  ;;  %v2269_v17 = vshrl.u32 %v15209_v49, %v2263_v34 }
 0x4c4   : > { %v2272_v52 = vshrl.u32 %v15210_v5, %v2263_v34  ;;  %v7349_v60 = vadd.s32 4294967294, %v1323_v3  ;;  %v2205_v41 = vadd.s32 536870912, %v2204_v4  ;;  %v7352_v44 = vmin.u32 %v1425_v24, %v13697_v40 }
 0x4c5   : > { %v2276_v16 = vor.u32 %v2275_v29, %v2274_v56  ;;  %v2279_v35 = vor.u32 %v2278_v22, %v2277_v53  ;;  %v2267_v54 = vor.u32 %v2266_v63, %v2265_v42  ;;  %v2270_v47 = vor.u32 %v2269_v17, %v2268_v61  ;;  %v7427_v63 = vld [vmem:[%s9295_s20 + $0x178] sm:$0xff] }
 0x4c6   : > { %v2273_v13 = vor.u32 %v2272_v52, %v2271_v62  ;;  %vm2280_vm4 = vcmp.lt.s32.totalorder %v13705_v28, 1  ;;  %vm2282_vm13 = vcmp.lt.s32.totalorder %v13705_v28, 3  ;;  %v3045_v33 = vshrl.u32 %v3044_v0, 23 }
 0x4c7   : > { %v2289_v50 = vsel %vm2283_vm10, %v2276_v16, 920167782  ;;  %v2256_v7 = vor.u32 8388608, %v2255_v8  ;;  %v2293_v51 = vsel %vm2283_vm10, %v2279_v35, 1326507024  ;;  %vm7350_vm2 = vcmp.lt.s32.totalorder %v7349_v60, 0 }
 0x4c8   : > { %v13727_v39 = vshrl.u32 %v2205_v41, 30  ;;  %vm2281_vm3 = vcmp.lt.s32.totalorder %v13705_v28, 2  ;;  %v2288_v38 = vsel %vm2280_vm4, %v2267_v54, %v2270_v47  ;;  %v2290_v36 = vsel %vm2282_vm13, %v2273_v13, %v2289_v50 }
 0x4c9   : > { %v1427_v3 = vclz %v7352_v44  ;;  %v2292_v56 = vsel %vm2280_vm4, %v2270_v47, %v2273_v13  ;;  %v2294_v29 = vsel %vm2282_vm13, %v2276_v16, %v2293_v51  ;;  %v7461_v53 = vadd.s32 4294967169, %v3045_v33  ;;  %v7436_v33 = vld [vmem:[%s9295_s20 + $0x238] sm:$0xff] }
 0x4ca   : > { %v1326_v22 = vsel %vm7350_vm2, 0, %v7349_v60  ;;  %v2296_v24 = vshll.u32 %v2256_v7, 8  ;;  %v2207_v42 = vshll.u32 %v13727_v39, 30  ;;  %v2291_v61 = vsel %vm2281_vm3, %v2288_v38, %v2290_v36 }
 0x4cb   : > { %v2295_v17 = vsel %vm2281_vm3, %v2292_v56, %v2294_v29  ;;  %v1331_v62 = vsub.s32 4294967266, %v1326_v22  ;;  %v7353_v52 = vadd.s32 4294967294, %v1427_v3  ;;  %v3051_v0 = vadd.s32 1, %v7461_v53 }
 0x4cc   : > { %v13744_v8 = vmul.u32.u64.low %v2296_v24, %v2291_v61  ;;  %v13745_v35 = vmul.u32.u64.high %v2296_v24, %v2291_v61, %v13744_v8  ;;  %v2399_v16 = vmul.f32 %v8628_v14, %v7427_v63  ;;  %v13748_v41 = vsub.s32 %v2204_v4, %v2207_v42 }
 0x4cd   : > { %v2264_v60 = vshrl.u32 %v15252_v1, %v2263_v34  ;;  %v13751_v44 = vmul.u32.u64.low %v2296_v24, %v2295_v17  ;;  %v13752_v50 = vmul.u32.u64.high %v2296_v24, %v2295_v17, %v13751_v44  ;;  %v1311_v7 = vadd.s32 %v13534_v43, %v13547_v9 }
 0x4ce   : > { %v2285_v51 = vsel %vm2283_vm10, %v2273_v13, 2102212464  ;;  %v1327_v38 = vsub.s32 32, %v1326_v22  ;;  %v1332_v36 = vadd.s32 127, %v1331_v62  ;;  %vm7354_vm5 = vcmp.lt.s32.totalorder %v7353_v52, 0 }
 0x4cf   : > { %vm3052_vm12 = vcmp.gt.s32.totalorder %v3051_v0, 0  ;;  %v13759_v3 = vadd.f32 %v7436_v33, %v2399_v16  ;;  %v2210_v14 = vsub.s32 0, %v13748_v41  ;;  %v2284_v34 = vsel %vm2280_vm4, %v2264_v60, %v2267_v54 }
 0x4d0   : > { %v2286_v4 = vsel %vm2282_vm13, %v2270_v47, %v2285_v51  ;;  %v1430_v56 = vsel %vm7354_vm5, 0, %v7353_v52  ;;  %v3053_v29 = vsel %vm3052_vm12, %v3051_v0, 0  ;;  %v1328_v43 = vshll.u32 %v13672_v59, %v1326_v22 }
 0x4d1   : > { %v1329_v9 = vshrl.u32 %v1311_v7, %v1327_v38  ;;  %v1333_v13 = vshll.u32 %v1332_v36, 23  ;;  %v1415_v53 = vadd.s32 %v13595_v6, %v13604_v32  ;;  %v1431_v42 = vsub.s32 32, %v1430_v56 }
 0x4d2   : > { %v2287_v61 = vsel %vm2281_vm3, %v2284_v34, %v2286_v4  ;;  %v2306_v63 = vadd.s32 1, %v13745_v35  ;;  %v3148_v54 = vand.u32 2139095040, %v13759_v3  ;;  %v1435_v17 = vsub.s32 4294967266, %v1430_v56 }
 0x4d3   : > { %v7405_v47 = vmin.u32 %v2210_v14, %v13748_v41  ;;  %vm2305_vm11 = vc.u32 %v13752_v50, %v13744_v8  ;;  %v3055_v59 = vand.u32 31, %v3053_v29  ;;  %v1330_v22 = vor.u32 %v1329_v9, %v1328_v43 }
 0x4d4   : > { %v1334_v62 = vor.u32 4788187, %v1333_v13  ;;  %v1341_v52 = vsub.s32 4, %v13650_v30  ;;  %v2303_v6 = vmul.u32 %v2296_v24, %v2287_v61  ;;  %v1432_v32 = vshll.u32 %v13697_v40, %v1430_v56 }
 0x4d5   : > { %v1433_v28 = vshrl.u32 %v1415_v53, %v1431_v42  ;;  %v2307_v0 = vsel %vm2305_vm11, %v2306_v63, %v13745_v35  ;;  %v3149_v16 = vshrl.u32 %v3148_v54, 23  ;;  %v1436_v60 = vadd.s32 127, %v1435_v17 }
 0x4d6   : > { %v2212_v44 = vclz %v7405_v47  ;;  %v13779_v33 = vsub.s32 32, %v3055_v59  ;;  %v13782_v7 = vadd.s32 %v2307_v0, %v2303_v6  ;;  %v1335_v38 = vand.u32 2147483647, %v1334_v62 }
 0x4d7   : > { %v7465_v51 = vadd.s32 4294967169, %v3149_v16  ;;  %v1337_v36 = vcvt.s32.f32 %v1330_v22  ;;  %v1342_v24 = vsel %vm1257_vm8, %v1341_v52, %v13650_v30  ;;  %v1434_v40 = vor.u32 %v1433_v28, %v1432_v32 }
 0x4d8   : > { %v1437_v14 = vshll.u32 %v1436_v60, 23  ;;  %v7406_v34 = vadd.s32 4294967294, %v2212_v44  ;;  %v3067_v35 = vshll.u32 %v15210_v5, %v3055_v59  ;;  %v3068_v4 = vshrl.u32 %v15225_v12, %v13779_v33 }
 0x4d9   : > { %v15153_v56 = vand.u32 2147483647, %v13702_v26  ;;  %v13791_v43 = vshrl.u32 %v3053_v29, 5  ;;  %v3070_v9 = vshll.u32 %v15225_v12, %v3055_v59  ;;  %v3071_v13 = vshrl.u32 %v15257_v55, %v13779_v33 }
 0x4da   : > { %v2309_v53 = vadd.s32 536870912, %v13782_v7  ;;  %v3058_v30 = vshll.u32 %v15252_v1, %v3055_v59  ;;  %v3061_v42 = vshll.u32 %v15208_v57, %v3055_v59  ;;  %v3155_v61 = vadd.s32 1, %v7465_v51 }
 0x4db   : > { %v3059_v63 = vshrl.u32 %v15208_v57, %v13779_v33  ;;  %v3062_v54 = vshrl.u32 %v15209_v49, %v13779_v33  ;;  %v3064_v29 = vshll.u32 %v15209_v49, %v3055_v59  ;;  %v3065_v17 = vshrl.u32 %v15210_v5, %v13779_v33 }
 0x4dc   : > { %vm13808_vm6 = vcmp.le.f32.partialorder %v1255_v37, 0.7853982  ;;  %v1438_v22 = vor.u32 4788187, %v1437_v14  ;;  %vm7407_vm15 = vcmp.lt.s32.totalorder %v7406_v34, 0  ;;  %v3069_v62 = vor.u32 %v3068_v4, %v3067_v35 }
 0x4dd   : > { %v1344_v52 = vsel %vm13808_vm6, 0, %v1342_v24  ;;  %v3048_v6 = vand.u32 8388607, %v15153_v56  ;;  %v3072_v32 = vor.u32 %v3071_v13, %v3070_v9  ;;  %vm3076_vm9 = vcmp.lt.s32.totalorder %v13791_v43, 4 }
 0x4de   : > { %v1338_v59 = vmul.f32 %v1337_v36, %v1335_v38  ;;  %v1441_v28 = vcvt.s32.f32 %v1434_v40  ;;  %v13817_v0 = vshrl.u32 %v2309_v53, 30  ;;  %vm3156_vm7 = vcmp.gt.s32.totalorder %v3155_v61, 0 }
 0x4df   : > { %v13819_v37 = vsel %vm7407_vm15, 0, %v7406_v34  ;;  %v3060_v16 = vor.u32 %v3059_v63, %v3058_v30  ;;  %v3063_v60 = vor.u32 %v3062_v54, %v3061_v42  ;;  %v3066_v44 = vor.u32 %v3065_v17, %v3064_v29 }
 0x4e0   : > { %v1439_v51 = vand.u32 2147483647, %v1438_v22  ;;  %vm3073_vm14 = vcmp.lt.s32.totalorder %v13791_v43, 1  ;;  %vm3075_vm10 = vcmp.lt.s32.totalorder %v13791_v43, 3  ;;  %v3082_v24 = vsel %vm3076_vm9, %v3069_v62, 920167782 }
 0x4e1   : > { %vm1361_vm4 = vcmp.lt.s32.totalorder %v13343_v48, 0  ;;  %v3049_v38 = vor.u32 8388608, %v3048_v6  ;;  %v3086_v36 = vsel %vm3076_vm9, %v3072_v32, 1326507024  ;;  %v3157_v40 = vsel %vm3156_vm7, %v3155_v61, 0  ;;  %v7475_v32 = vld [vmem:[%s9298_s12 + $0xf0] sm:$0xff] }
 0x4e2   : > { %v1348_v14 = vadd.s32 3, %v1344_v52  ;;  %v1445_v34 = vsub.s32 4, %v13680_v45  ;;  %v2220_v35 = vsub.s32 4294967266, %v13819_v37  ;;  %v2311_v4 = vshll.u32 %v13817_v0, 30 }
 0x4e3   : > { %v1339_v9 = vxor.u32 2147483648, %v1338_v59  ;;  %vm3074_vm13 = vcmp.lt.s32.totalorder %v13791_v43, 2  ;;  %v3081_v13 = vsel %vm3073_vm14, %v3060_v16, %v3063_v60  ;;  %v3083_v53 = vsel %vm3075_vm10, %v3066_v44, %v3082_v24 }
 0x4e4   : > { %v1442_v30 = vmul.f32 %v1441_v28, %v1439_v51  ;;  %v3085_v42 = vsel %vm3073_vm14, %v3063_v60, %v3066_v44  ;;  %v3087_v61 = vsel %vm3075_vm10, %v3069_v62, %v3086_v36  ;;  %v3159_v63 = vand.u32 31, %v3157_v40 }
 0x4e5   : > { %vm13842_vm2 = vcmp.le.f32.partialorder %v1359_v58, 0.7853982  ;;  %v2200_v29 = vadd.s32 %v13668_v46, %v13676_v20  ;;  %v2216_v17 = vsub.s32 32, %v13819_v37  ;;  %v13849_v22 = vshll.u32 %v3049_v38, 8 }
 0x4e6   : > { %v13851_v52 = vand.u32 3, %v1348_v14  ;;  %v2221_v6 = vadd.s32 127, %v2220_v35  ;;  %v13854_v62 = vsub.s32 %v13782_v7, %v2311_v4  ;;  %v3084_v58 = vsel %vm3074_vm13, %v3081_v13, %v3083_v53 }
 0x4e7   : > { %v1340_v28 = vsel %vm1257_vm8, %v1339_v9, %v1338_v59  ;;  %v13864_v46 = vsel %vm1361_vm4, %v1445_v34, %v13680_v45  ;;  %v3057_v20 = vshrl.u32 %v15252_v1, %v13779_v33  ;;  %v3088_v7 = vsel %vm3074_vm13, %v3085_v42, %v3087_v61  ;;  %v8629_v34 = vld [vmem:[%s9382_s14] ss:$0 sm:$0xff] }
 0x4e8   : > { %v1443_v51 = vxor.u32 2147483648, %v1442_v30  ;;  %v2217_v24 = vshll.u32 %v13748_v41, %v13819_v37  ;;  %v3078_v38 = vsel %vm3076_vm9, %v3066_v44, 2102212464  ;;  %v13874_v36 = vsub.s32 32, %v3159_v63  ;;  %v7483_v41 = vld [vmem:[%s9298_s12 + $0x1b0] sm:$0xff] }
 0x4e9   : > { %v2218_v59 = vshrl.u32 %v2200_v29, %v2216_v17  ;;  %v13877_v14 = vmul.u32.u64.low %v13849_v22, %v3084_v58  ;;  %v13878_v45 = vmul.u32.u64.high %v13849_v22, %v3084_v58, %v13877_v14  ;;  %v3288_v33 = vmul.f32 %v8629_v34, %v7475_v32 }
 0x4ea   : > { %v2222_v35 = vshll.u32 %v2221_v6, 23  ;;  %v2314_v4 = vsub.s32 0, %v13854_v62  ;;  %v13884_v9 = vmul.u32.u64.low %v13849_v22, %v3088_v7  ;;  %v13885_v13 = vmul.u32.u64.high %v13849_v22, %v3088_v7, %v13884_v9 }
 0x4eb   : > { %v1343_v37 = vsel %vm13808_vm6, %v13257_v21, %v1340_v28  ;;  %v3077_v53 = vsel %vm3073_vm14, %v3057_v20, %v3060_v16  ;;  %v3079_v42 = vsel %vm3075_vm10, %v3063_v60, %v3078_v38  ;;  %v1444_v61 = vsel %vm1361_vm4, %v1443_v51, %v1442_v30 }
 0x4ec   : > { %v15152_v29 = vand.u32 2147483647, %v13759_v3  ;;  %v3174_v17 = vshll.u32 %v15225_v12, %v3159_v63  ;;  %v3175_v47 = vshrl.u32 %v15257_v55, %v13874_v36  ;;  %v13904_v6 = vshrl.u32 %v3157_v40, 5 }
 0x4ed   : > { %v3171_v58 = vshll.u32 %v15210_v5, %v3159_v63  ;;  %v3172_v16 = vshrl.u32 %v15225_v12, %v13874_v36  ;;  %v13909_v32 = vadd.f32 %v7483_v41, %v3288_v33  ;;  %v2219_v60 = vor.u32 %v2218_v59, %v2217_v24 }
 0x4ee   : > { %v2223_v28 = vor.u32 4788187, %v2222_v35  ;;  %v7409_v30 = vmin.u32 %v2314_v4, %v13854_v62  ;;  %v3080_v20 = vsel %vm3074_vm13, %v3077_v53, %v3079_v42  ;;  %v3165_v7 = vshll.u32 %v15208_v57, %v3159_v63 }
 0x4ef   : > { %v3166_v40 = vshrl.u32 %v15209_v49, %v13874_v36  ;;  %v3168_v51 = vshll.u32 %v15209_v49, %v3159_v63  ;;  %v3169_v38 = vshrl.u32 %v15210_v5, %v13874_v36  ;;  %v3152_v24 = vand.u32 8388607, %v15152_v29 }
 0x4f0   : > { %v3162_v59 = vshll.u32 %v15252_v1, %v3159_v63  ;;  %v3163_v43 = vshrl.u32 %v15208_v57, %v13874_v36  ;;  %v3176_v33 = vor.u32 %v3175_v47, %v3174_v17  ;;  %v3099_v35 = vadd.s32 1, %v13878_v45 }
 0x4f1   : > { %v3173_v4 = vor.u32 %v3172_v16, %v3171_v58  ;;  %vm3180_vm3 = vcmp.lt.s32.totalorder %v13904_v6, 4  ;;  %v3934_v9 = vand.u32 2139095040, %v13909_v32  ;;  %v2224_v41 = vand.u32 2147483647, %v2223_v28 }
 0x4f2   : > { %v2226_v53 = vcvt.s32.f32 %v2219_v60  ;;  %v2316_v42 = vclz %v7409_v30  ;;  %vm3098_vm5 = vc.u32 %v13885_v13, %v13877_v14  ;;  %v3096_v29 = vmul.u32 %v13849_v22, %v3080_v20 }
 0x4f3   : > { %v13931_v63 = vor.u32 %v3166_v40, %v3165_v7  ;;  %v3170_v56 = vor.u32 %v3169_v38, %v3168_v51  ;;  %v3935_v17 = vshrl.u32 %v3934_v9, 23  ;;  %v3164_v47 = vor.u32 %v3163_v43, %v3162_v59  ;;  %v7484_v51 = vld [vmem:[%s9298_s12 + $0x1b8] sm:$0xff] }
 0x4f4   : > { %vm3177_vm12 = vcmp.lt.s32.totalorder %v13904_v6, 1  ;;  %vm3179_vm11 = vcmp.lt.s32.totalorder %v13904_v6, 3  ;;  %v3190_v58 = vsel %vm3180_vm3, %v3176_v33, 1326507024  ;;  %v3100_v16 = vsel %vm3098_vm5, %v3099_v35, %v13878_v45 }
 0x4f5   : > { %v3153_v60 = vor.u32 8388608, %v3152_v24  ;;  %v3186_v22 = vsel %vm3180_vm3, %v3173_v4, 920167782  ;;  %v7509_v28 = vadd.s32 4294967169, %v3935_v17  ;;  %8563 = vcosq.f32 %v1343_v37 }
 0x4f6   : > { %v1447_v30 = vsel %vm13842_vm2, %v13343_v48, %v1444_v61  ;;  %v13944_v20 = vmul.f32 %v2226_v53, %v2224_v41  ;;  %v3289_v7 = vmul.f32 %v8629_v34, %v7476_v27  ;;  %vm3178_vm8 = vcmp.lt.s32.totalorder %v13904_v6, 2 }
 0x4f7   : > { %v3189_v40 = vsel %vm3177_vm12, %v13931_v63, %v3170_v56  ;;  %v3191_v45 = vsel %vm3179_vm11, %v3173_v4, %v3190_v58  ;;  %v3941_v38 = vadd.s32 1, %v7509_v28  ;;  %v7410_v24 = vadd.s32 4294967294, %v2316_v42 }
 0x4f8   : > { %v13953_v59 = vadd.s32 %v3100_v16, %v3096_v29  ;;  %v3185_v61 = vsel %vm3177_vm12, %v3164_v47, %v13931_v63  ;;  %v3187_v27 = vsel %vm3179_vm11, %v3170_v56, %v3186_v22  ;;  %8565 = vsinq.f32 %v1343_v37 }
 0x4f9   : > { %v13961_v43 = vshll.u32 %v3153_v60, 8  ;;  %vm3942_vm6 = vcmp.gt.s32.totalorder %v3941_v38, 0  ;;  %8567 = vcosq.f32 %v1447_v30  ;;  %v3192_v33 = vsel %vm3178_vm8, %v3189_v40, %v3191_v45 }
 0x4fa   : > { %v13965_v35 = vadd.f32 %v7484_v51, %v3289_v7  ;;  %v3943_v29 = vsel %vm3942_vm6, %v3941_v38, 0  ;;  %8569 = vsinq.f32 %v1447_v30  ;;  %v13969_v4 = vadd.s32 %v13744_v8, %v13752_v50 }
 0x4fb   : > { %v3188_v37 = vsel %vm3178_vm8, %v3185_v61, %v3187_v27  ;;  %v3945_v9 = vand.u32 31, %v3943_v29  ;;  %vm7411_vm15 = vcmp.lt.s32.totalorder %v7410_v24, 0  ;;  %v3102_v53 = vadd.s32 536870912, %v13953_v59 }
 0x4fc   : > { %15329 = vst [vmem:[#allocation37_spill] sm:$0xff] %v13965_v35  ;;  %v3161_v42 = vshrl.u32 %v15252_v1, %v13874_v36  ;;  %v13978_v17 = vmul.u32.u64.low %v13961_v43, %v3192_v33  ;;  %v13979_v58 = vmul.u32.u64.high %v13961_v43, %v3192_v33, %v13978_v17  ;;  %v15155_v16 = vand.u32 2147483647, %v13909_v32 }
 0x4fd   : > { %v13982_v8 = vsub.s32 32, %v3945_v9  ;;  %v3182_v50 = vsel %vm3180_vm3, %v3170_v56, 2102212464  ;;  %v13987_v60 = vmul.u32.u64.low %v13961_v43, %v3188_v37  ;;  %v13988_v22 = vmul.u32.u64.high %v13961_v43, %v3188_v37, %v13987_v60 }
 0x4fe   : > { %v4038_v28 = vand.u32 2139095040, %v13965_v35  ;;  %v3948_v36 = vshll.u32 %v15252_v1, %v3945_v9  ;;  %v3951_v7 = vshll.u32 %v15208_v57, %v3945_v9  ;;  %v3957_v40 = vshll.u32 %v15210_v5, %v3945_v9 }
 0x4ff   : > { %v3949_v30 = vshrl.u32 %v15208_v57, %v13982_v8  ;;  %v13997_v45 = vpop.eup %8563  ;;  %v13999_v51 = vshrl.u32 %v3102_v53, 30  ;;  %v14001_v56 = vshrl.u32 %v3943_v29, 5  ;;  %v3952_v38 = vshrl.u32 %v15209_v49, %v13982_v8 }
 0x500   : > { %v3954_v61 = vshll.u32 %v15209_v49, %v3945_v9  ;;  %vm2146_vm9 = vcmp.lt.s32.totalorder %v13530_v19, 0  ;;  %v14008_v27 = vsel %vm7411_vm15, 0, %v7410_v24  ;;  %v3938_v33 = vand.u32 8388607, %v15155_v16 }
 0x501   : > { %v3955_v37 = vshrl.u32 %v15210_v5, %v13982_v8  ;;  %v3958_v29 = vshrl.u32 %v15225_v12, %v13982_v8  ;;  %v3181_v53 = vsel %vm3177_vm12, %v3161_v42, %v3164_v47  ;;  %v3183_v17 = vsel %vm3179_vm11, %v13931_v63, %v3182_v50 }
 0x502   : > { %v3960_v41 = vshll.u32 %v15225_v12, %v3945_v9  ;;  %v4039_v24 = vshrl.u32 %v4038_v28, 23  ;;  %v8566_v34 = vpop.eup %8565  ;;  %v14022_v44 = vor.u32 %v3949_v30, %v3948_v36  ;;  %v14024_v16 = vor.u32 %v3952_v38, %v3951_v7 }
 0x503   : > { %v3959_v15 = vor.u32 %v3958_v29, %v3957_v40  ;;  %v3961_v11 = vshrl.u32 %v15257_v55, %v13982_v8  ;;  %v14028_v2 = vpop.eup %8567  ;;  %v2324_v47 = vsub.s32 4294967266, %v14008_v27  ;;  %v3104_v42 = vshll.u32 %v13999_v51, 30 }
 0x504   : > { %v3956_v25 = vor.u32 %v3955_v37, %v3954_v61  ;;  %vm3963_vm7 = vcmp.lt.s32.totalorder %v14001_v56, 1  ;;  %v14033_v63 = vpop.eup %8569  ;;  %vm1354_vm14 = vcmp.eq.s32.totalorder %v13851_v52, 2  ;;  %v3939_v9 = vor.u32 8388608, %v3938_v33 }
 0x505   : > { %v3962_v50 = vor.u32 %v3961_v11, %v3960_v41  ;;  %vm3965_vm10 = vcmp.lt.s32.totalorder %v14001_v56, 3  ;;  %vm3966_vm4 = vcmp.lt.s32.totalorder %v14001_v56, 4  ;;  %vm1351_vm13 = vcmp.eq.s32.totalorder %v13851_v52, 0 }
 0x506   : > { %v15330_v28 = vand.u32 2147483647, %v13530_v19  ;;  %v3184_v30 = vsel %vm3178_vm8, %v3181_v53, %v3183_v17  ;;  %vm3202_vm5 = vc.u32 %v13979_v58, %v13987_v60  ;;  %v3203_v11 = vadd.s32 1, %v13988_v22 }
 0x507   : > { %v7513_v41 = vadd.s32 4294967169, %v4039_v24  ;;  %vm3964_vm12 = vcmp.lt.s32.totalorder %v14001_v56, 2  ;;  %v3971_v7 = vsel %vm3963_vm7, %v14022_v44, %v14024_v16  ;;  %v3972_v40 = vsel %vm3966_vm4, %v3959_v15, 920167782 }
 0x508   : > { %vm14041_vm3 = vcmp.le.f32.partialorder %v15330_v28, 0.7853982  ;;  %v3976_v6 = vsel %vm3966_vm4, %v3962_v50, 1326507024  ;;  %v2320_v38 = vsub.s32 32, %v14008_v27  ;;  %v3973_v61 = vsel %vm3965_vm10, %v3956_v25, %v3972_v40 }
 0x509   : > { %v3975_v33 = vsel %vm3963_vm7, %v14024_v16, %v3956_v25  ;;  %v3977_v37 = vsel %vm3965_vm10, %v3959_v15, %v3976_v6  ;;  %v1355_v29 = vxor.u32 2147483648, %v13997_v45  ;;  %v15333_v53 = vsel %vm13842_vm2, 0, %v13864_v46 }
 0x50a   : > { %v1452_v17 = vadd.s32 3, %v15333_v53  ;;  %v3200_v24 = vmul.u32 %v13961_v43, %v3184_v30  ;;  %v14073_v50 = vshll.u32 %v3939_v9, 8  ;;  %v2325_v28 = vadd.s32 127, %v2324_v47 }
 0x50b   : > { %v3204_v40 = vsel %vm3202_vm5, %v3203_v11, %v13988_v22  ;;  %v3974_v15 = vsel %vm3964_vm12, %v3971_v7, %v3973_v61  ;;  %v4045_v6 = vadd.s32 1, %v7513_v41  ;;  %v1352_v23 = vxor.u32 2147483648, %v8566_v34 }
 0x50c   : > { %v15334_v54 = vsub.s32 4, %v13727_v39  ;;  %v14087_v43 = vsub.s32 %v13953_v59, %v3104_v42  ;;  %v3978_v47 = vsel %vm3964_vm12, %v3975_v33, %v3977_v37  ;;  %v15335_v22 = vxor.u32 2147483648, %v13944_v20 }
 0x50d   : > { %v2321_v30 = vshll.u32 %v13854_v62, %v14008_v27  ;;  %v2322_v11 = vshrl.u32 %v13969_v4, %v2320_v38  ;;  %vm4046_vm2 = vcmp.gt.s32.totalorder %v4045_v6, 0  ;;  %v14099_v41 = vadd.s32 %v3204_v40, %v3200_v24 }
 0x50e   : > { %v2231_v46 = vsel %vm2146_vm9, %v15334_v54, %v13727_v39  ;;  %v2229_v9 = vsel %vm2146_vm9, %v15335_v22, %v13944_v20  ;;  %v14102_v39 = vmul.u32.u64.low %v14073_v50, %v3974_v15  ;;  %v14103_v59 = vmul.u32.u64.high %v14073_v50, %v3974_v15, %v14102_v39 }
 0x50f   : > { %v4047_v42 = vsel %vm4046_vm2, %v4045_v6, 0  ;;  %v2326_v7 = vshll.u32 %v2325_v28, 23  ;;  %v3947_v61 = vshrl.u32 %v15252_v1, %v13982_v8  ;;  %v14112_v62 = vand.u32 3, %v1452_v17 }
 0x510   : > { %v14109_v20 = vmul.u32.u64.low %v14073_v50, %v3978_v47  ;;  %v14110_v33 = vmul.u32.u64.high %v14073_v50, %v3978_v47, %v14109_v20  ;;  %v3107_v4 = vsub.s32 0, %v14087_v43  ;;  %v3968_v27 = vsel %vm3966_vm4, %v3956_v25, 2102212464 }
 0x511   : > { %v4049_v38 = vand.u32 31, %v4047_v42  ;;  %vm1350_vm11 = vcmp.lt.s32.totalorder %v13851_v52, 2  ;;  %v1356_v37 = vsel %vm1354_vm14, %v1355_v29, %v8566_v34  ;;  %v1353_v8 = vsel %vm1351_vm13, %v13997_v45, %v1352_v23  ;;  %v7531_v20 = vld [vmem:[%s9298_s12 + $0x130] sm:$0xff] }
 0x512   : > { %v2232_v53 = vsel %vm14041_vm3, %v13530_v19, %v2229_v9  ;;  %v2233_v17 = vsel %vm14041_vm3, 0, %v2231_v46  ;;  %v3206_v24 = vadd.s32 536870912, %v14099_v41  ;;  %v2323_v25 = vor.u32 %v2322_v11, %v2321_v30 }
 0x513   : > { %v2327_v28 = vor.u32 4788187, %v2326_v7  ;;  %v3967_v40 = vsel %vm3963_vm7, %v3947_v61, %v14022_v44  ;;  %v3969_v34 = vsel %vm3965_vm10, %v14024_v16, %v3968_v27  ;;  %vm1455_vm8 = vcmp.eq.s32.totalorder %v14112_v62, 0 }
 0x514   : > { %vm1458_vm6 = vcmp.eq.s32.totalorder %v14112_v62, 2  ;;  %v7462_v23 = vmin.u32 %v3107_v4, %v14087_v43  ;;  %v14138_v45 = vsub.s32 32, %v4049_v38  ;;  %v1357_v36 = vsel %vm1350_vm11, %v1353_v8, %v1356_v37 }
 0x515   : > { %v1456_v29 = vxor.u32 2147483648, %v14033_v63  ;;  %v1459_v15 = vxor.u32 2147483648, %v14028_v2  ;;  %v2237_v44 = vadd.s32 3, %v2233_v17  ;;  %vm1347_vm15 = vweird.f32 %v13257_v21 }
 0x516   : > { %8571 = vcosq.f32 %v2232_v53  ;;  %v14145_v16 = vshrl.u32 %v3206_v24, 30  ;;  %v3970_v6 = vsel %vm3964_vm12, %v3967_v40, %v3969_v34  ;;  %v3989_v54 = vadd.s32 1, %v14103_v59 }
 0x517   : > { %vm1454_vm9 = vcmp.lt.s32.totalorder %v14112_v62, 2  ;;  %8573 = vsinq.f32 %v2232_v53  ;;  %v2328_v52 = vand.u32 2147483647, %v2327_v28  ;;  %v2330_v46 = vcvt.s32.f32 %v2323_v25  ;;  %v14183_v28 = vld [vmem:[%s9394_s29] ss:$0 sm:$0xff] }
 0x518   : > { %vm3988_vm7 = vc.u32 %v14110_v33, %v14102_v39  ;;  %v3109_v47 = vclz %v7462_v23  ;;  %v15165_v22 = vand.u32 2147483647, %v13965_v35  ;;  %v4061_v9 = vshll.u32 %v15210_v5, %v4049_v38 }
 0x519   : > { %v4062_v56 = vshrl.u32 %v15225_v12, %v14138_v45  ;;  %vm2250_vm14 = vcmp.lt.s32.totalorder %v13635_v18, 0  ;;  %v3986_v30 = vmul.u32 %v14073_v50, %v3970_v6  ;;  %v14159_v11 = vshrl.u32 %v4047_v42, 5 }
 0x51a   : > { %v4064_v7 = vshll.u32 %v15225_v12, %v4049_v38  ;;  %v4065_v61 = vshrl.u32 %v15257_v55, %v14138_v45  ;;  %v3208_v4 = vshll.u32 %v14145_v16, 30  ;;  %v3990_v27 = vsel %vm3988_vm7, %v3989_v54, %v14103_v59 }
 0x51b   : > { %v4052_v37 = vshll.u32 %v15252_v1, %v4049_v38  ;;  %v4055_v8 = vshll.u32 %v15208_v57, %v4049_v38  ;;  %vm1451_vm10 = vweird.f32 %v13343_v48  ;;  %v4053_v50 = vshrl.u32 %v15208_v57, %v14138_v45 }
 0x51c   : > { %v4056_v42 = vshrl.u32 %v15209_v49, %v14138_v45  ;;  %v4058_v53 = vshll.u32 %v15209_v49, %v4049_v38  ;;  %v4059_v17 = vshrl.u32 %v15210_v5, %v14138_v45  ;;  %v1460_v59 = vsel %vm1458_vm6, %v1459_v15, %v14033_v63  ;;  %v7539_v63 = vld [vmem:[%s9298_s12 + $0x1f0] sm:$0xff] }
 0x51d   : > { %v14180_v24 = vand.u32 3, %v2237_v44  ;;  %v4063_v25 = vor.u32 %v4062_v56, %v4061_v9  ;;  %v4171_v40 = vmul.f32 %v14183_v28, %v7531_v20  ;;  %v15336_v34 = vand.u32 2147483647, %v13635_v18 }
 0x51e   : > { %v14192_v38 = vadd.s32 %v3990_v27, %v3986_v30  ;;  %v4042_v6 = vand.u32 8388607, %v15165_v22  ;;  %v4066_v54 = vor.u32 %v4065_v61, %v4064_v7  ;;  %vm4070_vm13 = vcmp.lt.s32.totalorder %v14159_v11, 4 }
 0x51f   : > { %vm14188_vm4 = vcmp.le.f32.partialorder %v15336_v34, 0.7853982  ;;  %v1457_v15 = vsel %vm1455_vm8, %v14028_v2, %v1456_v29  ;;  %v2331_v44 = vmul.f32 %v2330_v46, %v2328_v52  ;;  %v2334_v9 = vsub.s32 4, %v13817_v0 }
 0x520   : > { %v7463_v56 = vadd.s32 4294967294, %v3109_v47  ;;  %v14203_v20 = vsub.s32 %v14099_v41, %v3208_v4  ;;  %v4054_v30 = vor.u32 %v4053_v50, %v4052_v37  ;;  %v4057_v27 = vor.u32 %v4056_v42, %v4055_v8  ;;  %v8572_v35 = vpop.eup %8571 }
 0x521   : > { %v4060_v34 = vor.u32 %v4059_v17, %v4058_v53  ;;  %vm4067_vm3 = vcmp.lt.s32.totalorder %v14159_v11, 1  ;;  %vm4069_vm5 = vcmp.lt.s32.totalorder %v14159_v11, 3  ;;  %v4076_v7 = vsel %vm4070_vm13, %v4063_v25, 920167782  ;;  %v8574_v2 = vpop.eup %8573 }
 0x522   : > { %v14209_v61 = vadd.f32 %v7539_v63, %v4171_v40  ;;  %v14213_v29 = vsel %vm1347_vm15, nan, %v1357_v36  ;;  %v3992_v41 = vadd.s32 536870912, %v14192_v38  ;;  %v4043_v52 = vor.u32 8388608, %v4042_v6 }
 0x523   : > { %v4080_v46 = vsel %vm4070_vm13, %v4066_v54, 1326507024  ;;  %v1461_v47 = vsel %vm1454_vm9, %v1457_v15, %v1460_v59  ;;  %vm2240_vm12 = vcmp.eq.s32.totalorder %v14180_v24, 0  ;;  %v2335_v4 = vsel %vm2250_vm14, %v2334_v9, %v13817_v0 }
 0x524   : > { %vm7464_vm2 = vcmp.lt.s32.totalorder %v7463_v56, 0  ;;  %v2332_v37 = vxor.u32 2147483648, %v2331_v44  ;;  %vm3043_vm11 = vcmp.lt.s32.totalorder %v13702_v26, 0  ;;  %vm4068_vm8 = vcmp.lt.s32.totalorder %v14159_v11, 2 }
 0x525   : > { %v4075_v21 = vsel %vm4067_vm3, %v4054_v30, %v4057_v27  ;;  %v4077_v36 = vsel %vm4069_vm5, %v4060_v34, %v4076_v7  ;;  %vm2239_vm6 = vcmp.lt.s32.totalorder %v14180_v24, 2  ;;  %v3211_v62 = vsub.s32 0, %v14203_v20 }
 0x526   : > { %v4079_v8 = vsel %vm4067_vm3, %v4057_v27, %v4060_v34  ;;  %v4081_v0 = vsel %vm4069_vm5, %v4063_v25, %v4080_v46  ;;  %v4817_v50 = vand.u32 2139095040, %v14209_v61  ;;  %vm2243_vm15 = vcmp.eq.s32.totalorder %v14180_v24, 2 }
 0x527   : > { %v14238_v42 = vsel %vm7464_vm2, 0, %v7463_v56  ;;  %v14240_v53 = vshrl.u32 %v3992_v41, 30  ;;  %v14242_v17 = vshll.u32 %v4043_v52, 8  ;;  %v14246_v59 = vsel %vm1451_vm10, nan, %v1461_v47 }
 0x528   : > { %v2337_v40 = vsel %vm14188_vm4, 0, %v2335_v4  ;;  %v15339_v6 = vand.u32 2147483647, %v13702_v26  ;;  %v4078_v54 = vsel %vm4068_vm8, %v4075_v21, %v4077_v36  ;;  %v4818_v63 = vshrl.u32 %v4817_v50, 23 }
 0x529   : > { %v2241_v15 = vxor.u32 2147483648, %v8574_v2  ;;  %v2244_v9 = vxor.u32 2147483648, %v8572_v35  ;;  %v3127_v56 = vsub.s32 4, %v13999_v51  ;;  %v4082_v48 = vsel %vm4068_vm8, %v4079_v8, %v4081_v0 }
 0x52a   : > { %vm14252_vm9 = vcmp.le.f32.partialorder %v15339_v6, 0.7853982  ;;  %v2333_v7 = vsel %vm2250_vm14, %v2332_v37, %v2331_v44  ;;  %v3117_v41 = vsub.s32 4294967266, %v14238_v42  ;;  %v7466_v52 = vmin.u32 %v3211_v62, %v14203_v20 }
 0x52b   : > { %v7565_v46 = vadd.s32 4294967169, %v4818_v63  ;;  %v3994_v47 = vshll.u32 %v14240_v53, 30  ;;  %v4051_v4 = vshrl.u32 %v15252_v1, %v14138_v45  ;;  %v4072_v8 = vsel %vm4070_vm13, %v4060_v34, 2102212464 }
 0x52c   : > { %v14269_v21 = vmul.u32.u64.low %v14242_v17, %v4078_v54  ;;  %v14270_v36 = vmul.u32.u64.high %v14242_v17, %v4078_v54, %v14269_v21  ;;  %v14276_v44 = vmul.u32.u64.low %v14242_v17, %v4082_v48  ;;  %v14277_v37 = vmul.u32.u64.high %v14242_v17, %v4082_v48, %v14276_v44 }
 0x52d   : > { %v4824_v0 = vadd.s32 1, %v7565_v46  ;;  %v2242_v62 = vsel %vm2240_vm12, %v8572_v35, %v2241_v15  ;;  %v2245_v45 = vsel %vm2243_vm15, %v2244_v9, %v8574_v2  ;;  %v2336_v50 = vsel %vm14188_vm4, %v13635_v18, %v2333_v7  ;;  %v7532_v9 = vld [vmem:[%s9298_s12 + $0x138] sm:$0xff] }
 0x52e   : > { %v3097_v6 = vadd.s32 %v13877_v14, %v13885_v13  ;;  %v3113_v34 = vsub.s32 32, %v14238_v42  ;;  %v14292_v54 = vsel %vm3043_vm11, %v3127_v56, %v13999_v51  ;;  %v3213_v63 = vclz %v7466_v52 }
 0x52f   : > { %vm4825_vm7 = vcmp.gt.s32.totalorder %v4824_v0, 0  ;;  %v14295_v35 = vsub.s32 %v14192_v38, %v3994_v47  ;;  %v4071_v2 = vsel %vm4067_vm3, %v4051_v4, %v4054_v30  ;;  %v4073_v23 = vsel %vm4069_vm5, %v4057_v27, %v4072_v8  ;;  %v7540_v4 = vld [vmem:[%s9298_s12 + $0x1f8] sm:$0xff] }
 0x530   : > { %v4826_v15 = vsel %vm4825_vm7, %v4824_v0, 0  ;;  %8575 = vcosq.f32 %v2336_v50  ;;  %v14301_v14 = vadd.s32 3, %v2337_v40  ;;  %v3118_v13 = vadd.s32 127, %v3117_v41 }
 0x531   : > { %v15164_v51 = vand.u32 2147483647, %v14209_v61  ;;  %v14307_v56 = vsel %vm2239_vm6, %v2242_v62, %v2245_v45  ;;  %8577 = vsinq.f32 %v2336_v50  ;;  %v4828_v30 = vand.u32 31, %v4826_v15 }
 0x532   : > { %v3114_v27 = vshll.u32 %v14087_v43, %v14238_v42  ;;  %v3115_v40 = vshrl.u32 %v3097_v6, %v3113_v34  ;;  %v7467_v48 = vadd.s32 4294967294, %v3213_v63  ;;  %v4074_v7 = vsel %vm4068_vm8, %v4071_v2, %v4073_v23 }
 0x533   : > { %v3997_v41 = vsub.s32 0, %v14295_v35  ;;  %v4093_v24 = vadd.s32 1, %v14270_v36  ;;  %v4172_v52 = vmul.f32 %v14183_v28, %v7532_v9  ;;  %v4829_v46 = vsub.s32 32, %v4828_v30 }
 0x534   : > { %v3119_v47 = vshll.u32 %v3118_v13, 23  ;;  %vm4092_vm14 = vc.u32 %v14277_v37, %v14269_v21  ;;  %v4821_v43 = vand.u32 8388607, %v15164_v51  ;;  %v4831_v42 = vshll.u32 %v15252_v1, %v4828_v30 }
 0x535   : > { %v4832_v11 = vshrl.u32 %v15208_v57, %v4829_v46  ;;  %v4834_v8 = vshll.u32 %v15208_v57, %v4828_v30  ;;  %v4835_v44 = vshrl.u32 %v15209_v49, %v4829_v46  ;;  %v4837_v0 = vshll.u32 %v15209_v49, %v4828_v30 }
 0x536   : > { %vm7468_vm10 = vcmp.lt.s32.totalorder %v7467_v48, 0  ;;  %v4090_v28 = vmul.u32 %v14242_v17, %v4074_v7  ;;  %v4827_v62 = vshrl.u32 %v4826_v15, 5  ;;  %v4840_v45 = vshll.u32 %v15210_v5, %v4828_v30 }
 0x537   : > { %v7510_v50 = vmin.u32 %v3997_v41, %v14295_v35  ;;  %v4094_v6 = vsel %vm4092_vm14, %v4093_v24, %v14270_v36  ;;  %v14333_v34 = vadd.f32 %v7540_v4, %v4172_v52  ;;  %v4838_v63 = vshrl.u32 %v15210_v5, %v4829_v46 }
 0x538   : > { %v4822_v2 = vor.u32 8388608, %v4821_v43  ;;  %v4841_v23 = vshrl.u32 %v15225_v12, %v4829_v46  ;;  %v4843_v13 = vshll.u32 %v15225_v12, %v4828_v30  ;;  %v4844_v9 = vshrl.u32 %v15257_v55, %v4829_v46 }
 0x539   : > { %15342 = vst [vmem:[#allocation38_spill] sm:$0xff] %v14333_v34  ;;  %vm2236_vm4 = vweird.f32 %v13530_v19  ;;  %v4830_v17 = vshrl.u32 %v15252_v1, %v4829_v46  ;;  %v4833_v15 = vor.u32 %v4832_v11, %v4831_v42  ;;  %v4836_v7 = vor.u32 %v4835_v44, %v4834_v8 }
 0x53a   : > { %v4839_v41 = vor.u32 %v4838_v63, %v4837_v0  ;;  %v14341_v51 = vpop.eup %8575  ;;  %v14343_v36 = vadd.s32 %v4094_v6, %v4090_v28  ;;  %v4842_v24 = vor.u32 %v4841_v23, %v4840_v45  ;;  %vm4846_vm13 = vcmp.lt.s32.totalorder %v4827_v62, 1  ;;  %v589_v23 = vld [vmem:[%s9295_s20 + $0x30] sm:$0xff] }
 0x53b   : > { %vm4849_vm3 = vcmp.lt.s32.totalorder %v4827_v62, 4  ;;  %v14345_v52 = vpop.eup %8577  ;;  %v4845_v4 = vor.u32 %v4844_v9, %v4843_v13  ;;  %vm4848_vm5 = vcmp.lt.s32.totalorder %v4827_v62, 3  ;;  %v4921_v43 = vand.u32 2139095040, %v14333_v34  ;;  %v590_v13 = vld [vmem:[%s9295_s20 + $0x38] sm:$0xff] }
 0x53c   : > { %v4851_v30 = vsel %vm4849_vm3, %v4839_v41, 2102212464  ;;  %v3116_v22 = vor.u32 %v3115_v40, %v3114_v27  ;;  %v3120_v46 = vor.u32 4788187, %v3119_v47  ;;  %vm4847_vm12 = vcmp.lt.s32.totalorder %v4827_v62, 2 }
 0x53d   : > { %v4862_v42 = vshll.u32 %v4822_v2, 8  ;;  %v4850_v11 = vsel %vm4846_vm13, %v4830_v17, %v4833_v15  ;;  %v4852_v8 = vsel %vm4848_vm5, %v4836_v7, %v4851_v30  ;;  %v4854_v44 = vsel %vm4846_vm13, %v4833_v15, %v4836_v7 }
 0x53e   : > { %v4855_v0 = vsel %vm4849_vm3, %v4842_v24, 920167782  ;;  %v14354_v28 = vsel %vm7468_vm10, 0, %v7467_v48  ;;  %v4096_v45 = vadd.s32 536870912, %v14343_v36  ;;  %v4858_v40 = vsel %vm4846_vm13, %v4836_v7, %v4839_v41 }
 0x53f   : > { %v4856_v27 = vsel %vm4848_vm5, %v4839_v41, %v4855_v0  ;;  %v3999_v47 = vclz %v7510_v50  ;;  %v4859_v63 = vsel %vm4849_vm3, %v4845_v4, 1326507024  ;;  %v4922_v2 = vshrl.u32 %v4921_v43, 23 }
 0x540   : > { %v4857_v6 = vsel %vm4847_vm12, %v4854_v44, %v4856_v27  ;;  %v3121_v9 = vand.u32 2147483647, %v3120_v46  ;;  %v3123_v17 = vcvt.s32.f32 %v3116_v22  ;;  %v4853_v15 = vsel %vm4847_vm12, %v4850_v11, %v4852_v8 }
 0x541   : > { %v4860_v48 = vsel %vm4848_vm5, %v4842_v24, %v4859_v63  ;;  %v14366_v38 = vmul.u32.u64.low %v4862_v42, %v4857_v6  ;;  %v14367_v0 = vmul.u32.u64.high %v4862_v42, %v4857_v6, %v14366_v38  ;;  %v7569_v50 = vadd.s32 4294967169, %v4922_v2  ;;  %v7587_v2 = vld [vmem:[%s9298_s12 + $0x170] sm:$0xff] }
 0x542   : > { %v4861_v30 = vsel %vm4847_vm12, %v4858_v40, %v4860_v48  ;;  %v3221_v7 = vsub.s32 4294967266, %v14354_v28  ;;  %v14371_v41 = vshrl.u32 %v4096_v45, 30  ;;  %v14377_v22 = vmul.f32 %v14213_v29, %v589_v23 }
 0x543   : > { %v14373_v4 = vmul.u32.u64.low %v4862_v42, %v4861_v30  ;;  %v14374_v43 = vmul.u32.u64.high %v4862_v42, %v4861_v30, %v14373_v4  ;;  %v14380_v46 = vmul.f32 %v14246_v59, %v590_v13  ;;  %v7511_v62 = vadd.s32 4294967294, %v3999_v47 }
 0x544   : > { %15343 = vst [vmem:[#allocation39_spill] sm:$0xff] %v14371_v41  ;;  %15344 = vst [vmem:[#allocation40_spill] sm:$0xff] %v14377_v22  ;;  %v4928_v24 = vadd.s32 1, %v7569_v50  ;;  %v14385_v11 = vsel %vm2236_vm4, nan, %v14307_v56  ;;  %v14388_v8 = vand.u32 3, %v14301_v14  ;;  %v15347_v44 = vsel %vm14252_vm9, 0, %v14292_v54 }
 0x545   : > { %15345 = vst [vmem:[#allocation41_spill] sm:$0xff] %v14380_v46  ;;  %15346 = vst [vmem:[#allocation42_spill] sm:$0xff] %v14385_v11  ;;  %v3134_v45 = vadd.s32 3, %v15347_v44  ;;  %v4869_v29 = vmul.u32 %v4862_v42, %v4853_v15  ;;  %v14394_v27 = vmul.f32 %v3123_v17, %v3121_v9  ;;  %v3201_v59 = vadd.s32 %v13987_v60, %v13979_v58 }
 0x546   : > { %v4872_v40 = vadd.s32 1, %v14367_v0  ;;  %vm4929_vm2 = vcmp.gt.s32.totalorder %v4928_v24, 0  ;;  %v3217_v19 = vsub.s32 32, %v14354_v28  ;;  %v14400_v56 = vadd.s32 127, %v3221_v7 }
 0x547   : > { %v4098_v14 = vshll.u32 %v14371_v41, 30  ;;  %vm4871_vm8 = vc.u32 %v14374_v43, %v14366_v38  ;;  %vm7512_vm6 = vcmp.lt.s32.totalorder %v7511_v62, 0  ;;  %v15166_v42 = vand.u32 2147483647, %v14333_v34 }
 0x548   : > { %v4873_v54 = vsel %vm4871_vm8, %v4872_v40, %v14367_v0  ;;  %v4930_v47 = vsel %vm4929_vm2, %v4928_v24, 0  ;;  %v14409_v6 = vand.u32 3, %v3134_v45  ;;  %v3125_v23 = vxor.u32 2147483648, %v14394_v27  ;;  %v14427_v24 = vld [vmem:[%s9740_s9] ss:$0 sm:$0xff] }
 0x549   : > { %v4874_v63 = vadd.s32 %v4873_v54, %v4869_v29  ;;  %v4932_v17 = vand.u32 31, %v4930_v47  ;;  %v14416_v15 = vshrl.u32 %v3201_v59, %v3217_v19  ;;  %v14418_v48 = vsel %vm7512_vm6, 0, %v7511_v62  ;;  %v7595_v59 = vld [vmem:[%s9298_s12 + $0x230] sm:$0xff] }
 0x54a   : > { %v14421_v30 = vsub.s32 %v14343_v36, %v4098_v14  ;;  %v3223_v50 = vshll.u32 %v14400_v56, 23  ;;  %v4925_v7 = vand.u32 8388607, %v15166_v42  ;;  %v5062_v44 = vmul.f32 %v14427_v24, %v7587_v2 }
 0x54b   : > { %v4875_v0 = vadd.s32 536870912, %v4874_v63  ;;  %v4933_v4 = vsub.s32 32, %v4932_v17  ;;  %v3987_v45 = vadd.s32 %v14102_v39, %v14110_v33  ;;  %v4935_v62 = vshll.u32 %v15252_v1, %v4932_v17 }
 0x54c   : > { %v4938_v36 = vshll.u32 %v15208_v57, %v4932_v17  ;;  %v4007_v40 = vsub.s32 4294967266, %v14418_v48  ;;  %v4931_v19 = vshrl.u32 %v4930_v47, 5  ;;  %v4101_v54 = vsub.s32 0, %v14421_v30 }
 0x54d   : > { %v14432_v29 = vshrl.u32 %v4875_v0, 30  ;;  %v4936_v56 = vshrl.u32 %v15208_v57, %v4933_v4  ;;  %v4939_v14 = vshrl.u32 %v15209_v49, %v4933_v4  ;;  %v4941_v39 = vshll.u32 %v15209_v49, %v4932_v17 }
 0x54e   : > { %v4942_v33 = vshrl.u32 %v15210_v5, %v4933_v4  ;;  %v4926_v0 = vor.u32 8388608, %v4925_v7  ;;  %v4944_v42 = vshll.u32 %v15210_v5, %v4932_v17  ;;  %v4945_v60 = vshrl.u32 %v15225_v12, %v4933_v4 }
 0x54f   : > { %15348 = vst [vmem:[#allocation43_spill] sm:$0xff] %v14432_v29  ;;  %v4877_v2 = vshll.u32 %v14432_v29, 30  ;;  %v14446_v58 = vadd.f32 %v7595_v59, %v5062_v44  ;;  %v4937_v9 = vor.u32 %v4936_v56, %v4935_v62  ;;  %v4940_v13 = vor.u32 %v4939_v14, %v4938_v36 }
 0x550   : > { %v4947_v46 = vshll.u32 %v15225_v12, %v4932_v17  ;;  %vm2344_vm15 = vcmp.eq.s32.totalorder %v14388_v8, 0  ;;  %vm2347_vm7 = vcmp.eq.s32.totalorder %v14388_v8, 2  ;;  %v4943_v22 = vor.u32 %v4942_v33, %v4941_v39 }
 0x551   : > { %v14448_v47 = vsub.s32 %v4874_v63, %v4877_v2  ;;  %v4946_v34 = vor.u32 %v4945_v60, %v4944_v42  ;;  %v4948_v7 = vshrl.u32 %v15257_v55, %v4933_v4  ;;  %vm4950_vm14 = vcmp.lt.s32.totalorder %v4931_v19, 1 }
 0x552   : > { %vm3147_vm10 = vcmp.lt.s32.totalorder %v13759_v3, 0  ;;  %v7514_v44 = vmin.u32 %v4101_v54, %v14421_v30  ;;  %v4934_v63 = vshrl.u32 %v15252_v1, %v4933_v4  ;;  %vm4952_vm4 = vcmp.lt.s32.totalorder %v4931_v19, 3 }
 0x553   : > { %vm4953_vm13 = vcmp.lt.s32.totalorder %v4931_v19, 4  ;;  %v4003_v62 = vsub.s32 32, %v14418_v48  ;;  %v4880_v17 = vsub.s32 0, %v14448_v47  ;;  %v4949_v36 = vor.u32 %v4948_v7, %v4947_v46 }
 0x554   : > { %v5708_v59 = vand.u32 2139095040, %v14446_v58  ;;  %vm4951_vm3 = vcmp.lt.s32.totalorder %v4931_v19, 2  ;;  %v4955_v42 = vsel %vm4953_vm13, %v4943_v22, 2102212464  ;;  %v4958_v60 = vsel %vm4950_vm14, %v4937_v9, %v4940_v13 }
 0x555   : > { %v4959_v56 = vsel %vm4953_vm13, %v4946_v34, 920167782  ;;  %vm2343_vm5 = vcmp.lt.s32.totalorder %v14388_v8, 2  ;;  %v15349_v14 = vand.u32 2147483647, %v13759_v3  ;;  %v4962_v2 = vsel %vm4950_vm14, %v4940_v13, %v4943_v22 }
 0x556   : > { %v4960_v54 = vsel %vm4952_vm4, %v4943_v22, %v4959_v56  ;;  %v4963_v46 = vsel %vm4953_vm13, %v4949_v36, 1326507024  ;;  %v4966_v39 = vshll.u32 %v4926_v0, 8  ;;  %v3126_v33 = vsel %vm3043_vm11, %v3125_v23, %v14394_v27 }
 0x557   : > { %vm14464_vm12 = vcmp.le.f32.partialorder %v15349_v14, 0.7853982  ;;  %v4008_v7 = vadd.s32 127, %v4007_v40  ;;  %v4103_v11 = vclz %v7514_v44  ;;  %v4954_v41 = vsel %vm4950_vm14, %v4934_v63, %v4937_v9 }
 0x558   : > { %v7566_v29 = vmin.u32 %v4880_v17, %v14448_v47  ;;  %v4956_v14 = vsel %vm4952_vm4, %v4940_v13, %v4955_v42  ;;  %v4961_v18 = vsel %vm4951_vm3, %v4958_v60, %v4960_v54  ;;  %v4964_v56 = vsel %vm4952_vm4, %v4946_v34, %v4963_v46 }
 0x559   : > { %v15352_v22 = vshll.u32 %v14203_v20, %v14354_v28  ;;  %v3224_v36 = vor.u32 4788187, %v3223_v50  ;;  %v4965_v27 = vsel %vm4951_vm3, %v4962_v2, %v4964_v56  ;;  %v5709_v23 = vshrl.u32 %v5708_v59, 23  ;;  %v7588_v2 = vld [vmem:[%s9298_s12 + $0x178] sm:$0xff] }
 0x55a   : > { %v4004_v9 = vshll.u32 %v14295_v35, %v14418_v48  ;;  %v4005_v40 = vshrl.u32 %v3987_v45, %v4003_v62  ;;  %v14485_v44 = vmul.u32.u64.low %v4966_v39, %v4965_v27  ;;  %v14486_v63 = vmul.u32.u64.high %v4966_v39, %v4965_v27, %v14485_v44 }
 0x55b   : > { %v3220_v0 = vor.u32 %v14416_v15, %v15352_v22  ;;  %v4009_v13 = vshll.u32 %v4008_v7, 23  ;;  %v4957_v17 = vsel %vm4951_vm3, %v4954_v41, %v4956_v14  ;;  %v15353_v20 = vsub.s32 4, %v14145_v16 }
 0x55c   : > { %v14489_v34 = vmul.u32.u64.low %v4966_v39, %v4961_v18  ;;  %v14490_v42 = vmul.u32.u64.high %v4966_v39, %v4961_v18, %v14489_v34  ;;  %v7515_v15 = vadd.s32 4294967294, %v4103_v11  ;;  %v4882_v50 = vclz %v7566_v29 }
 0x55d   : > { %v3232_v28 = vsel %vm3147_vm10, %v15353_v20, %v14145_v16  ;;  %v7621_v35 = vadd.s32 4294967169, %v5709_v23  ;;  %v15354_v48 = vxor.u32 2147483648, %v14345_v52  ;;  %v15355_v18 = vxor.u32 2147483648, %v14341_v51 }
 0x55e   : > { %v14511_v16 = vsel %vm14252_vm9, %v13702_v26, %v3126_v33  ;;  %v3227_v11 = vcvt.s32.f32 %v3220_v0  ;;  %v3225_v29 = vand.u32 2147483647, %v3224_v36  ;;  %v4973_v19 = vmul.u32 %v4966_v39, %v4957_v17 }
 0x55f   : > { %v2346_v41 = vsel %vm2344_vm15, %v14341_v51, %v15354_v48  ;;  %v2349_v45 = vsel %vm2347_vm7, %v15355_v18, %v14345_v52  ;;  %vm4975_vm11 = vc.u32 %v14486_v63, %v14489_v34  ;;  %v5715_v62 = vadd.s32 1, %v7621_v35 }
 0x560   : > { %v3234_v59 = vsel %vm14464_vm12, 0, %v3232_v28  ;;  %v4006_v60 = vor.u32 %v4005_v40, %v4004_v9  ;;  %v4010_v51 = vor.u32 4788187, %v4009_v13  ;;  %v4976_v54 = vadd.s32 1, %v14490_v42  ;;  %v7596_v28 = vld [vmem:[%s9298_s12 + $0x238] sm:$0xff] }
 0x561   : > { %vm7516_vm2 = vcmp.lt.s32.totalorder %v7515_v15, 0  ;;  %v7567_v52 = vadd.s32 4294967294, %v4882_v50  ;;  %v15176_v25 = vand.u32 2147483647, %v14446_v58  ;;  %vm5716_vm9 = vcmp.gt.s32.totalorder %v5715_v62, 0 }
 0x562   : > { %v14522_v46 = vsel %vm2343_vm5, %v2346_v41, %v2349_v45  ;;  %8579 = vcosq.f32 %v14511_v16  ;;  %v4977_v39 = vsel %vm4975_vm11, %v4976_v54, %v14490_v42  ;;  %v5717_v33 = vsel %vm5716_vm9, %v5715_v62, 0 }
 0x563   : > { %v14526_v7 = vmul.f32 %v3227_v11, %v3225_v29  ;;  %v14528_v14 = vadd.s32 3, %v3234_v59  ;;  %v4978_v56 = vadd.s32 %v4977_v39, %v4973_v19  ;;  %v5719_v22 = vand.u32 31, %v5717_v33 }
 0x564   : > { %v4011_v0 = vand.u32 2147483647, %v4010_v51  ;;  %v4013_v36 = vcvt.s32.f32 %v4006_v60  ;;  %v14530_v27 = vsel %vm7516_vm2, 0, %v7515_v15  ;;  %v5063_v8 = vmul.f32 %v14427_v24, %v7588_v2 }
 0x565   : > { %vm7568_vm8 = vcmp.lt.s32.totalorder %v7567_v52, 0  ;;  %v4979_v23 = vadd.s32 536870912, %v4978_v56  ;;  %v5712_v9 = vand.u32 8388607, %v15176_v25  ;;  %v5720_v40 = vsub.s32 32, %v5719_v22 }
 0x566   : > { %v5718_v44 = vshrl.u32 %v5717_v33, 5  ;;  %v5722_v13 = vshll.u32 %v15252_v1, %v5719_v22  ;;  %v5725_v17 = vshll.u32 %v15208_v57, %v5719_v22  ;;  %v5731_v42 = vshll.u32 %v15210_v5, %v5719_v22 }
 0x567   : > { %v14538_v20 = vshrl.u32 %v4979_v23, 30  ;;  %v5723_v15 = vshrl.u32 %v15208_v57, %v5720_v40  ;;  %v5726_v24 = vshrl.u32 %v15209_v49, %v5720_v40  ;;  %v5728_v50 = vshll.u32 %v15209_v49, %v5719_v22 }
 0x568   : > { %v5729_v35 = vshrl.u32 %v15210_v5, %v5720_v40  ;;  %v5732_v48 = vshrl.u32 %v15225_v12, %v5720_v40  ;;  %v5734_v41 = vshll.u32 %v15225_v12, %v5719_v22  ;;  %v5735_v18 = vshrl.u32 %v15257_v55, %v5720_v40 }
 0x569   : > { %v14548_v45 = vmul.f32 %v4013_v36, %v4011_v0  ;;  %v4091_v11 = vadd.s32 %v14269_v21, %v14277_v37  ;;  %v4107_v29 = vsub.s32 32, %v14530_v27  ;;  %v4981_v19 = vshll.u32 %v14538_v20, 30 }
 0x56a   : > { %v14555_v62 = vsel %vm7568_vm8, 0, %v7567_v52  ;;  %v14557_v59 = vadd.f32 %v7596_v28, %v5063_v8  ;;  %v5713_v60 = vor.u32 8388608, %v5712_v9  ;;  %v5733_v51 = vor.u32 %v5732_v48, %v5731_v42 }
 0x56b   : > { %v14559_v54 = vsub.s32 %v4978_v56, %v4981_v19  ;;  %v5721_v2 = vshrl.u32 %v15252_v1, %v5720_v40  ;;  %v5724_v39 = vor.u32 %v5723_v15, %v5722_v13  ;;  %v5727_v33 = vor.u32 %v5726_v24, %v5725_v17 }
 0x56c   : > { %v14562_v22 = vpop.eup %8579  ;;  %v5730_v21 = vor.u32 %v5729_v35, %v5728_v50  ;;  %v5736_v37 = vor.u32 %v5735_v18, %v5734_v41  ;;  %vm5737_vm6 = vcmp.lt.s32.totalorder %v5718_v44, 1  ;;  %vm5740_vm15 = vcmp.lt.s32.totalorder %v5718_v44, 4 }
 0x56d   : > { %v4111_v0 = vsub.s32 4294967266, %v14530_v27  ;;  %v4890_v52 = vsub.s32 4294967266, %v14555_v62  ;;  %v4984_v36 = vsub.s32 0, %v14559_v54  ;;  %vm5739_vm7 = vcmp.lt.s32.totalorder %v5718_v44, 3 }
 0x56e   : > { %vm3933_vm14 = vcmp.lt.s32.totalorder %v13909_v32, 0  ;;  %v5742_v56 = vsel %vm5740_vm15, %v5730_v21, 2102212464  ;;  %v5746_v8 = vsel %vm5740_vm15, %v5733_v51, 920167782  ;;  %v5753_v23 = vshll.u32 %v5713_v60, 8 }
 0x56f   : > { %v5812_v9 = vand.u32 2139095040, %v14557_v59  ;;  %v7570_v40 = vmin.u32 %v4984_v36, %v14559_v54  ;;  %vm5738_vm4 = vcmp.lt.s32.totalorder %v5718_v44, 2  ;;  %v5741_v13 = vsel %vm5737_vm6, %v5721_v2, %v5724_v39 }
 0x570   : > { %v5745_v17 = vsel %vm5737_vm6, %v5724_v39, %v5727_v33  ;;  %v5743_v42 = vsel %vm5739_vm7, %v5727_v33, %v5742_v56  ;;  %v5747_v28 = vsel %vm5739_vm7, %v5730_v21, %v5746_v8  ;;  %v5749_v15 = vsel %vm5737_vm6, %v5727_v33, %v5730_v21 }
 0x571   : > { %v5750_v24 = vsel %vm5740_vm15, %v5736_v37, 1326507024  ;;  %v4112_v50 = vadd.s32 127, %v4111_v0  ;;  %v4870_v35 = vadd.s32 %v14366_v38, %v14374_v43  ;;  %v4886_v48 = vsub.s32 32, %v14555_v62 }
 0x572   : > { %v4891_v41 = vadd.s32 127, %v4890_v52  ;;  %v15356_v18 = vand.u32 2147483647, %v13909_v32  ;;  %v4986_v60 = vclz %v7570_v40  ;;  %v5748_v2 = vsel %vm5738_vm4, %v5745_v17, %v5747_v28 }
 0x573   : > { %v5751_v39 = vsel %vm5739_vm7, %v5733_v51, %v5750_v24  ;;  %v5813_v33 = vshrl.u32 %v5812_v9, 23  ;;  %v5744_v21 = vsel %vm5738_vm4, %v5741_v13, %v5743_v42  ;;  %v15175_v36 = vand.u32 2147483647, %v14557_v59 }
 0x574   : > { %vm14583_vm13 = vcmp.le.f32.partialorder %v15356_v18, 0.7853982  ;;  %v5752_v37 = vsel %vm5738_vm4, %v5749_v15, %v5751_v39  ;;  %v14591_v38 = vmul.u32.u64.low %v5753_v23, %v5748_v2  ;;  %v14592_v43 = vmul.u32.u64.high %v5753_v23, %v5748_v2, %v14591_v38 }
 0x575   : > { %v14595_v0 = vmul.u32.u64.low %v5753_v23, %v5752_v37  ;;  %v14596_v52 = vmul.u32.u64.high %v5753_v23, %v5752_v37, %v14595_v0  ;;  %v7625_v56 = vadd.s32 4294967169, %v5813_v33  ;;  %v4015_v8 = vxor.u32 2147483648, %v14548_v45 }
 0x576   : > { %v4017_v40 = vsub.s32 4, %v14240_v53  ;;  %v4108_v51 = vshll.u32 %v14421_v30, %v14530_v27  ;;  %v4109_v9 = vshrl.u32 %v4091_v11, %v4107_v29  ;;  %v4113_v44 = vshll.u32 %v4112_v50, 23 }
 0x577   : > { %v7571_v13 = vadd.s32 4294967294, %v4986_v60  ;;  %v5760_v17 = vmul.u32 %v5753_v23, %v5744_v21  ;;  %v5819_v42 = vadd.s32 1, %v7625_v56  ;;  %v4887_v28 = vshll.u32 %v14448_v47, %v14555_v62 }
 0x578   : > { %v4888_v15 = vshrl.u32 %v4870_v35, %v4886_v48  ;;  %v4892_v24 = vshll.u32 %v4891_v41, 23  ;;  %v5763_v18 = vadd.s32 1, %v14592_v43  ;;  %v3229_v2 = vxor.u32 2147483648, %v14526_v7 }
 0x579   : > { %vm5762_vm3 = vc.u32 %v14596_v52, %v14591_v38  ;;  %v5816_v30 = vand.u32 8388607, %v15175_v36  ;;  %vm5820_vm5 = vcmp.gt.s32.totalorder %v5819_v42, 0  ;;  %v4016_v27 = vsel %vm3933_vm14, %v4015_v8, %v14548_v45 }
 0x57a   : > { %v14617_v47 = vsel %vm3933_vm14, %v4017_v40, %v14240_v53  ;;  %v14619_v11 = vor.u32 %v4109_v9, %v4108_v51  ;;  %v5764_v29 = vsel %vm5762_vm3, %v5763_v18, %v14592_v43  ;;  %v14622_v62 = vor.u32 4788187, %v4113_v44 }
 0x57b   : > { %vm7572_vm11 = vcmp.lt.s32.totalorder %v7571_v13, 0  ;;  %v5765_v23 = vadd.s32 %v5764_v29, %v5760_v17  ;;  %v5821_v50 = vsel %vm5820_vm5, %v5819_v42, 0  ;;  %8581 = vsinq.f32 %v14511_v16 }
 0x57c   : > { %v3141_v35 = vxor.u32 2147483648, %v14562_v22  ;;  %v14626_v48 = vor.u32 %v4888_v15, %v4887_v28  ;;  %v14628_v45 = vor.u32 4788187, %v4892_v24  ;;  %v14633_v53 = vsel %vm3147_vm10, %v3229_v2, %v14526_v7 }
 0x57d   : > { %v5766_v41 = vadd.s32 536870912, %v5765_v23  ;;  %v5817_v60 = vor.u32 8388608, %v5816_v30  ;;  %v5823_v39 = vand.u32 31, %v5821_v50  ;;  %v14638_v33 = vsel %vm14583_vm13, %v13909_v32, %v4016_v27 }
 0x57e   : > { %v4020_v16 = vsel %vm14583_vm13, 0, %v14617_v47  ;;  %v4117_v21 = vcvt.s32.f32 %v14619_v11  ;;  %v4989_v37 = vsel %vm7572_vm11, 0, %v7571_v13  ;;  %v4115_v43 = vand.u32 2147483647, %v14622_v62 }
 0x57f   : > { %v4974_v7 = vadd.s32 %v14489_v34, %v14486_v63  ;;  %v14647_v0 = vshrl.u32 %v5766_v41, 30  ;;  %v5824_v56 = vsub.s32 32, %v5823_v39  ;;  %v4894_v8 = vand.u32 2147483647, %v14628_v45  ;;  %v15364_v45 = vld [vmem:[#allocation37_spill] sm:$0xff] }
 0x580   : > { %v4896_v40 = vcvt.s32.f32 %v14626_v48  ;;  %v4990_v51 = vsub.s32 32, %v4989_v37  ;;  %v6083_v9 = vand.u32 4294901760, %v10885_v31  ;;  %v4994_v44 = vsub.s32 4294967266, %v4989_v37 }
 0x581   : > { %v5768_v17 = vshll.u32 %v14647_v0, 30  ;;  %v5822_v42 = vshrl.u32 %v5821_v50, 5  ;;  %v14653_v13 = vshll.u32 %v5817_v60, 8  ;;  %v5826_v28 = vshll.u32 %v15252_v1, %v5823_v39 }
 0x582   : > { %v5827_v63 = vshrl.u32 %v15208_v57, %v5824_v56  ;;  %v5829_v34 = vshll.u32 %v15208_v57, %v5823_v39  ;;  %v5830_v15 = vshrl.u32 %v15209_v49, %v5824_v56  ;;  %v5832_v18 = vshll.u32 %v15209_v49, %v5823_v39 }
 0x583   : > { %v14659_v24 = vsub.s32 %v5765_v23, %v5768_v17  ;;  %v5833_v2 = vshrl.u32 %v15210_v5, %v5824_v56  ;;  %v5835_v30 = vshll.u32 %v15210_v5, %v5823_v39  ;;  %v4991_v27 = vshll.u32 %v14559_v54, %v4989_v37 }
 0x584   : > { %v4992_v29 = vshrl.u32 %v4974_v7, %v4990_v51  ;;  %v5761_v50 = vadd.s32 %v14591_v38, %v14596_v52  ;;  %v6084_v57 = vsub.f32 %v10885_v31, %v6083_v9  ;;  %v14670_v41 = vadd.s32 127, %v4994_v44 }
 0x585   : > { %v5771_v23 = vsub.s32 0, %v14659_v24  ;;  %v5836_v49 = vshrl.u32 %v15225_v12, %v5824_v56  ;;  %v5838_v60 = vshll.u32 %v15225_v12, %v5823_v39  ;;  %v14675_v17 = vpop.eup %8581  ;;  %v5825_v5 = vshrl.u32 %v15252_v1, %v5824_v56 }
 0x586   : > { %v5828_v54 = vor.u32 %v5827_v63, %v5826_v28  ;;  %v5831_v37 = vor.u32 %v5830_v15, %v5829_v34  ;;  %v5839_v38 = vshrl.u32 %v15257_v55, %v5824_v56  ;;  %v5834_v7 = vor.u32 %v5833_v2, %v5832_v18 }
 0x587   : > { %v7622_v52 = vmin.u32 %v5771_v23, %v14659_v24  ;;  %v5837_v51 = vor.u32 %v5836_v49, %v5835_v30  ;;  %vm5841_vm10 = vcmp.lt.s32.totalorder %v5822_v42, 1  ;;  %vm5843_vm2 = vcmp.lt.s32.totalorder %v5822_v42, 3 }
 0x588   : > { %v5840_v44 = vor.u32 %v5839_v38, %v5838_v60  ;;  %vm5844_vm9 = vcmp.lt.s32.totalorder %v5822_v42, 4  ;;  %v6090_v36 = vand.u32 4294901760, %v10949_v10  ;;  %v14681_v25 = vor.u32 %v4992_v29, %v4991_v27 }
 0x589   : > { %v5773_v12 = vclz %v7622_v52  ;;  %vm5842_vm8 = vcmp.lt.s32.totalorder %v5822_v42, 2  ;;  %v6085_v39 = vand.u32 4294901760, %v6084_v57  ;;  %v5845_v1 = vsel %vm5841_vm10, %v5825_v5, %v5828_v54 }
 0x58a   : > { %v5846_v28 = vsel %vm5844_vm9, %v5834_v7, 2102212464  ;;  %v5849_v55 = vsel %vm5841_vm10, %v5828_v54, %v5831_v37  ;;  %v5850_v56 = vsel %vm5844_vm9, %v5837_v51, 920167782  ;;  %v5853_v18 = vsel %vm5841_vm10, %v5831_v37, %v5834_v7 }
 0x58b   : > { %v7623_v63 = vadd.s32 4294967294, %v5773_v12  ;;  %v5847_v34 = vsel %vm5843_vm2, %v5831_v37, %v5846_v28  ;;  %v5851_v15 = vsel %vm5843_vm2, %v5834_v7, %v5850_v56  ;;  %v4996_v2 = vshll.u32 %v14670_v41, 23  ;;  %v15359_v7 = vld [vmem:[#allocation30_spill] sm:$0xff] }
 0x58c   : > { %v5852_v30 = vsel %vm5842_vm8, %v5849_v55, %v5851_v15  ;;  %v5854_v27 = vsel %vm5844_vm9, %v5840_v44, 1326507024  ;;  %v6091_v29 = vsub.f32 %v10949_v10, %v6090_v36  ;;  %v5848_v5 = vsel %vm5842_vm8, %v5845_v1, %v5847_v34  ;;  %v15360_v55 = vld [vmem:[#allocation32_spill] sm:$0xff] }
 0x58d   : > { %vm7624_vm6 = vcmp.lt.s32.totalorder %v7623_v63, 0  ;;  %v5855_v57 = vsel %vm5843_vm2, %v5837_v51, %v5854_v27  ;;  %v14698_v23 = vmul.u32.u64.low %v14653_v13, %v5852_v30  ;;  %v14699_v49 = vmul.u32.u64.high %v14653_v13, %v5852_v30, %v14698_v23 }
 0x58e   : > { %v5776_v60 = vsel %vm7624_vm6, 0, %v7623_v63  ;;  %v5856_v41 = vsel %vm5842_vm8, %v5853_v18, %v5855_v57  ;;  %v6092_v54 = vand.u32 4294901760, %v6091_v29  ;;  %v6097_v44 = vand.u32 4294901760, %v15359_v7  ;;  %v15361_v18 = vld [vmem:[#allocation33_spill] sm:$0xff]  ;;  %v15362_v57 = vld [vmem:[#allocation35_spill] sm:$0xff] }
 0x58f   : > { %v5777_v37 = vsub.s32 32, %v5776_v60  ;;  %v5778_v38 = vshll.u32 %v14659_v24, %v5776_v60  ;;  %v5781_v52 = vsub.s32 4294967266, %v5776_v60  ;;  %v6104_v56 = vand.u32 4294901760, %v15360_v55 }
 0x590   : > { %v14707_v12 = vmul.u32.u64.low %v14653_v13, %v5856_v41  ;;  %v14708_v51 = vmul.u32.u64.high %v14653_v13, %v5856_v41, %v14707_v12  ;;  %v14710_v28 = vpack.c.bf16 %v6092_v54, %v6085_v39  ;;  %v5867_v42 = vadd.s32 1, %v14699_v49 }
 0x591   : > { %v5779_v63 = vshrl.u32 %v5761_v50, %v5777_v37  ;;  %v5782_v15 = vadd.s32 127, %v5781_v52  ;;  %v6098_v1 = vsub.f32 %v15359_v7, %v6097_v44  ;;  %vm3140_vm15 = vcmp.eq.s32.totalorder %v14409_v6, 2  ;;  %v15363_v52 = vld [vmem:[#allocation36_spill] sm:$0xff] }
 0x592   : > { %vm4816_vm7 = vcmp.lt.s32.totalorder %v14209_v61, 0  ;;  %v5864_v24 = vmul.u32 %v14653_v13, %v5848_v5  ;;  %v6105_v34 = vsub.f32 %v15360_v55, %v6104_v56  ;;  %v6111_v30 = vand.u32 4294901760, %v15361_v18 }
 0x593   : > { %v7999_v39 = vpack.c.bf16 %v10949_v10, %v10885_v31  ;;  %v5780_v27 = vor.u32 %v5779_v63, %v5778_v38  ;;  %v5783_v50 = vshll.u32 %v5782_v15, 23  ;;  %v6099_v29 = vand.u32 4294901760, %v6098_v1  ;;  %v15390_v31 = vld [vmem:[#allocation26_spill] sm:$0xff]  ;;  %v15391_v10 = vld [vmem:[#allocation29_spill] sm:$0xff] }
 0x594   : > { %v6118_v60 = vand.u32 4294901760, %v15362_v57  ;;  %vm3137_vm14 = vcmp.eq.s32.totalorder %v14409_v6, 0  ;;  %8583 = vcosq.f32 %v14638_v33  ;;  %v4997_v41 = vor.u32 4788187, %v4996_v2 }
 0x595   : > { %vm5866_vm4 = vc.u32 %v14708_v51, %v14698_v23  ;;  %v6106_v13 = vand.u32 4294901760, %v6105_v34  ;;  %v4118_v5 = vmul.f32 %v4117_v21, %v4115_v43  ;;  %v4897_v54 = vmul.f32 %v4896_v40, %v4894_v8  ;;  %v14870_v8 = vpop.f32.mrb[0].mxu0 }
 0x596   : > { %v5784_v37 = vor.u32 4788187, %v5783_v50  ;;  %v5868_v38 = vsel %vm5866_vm4, %v5867_v42, %v14699_v49  ;;  %vm2340_vm3 = vweird.f32 %v15363_v52  ;;  %v5787_v2 = vcvt.s32.f32 %v5780_v27 }
 0x597   : > { %v5869_v12 = vadd.s32 %v5868_v38, %v5864_v24  ;;  %v14737_v63 = vpack.c.bf16 %v6106_v13, %v6099_v29  ;;  %v6112_v15 = vsub.f32 %v15361_v18, %v6111_v30  ;;  %v5000_v62 = vcvt.s32.f32 %v14681_v25 }
 0x598   : > { %v5785_v11 = vand.u32 2147483647, %v5784_v37  ;;  %v6119_v21 = vsub.f32 %v15362_v57, %v6118_v60  ;;  %v8002_v48 = vpack.c.bf16 %v15360_v55, %v15359_v7  ;;  %vm3136_vm5 = vcmp.lt.s32.totalorder %v14409_v6, 2  ;;  %v15392_v7 = vld [vmem:[#allocation31_spill] sm:$0xff]  ;;  %v15393_v55 = vld [vmem:[#allocation34_spill] sm:$0xff] }
 0x599   : > { %v15365_v43 = vand.u32 2147483647, %v15364_v45  ;;  %v4998_v40 = vand.u32 2147483647, %v4997_v41  ;;  %v5870_v49 = vadd.s32 536870912, %v5869_v12  ;;  %v6113_v42 = vand.u32 4294901760, %v6112_v15 }
 0x59a   : > { %v8005_v25 = vpack.c.bf16 %v15362_v57, %v15361_v18  ;;  %8585 = vsinq.f32 %v14638_v33  ;;  %v4898_v1 = vxor.u32 2147483648, %v4897_v54  ;;  %v6120_v24 = vand.u32 4294901760, %v6119_v21  ;;  %v15371_v15 = vld [vmem:[#allocation43_spill] sm:$0xff] }
 0x59b   : > { %vm14747_vm11 = vcmp.le.f32.partialorder %v15365_v43, 0.7853982  ;;  %v14758_v34 = vpack.c.bf16 %v6090_v36, %v6083_v9  ;;  %v5788_v27 = vmul.f32 %v5787_v2, %v5785_v11  ;;  %v14760_v50 = vshrl.u32 %v5870_v49, 30  ;;  %v7361_v2 = vld [vmem:[%s9295_s20 + $0x70] sm:$0xff] }
 0x59c   : > { %v14762_v29 = vpack.c.bf16 %v6104_v56, %v6097_v44  ;;  %v14764_v41 = vpack.c.bf16 %v6118_v60, %v6111_v30  ;;  %v3138_v13 = vxor.u32 2147483648, %v14675_v17  ;;  %v3233_v33 = vsel %vm14464_vm12, %v13759_v3, %v14633_v53  ;;  %v15394_v18 = vld [vmem:[#allocation27_spill] sm:$0xff] }
 0x59d   : > { %vm4037_vm10 = vcmp.lt.s32.totalorder %v15364_v45, 0  ;;  %v14772_v37 = vpack.c.bf16 %v6120_v24, %v6113_v42  ;;  %v14775_v36 = vand.u32 3, %v14528_v14  ;;  %v4119_v9 = vxor.u32 2147483648, %v4118_v5  ;;  %v15374_v42 = vld [vmem:[#allocation38_spill] sm:$0xff] }
 0x59e   : > { %v5001_v38 = vmul.f32 %v5000_v62, %v4998_v40  ;;  %v5872_v44 = vshll.u32 %v14760_v50, 30  ;;  %v3142_v56 = vsel %vm3140_vm15, %v3141_v35, %v14675_v17  ;;  %v4024_v4 = vadd.s32 3, %v4020_v16  ;;  %v14795_v60 = vpop.eup %8583  ;;  %v15372_v16 = vld [vmem:[#allocation39_spill] sm:$0xff] }
 0x59f   : > { %v15368_v53 = vand.u32 2147483647, %v14209_v61  ;;  %v4899_v30 = vsel %vm4816_vm7, %v4898_v1, %v4897_v54  ;;  %8587 = vcosq.f32 %v3233_v33  ;;  %v4900_v35 = vsub.s32 4, %v15371_v15 }
 0x5a0   : > { %v5789_v17 = vxor.u32 2147483648, %v5788_v27  ;;  %v14799_v19 = vsub.s32 %v5869_v12, %v5872_v44  ;;  %v3139_v47 = vsel %vm3137_vm14, %v14562_v22, %v3138_v13  ;;  %8589 = vsinq.f32 %v3233_v33  ;;  %v15373_v22 = vld [vmem:[#allocation42_spill] sm:$0xff] }
 0x5a1   : > { %vm14789_vm12 = vcmp.le.f32.partialorder %v15368_v53, 0.7853982  ;;  %v4121_v62 = vsub.s32 4, %v15372_v16  ;;  %vm5707_vm13 = vcmp.lt.s32.totalorder %v14446_v58, 0  ;;  %v4120_v54 = vsel %vm4037_vm10, %v4119_v9, %v4118_v5 }
 0x5a2   : > { %v4902_v11 = vsel %vm14789_vm12, %v14209_v61, %v4899_v30  ;;  %v5002_v21 = vxor.u32 2147483648, %v5001_v38  ;;  %v5875_v12 = vsub.s32 0, %v14799_v19  ;;  %v14815_v43 = vsel %vm2340_vm3, nan, %v14522_v46 }
 0x5a3   : > { %v14818_v40 = vmul.f32 %v7361_v2, %v15373_v22  ;;  %v14820_v49 = vand.u32 3, %v4024_v4  ;;  %vm4920_vm2 = vcmp.lt.s32.totalorder %v15374_v42, 0  ;;  %v4901_v5 = vsel %vm4816_vm7, %v4900_v35, %v15371_v15 }
 0x5a4   : > { %v15375_v1 = vand.u32 2147483647, %v14446_v58  ;;  %v5790_v46 = vsel %vm5707_vm13, %v5789_v17, %v5788_v27  ;;  %v7626_v52 = vmin.u32 %v5875_v12, %v14799_v19  ;;  %v8586_v13 = vpop.eup %8585  ;;  %v3143_v33 = vsel %vm3136_vm5, %v3139_v47, %v3142_v56 }
 0x5a5   : > { %v4122_v9 = vsel %vm4037_vm10, %v4121_v62, %v15372_v16  ;;  %v4123_v44 = vsel %vm14747_vm11, %v15364_v45, %v4120_v54  ;;  %8591 = vcosq.f32 %v4902_v11  ;;  %vm3133_vm8 = vweird.f32 %v13702_v26 }
 0x5a6   : > { %vm14828_vm9 = vcmp.le.f32.partialorder %v15375_v1, 0.7853982  ;;  %vm3244_vm6 = vcmp.eq.s32.totalorder %v14775_v36, 2  ;;  %8593 = vsinq.f32 %v4902_v11  ;;  %v15378_v27 = vand.u32 2147483647, %v15374_v42 }
 0x5a7   : > { %v5003_v6 = vsel %vm4920_vm2, %v5002_v21, %v5001_v38  ;;  %v5877_v56 = vclz %v7626_v52  ;;  %v4903_v53 = vsel %vm14789_vm12, 0, %v4901_v5  ;;  %v5004_v30 = vsub.s32 4, %v14538_v20  ;;  %v7973_v5 = vpop.f32.mrb[1].mxu0 }
 0x5a8   : > { %vm14847_vm15 = vcmp.le.f32.partialorder %v15378_v27, 0.7853982  ;;  %v5791_v2 = vsub.s32 4, %v14647_v0  ;;  %v5793_v15 = vsel %vm14828_vm9, %v14446_v58, %v5790_v46  ;;  %vm4030_vm7 = vcmp.eq.s32.totalorder %v14820_v49, 2 }
 0x5a9   : > { %v4124_v35 = vsel %vm14747_vm11, 0, %v4122_v9  ;;  %8595 = vcosq.f32 %v4123_v44  ;;  %v7627_v17 = vadd.s32 4294967294, %v5877_v56  ;;  %v4028_v38 = vxor.u32 2147483648, %v8586_v13  ;;  %v8588_v16 = vpop.eup %8587 }
 0x5aa   : > { %v4031_v47 = vxor.u32 2147483648, %v14795_v60  ;;  %8597 = vsinq.f32 %v4123_v44  ;;  %v5006_v14 = vsel %vm14847_vm15, %v15374_v42, %v5003_v6  ;;  %vm3240_vm14 = vcmp.lt.s32.totalorder %v14775_v36, 2  ;;  %v8590_v11 = vpop.eup %8589 }
 0x5ab   : > { %v4907_v62 = vadd.s32 3, %v4903_v53  ;;  %8599 = vcosq.f32 %v5793_v15  ;;  %v5865_v54 = vadd.s32 %v14698_v23, %v14708_v51  ;;  %vm7628_vm4 = vcmp.lt.s32.totalorder %v7627_v17, 0 }
 0x5ac   : > { %vm4023_vm3 = vweird.f32 %v13909_v32  ;;  %v5005_v21 = vsel %vm4920_vm2, %v5004_v30, %v14538_v20  ;;  %v5792_v12 = vsel %vm5707_vm13, %v5791_v2, %v14647_v0  ;;  %8601 = vsinq.f32 %v5793_v15 }
 0x5ad   : > { %v5880_v22 = vsel %vm7628_vm4, 0, %v7627_v17  ;;  %8603 = vcosq.f32 %v5006_v14  ;;  %v3245_v46 = vxor.u32 2147483648, %v8588_v16  ;;  %vm4027_vm5 = vcmp.eq.s32.totalorder %v14820_v49, 0 }
 0x5ae   : > { %v5881_v1 = vsub.s32 32, %v5880_v22  ;;  %v5882_v23 = vshll.u32 %v14799_v19, %v5880_v22  ;;  %v5885_v51 = vsub.s32 4294967266, %v5880_v22  ;;  %v4128_v52 = vadd.s32 3, %v4124_v35 }
 0x5af   : > { %8605 = vsinq.f32 %v5006_v14  ;;  %v3242_v9 = vxor.u32 2147483648, %v8590_v11  ;;  %v5794_v20 = vsel %vm14828_vm9, 0, %v5792_v12  ;;  %v8592_v0 = vpop.eup %8591  ;;  %vm3241_vm11 = vcmp.eq.s32.totalorder %v14775_v36, 0 }
 0x5b0   : > { %v5883_v44 = vshrl.u32 %v5865_v54, %v5881_v1  ;;  %v5886_v27 = vadd.s32 127, %v5885_v51  ;;  %vm4026_vm10 = vcmp.lt.s32.totalorder %v14820_v49, 2  ;;  %v4032_v19 = vsel %vm4030_vm7, %v4031_v47, %v8586_v13  ;;  %v8594_v56 = vpop.eup %8593 }
 0x5b1   : > { %v5007_v6 = vsel %vm14847_vm15, 0, %v5005_v21  ;;  %v4029_v53 = vsel %vm4027_vm5, %v14795_v60, %v4028_v38  ;;  %v4908_v30 = vand.u32 3, %v4907_v62  ;;  %v14892_v15 = vsel %vm3133_vm8, nan, %v3143_v33 }
 0x5b2   : > { %v5884_v2 = vor.u32 %v5883_v44, %v5882_v23  ;;  %v5887_v24 = vshll.u32 %v5886_v27, 23  ;;  %v3246_v35 = vsel %vm3244_vm6, %v3245_v46, %v8590_v11  ;;  %v14896_v17 = vand.u32 3, %v4128_v52 }
 0x5b3   : > { %v5798_v14 = vadd.s32 3, %v5794_v20  ;;  %v8596_v13 = vpop.eup %8595  ;;  %v3243_v47 = vsel %vm3241_vm11, %v8588_v16, %v3242_v9  ;;  %v5011_v4 = vadd.s32 3, %v5007_v6  ;;  %v4033_v60 = vsel %vm4026_vm10, %v4029_v53, %v4032_v19 }
 0x5b4   : > { %v5888_v54 = vor.u32 4788187, %v5887_v24  ;;  %v5891_v21 = vcvt.s32.f32 %v5884_v2  ;;  %v8598_v12 = vpop.eup %8597  ;;  %vm4906_vm12 = vweird.f32 %v14209_v61  ;;  %v4911_v26 = vxor.u32 2147483648, %v8594_v56 }
 0x5b5   : > { %v4914_v33 = vxor.u32 2147483648, %v8592_v0  ;;  %v8600_v38 = vpop.eup %8599  ;;  %vm4910_vm13 = vcmp.eq.s32.totalorder %v4908_v30, 0  ;;  %vm4913_vm2 = vcmp.eq.s32.totalorder %v4908_v30, 2  ;;  %v5895_v11 = vsub.s32 4, %v14760_v50 }
 0x5b6   : > { %v5889_v62 = vand.u32 2147483647, %v5888_v54  ;;  %v8602_v22 = vpop.eup %8601  ;;  %vm3237_vm9 = vweird.f32 %v13759_v3  ;;  %v3247_v16 = vsel %vm3240_vm14, %v3243_v47, %v3246_v35  ;;  %vm4131_vm8 = vcmp.eq.s32.totalorder %v14896_v17, 0  ;;  %v7418_v54 = vld [vmem:[%s9295_s20 + $0xb0] sm:$0xff] }
 0x5b7   : > { %vm4134_vm6 = vcmp.eq.s32.totalorder %v14896_v17, 2  ;;  %v5799_v49 = vand.u32 3, %v5798_v14  ;;  %v8604_v5 = vpop.eup %8603  ;;  %v4034_v1 = vsel %vm4023_vm3, nan, %v4033_v60  ;;  %vm4130_vm15 = vcmp.lt.s32.totalorder %v14896_v17, 2  ;;  %v7362_v14 = vld [vmem:[%s9295_s20 + $0x78] sm:$0xff]  ;;  %v3271_v60 = vld [vmem:[%s9298_s12 + $0x30] sm:$0xff] }
 0x5b8   : > { %vm4909_vm7 = vcmp.lt.s32.totalorder %v4908_v30, 2  ;;  %v5012_v23 = vand.u32 3, %v5011_v4  ;;  %v5892_v51 = vmul.f32 %v5891_v21, %v5889_v62  ;;  %v4912_v52 = vsel %vm4910_vm13, %v8592_v0, %v4911_v26  ;;  %v7523_v26 = vld [vmem:[%s9298_s12 + $0x70] sm:$0xff] }
 0x5b9   : > { %v8606_v46 = vpop.eup %8605  ;;  %v4915_v36 = vsel %vm4913_vm2, %v4914_v33, %v8594_v56  ;;  %v15381_v9 = vand.u32 2147483647, %v14557_v59  ;;  %vm5811_vm4 = vcmp.lt.s32.totalorder %v14557_v59, 0  ;;  %v5802_v32 = vxor.u32 2147483648, %v8602_v22 }
 0x5ba   : > { %v5805_v44 = vxor.u32 2147483648, %v8600_v38  ;;  %v5893_v27 = vxor.u32 2147483648, %v5892_v51  ;;  %v5896_v19 = vsel %vm5811_vm4, %v5895_v11, %v14760_v50  ;;  %v4132_v6 = vxor.u32 2147483648, %v8598_v12 }
 0x5bb   : > { %vm14914_vm14 = vcmp.le.f32.partialorder %v15381_v9, 0.7853982  ;;  %v4135_v53 = vxor.u32 2147483648, %v8596_v13  ;;  %vm5801_vm3 = vcmp.eq.s32.totalorder %v5799_v49, 0  ;;  %vm5804_vm5 = vcmp.eq.s32.totalorder %v5799_v49, 2 }
 0x5bc   : > { %vm5014_vm11 = vcmp.eq.s32.totalorder %v5012_v23, 0  ;;  %v5015_v0 = vxor.u32 2147483648, %v8606_v46  ;;  %v5018_v56 = vxor.u32 2147483648, %v8604_v5  ;;  %v5894_v2 = vsel %vm5811_vm4, %v5893_v27, %v5892_v51 }
 0x5bd   : > { %v4916_v24 = vsel %vm4909_vm7, %v4912_v52, %v4915_v36  ;;  %vm5017_vm10 = vcmp.eq.s32.totalorder %v5012_v23, 2  ;;  %v5897_v35 = vsel %vm14914_vm14, %v14557_v59, %v5894_v2  ;;  %v5898_v50 = vsel %vm14914_vm14, 0, %v5896_v19  ;;  %v7579_v52 = vld [vmem:[%s9298_s12 + $0xb0] sm:$0xff] }
 0x5be   : > { %vm5800_vm13 = vcmp.lt.s32.totalorder %v5799_v49, 2  ;;  %v5803_v47 = vsel %vm5801_vm3, %v8600_v38, %v5802_v32  ;;  %v5806_v4 = vsel %vm5804_vm5, %v5805_v44, %v8602_v22  ;;  %8607 = vcosq.f32 %v5897_v35 }
 0x5bf   : > { %v4133_v21 = vsel %vm4131_vm8, %v8596_v13, %v4132_v6  ;;  %v4136_v30 = vsel %vm4134_vm6, %v4135_v53, %v8598_v12  ;;  %vm5013_vm2 = vcmp.lt.s32.totalorder %v5012_v23, 2  ;;  %8609 = vsinq.f32 %v5897_v35  ;;  %v15384_v13 = vld [vmem:[#allocation40_spill] sm:$0xff] }
 0x5c0   : > { %v4917_v33 = vsel %vm4906_vm12, nan, %v4916_v24  ;;  %v5016_v62 = vsel %vm5014_vm11, %v8604_v5, %v5015_v0  ;;  %v5019_v38 = vsel %vm5017_vm10, %v5018_v56, %v8606_v46  ;;  %v5902_v11 = vadd.s32 3, %v5898_v50  ;;  %v7419_v46 = vld [vmem:[%s9295_s20 + $0xb8] sm:$0xff] }
 0x5c1   : > { %v2359_v22 = vmul.f32 %v7362_v14, %v14815_v43  ;;  %v2366_v51 = vadd.f32 %v14818_v40, %v15384_v13  ;;  %vm5797_vm8 = vweird.f32 %v14446_v58  ;;  %v5807_v12 = vsel %vm5800_vm13, %v5803_v47, %v5806_v4  ;;  %v7580_v14 = vld [vmem:[%s9298_s12 + $0xb8] sm:$0xff] }
 0x5c2   : > { %v3248_v61 = vsel %vm3237_vm9, nan, %v3247_v16  ;;  %v3255_v5 = vmul.f32 %v7418_v54, %v14892_v15  ;;  %vm4127_vm12 = vweird.f32 %v15364_v45  ;;  %vm5010_vm6 = vweird.f32 %v15374_v42  ;;  %v15385_v16 = vld [vmem:[#allocation41_spill] sm:$0xff] }
 0x5c3   : > { %v4137_v43 = vsel %vm4130_vm15, %v4133_v21, %v4136_v30  ;;  %v4145_v40 = vmul.f32 %v4034_v1, %v3271_v60  ;;  %v5020_v58 = vsel %vm5013_vm2, %v5016_v62, %v5019_v38  ;;  %v5028_v49 = vmul.f32 %v7523_v26, %v4917_v33  ;;  %v3272_v15 = vld [vmem:[%s9298_s12 + $0x38] sm:$0xff]  ;;  %v5975_v1 = vld [vmem:[%s9288_s30 + $0x30] sm:$0xff] }
 0x5c4   : > { %v5808_v36 = vsel %vm5797_vm8, nan, %v5807_v12  ;;  %v5903_v3 = vand.u32 3, %v5902_v11  ;;  %v2367_v9 = vadd.f32 %v2359_v22, %v15385_v16  ;;  %v3256_v20 = vmul.f32 %v7419_v46, %v3248_v61  ;;  %v7524_v45 = vld [vmem:[%s9298_s12 + $0x78] sm:$0xff]  ;;  %s8812_s12 = scalar_lea.vmem %s15028_s11, 16 }
 0x5c5   : > { %v4138_v32 = vsel %vm4127_vm12, nan, %v4137_v43  ;;  %v5021_v44 = vsel %vm5010_vm6, nan, %v5020_v58  ;;  %v3263_v42 = vadd.f32 %v3255_v5, %v2366_v51  ;;  %v5036_v27 = vadd.f32 %v5028_v49, %v4145_v40  ;;  %v5976_v4 = vld [vmem:[%s9288_s30 + $0x38] sm:$0xff]  ;;  %s15396_s30 = sld [smem:[#allocation46_spill]]  ;;  %p8813_p8 = scmp.ne.s32.totalorder %s15028_s11, %s8812_s12 }
 0x5c6   : > { %v5919_v19 = vmul.f32 %v7579_v52, %v5808_v36  ;;  %vm5908_vm9 = vcmp.eq.s32.totalorder %v5903_v3, 2  ;;  %v4146_v6 = vmul.f32 %v4138_v32, %v3272_v15  ;;  %v5029_v53 = vmul.f32 %v7524_v45, %v5021_v44  ;;  %v15387_v46 = vld [vmem:[#allocation28_spill] sm:$0xff]  ;;  %p8820_p10 = scmp.lt.s32.totalorder %s8818_s23, %s8812_s12 }
 0x5c7   : > { %vm5905_vm15 = vcmp.eq.s32.totalorder %v5903_v3, 0  ;;  %v3264_v56 = vadd.f32 %v3256_v20, %v2367_v9  ;;  %vm5904_vm7 = vcmp.lt.s32.totalorder %v5903_v3, 2  ;;  %vm5901_vm14 = vweird.f32 %v14557_v59  ;;  %p8814_p12 = pnand %p8813_p8, %p15398_p9 }
 0x5c8   : > { %v8608_v17 = vpop.eup %8607  ;;  %v5927_v35 = vadd.f32 %v5919_v19, %v5036_v27  ;;  %v5983_v50 = vmul.f32 %v5975_v1, %v3263_v42  ;;  %v5037_v54 = vadd.f32 %v5029_v53, %v4146_v6  ;;  %v15386_v5 = vmov 0.0|0.0   ;;  %p8821_p11 = por %p8820_p10, %p8819_p0 }
 0x5c9   : > { %v8610_v23 = vpop.eup %8609  ;;  %v5909_v0 = vxor.u32 2147483648, %v8608_v17  ;;  %v5984_v26 = vmul.f32 %v5976_v4, %v3264_v56  ;;  %v15388_v58 = vmov 0.0   ;;  %p8815_p6 = pneg %p8814_p12 }
 0x5ca   : > { %v5906_v2 = vxor.u32 2147483648, %v8610_v23  ;;  %v5991_v33 = vmul.f32 %v5983_v50, %v5927_v35 }
 0x5cb   : > { %v5910_v24 = vsel %vm5908_vm9, %v5909_v0, %v8610_v23  ;;  %s15397_s1 = smov %s15396_s30  ;;  %s15026_s20 = scalar_lea.hbm %s15396_s30, %s7635_s22 }
 0x5cc   : > { %v5907_v47 = vsel %vm5905_vm15, %v8608_v17, %v5906_v2  ;;  %v6016_v11 = vand.u32 4294901760, %v5991_v33  ;;  %p8822_p5 = pnand %p8821_p11, %p8815_p6 }
 0x5cd   : > { %v5911_v21 = vsel %vm5904_vm7, %v5907_v47, %v5910_v24 }
 0x5ce   : > { %v5912_v30 = vsel %vm5901_vm14, nan, %v5911_v21  ;;  %v6124_v13 = vsub.f32 %v5991_v33, %v6016_v11 }
 0x5cf   : > { %v5920_v60 = vmul.f32 %v7580_v14, %v5912_v30 }
 0x5d0   : > { %v6125_v59 = vand.u32 4294901760, %v6124_v13 }
 0x5d1   : > { %v5928_v62 = vadd.f32 %v5920_v60, %v5037_v54 }
 0x5d2   : > { %v6126_v43 = vsub.f32 %v6124_v13, %v6125_v59 }
 0x5d3   : > { %v5992_v38 = vmul.f32 %v5984_v26, %v5928_v62 }
 0x5d4   : > { %v6127_v49 = vand.u32 4294901760, %v6126_v43 }
 0x5d5   : > { %v6019_v22 = vand.u32 4294901760, %v5992_v38 }
 0x5d7   : > { %v7984_v51 = vpack.c.bf16 %v6019_v22, %v6016_v11  ;;  %v6131_v12 = vsub.f32 %v5992_v38, %v6019_v22 }
 0x5d9   : > { %7985 = vmatpush3.bf16.msra.mxu1 %v7984_v51  ;;  %v6132_v61 = vand.u32 4294901760, %v6131_v12 }
 0x5da   : > { %7986 = vmatprep.subr.bf16.mxu1 %v15386_v5 }
 0x5db   : > { %v6133_v40 = vsub.f32 %v6131_v12, %v6132_v61 }
 0x5dc   : > { %7763 = vmatmul.mubr.f32.vlgmr.msra.gmra.mrb[0].mxu1 %v15387_v46 }
 0x5dd   : > { %7988 = vmatpush3.bf16.msra.mxu1 %v14710_v28  ;;  %7781 = vmatprep.mubr.msk.f32.mxu1 %vm8902_vm0, %v15388_v58  ;;  %v6134_v52 = vand.u32 4294901760, %v6133_v40  ;;  %v15389_v28 = vmov 1.0  }
 0x5de   : > { %7989 = vmatprep.subr.bf16.mxu1 %v15386_v5 }
 0x5df   : > { %v7996_v36 = vpack.c.bf16 %v6134_v52, %v6127_v49 }
 0x5e1   : > { %7991 = vmatpush3.bf16.msra.mxu1 %v14737_v63  ;;  %v8008_v63 = vpack.c.bf16 %v6131_v12, %v6124_v13 }
 0x5e2   : > { %7992 = vmatprep.subr.bf16.mxu1 %v15386_v5 }
 0x5e5   : > { %7994 = vmatpush3.bf16.msra.mxu1 %v14772_v37 }
 0x5e6   : > { %7995 = vmatprep.subr.bf16.mxu1 %v15386_v5 }
 0x5e9   : > { %7997 = vmatpush3.bf16.msra.mxu1 %v7996_v36 }
 0x5ea   : > { %7998 = vmatprep.subr.bf16.mxu1 %v15386_v5 }
 0x5ec   : > { %7782 = vmatmul.mubr.msk.f32.vlgmr.msra.gmra.mrb[0].mxu1 %vm5993_vm1, %v15389_v28 }
 0x5ed   : > { %8000 = vmatpush3.bf16.msra.mxu1 %v7999_v39  ;;  %7800 = vmatprep.mubr.msk.f32.mxu1 %vm8902_vm0, %v15388_v58  ;;  %v8032_v39 = vpack.c.bf16 %v6132_v61, %v6125_v59 }
 0x5ee   : > { %8001 = vmatprep.subr.bf16.mxu1 %v15386_v5 }
 0x5f1   : > { %8003 = vmatpush3.bf16.msra.mxu1 %v8002_v48 }
 0x5f2   : > { %8004 = vmatprep.subr.bf16.mxu1 %v15386_v5 }
 0x5f5   : > { %8006 = vmatpush3.bf16.msra.mxu1 %v8005_v25 }
 0x5f6   : > { %8007 = vmatprep.subr.bf16.mxu1 %v15386_v5 }
 0x5f9   : > { %8009 = vmatpush3.bf16.msra.mxu1 %v8008_v63 }
 0x5fa   : > { %8010 = vmatprep.subr.bf16.mxu1 %v15386_v5 }
 0x5fc   : > { %7801 = vmatmul.mubr.f32.vlgmr.msra.gmra.mrb[0].mxu1 %v15390_v31 }
 0x5fd   : > { %8012 = vmatpush3.bf16.msra.mxu1 %v15391_v10  ;;  %7819 = vmatprep.mubr.msk.f32.mxu1 %vm8902_vm0, %v15388_v58 }
 0x5fe   : > { %8013 = vmatprep.subr.bf16.mxu1 %v15386_v5 }
 0x601   : > { %8015 = vmatpush3.bf16.msra.mxu1 %v15392_v7 }
 0x602   : > { %8016 = vmatprep.subr.bf16.mxu1 %v15386_v5 }
 0x605   : > { %8018 = vmatpush3.bf16.msra.mxu1 %v15393_v55 }
 0x606   : > { %8019 = vmatprep.subr.bf16.mxu1 %v15386_v5 }
 0x609   : > { %8021 = vmatpush3.bf16.msra.mxu1 %v7984_v51 }
 0x60a   : > { %8022 = vmatprep.subr.bf16.mxu1 %v15386_v5 }
 0x60c   : > { %7820 = vmatmul.mubr.f32.vlgmr.msra.gmra.mrb[0].mxu1 %v15394_v18 }
 0x60d   : > { %8024 = vmatpush3.bf16.msra.mxu1 %v14758_v34  ;;  %7838 = vmatprep.mubr.msk.f32.mxu1 %vm8902_vm0, %v15388_v58 }
 0x60e   : > { %8025 = vmatprep.subr.bf16.mxu1 %v15386_v5 }
 0x611   : > { %8027 = vmatpush3.bf16.msra.mxu1 %v14762_v29 }
 0x612   : > { %8028 = vmatprep.subr.bf16.mxu1 %v15386_v5 }
 0x615   : > { %8030 = vmatpush3.bf16.msra.mxu1 %v14764_v41 }
 0x616   : > { %8031 = vmatprep.subr.bf16.mxu1 %v15386_v5 }
 0x619   : > { %8033 = vmatpush3.bf16.msra.mxu1 %v8032_v39 }
 0x61a   : > { %8034 = vmatprep.subr.bf16.mxu1 %v15386_v5 }
 0x61c   : > { %7839 = vmatmul.mubr.msk.f32.vlgmr.msra.gmra.mrb[0].mxu1 %vm5993_vm1, %v15389_v28 }
 0x61d   : > { %8036 = vmatpush3.bf16.msra.mxu1 %v15391_v10  ;;  %7857 = vmatprep.mubr.msk.f32.mxu1 %vm8902_vm0, %v15388_v58 }
 0x61e   : > { %8037 = vmatprep.subr.bf16.mxu1 %v15386_v5 }
 0x621   : > { %8039 = vmatpush3.bf16.msra.mxu1 %v15392_v7 }
 0x622   : > { %8040 = vmatprep.subr.bf16.mxu1 %v15386_v5 }
 0x625   : > { %8042 = vmatpush3.bf16.msra.mxu1 %v15393_v55 }
 0x626   : > { %8043 = vmatprep.subr.bf16.mxu1 %v15386_v5 }
 0x629   : > { %8045 = vmatpush3.bf16.msra.mxu1 %v7984_v51 }
 0x62c   : > { %7858 = vmatmul.mubr.msk.f32.vlgmr.msra.gmra.mrb[0].mxu1 %vm5993_vm1, %v15389_v28 }
 0x6ff   : > { %v6530_v57 = vpop.f32.mrb[0].mxu1 }
 0x700   : > { %v8118_v48 = vadd.f32 %v14870_v8, %v6530_v57  ;;  %v7859_v25 = vpop.f32.mrb[1].mxu1 }
 0x702   : > { %v7071_v34 = vmul.f32 0.5, %v8118_v48 }
 0x704   : > { %7072 = vst [vmem:[%s570_s26] sm:$0x1] %v7071_v34 }
 0x705   : > { %8825 = shalt.err (!%p8822_p5)
}
 0x706   : > { %s8826_s27 = scalar_lea.hbm %s15026_s20, 16  ;;  %s8830_s15 = scalar_lea.hbm %s15397_s1, 32 }
 0x707   : > { %p8827_p1 = scmp.ne.s32.totalorder %s15026_s20, %s8826_s27  ;;  %p8831_p3 = scmp.lt.u32.totalorder %s15026_s20, %s15397_s1 }
 0x708   : > { %p8832_p4 = scmp.lt.u32.totalorder %s8830_s15, %s8826_s27  ;;  %p8834_p8 = scmp.lt.u32.totalorder %s8826_s27, %s15026_s20 }
 0x709   : > { %p8828_p7 = pnand %p8827_p1, %p15398_p9 }
 0x70a   : > { %p8833_p13 = por %p8832_p4, %p8831_p3 }
 0x70b   : > { %p8829_p2 = pneg %p8828_p7 }
 0x70c   : > { %p8835_p12 = por %p8834_p8, %p8833_p13 }
 0x70e   : > { %p8836_p6 = pnand %p8835_p12, %p8829_p2 }
 0x710   : > { %8839 = shalt.err (!%p8836_p6)
}
 0x711   : > { %8346 = dma.vmem_to_hbm [thread:$0]  (%p15398_p9), %s15028_s11, 16, %s15026_s20, %s7074_s16  }
 0x712 PF: > { %s15399_s18 = sld [smem:[#allocation19_spill]]  ;;  %s15400_s3 = sld [smem:[#allocation25_spill]] }
 0x713   : > { %s15401_s9 = sld [smem:[#allocation21_spill]] }
 0x718   : > { %s7098_s22 = sand.u32 1, %s15399_s18   ;;  %p15402_p0 = scmp.ne.s32.totalorder %s15400_s3, 0 }
 0x719   : > { %p15403_p10 = scmp.ge.s32.totalorder %s15401_s9, 2  ;;  %s7099_s26 = scalar_lea.sflag [#allocation4], %s7098_s22 }
 0x71b   : > { %p8368_p11 = pnand %p15403_p10, %p15402_p0 }
 0x71d   : > { %8873 = dma.done.wait (!%p8368_p11), %s7099_s26, 16  }
 0x71e   : > { %8875 = vsyncadd (!%p8368_p11), %s7099_s26, 4294967280  ;;  %s15404_s12 = sld [smem:[#allocation22_spill]]  ;;  %s15405_s21 = sld [smem:[#allocation20_spill]] }
 0x71f   : > { %s15406_s11 = sld [smem:[#allocation23_spill]]  ;;  %s15407_s30 = smov %s8882_s10 }
 0x724   : > { %p31_p5 = scmp.ge.s32.totalorder %s15404_s12, 4   ;;  %s15408_s10 = smov %s15405_s21 }
 0x726   :  { %33 = sbr.rel (!%p31_p5) target bundleno = 15 (0xf), region = 187 }
 0x72d   :  { %7103 = vsyncpa [#allocation3], 1 }
 0x72e   :  { %7105 = vsyncpa [#allocation3 + $0x1], 1 }
 0x72f   :  { %7106 = vsyncpa [#allocation6], 1 }
 0x730   :  { %7108 = vsyncpa [#allocation6 + $0x1], 1 }
 0x731   :  { %7109 = vsyncpa [#allocation9], 1 }
 0x732   :  { %7111 = vsyncpa [#allocation9 + $0x1], 1 }
 0x733   :  { %7112 = vsyncpa [#allocation12], 1 }
 0x734   :  { %7114 = vsyncpa [#allocation12 + $0x1], 1 }
 0x735   :  { %7115 = vsyncpa [#allocation4], 1 }
 0x736   :  { %7117 = vsyncpa [#allocation4 + $0x1], 1 }

</bundles_post_ra>
